<compile_context>
chip_gen: v7x
topology: tpu7x:2x2x1
jax: 0.10.0
libtpu: 0.0.40
codegen_flags: <defaults>
</compile_context>

<pallas_src>
import jax
import jax.numpy as jnp
from jax.experimental import pallas as pl
from jax.experimental.pallas import tpu as pltpu

N = 2          # batch size used in the demo
EPS = 1e-5     # BatchNorm eps


def _generator_kernel(noise_ref,           # (N, 128)
                      fw1_ref, fb1_ref,    # (128, 1024), (1, 1024)
                      fw2_ref, fb2_ref,    # (1024, 2048), (1, 2048)  [cols NHWC-permuted]
                      w1_ref, b1_ref,      # (1152, 64), (1, 64)      [block im2col deconv1 + BN1]
                      w2e_ref, w2o_ref,    # (128, 28) x 2            [phase-decomposed deconv2 + BN2]
                      b2_ref,              # (1, 1)
                      out_ref):            # (2, 14*N, 28)
    f32 = jnp.float32
    nb = noise_ref.shape[0]

    def leaky(v):
        return jnp.where(v > 0, v, 0.2 * v)

    # ---- full_connection: Linear(128->1024) -> LeakyReLU -> Linear(1024->2048)
    a1 = jnp.dot(noise_ref[...], fw1_ref[...], preferred_element_type=f32) + fb1_ref[...]
    a1 = leaky(a1)
    x2 = jnp.dot(a1, fw2_ref[...], preferred_element_type=f32) + fb2_ref[...]   # (N, 2048)

    # ---- rearrange to rows=(h, n), lanes=(w*8 + c): 16 lane-aligned slices, one concat.
    x2r = jnp.concatenate([x2[:, 128 * h:128 * (h + 1)] for h in range(16)], axis=0)  # (16N, 128)

    # ---- ConvTranspose2d(8->4, k3, s1, p1) + BN1 + LeakyReLU as ONE lane-dense matmul.
    zl = jnp.zeros((16 * nb, 8), f32)
    xp = jnp.concatenate([zl, x2r, zl], axis=1)              # (16N, 144): zero-pad W
    zr = jnp.zeros((nb, 144), f32)
    xp = jnp.concatenate([zr, xp, zr], axis=0)               # (18N, 144): zero-pad H
    taps = []
    for di in range(3):
        rows = xp[di * nb:(di + 16) * nb, :]                 # (16N, 144): rows (h+di, n)
        for dj in range(3):
            taps.append(rows[:, 8 * dj:8 * dj + 128])        # (16N, 128): shift W by dj
    l1 = jnp.concatenate(taps, axis=1)                       # (16N, 1152) lane-dense im2col
    h1 = leaky(jnp.dot(l1, w1_ref[...], preferred_element_type=f32) + b1_ref[...])  # (16N, 64)

    # ---- ConvTranspose2d(4->1, k4, s2, p3) + BN2 + LeakyReLU + Tanh.
    # Even output rows (y=2p) read input rows {p, p+1}; odd rows (y=2p+1) read {p+1, p+2}.
    r0 = h1[0 * nb:14 * nb, :]
    r1 = h1[1 * nb:15 * nb, :]
    r2 = h1[2 * nb:16 * nb, :]
    le = jnp.concatenate([r0, r1], axis=1)                   # (14N, 128)
    lo = jnp.concatenate([r1, r2], axis=1)                   # (14N, 128)
    oe = jnp.tanh(leaky(jnp.dot(le, w2e_ref[...], preferred_element_type=f32) + b2_ref[...]))
    oo = jnp.tanh(leaky(jnp.dot(lo, w2o_ref[...], preferred_element_type=f32) + b2_ref[...]))
    out_ref[0] = oe                                          # (14N, 28): cols = rx*14 + q
    out_ref[1] = oo


def _prepare_inputs(noises, params):
    """Constant-fold BN, flip/permute/block the weights (layout plumbing only)."""
    (f1w, f1b, f2w, f2b,
     ct1w, ct1b, g1, be1, m1, v1,
     ct2w, ct2b, g2, be2, m2, v2) = [p.astype(jnp.float32) for p in params]
    f32 = jnp.float32

    fw1 = f1w.T                                                # (128, 1024)
    fb1 = f1b.reshape(1, 1024)

    # Permute fc2 columns: PyTorch NCHW-flat (c*256 + h*16 + w) -> NHWC-flat (h*128 + w*8 + c).
    k = jnp.arange(2048)
    hh, ww, cc = k // 128, (k // 8) % 16, k % 8
    perm = cc * 256 + hh * 16 + ww
    fw2 = f2w.T[:, perm]                                       # (1024, 2048)
    fb2 = f2b[perm].reshape(1, 2048)

    # deconv1 == 3x3 SAME conv with spatially flipped kernel; fold inference-mode BN1.
    s1 = g1 / jnp.sqrt(v1 + EPS)                               # (4,)
    wstd = jnp.flip(ct1w, axis=(2, 3))                         # (8,4,3,3) [ci,co,di,dj]
    wstd = jnp.transpose(wstd, (2, 3, 0, 1)).reshape(9, 8, 4)  # [tap, ci, co]
    wstd = wstd * s1                                           # fold BN scale into co
    # Block weight: row = 128*tap + 8*w_in + ci, col = 4*w_out + co, nonzero iff w_in == w_out.
    w1blk = jnp.einsum('tic,wv->twivc', wstd,
                       jnp.eye(16, dtype=f32)).reshape(1152, 64)
    b1 = s1 * ct1b + (be1 - m1 * s1)                           # folded conv bias + BN shift
    b1t = jnp.tile(b1, 16).reshape(1, 64)

    # deconv2 (stride 2) phase-decomposed over output parity; fold inference-mode BN2.
    s2 = (g2 / jnp.sqrt(v2 + EPS))[0]
    w2 = ct2w[:, 0] * s2                                       # (4,4,4) [ci, ki, kj]
    # parity -> ((input offset, kernel index), ...); order matches the kernel's lane concat.
    tap = {0: ((0, 3), (1, 1)), 1: ((1, 2), (2, 0))}

    def blk(ry, rx):
        parts = []
        for (_dh, ki) in tap[ry]:                              # a = 0, 1 (row half of L)
            acc = jnp.zeros((16, 4, 14), f32)
            for (dw, kj) in tap[rx]:
                # j == q + dw diagonal
                acc = acc + jnp.einsum('i,jq->jiq', w2[:, ki, kj],
                                       jnp.eye(16, 14, k=-dw, dtype=f32))
            parts.append(acc)
        return jnp.stack(parts, axis=0).reshape(128, 14)       # [64*a + 4*j + ci, q]

    w2e = jnp.concatenate([blk(0, 0), blk(0, 1)], axis=1)      # (128, 28): even output rows
    w2o = jnp.concatenate([blk(1, 0), blk(1, 1)], axis=1)      # (128, 28): odd output rows
    b2f = (s2 * ct2b + (be2 - m2 * s2)).reshape(1, 1)

    return (noises.astype(f32), fw1, fb1, fw2, fb2, w1blk, b1t, w2e, w2o, b2f)


@jax.jit
def generator_forward(noises, params):
    """noises: (N, 128) float32. Returns fake images of shape (N, 1, 28, 28)."""
    n = noises.shape[0]
    args = _prepare_inputs(noises, params)

    def full_spec(a):
        nd = a.ndim
        return pl.BlockSpec(a.shape, lambda i, nd=nd: (0,) * nd)

    raw = pl.pallas_call(
        _generator_kernel,
        out_shape=jax.ShapeDtypeStruct((2, 14 * n, 28), jnp.float32),
        grid=(1,),
        in_specs=[full_spec(a) for a in args],
        out_specs=pl.BlockSpec((2, 14 * n, 28), lambda i: (0, 0, 0)),
        compiler_params=pltpu.CompilerParams(
            dimension_semantics=("arbitrary",),
            # fc2 weight is 8 MiB (double-buffered by the pipeline); raise above the
            # 16 MiB v5e default.  48 MiB fits comfortably on v5e/v6e/v7x.
            vmem_limit_bytes=48 * 1024 * 1024),
    )(*args)

    # raw[ry, p*N + n, rx*14 + q] == img[n, 2p+ry, 2q+rx]; interleave (layout plumbing).
    img = raw.reshape(2, 14, n, 2, 14)             # (ry, p, n, rx, q)
    img = jnp.transpose(img, (2, 1, 0, 4, 3))      # (n, p, ry, q, rx)
    return img.reshape(n, 28, 28)[:, None, :, :]   # (N, 1, 28, 28)


def reference_forward(noises, params):
    """Pure-JAX reference matching the PyTorch forward (BatchNorm in inference mode)."""
    (f1w, f1b, f2w, f2b,
     ct1w, ct1b, g1, be1, m1, v1,
     ct2w, ct2b, g2, be2, m2, v2) = [p.astype(jnp.float32) for p in params]

    z = noises.astype(jnp.float32) @ f1w.T + f1b
    z = jnp.where(z > 0, z, 0.2 * z)
    x = z @ f2w.T + f2b
    x = x.reshape(-1, 8, 16, 16)

    def conv_transpose(h, w_iohw, b, stride, pad):
        kk = w_iohw.shape[-1]
        w = jnp.flip(w_iohw, (2, 3)).transpose(1, 0, 2, 3)     # IOHW -> OIHW, flipped
        y = jax.lax.conv_general_dilated(
            h, w, window_strides=(1, 1),
            padding=[(kk - 1 - pad, kk - 1 - pad)] * 2,
            lhs_dilation=(stride, stride),
            dimension_numbers=('NCHW', 'OIHW', 'NCHW'))
        return y + b.reshape(1, -1, 1, 1)

    def bn(h, g, be, m, v):
        g = g.reshape(1, -1, 1, 1); be = be.reshape(1, -1, 1, 1)
        m = m.reshape(1, -1, 1, 1); v = v.reshape(1, -1, 1, 1)
        return g * (h - m) / jnp.sqrt(v + EPS) + be

    h = conv_transpose(x, ct1w, ct1b, 1, 1)
    h = bn(h, g1, be1, m1, v1)
    h = jnp.where(h > 0, h, 0.2 * h)
    h = conv_transpose(h, ct2w, ct2b, 2, 3)
    h = bn(h, g2, be2, m2, v2)
    h = jnp.where(h > 0, h, 0.2 * h)
    return jnp.tanh(h)


if __name__ == "__main__":
    key = jax.random.PRNGKey(0)
    ks = jax.random.split(key, 17)
    f32 = jnp.float32
    # Deterministic synthetic parameters (PyTorch-convention shapes).
    params = (
        0.1 * jax.random.normal(ks[0], (1024, 128), f32),    # fc1 weight (out, in)
        0.1 * jax.random.normal(ks[1], (1024,), f32),        # fc1 bias
        0.1 * jax.random.normal(ks[2], (2048, 1024), f32),   # fc2 weight
        0.1 * jax.random.normal(ks[3], (2048,), f32),        # fc2 bias
        0.1 * jax.random.normal(ks[4], (8, 4, 3, 3), f32),   # deconv1 weight (in, out, kh, kw)
        0.1 * jax.random.normal(ks[5], (4,), f32),           # deconv1 bias
        1.0 + 0.1 * jax.random.normal(ks[6], (4,), f32),     # bn1 gamma
        0.1 * jax.random.normal(ks[7], (4,), f32),           # bn1 beta
        0.1 * jax.random.normal(ks[8], (4,), f32),           # bn1 running_mean
        0.5 + jax.random.uniform(ks[9], (4,), f32),          # bn1 running_var
        0.1 * jax.random.normal(ks[10], (4, 1, 4, 4), f32),  # deconv2 weight (in, out, kh, kw)
        0.1 * jax.random.normal(ks[11], (1,), f32),          # deconv2 bias
        1.0 + 0.1 * jax.random.normal(ks[12], (1,), f32),    # bn2 gamma
        0.1 * jax.random.normal(ks[13], (1,), f32),          # bn2 beta
        0.1 * jax.random.normal(ks[14], (1,), f32),          # bn2 running_mean
        0.5 + jax.random.uniform(ks[15], (1,), f32),         # bn2 running_var
    )
    noises = jax.random.normal(ks[16], (N, 128), f32)

    out = jax.block_until_ready(generator_forward(noises, params))
    ref = jax.block_until_ready(reference_forward(noises, params))
    assert out.shape == (N, 1, 28, 28), out.shape
    if not jnp.allclose(out, ref, rtol=1e-3, atol=1e-3):
        err = jnp.max(jnp.abs(out - ref))
        raise AssertionError(f"Pallas kernel mismatch: max abs err = {err}")
    print("KERNEL_OK")
</pallas_src>

<mosaic_0001>
module attributes {stable_mosaic.version = 11 : i64} {
  func.func private @main(%arg0: i32) attributes {dimension_semantics = [#tpu.dimension_semantics<core_parallel>], iteration_bounds = array<i64: 2>, tpu.core_type = #tpu.core_type<sc_scalar_subcore>, window_params = []} {
    return
  }
}

module attributes {stable_mosaic.version = 11 : i64} {
  func.func private @main(%arg0: i32) attributes {dimension_semantics = [#tpu.dimension_semantics<core_parallel>], iteration_bounds = array<i64: 2>, tpu.core_type = #tpu.core_type<sc_scalar_subcore>, window_params = []} {
    return
  }
}

module attributes {stable_mosaic.version = 11 : i64} {
  func.func @_generator_kernel(%arg0: i32, %arg1: memref<2x128xf32, #tpu.memory_space<vmem>>, %arg2: memref<128x1024xf32, #tpu.memory_space<vmem>>, %arg3: memref<1x1024xf32, #tpu.memory_space<vmem>>, %arg4: memref<1024x2048xf32, #tpu.memory_space<vmem>>, %arg5: memref<1x2048xf32, #tpu.memory_space<vmem>>, %arg6: memref<1152x64xf32, #tpu.memory_space<vmem>>, %arg7: memref<1x64xf32, #tpu.memory_space<vmem>>, %arg8: memref<128x28xf32, #tpu.memory_space<vmem>>, %arg9: memref<128x28xf32, #tpu.memory_space<vmem>>, %arg10: memref<1x1xf32, #tpu.memory_space<vmem>>, %arg11: memref<2x28x28xf32, #tpu.memory_space<vmem>>) attributes {dimension_semantics = [#tpu.dimension_semantics<arbitrary>], iteration_bounds = array<i64: 1>, scalar_prefetch = 0 : i64, scratch_operands = 0 : i64, tpu.core_type = #tpu.core_type<tc>, window_params = [{pipeline_mode = #tpu.pipeline_mode<synchronous>, transform_indices = @transform_0, window_bounds = array<i64: 2, 128>}, {pipeline_mode = #tpu.pipeline_mode<synchronous>, transform_indices = @transform_1, window_bounds = array<i64: 128, 1024>}, {pipeline_mode = #tpu.pipeline_mode<synchronous>, transform_indices = @transform_2, window_bounds = array<i64: 1, 1024>}, {pipeline_mode = #tpu.pipeline_mode<synchronous>, transform_indices = @transform_3, window_bounds = array<i64: 1024, 2048>}, {pipeline_mode = #tpu.pipeline_mode<synchronous>, transform_indices = @transform_4, window_bounds = array<i64: 1, 2048>}, {pipeline_mode = #tpu.pipeline_mode<synchronous>, transform_indices = @transform_5, window_bounds = array<i64: 1152, 64>}, {pipeline_mode = #tpu.pipeline_mode<synchronous>, transform_indices = @transform_6, window_bounds = array<i64: 1, 64>}, {pipeline_mode = #tpu.pipeline_mode<synchronous>, transform_indices = @transform_7, window_bounds = array<i64: 128, 28>}, {pipeline_mode = #tpu.pipeline_mode<synchronous>, transform_indices = @transform_8, window_bounds = array<i64: 128, 28>}, {pipeline_mode = #tpu.pipeline_mode<synchronous>, transform_indices = @transform_9, window_bounds = array<i64: 1, 1>}, {pipeline_mode = #tpu.pipeline_mode<synchronous>, transform_indices = @transform_10, window_bounds = array<i64: 2, 28, 28>}]} {
    %c0 = arith.constant 0 : index
    %c0_0 = arith.constant 0 : index
    %0 = vector.load %arg1[%c0, %c0_0] : memref<2x128xf32, #tpu.memory_space<vmem>>, vector<2x128xf32>
    %c0_1 = arith.constant 0 : index
    %c0_2 = arith.constant 0 : index
    %1 = vector.load %arg2[%c0_1, %c0_2] : memref<128x1024xf32, #tpu.memory_space<vmem>>, vector<128x1024xf32>
    %cst = arith.constant dense<0.000000e+00> : vector<2x1024xf32>
    %2 = tpu.matmul %0, %1, %cst {dimension_numbers = #tpu.dot_dimension_numbers<[1], [0], [0], [1], [0, 0, 1, 1], [], []>} : vector<2x128xf32>, vector<128x1024xf32>, vector<2x1024xf32> -> vector<2x1024xf32>
    %c0_3 = arith.constant 0 : index
    %c0_4 = arith.constant 0 : index
    %3 = vector.load %arg3[%c0_3, %c0_4] : memref<1x1024xf32, #tpu.memory_space<vmem>>, vector<1x1024xf32>
    %4 = vector.broadcast %3 : vector<1x1024xf32> to vector<2x1024xf32>
    %5 = arith.addf %2, %4 : vector<2x1024xf32>
    %cst_5 = arith.constant 0.000000e+00 : f32
    %6 = vector.broadcast %cst_5 : f32 to vector<2x1024xf32>
    %7 = arith.cmpf ogt, %5, %6 : vector<2x1024xf32>
    %cst_6 = arith.constant 2.000000e-01 : f32
    %8 = vector.broadcast %cst_6 : f32 to vector<2x1024xf32>
    %9 = arith.mulf %8, %5 : vector<2x1024xf32>
    %10 = arith.select %7, %5, %9 : vector<2x1024xi1>, vector<2x1024xf32>
    %c0_7 = arith.constant 0 : index
    %c0_8 = arith.constant 0 : index
    %11 = vector.load %arg4[%c0_7, %c0_8] : memref<1024x2048xf32, #tpu.memory_space<vmem>>, vector<1024x2048xf32>
    %cst_9 = arith.constant dense<0.000000e+00> : vector<2x2048xf32>
    %12 = tpu.matmul %10, %11, %cst_9 {dimension_numbers = #tpu.dot_dimension_numbers<[1], [0], [0], [1], [0, 0, 1, 1], [], []>} : vector<2x1024xf32>, vector<1024x2048xf32>, vector<2x2048xf32> -> vector<2x2048xf32>
    %c0_10 = arith.constant 0 : index
    %c0_11 = arith.constant 0 : index
    %13 = vector.load %arg5[%c0_10, %c0_11] : memref<1x2048xf32, #tpu.memory_space<vmem>>, vector<1x2048xf32>
    %14 = vector.broadcast %13 : vector<1x2048xf32> to vector<2x2048xf32>
    %15 = arith.addf %12, %14 : vector<2x2048xf32>
    %16 = vector.extract_strided_slice %15 {offsets = [0, 0], sizes = [2, 128], strides = [1, 1]} : vector<2x2048xf32> to vector<2x128xf32>
    %17 = vector.extract_strided_slice %15 {offsets = [0, 128], sizes = [2, 128], strides = [1, 1]} : vector<2x2048xf32> to vector<2x128xf32>
    %18 = vector.extract_strided_slice %15 {offsets = [0, 256], sizes = [2, 128], strides = [1, 1]} : vector<2x2048xf32> to vector<2x128xf32>
    %19 = vector.extract_strided_slice %15 {offsets = [0, 384], sizes = [2, 128], strides = [1, 1]} : vector<2x2048xf32> to vector<2x128xf32>
    %20 = vector.extract_strided_slice %15 {offsets = [0, 512], sizes = [2, 128], strides = [1, 1]} : vector<2x2048xf32> to vector<2x128xf32>
    %21 = vector.extract_strided_slice %15 {offsets = [0, 640], sizes = [2, 128], strides = [1, 1]} : vector<2x2048xf32> to vector<2x128xf32>
    %22 = vector.extract_strided_slice %15 {offsets = [0, 768], sizes = [2, 128], strides = [1, 1]} : vector<2x2048xf32> to vector<2x128xf32>
    %23 = vector.extract_strided_slice %15 {offsets = [0, 896], sizes = [2, 128], strides = [1, 1]} : vector<2x2048xf32> to vector<2x128xf32>
    %24 = vector.extract_strided_slice %15 {offsets = [0, 1024], sizes = [2, 128], strides = [1, 1]} : vector<2x2048xf32> to vector<2x128xf32>
    %25 = vector.extract_strided_slice %15 {offsets = [0, 1152], sizes = [2, 128], strides = [1, 1]} : vector<2x2048xf32> to vector<2x128xf32>
    %26 = vector.extract_strided_slice %15 {offsets = [0, 1280], sizes = [2, 128], strides = [1, 1]} : vector<2x2048xf32> to vector<2x128xf32>
    %27 = vector.extract_strided_slice %15 {offsets = [0, 1408], sizes = [2, 128], strides = [1, 1]} : vector<2x2048xf32> to vector<2x128xf32>
    %28 = vector.extract_strided_slice %15 {offsets = [0, 1536], sizes = [2, 128], strides = [1, 1]} : vector<2x2048xf32> to vector<2x128xf32>
    %29 = vector.extract_strided_slice %15 {offsets = [0, 1664], sizes = [2, 128], strides = [1, 1]} : vector<2x2048xf32> to vector<2x128xf32>
    %30 = vector.extract_strided_slice %15 {offsets = [0, 1792], sizes = [2, 128], strides = [1, 1]} : vector<2x2048xf32> to vector<2x128xf32>
    %31 = vector.extract_strided_slice %15 {offsets = [0, 1920], sizes = [2, 128], strides = [1, 1]} : vector<2x2048xf32> to vector<2x128xf32>
    %32 = tpu.concatenate %16, %17, %18, %19, %20, %21, %22, %23, %24, %25, %26, %27, %28, %29, %30, %31 in 0 : vector<2x128xf32>, vector<2x128xf32>, vector<2x128xf32>, vector<2x128xf32>, vector<2x128xf32>, vector<2x128xf32>, vector<2x128xf32>, vector<2x128xf32>, vector<2x128xf32>, vector<2x128xf32>, vector<2x128xf32>, vector<2x128xf32>, vector<2x128xf32>, vector<2x128xf32>, vector<2x128xf32>, vector<2x128xf32> -> vector<32x128xf32>
    %cst_12 = arith.constant 0.000000e+00 : f32
    %33 = vector.broadcast %cst_12 : f32 to vector<32x8xf32>
    %34 = tpu.concatenate %33, %32, %33 in 1 : vector<32x8xf32>, vector<32x128xf32>, vector<32x8xf32> -> vector<32x144xf32>
    %cst_13 = arith.constant 0.000000e+00 : f32
    %35 = vector.broadcast %cst_13 : f32 to vector<2x144xf32>
    %36 = tpu.concatenate %35, %34, %35 in 0 : vector<2x144xf32>, vector<32x144xf32>, vector<2x144xf32> -> vector<36x144xf32>
    %37 = vector.extract_strided_slice %36 {offsets = [0, 0], sizes = [32, 144], strides = [1, 1]} : vector<36x144xf32> to vector<32x144xf32>
    %38 = vector.extract_strided_slice %37 {offsets = [0, 0], sizes = [32, 128], strides = [1, 1]} : vector<32x144xf32> to vector<32x128xf32>
    %39 = vector.extract_strided_slice %37 {offsets = [0, 8], sizes = [32, 128], strides = [1, 1]} : vector<32x144xf32> to vector<32x128xf32>
    %40 = vector.extract_strided_slice %37 {offsets = [0, 16], sizes = [32, 128], strides = [1, 1]} : vector<32x144xf32> to vector<32x128xf32>
    %41 = vector.extract_strided_slice %36 {offsets = [2, 0], sizes = [32, 144], strides = [1, 1]} : vector<36x144xf32> to vector<32x144xf32>
    %42 = vector.extract_strided_slice %41 {offsets = [0, 0], sizes = [32, 128], strides = [1, 1]} : vector<32x144xf32> to vector<32x128xf32>
    %43 = vector.extract_strided_slice %41 {offsets = [0, 8], sizes = [32, 128], strides = [1, 1]} : vector<32x144xf32> to vector<32x128xf32>
    %44 = vector.extract_strided_slice %41 {offsets = [0, 16], sizes = [32, 128], strides = [1, 1]} : vector<32x144xf32> to vector<32x128xf32>
    %45 = vector.extract_strided_slice %36 {offsets = [4, 0], sizes = [32, 144], strides = [1, 1]} : vector<36x144xf32> to vector<32x144xf32>
    %46 = vector.extract_strided_slice %45 {offsets = [0, 0], sizes = [32, 128], strides = [1, 1]} : vector<32x144xf32> to vector<32x128xf32>
    %47 = vector.extract_strided_slice %45 {offsets = [0, 8], sizes = [32, 128], strides = [1, 1]} : vector<32x144xf32> to vector<32x128xf32>
    %48 = vector.extract_strided_slice %45 {offsets = [0, 16], sizes = [32, 128], strides = [1, 1]} : vector<32x144xf32> to vector<32x128xf32>
    %49 = tpu.concatenate %38, %39, %40, %42, %43, %44, %46, %47, %48 in 1 : vector<32x128xf32>, vector<32x128xf32>, vector<32x128xf32>, vector<32x128xf32>, vector<32x128xf32>, vector<32x128xf32>, vector<32x128xf32>, vector<32x128xf32>, vector<32x128xf32> -> vector<32x1152xf32>
    %c0_14 = arith.constant 0 : index
    %c0_15 = arith.constant 0 : index
    %50 = vector.load %arg6[%c0_14, %c0_15] : memref<1152x64xf32, #tpu.memory_space<vmem>>, vector<1152x64xf32>
    %cst_16 = arith.constant dense<0.000000e+00> : vector<32x64xf32>
    %51 = tpu.matmul %49, %50, %cst_16 {dimension_numbers = #tpu.dot_dimension_numbers<[1], [0], [0], [1], [0, 0, 1, 1], [], []>} : vector<32x1152xf32>, vector<1152x64xf32>, vector<32x64xf32> -> vector<32x64xf32>
    %c0_17 = arith.constant 0 : index
    %c0_18 = arith.constant 0 : index
    %52 = vector.load %arg7[%c0_17, %c0_18] : memref<1x64xf32, #tpu.memory_space<vmem>>, vector<1x64xf32>
    %53 = vector.broadcast %52 : vector<1x64xf32> to vector<32x64xf32>
    %54 = arith.addf %51, %53 : vector<32x64xf32>
    %cst_19 = arith.constant 0.000000e+00 : f32
    %55 = vector.broadcast %cst_19 : f32 to vector<32x64xf32>
    %56 = arith.cmpf ogt, %54, %55 : vector<32x64xf32>
    %cst_20 = arith.constant 2.000000e-01 : f32
    %57 = vector.broadcast %cst_20 : f32 to vector<32x64xf32>
    %58 = arith.mulf %57, %54 : vector<32x64xf32>
    %59 = arith.select %56, %54, %58 : vector<32x64xi1>, vector<32x64xf32>
    %60 = vector.extract_strided_slice %59 {offsets = [0, 0], sizes = [28, 64], strides = [1, 1]} : vector<32x64xf32> to vector<28x64xf32>
    %61 = vector.extract_strided_slice %59 {offsets = [2, 0], sizes = [28, 64], strides = [1, 1]} : vector<32x64xf32> to vector<28x64xf32>
    %62 = vector.extract_strided_slice %59 {offsets = [4, 0], sizes = [28, 64], strides = [1, 1]} : vector<32x64xf32> to vector<28x64xf32>
    %63 = tpu.concatenate %60, %61 in 1 : vector<28x64xf32>, vector<28x64xf32> -> vector<28x128xf32>
    %64 = tpu.concatenate %61, %62 in 1 : vector<28x64xf32>, vector<28x64xf32> -> vector<28x128xf32>
    %c0_21 = arith.constant 0 : index
    %c0_22 = arith.constant 0 : index
    %65 = vector.load %arg8[%c0_21, %c0_22] : memref<128x28xf32, #tpu.memory_space<vmem>>, vector<128x28xf32>
    %cst_23 = arith.constant dense<0.000000e+00> : vector<28x28xf32>
    %66 = tpu.matmul %63, %65, %cst_23 {dimension_numbers = #tpu.dot_dimension_numbers<[1], [0], [0], [1], [0, 0, 1, 1], [], []>} : vector<28x128xf32>, vector<128x28xf32>, vector<28x28xf32> -> vector<28x28xf32>
    %c0_24 = arith.constant 0 : index
    %c0_25 = arith.constant 0 : index
    %67 = vector.load %arg10[%c0_24, %c0_25] : memref<1x1xf32, #tpu.memory_space<vmem>>, vector<1x1xf32>
    %68 = vector.broadcast %67 : vector<1x1xf32> to vector<28x28xf32>
    %69 = arith.addf %66, %68 : vector<28x28xf32>
    %cst_26 = arith.constant 0.000000e+00 : f32
    %70 = vector.broadcast %cst_26 : f32 to vector<28x28xf32>
    %71 = arith.cmpf ogt, %69, %70 : vector<28x28xf32>
    %cst_27 = arith.constant 2.000000e-01 : f32
    %72 = vector.broadcast %cst_27 : f32 to vector<28x28xf32>
    %73 = arith.mulf %72, %69 : vector<28x28xf32>
    %74 = arith.select %71, %69, %73 : vector<28x28xi1>, vector<28x28xf32>
    %75 = math.tanh %74 : vector<28x28xf32>
    %c0_28 = arith.constant 0 : index
    %c0_29 = arith.constant 0 : index
    %76 = vector.load %arg9[%c0_28, %c0_29] : memref<128x28xf32, #tpu.memory_space<vmem>>, vector<128x28xf32>
    %cst_30 = arith.constant dense<0.000000e+00> : vector<28x28xf32>
    %77 = tpu.matmul %64, %76, %cst_30 {dimension_numbers = #tpu.dot_dimension_numbers<[1], [0], [0], [1], [0, 0, 1, 1], [], []>} : vector<28x128xf32>, vector<128x28xf32>, vector<28x28xf32> -> vector<28x28xf32>
    %c0_31 = arith.constant 0 : index
    %c0_32 = arith.constant 0 : index
    %78 = vector.load %arg10[%c0_31, %c0_32] : memref<1x1xf32, #tpu.memory_space<vmem>>, vector<1x1xf32>
    %79 = vector.broadcast %78 : vector<1x1xf32> to vector<28x28xf32>
    %80 = arith.addf %77, %79 : vector<28x28xf32>
    %cst_33 = arith.constant 0.000000e+00 : f32
    %81 = vector.broadcast %cst_33 : f32 to vector<28x28xf32>
    %82 = arith.cmpf ogt, %80, %81 : vector<28x28xf32>
    %cst_34 = arith.constant 2.000000e-01 : f32
    %83 = vector.broadcast %cst_34 : f32 to vector<28x28xf32>
    %84 = arith.mulf %83, %80 : vector<28x28xf32>
    %85 = arith.select %82, %80, %84 : vector<28x28xi1>, vector<28x28xf32>
    %86 = math.tanh %85 : vector<28x28xf32>
    %c0_35 = arith.constant 0 : index
    %c0_36 = arith.constant 0 : index
    %c0_37 = arith.constant 0 : index
    %87 = vector.load %arg11[%c0_35, %c0_36, %c0_37] : memref<2x28x28xf32, #tpu.memory_space<vmem>>, vector<1x28x28xf32>
    %88 = vector.shape_cast %87 : vector<1x28x28xf32> to vector<28x28xf32>
    %89 = vector.shape_cast %75 : vector<28x28xf32> to vector<1x28x28xf32>
    tpu.vector_store %arg11[%c0_35, %c0_36, %c0_37], %89 {strides = array<i32>} : memref<2x28x28xf32, #tpu.memory_space<vmem>>, vector<1x28x28xf32>,
    %c1 = arith.constant 1 : index
    %c0_38 = arith.constant 0 : index
    %c0_39 = arith.constant 0 : index
    %90 = vector.load %arg11[%c1, %c0_38, %c0_39] : memref<2x28x28xf32, #tpu.memory_space<vmem>>, vector<1x28x28xf32>
    %91 = vector.shape_cast %90 : vector<1x28x28xf32> to vector<28x28xf32>
    %92 = vector.shape_cast %86 : vector<28x28xf32> to vector<1x28x28xf32>
    tpu.vector_store %arg11[%c1, %c0_38, %c0_39], %92 {strides = array<i32>} : memref<2x28x28xf32, #tpu.memory_space<vmem>>, vector<1x28x28xf32>,
    return
  }
  func.func @transform_0(%arg0: i32) -> (i32, i32) {
    %c0_i32 = arith.constant 0 : i32
    %c0_i32_0 = arith.constant 0 : i32
    %c0_i32_1 = arith.constant 0 : i32
    return %c0_i32, %c0_i32_0 : i32, i32
  }
  func.func @transform_1(%arg0: i32) -> (i32, i32) {
    %c0_i32 = arith.constant 0 : i32
    %c0_i32_0 = arith.constant 0 : i32
    %c0_i32_1 = arith.constant 0 : i32
    return %c0_i32, %c0_i32_0 : i32, i32
  }
  func.func @transform_2(%arg0: i32) -> (i32, i32) {
    %c0_i32 = arith.constant 0 : i32
    %c0_i32_0 = arith.constant 0 : i32
    %c0_i32_1 = arith.constant 0 : i32
    return %c0_i32, %c0_i32_0 : i32, i32
  }
  func.func @transform_3(%arg0: i32) -> (i32, i32) {
    %c0_i32 = arith.constant 0 : i32
    %c0_i32_0 = arith.constant 0 : i32
    %c0_i32_1 = arith.constant 0 : i32
    return %c0_i32, %c0_i32_0 : i32, i32
  }
  func.func @transform_4(%arg0: i32) -> (i32, i32) {
    %c0_i32 = arith.constant 0 : i32
    %c0_i32_0 = arith.constant 0 : i32
    %c0_i32_1 = arith.constant 0 : i32
    return %c0_i32, %c0_i32_0 : i32, i32
  }
  func.func @transform_5(%arg0: i32) -> (i32, i32) {
    %c0_i32 = arith.constant 0 : i32
    %c0_i32_0 = arith.constant 0 : i32
    %c0_i32_1 = arith.constant 0 : i32
    return %c0_i32, %c0_i32_0 : i32, i32
  }
  func.func @transform_6(%arg0: i32) -> (i32, i32) {
    %c0_i32 = arith.constant 0 : i32
    %c0_i32_0 = arith.constant 0 : i32
    %c0_i32_1 = arith.constant 0 : i32
    return %c0_i32, %c0_i32_0 : i32, i32
  }
  func.func @transform_7(%arg0: i32) -> (i32, i32) {
    %c0_i32 = arith.constant 0 : i32
    %c0_i32_0 = arith.constant 0 : i32
    %c0_i32_1 = arith.constant 0 : i32
    return %c0_i32, %c0_i32_0 : i32, i32
  }
  func.func @transform_8(%arg0: i32) -> (i32, i32) {
    %c0_i32 = arith.constant 0 : i32
    %c0_i32_0 = arith.constant 0 : i32
    %c0_i32_1 = arith.constant 0 : i32
    return %c0_i32, %c0_i32_0 : i32, i32
  }
  func.func @transform_9(%arg0: i32) -> (i32, i32) {
    %c0_i32 = arith.constant 0 : i32
    %c0_i32_0 = arith.constant 0 : i32
    %c0_i32_1 = arith.constant 0 : i32
    return %c0_i32, %c0_i32_0 : i32, i32
  }
  func.func @transform_10(%arg0: i32) -> (i32, i32, i32) {
    %c0_i32 = arith.constant 0 : i32
    %c0_i32_0 = arith.constant 0 : i32
    %c0_i32_1 = arith.constant 0 : i32
    %c0_i32_2 = arith.constant 0 : i32
    return %c0_i32, %c0_i32_0, %c0_i32_1 : i32, i32, i32
  }
}

</mosaic_0001>

<bundles_post_ra>
// kernel: tile.8
= control target key start
LH: loop header
LB: loop body
LE: loop exit
PB: predicated region body
PF: predicated region fallthrough
CT: control target
= control target key end

     0   :  { %s28_s0 = inlined_call_operand.vmem [shape: f32[4], index: 0, kind: input, shape index: {}]   ;;  %s29_s1 = inlined_call_operand.vmem [shape: f32[16,4], index: 1, kind: output, shape index: {}]  }
   0x1   :  { %v4_v0 = vld [vmem:[%s28_s0] ss:$0 sm:$0xff] }
   0x2   :  { %5 = vst [vmem:[%s29_s1] sm:$0xff] %v4_v0  ;;  %8 = vst [vmem:[%s29_s1 + $0x8] sm:$0xff] %v4_v0 }

// kernel: tile.9
= control target key start
LH: loop header
LB: loop body
LE: loop exit
PB: predicated region body
PF: predicated region fallthrough
CT: control target
= control target key end

     0   :  { %s131_s10 = smov 60   ;;  %s132_s11 = smov 52   ;;  %vm3_vm0 = vcmask 31744   ;;  %vm9_vm1 = vcmask 523744   ;;  %vm15_vm2 = vcmask 490944   ;;  %vm21_vm3 = vcmask 458144   ;;  %s207_s0 = inlined_call_operand.vmem [shape: f32[16,4], index: 0, kind: input, shape index: {}]   ;;  %s208_s1 = inlined_call_operand.vmem [shape: f32[1,64], index: 1, kind: output, shape index: {}]  }
   0x1   :  { %v101_v0 = vld [vmem:[%s207_s0 + $0xf] sm:$0x1]   ;;  %v103_v1 = vld [vmem:[%s207_s0 + $0xd] sm:$0x1]   ;;  %v102_v2 = vld [vmem:[%s207_s0 + $0xe] sm:$0x1]  }
   0x2   :  { %7 = vrot.lane.b32.xlu0 %v101_v0, %s131_s10  ;;  %19 = vrot.lane.b32.xlu1 %v103_v1, %s132_s11  ;;  %v104_v3 = vld [vmem:[%s207_s0 + $0xc] sm:$0x1]   ;;  %s133_s16 = smov 56   ;;  %s134_s17 = smov 48   ;;  %v105_v4 = vld [vmem:[%s207_s0 + $0xb] sm:$0x1]  }
   0x3   :  { %v106_v5 = vld [vmem:[%s207_s0 + $0xa] sm:$0x1]   ;;  %v2_v6 = vld [vmem:[%s207_s0] sm:$0x1]   ;;  %s135_s24 = smov 44   ;;  %s136_s25 = smov 40  }
   0x4   :  { %4 = vst.msk [vmem:[#allocation0] sm:$0x1] %vm3_vm0, %v2_v6   ;;  %v107_v7 = vld [vmem:[%s207_s0 + $0x9] sm:$0x1]   ;;  %v108_v8 = vld [vmem:[%s207_s0 + $0x8] sm:$0x1]  }
   0x5   :  { %s137_s30 = smov 36   ;;  %s138_s2 = smov 32   ;;  %v109_v9 = vld [vmem:[%s207_s0 + $0x7] sm:$0x1]   ;;  %v110_v10 = vld [vmem:[%s207_s0 + $0x6] sm:$0x1]  }
   0x6   :  { %13 = vrot.lane.b32.xlu0 %v102_v2, %s133_s16  ;;  %25 = vrot.lane.b32.xlu1 %v104_v3, %s134_s17  ;;  %s139_s7 = smov 28   ;;  %s140_s8 = smov 24   ;;  %v111_v11 = vld [vmem:[%s207_s0 + $0x5] sm:$0x1]   ;;  %v112_v12 = vld [vmem:[%s207_s0 + $0x4] sm:$0x1]  }
   0x7   :  { %s141_s13 = smov 20   ;;  %s142_s14 = smov 16   ;;  %v113_v13 = vld [vmem:[%s207_s0 + $0x3] sm:$0x1]   ;;  %v114_v14 = vld [vmem:[%s207_s0 + $0x2] sm:$0x1]  }
   0x8   :  { %s143_s19 = smov 12   ;;  %s144_s20 = smov 8   ;;  %v115_v15 = vld [vmem:[%s207_s0 + $0x1] sm:$0x1]   ;;  %vm27_vm4 = vcmask 425344   ;;  %vm33_vm5 = vcmask 392544  }
   0x9   :  { %s145_s0 = smov 4   ;;  %vm39_vm6 = vcmask 359744   ;;  %vm45_vm7 = vcmask 326944   ;;  %vm51_vm8 = vcmask 294144   ;;  %vm57_vm9 = vcmask 261344  }
   0xa   :  { %31 = vrot.lane.b32.xlu0 %v105_v4, %s135_s24  ;;  %37 = vrot.lane.b32.xlu1 %v106_v5, %s136_s25  ;;  %vm63_vm10 = vcmask 228544   ;;  %vm69_vm11 = vcmask 195744   ;;  %vm75_vm12 = vcmask 162944   ;;  %vm81_vm13 = vcmask 130144  }
   0xb   :  { %vm87_vm14 = vcmask 97344   ;;  %vm93_vm15 = vcmask 64544  }
   0xe   :  { %43 = vrot.lane.b32.xlu0 %v107_v7, %s137_s30  ;;  %49 = vrot.lane.b32.xlu1 %v108_v8, %s138_s2 }
  0x12   :  { %55 = vrot.lane.b32.xlu0 %v109_v9, %s139_s7  ;;  %61 = vrot.lane.b32.xlu1 %v110_v10, %s140_s8 }
  0x16   :  { %67 = vrot.lane.b32.xlu0 %v111_v11, %s141_s13  ;;  %73 = vrot.lane.b32.xlu1 %v112_v12, %s142_s14 }
  0x1a   :  { %79 = vrot.lane.b32.xlu0 %v113_v13, %s143_s19  ;;  %85 = vrot.lane.b32.xlu1 %v114_v14, %s144_s20 }
  0x1e   :  { %91 = vrot.lane.b32.xlu0 %v115_v15, %s145_s0 }
  0x74   :  { %v8_v16 = vpop.permute.xlu0 %7   ;;  %v20_v17 = vpop.permute.xlu1 %19  }
  0x75   :  { %10 = vst.msk [vmem:[#allocation0] sm:$0x1] %vm9_vm1, %v8_v16  }
  0x78   :  { %v14_v18 = vpop.permute.xlu0 %13   ;;  %v26_v19 = vpop.permute.xlu1 %25  }
  0x79   :  { %16 = vst.msk [vmem:[#allocation0] sm:$0x1] %vm15_vm2, %v14_v18  }
  0x7a   :  { %22 = vst.msk [vmem:[#allocation0] sm:$0x1] %vm21_vm3, %v20_v17  }
  0x7b   :  { %28 = vst.msk [vmem:[#allocation0] sm:$0x1] %vm27_vm4, %v26_v19  }
  0x7c   :  { %v32_v20 = vpop.permute.xlu0 %31   ;;  %v38_v21 = vpop.permute.xlu1 %37  }
  0x7d   :  { %34 = vst.msk [vmem:[#allocation0] sm:$0x1] %vm33_vm5, %v32_v20  }
  0x7e   :  { %40 = vst.msk [vmem:[#allocation0] sm:$0x1] %vm39_vm6, %v38_v21  }
  0x80   :  { %v44_v22 = vpop.permute.xlu0 %43   ;;  %v50_v23 = vpop.permute.xlu1 %49  }
  0x81   :  { %46 = vst.msk [vmem:[#allocation0] sm:$0x1] %vm45_vm7, %v44_v22  }
  0x82   :  { %52 = vst.msk [vmem:[#allocation0] sm:$0x1] %vm51_vm8, %v50_v23  }
  0x84   :  { %v56_v24 = vpop.permute.xlu0 %55   ;;  %v62_v25 = vpop.permute.xlu1 %61  }
  0x85   :  { %58 = vst.msk [vmem:[#allocation0] sm:$0x1] %vm57_vm9, %v56_v24  }
  0x86   :  { %64 = vst.msk [vmem:[#allocation0] sm:$0x1] %vm63_vm10, %v62_v25  }
  0x88   :  { %v68_v26 = vpop.permute.xlu0 %67   ;;  %v74_v27 = vpop.permute.xlu1 %73  }
  0x89   :  { %70 = vst.msk [vmem:[#allocation0] sm:$0x1] %vm69_vm11, %v68_v26  }
  0x8a   :  { %76 = vst.msk [vmem:[#allocation0] sm:$0x1] %vm75_vm12, %v74_v27  }
  0x8c   :  { %v80_v28 = vpop.permute.xlu0 %79   ;;  %v86_v29 = vpop.permute.xlu1 %85  }
  0x8d   :  { %82 = vst.msk [vmem:[#allocation0] sm:$0x1] %vm81_vm13, %v80_v28  }
  0x8e   :  { %88 = vst.msk [vmem:[#allocation0] sm:$0x1] %vm87_vm14, %v86_v29  }
  0x90   :  { %v92_v30 = vpop.permute.xlu0 %91  }
  0x91   :  { %94 = vst.msk [vmem:[#allocation0] sm:$0x1] %vm93_vm15, %v92_v30  }
  0x98   :  { %v98_v31 = vld [vmem:[#allocation0] sm:$0x1] }
  0x99   :  { %100 = vst [vmem:[%s208_s1] sm:$0x1] %v98_v31 }

// kernel: generator_forward.1
= control target key start
LH: loop header
LB: loop body
LE: loop exit
PB: predicated region body
PF: predicated region fallthrough
CT: control target
= control target key end

     0   :  { %s16868_s0 = inlined_call_operand.vmem [shape: f32[2,128], index: 0, kind: input, shape index: {}]   ;;  %s16869_s1 = inlined_call_operand.vmem [shape: f32[128,1024], index: 1, kind: input, shape index: {}]   ;;  %s16870_s2 = inlined_call_operand.vmem [shape: f32[1,1024], index: 2, kind: input, shape index: {}]   ;;  %s16871_s3 = inlined_call_operand.vmem [shape: f32[1024,2048], index: 3, kind: input, shape index: {}]   ;;  %s16872_s4 = inlined_call_operand.hbm [shape: f32[1,2048], index: 4, kind: input, shape index: {}]   ;;  %s16873_s5 = inlined_call_operand.vmem [shape: f32[1152,64], index: 5, kind: input, shape index: {}]   ;;  %s16874_s6 = inlined_call_operand.vmem [shape: f32[1,64], index: 6, kind: input, shape index: {}]   ;;  %s16875_s7 = inlined_call_operand.vmem [shape: f32[128,28], index: 7, kind: input, shape index: {}]   ;;  %s16876_s8 = inlined_call_operand.vmem [shape: f32[128,28], index: 8, kind: input, shape index: {}]   ;;  %s16877_s9 = inlined_call_operand.<no memory space> [shape: f32[1,1], index: 9, kind: input, shape index: {}]   ;;  %s16878_s10 = inlined_call_operand.vmem [shape: f32[2,28,28], index: 10, kind: output, shape index: {}]  }
   0x1   :  { %v15_v0 = vstv %s16877_s9 }
   0x2   :  { %16 = vst [vmem:[#allocation2] sm:$0x1] %v15_v0 }
   0x3   :  { %17 = vsyncpa [#allocation4], 0  ;;  %s9144_s15 = smov [#allocation3]   ;;  %s9120_s19 = scalar_lea.hbm %s16872_s4, 256 }
   0x4   :  { %s32_s16 = sshll.u32 %s9144_s15, 4  ;;  %p9121_p0 = scmp.ne.s32.totalorder %s16872_s4, %s9120_s19  ;;  %s33_s16 = int_to_ptr.vmem [resolvable:$true] %s32_s16 }
   0x5   :  { %p9124_p1 = scmp.lt.u32.totalorder %s9120_s19, %s16872_s4 }
   0x7   :  { %p9126_p2 = pnand %p9124_p1, %p9121_p0 }
   0x9   :  { %9129 = shalt.err (!%p9126_p2)
}
   0xa   :  { %s9130_s9 = scalar_lea.vmem %s33_s16, 256  ;;  %p9135_p4 = scmp.lt.s32.totalorder %s33_s16, %s33_s16 }
   0xb   :  { %p9131_p3 = scmp.ne.s32.totalorder %s33_s16, %s9130_s9  ;;  %p9136_p5 = scmp.lt.s32.totalorder %s9130_s9, %s9130_s9 }
   0xd   :  { %p9137_p6 = por %p9136_p5, %p9135_p4 }
   0xf   :  { %p9138_p7 = pnand %p9137_p6, %p9131_p3 }
  0x11   :  { %9141 = shalt.err (!%p9138_p7)
}
  0x12   :  { %35 = dma.hbm_to_vmem [thread:$0]  %s16872_s4, 256, %s33_s16, [#allocation4]  }
  0x13   :  { %9142 = dma.done.wait [#allocation4], 256  }
  0x14   :  { %9143 = vsyncadd [#allocation4], 4294967040  ;;  %v9145_v1 = vmov 0.0   ;;  %v51_v2 = vld [vmem:[%s16869_s1 + $0x8] sm:$0xff]  ;;  %v50_v4 = vld [vmem:[%s16869_s1] sm:$0xff]  ;;  %vm4968_vm8 = vcmask 1041408  }
  0x15   :  { %284 = vmatprep.mubr.f32.mxu0 %v9145_v1  ;;  %355 = vmatprep.mubr.f32.mxu1 %v9145_v1  ;;  %v59_v3 = vld [vmem:[%s16869_s1 + $0x48] sm:$0xff]  ;;  %v58_v6 = vld [vmem:[%s16869_s1 + $0x40] sm:$0xff]  ;;  %v53_v29 = vld [vmem:[%s16869_s1 + $0x18] sm:$0xff]  ;;  %vm4970_vm9 = vcmask 1043456   ;;  %vm4972_vm10 = vcmask 1045504   ;;  %s9146_s16 = smov 8  }
  0x16   :  { %v6484_v5 = vpack.c.bf16 %v59_v3, %v51_v2  ;;  %v67_v7 = vld [vmem:[%s16869_s1 + $0x88] sm:$0xff]  ;;  %v6486_v9 = vpack.c.bf16 %v58_v6, %v50_v4  ;;  %v66_v11 = vld [vmem:[%s16869_s1 + $0x80] sm:$0xff]  ;;  %v61_v30 = vld [vmem:[%s16869_s1 + $0x58] sm:$0xff]  ;;  %vm4999_vm11 = vcmask 64512   ;;  %s9147_s9 = smov 120   ;;  %vm5059_vm12 = vcmask 982016  }
  0x17   :  { %v75_v8 = vld [vmem:[%s16869_s1 + $0xc8] sm:$0xff]  ;;  %v74_v12 = vld [vmem:[%s16869_s1 + $0xc0] sm:$0xff]  ;;  %v52_v31 = vld [vmem:[%s16869_s1 + $0x10] sm:$0xff]  ;;  %v6516_v33 = vpack.c.bf16 %v61_v30, %v53_v29  ;;  %s9148_s20 = smov 112   ;;  %vm5084_vm14 = vcmask 916480  }
  0x18   :  { %v6488_v10 = vpack.c.bf16 %v75_v8, %v67_v7  ;;  %v83_v13 = vld [vmem:[%s16869_s1 + $0x108] sm:$0xff]  ;;  %6485 = vmatprep.subr.bf16.mxu0 %v6484_v5  ;;  %v6490_v15 = vpack.c.bf16 %v74_v12, %v66_v11  ;;  %v82_v17 = vld [vmem:[%s16869_s1 + $0x100] sm:$0xff]  ;;  %v60_v34 = vld [vmem:[%s16869_s1 + $0x50] sm:$0xff] }
  0x19   :  { %v91_v14 = vld [vmem:[%s16869_s1 + $0x148] sm:$0xff]  ;;  %6487 = vmatpush1.bf16.msra.mxu0 %v6486_v9  ;;  %v90_v18 = vld [vmem:[%s16869_s1 + $0x140] sm:$0xff]  ;;  %v69_v35 = vld [vmem:[%s16869_s1 + $0x98] sm:$0xff]  ;;  %v6518_v38 = vpack.c.bf16 %v60_v34, %v52_v31  ;;  %6517 = vmatprep.subr.bf16.mxu1 %v6516_v33 }
  0x1a   :  { %6489 = vmatprep.subr.bf16.mxu0 %v6488_v10  ;;  %v6492_v16 = vpack.c.bf16 %v91_v14, %v83_v13  ;;  %v99_v19 = vld [vmem:[%s16869_s1 + $0x188] sm:$0xff]  ;;  %v6494_v21 = vpack.c.bf16 %v90_v18, %v82_v17  ;;  %v98_v23 = vld [vmem:[%s16869_s1 + $0x180] sm:$0xff]  ;;  %v77_v36 = vld [vmem:[%s16869_s1 + $0xd8] sm:$0xff] }
  0x1b   :  { %v107_v20 = vld [vmem:[%s16869_s1 + $0x1c8] sm:$0xff]  ;;  %v106_v24 = vld [vmem:[%s16869_s1 + $0x1c0] sm:$0xff]  ;;  %v6520_v39 = vpack.c.bf16 %v77_v36, %v69_v35  ;;  %v68_v40 = vld [vmem:[%s16869_s1 + $0x90] sm:$0xff]  ;;  %6519 = vmatpush1.bf16.msra.mxu1 %v6518_v38 }
  0x1c   :  { %v6496_v22 = vpack.c.bf16 %v107_v20, %v99_v19  ;;  %v115_v25 = vld [vmem:[%s16869_s1 + $0x208] sm:$0xff]  ;;  %v114_v27 = vld [vmem:[%s16869_s1 + $0x200] sm:$0xff]  ;;  %v6498_v32 = vpack.c.bf16 %v106_v24, %v98_v23  ;;  %v76_v41 = vld [vmem:[%s16869_s1 + $0xd0] sm:$0xff] }
  0x1d   :  { %6491 = vmatpush1.bf16.msra.mxu0 %v6490_v15  ;;  %v123_v26 = vld [vmem:[%s16869_s1 + $0x248] sm:$0xff]  ;;  %v122_v28 = vld [vmem:[%s16869_s1 + $0x240] sm:$0xff]  ;;  %v85_v42 = vld [vmem:[%s16869_s1 + $0x118] sm:$0xff]  ;;  %v6522_v46 = vpack.c.bf16 %v76_v41, %v68_v40  ;;  %6521 = vmatprep.subr.bf16.mxu1 %v6520_v39 }
  0x1e   :  { %6493 = vmatprep.subr.bf16.mxu0 %v6492_v16  ;;  %v6500_v37 = vpack.c.bf16 %v123_v26, %v115_v25  ;;  %v131_v43 = vld [vmem:[%s16869_s1 + $0x288] sm:$0xff]  ;;  %v93_v45 = vld [vmem:[%s16869_s1 + $0x158] sm:$0xff]  ;;  %v6502_v47 = vpack.c.bf16 %v122_v28, %v114_v27  ;;  %v130_v48 = vld [vmem:[%s16869_s1 + $0x280] sm:$0xff] }
  0x1f   :  { %v139_v44 = vld [vmem:[%s16869_s1 + $0x2c8] sm:$0xff]  ;;  %v6524_v49 = vpack.c.bf16 %v93_v45, %v85_v42  ;;  %v84_v50 = vld [vmem:[%s16869_s1 + $0x110] sm:$0xff]  ;;  %v138_v53 = vld [vmem:[%s16869_s1 + $0x2c0] sm:$0xff]  ;;  %6523 = vmatpush1.bf16.msra.mxu1 %v6522_v46 }
  0x20   :  { %v92_v51 = vld [vmem:[%s16869_s1 + $0x150] sm:$0xff]  ;;  %v6504_v52 = vpack.c.bf16 %v139_v44, %v131_v43  ;;  %v101_v54 = vld [vmem:[%s16869_s1 + $0x198] sm:$0xff]  ;;  %v147_v56 = vld [vmem:[%s16869_s1 + $0x308] sm:$0xff]  ;;  %v6506_v59 = vpack.c.bf16 %v138_v53, %v130_v48 }
  0x21   :  { %6495 = vmatpush1.bf16.msra.mxu0 %v6494_v21  ;;  %v109_v55 = vld [vmem:[%s16869_s1 + $0x1d8] sm:$0xff]  ;;  %v155_v57 = vld [vmem:[%s16869_s1 + $0x348] sm:$0xff]  ;;  %v6526_v58 = vpack.c.bf16 %v92_v51, %v84_v50  ;;  %v146_v60 = vld [vmem:[%s16869_s1 + $0x300] sm:$0xff]  ;;  %6525 = vmatprep.subr.bf16.mxu1 %v6524_v49 }
  0x22   :  { %6497 = vmatprep.subr.bf16.mxu0 %v6496_v22  ;;  %v6528_v61 = vpack.c.bf16 %v109_v55, %v101_v54  ;;  %v100_v62 = vld [vmem:[%s16869_s1 + $0x190] sm:$0xff]  ;;  %v6508_v0 = vpack.c.bf16 %v155_v57, %v147_v56  ;;  %v154_v2 = vld [vmem:[%s16869_s1 + $0x340] sm:$0xff]  ;;  %v117_v3 = vld [vmem:[%s16869_s1 + $0x218] sm:$0xff] }
  0x23   :  { %v108_v63 = vld [vmem:[%s16869_s1 + $0x1d0] sm:$0xff]  ;;  %v125_v4 = vld [vmem:[%s16869_s1 + $0x258] sm:$0xff]  ;;  %v163_v5 = vld [vmem:[%s16869_s1 + $0x388] sm:$0xff]  ;;  %6527 = vmatpush1.bf16.msra.mxu1 %v6526_v58  ;;  %v6510_v8 = vpack.c.bf16 %v154_v2, %v146_v60 }
  0x24   :  { %v171_v6 = vld [vmem:[%s16869_s1 + $0x3c8] sm:$0xff]  ;;  %v6530_v7 = vpack.c.bf16 %v108_v63, %v100_v62  ;;  %v162_v9 = vld [vmem:[%s16869_s1 + $0x380] sm:$0xff]  ;;  %6529 = vmatprep.subr.bf16.mxu1 %v6528_v61  ;;  %v6532_v10 = vpack.c.bf16 %v125_v4, %v117_v3  ;;  %v116_v11 = vld [vmem:[%s16869_s1 + $0x210] sm:$0xff] }
  0x25   :  { %6499 = vmatpush1.bf16.msra.mxu0 %v6498_v32  ;;  %v124_v12 = vld [vmem:[%s16869_s1 + $0x250] sm:$0xff]  ;;  %v6512_v13 = vpack.c.bf16 %v171_v6, %v163_v5  ;;  %v170_v14 = vld [vmem:[%s16869_s1 + $0x3c0] sm:$0xff]  ;;  %v133_v15 = vld [vmem:[%s16869_s1 + $0x298] sm:$0xff] }
  0x26   :  { %6501 = vmatprep.subr.bf16.mxu0 %v6500_v37  ;;  %v141_v16 = vld [vmem:[%s16869_s1 + $0x2d8] sm:$0xff]  ;;  %v55_v17 = vld [vmem:[%s16869_s1 + $0x28] sm:$0xff]  ;;  %v6534_v19 = vpack.c.bf16 %v124_v12, %v116_v11  ;;  %v6514_v20 = vpack.c.bf16 %v170_v14, %v162_v9  ;;  %v132_v22 = vld [vmem:[%s16869_s1 + $0x290] sm:$0xff] }
  0x27   :  { %v63_v18 = vld [vmem:[%s16869_s1 + $0x68] sm:$0xff]  ;;  %6531 = vmatpush1.bf16.msra.mxu1 %v6530_v7  ;;  %v6536_v21 = vpack.c.bf16 %v141_v16, %v133_v15  ;;  %v140_v23 = vld [vmem:[%s16869_s1 + $0x2d0] sm:$0xff]  ;;  %v149_v24 = vld [vmem:[%s16869_s1 + $0x318] sm:$0xff] }
  0x28   :  { %6533 = vmatprep.subr.bf16.mxu1 %v6532_v10  ;;  %v157_v25 = vld [vmem:[%s16869_s1 + $0x358] sm:$0xff]  ;;  %v6548_v26 = vpack.c.bf16 %v63_v18, %v55_v17  ;;  %v54_v27 = vld [vmem:[%s16869_s1 + $0x20] sm:$0xff]  ;;  %v71_v29 = vld [vmem:[%s16869_s1 + $0xa8] sm:$0xff]  ;;  %v6538_v32 = vpack.c.bf16 %v140_v23, %v132_v22 }
  0x29   :  { %6503 = vmatpush1.bf16.msra.mxu0 %v6502_v47  ;;  %v62_v28 = vld [vmem:[%s16869_s1 + $0x60] sm:$0xff]  ;;  %v79_v30 = vld [vmem:[%s16869_s1 + $0xe8] sm:$0xff]  ;;  %v6540_v33 = vpack.c.bf16 %v157_v25, %v149_v24  ;;  %v148_v34 = vld [vmem:[%s16869_s1 + $0x310] sm:$0xff] }
  0x2a   :  { %6505 = vmatprep.subr.bf16.mxu0 %v6504_v52  ;;  %v9418_v31 = vld [vmem:[%s16868_s0] sm:$0x3]  ;;  %v156_v35 = vld [vmem:[%s16869_s1 + $0x350] sm:$0xff]  ;;  %v165_v36 = vld [vmem:[%s16869_s1 + $0x398] sm:$0xff]  ;;  %v6550_v37 = vpack.c.bf16 %v62_v28, %v54_v27  ;;  %v6552_v39 = vpack.c.bf16 %v79_v30, %v71_v29 }
  0x2b   :  { %6535 = vmatpush1.bf16.msra.mxu1 %v6534_v19  ;;  %v173_v38 = vld [vmem:[%s16869_s1 + $0x3d8] sm:$0xff]  ;;  %v70_v40 = vld [vmem:[%s16869_s1 + $0xa0] sm:$0xff]  ;;  %v87_v42 = vld [vmem:[%s16869_s1 + $0x128] sm:$0xff]  ;;  %v6542_v44 = vpack.c.bf16 %v156_v35, %v148_v34 }
  0x2c   :  { %6537 = vmatprep.subr.bf16.mxu1 %v6536_v21  ;;  %v78_v41 = vld [vmem:[%s16869_s1 + $0xe0] sm:$0xff]  ;;  %v95_v43 = vld [vmem:[%s16869_s1 + $0x168] sm:$0xff]  ;;  %v6544_v45 = vpack.c.bf16 %v173_v38, %v165_v36  ;;  %v164_v46 = vld [vmem:[%s16869_s1 + $0x390] sm:$0xff] }
  0x2d   :  { %6507 = vmatpush1.bf16.msra.mxu0 %v6506_v59  ;;  %v172_v47 = vld [vmem:[%s16869_s1 + $0x3d0] sm:$0xff]  ;;  %v6554_v48 = vpack.c.bf16 %v78_v41, %v70_v40  ;;  %v86_v49 = vld [vmem:[%s16869_s1 + $0x120] sm:$0xff]  ;;  %v6556_v50 = vpack.c.bf16 %v95_v43, %v87_v42  ;;  %v57_v52 = vld [vmem:[%s16869_s1 + $0x38] sm:$0xff] }
  0x2e   :  { %6509 = vmatprep.subr.bf16.mxu0 %v6508_v0  ;;  %v94_v51 = vld [vmem:[%s16869_s1 + $0x160] sm:$0xff]  ;;  %v65_v53 = vld [vmem:[%s16869_s1 + $0x78] sm:$0xff]  ;;  %v103_v54 = vld [vmem:[%s16869_s1 + $0x1a8] sm:$0xff]  ;;  %v6546_v56 = vpack.c.bf16 %v172_v47, %v164_v46 }
  0x2f   :  { %6539 = vmatpush1.bf16.msra.mxu1 %v6538_v32  ;;  %v111_v55 = vld [vmem:[%s16869_s1 + $0x1e8] sm:$0xff]  ;;  %v6558_v57 = vpack.c.bf16 %v94_v51, %v86_v49  ;;  %v102_v58 = vld [vmem:[%s16869_s1 + $0x1a0] sm:$0xff]  ;;  %v6580_v59 = vpack.c.bf16 %v65_v53, %v57_v52  ;;  %v56_v60 = vld [vmem:[%s16869_s1 + $0x30] sm:$0xff] }
  0x30   :  { %6541 = vmatprep.subr.bf16.mxu1 %v6540_v33  ;;  %v64_v61 = vld [vmem:[%s16869_s1 + $0x70] sm:$0xff]  ;;  %v6560_v62 = vpack.c.bf16 %v111_v55, %v103_v54  ;;  %v110_v63 = vld [vmem:[%s16869_s1 + $0x1e0] sm:$0xff]  ;;  %v73_v0 = vld [vmem:[%s16869_s1 + $0xb8] sm:$0xff] }
  0x31   :  { %6511 = vmatpush1.bf16.msra.mxu0 %v6510_v8  ;;  %v81_v2 = vld [vmem:[%s16869_s1 + $0xf8] sm:$0xff]  ;;  %v119_v3 = vld [vmem:[%s16869_s1 + $0x228] sm:$0xff]  ;;  %v6582_v5 = vpack.c.bf16 %v64_v61, %v56_v60  ;;  %v6562_v6 = vpack.c.bf16 %v110_v63, %v102_v58  ;;  %v118_v7 = vld [vmem:[%s16869_s1 + $0x220] sm:$0xff] }
  0x32   :  { %6513 = vmatprep.subr.bf16.mxu0 %v6512_v13  ;;  %v127_v4 = vld [vmem:[%s16869_s1 + $0x268] sm:$0xff]  ;;  %v6584_v8 = vpack.c.bf16 %v81_v2, %v73_v0  ;;  %v72_v9 = vld [vmem:[%s16869_s1 + $0xb0] sm:$0xff]  ;;  %v126_v12 = vld [vmem:[%s16869_s1 + $0x260] sm:$0xff] }
  0x33   :  { %6543 = vmatpush1.bf16.msra.mxu1 %v6542_v44  ;;  %v80_v10 = vld [vmem:[%s16869_s1 + $0xf0] sm:$0xff]  ;;  %v6564_v11 = vpack.c.bf16 %v127_v4, %v119_v3  ;;  %v89_v13 = vld [vmem:[%s16869_s1 + $0x138] sm:$0xff]  ;;  %v135_v15 = vld [vmem:[%s16869_s1 + $0x2a8] sm:$0xff]  ;;  %v6566_v18 = vpack.c.bf16 %v126_v12, %v118_v7 }
  0x34   :  { %6545 = vmatprep.subr.bf16.mxu1 %v6544_v45  ;;  %v97_v14 = vld [vmem:[%s16869_s1 + $0x178] sm:$0xff]  ;;  %v143_v16 = vld [vmem:[%s16869_s1 + $0x2e8] sm:$0xff]  ;;  %v6586_v17 = vpack.c.bf16 %v80_v10, %v72_v9  ;;  %v134_v19 = vld [vmem:[%s16869_s1 + $0x2a0] sm:$0xff] }
  0x35   :  { %6515 = vmatpush1.bf16.msra.mxu0 %v6514_v20  ;;  %v6588_v20 = vpack.c.bf16 %v97_v14, %v89_v13  ;;  %v88_v21 = vld [vmem:[%s16869_s1 + $0x130] sm:$0xff]  ;;  %v6568_v23 = vpack.c.bf16 %v143_v16, %v135_v15  ;;  %v105_v24 = vld [vmem:[%s16869_s1 + $0x1b8] sm:$0xff]  ;;  %v159_v27 = vld [vmem:[%s16869_s1 + $0x368] sm:$0xff] }
  0x36   :  { %6549 = vmatprep.subr.bf16.mxu0 %v6548_v26  ;;  %v96_v22 = vld [vmem:[%s16869_s1 + $0x170] sm:$0xff]  ;;  %v113_v25 = vld [vmem:[%s16869_s1 + $0x1f8] sm:$0xff]  ;;  %v151_v26 = vld [vmem:[%s16869_s1 + $0x328] sm:$0xff] }
  0x37   :  { %6547 = vmatpush1.bf16.msra.mxu1 %v6546_v56  ;;  %v6590_v28 = vpack.c.bf16 %v96_v22, %v88_v21  ;;  %v150_v30 = vld [vmem:[%s16869_s1 + $0x320] sm:$0xff]  ;;  %v6592_v32 = vpack.c.bf16 %v113_v25, %v105_v24  ;;  %v104_v33 = vld [vmem:[%s16869_s1 + $0x1b0] sm:$0xff]  ;;  %v6572_v35 = vpack.c.bf16 %v159_v27, %v151_v26  ;;  %v129_v38 = vld [vmem:[%s16869_s1 + $0x278] sm:$0xff] }
  0x38   :  { %285 = vmatmul.mubr.f32.vlgmr.msra.gmra.mrb[0].mxu0 %v9418_v31  ;;  %6581 = vmatprep.subr.bf16.mxu1 %v6580_v59  ;;  %v112_v34 = vld [vmem:[%s16869_s1 + $0x1f0] sm:$0xff]  ;;  %v158_v36 = vld [vmem:[%s16869_s1 + $0x360] sm:$0xff]  ;;  %v175_v40 = vld [vmem:[%s16869_s1 + $0x3e8] sm:$0xff] }
  0x39   :  { %6551 = vmatpush1.bf16.msra.mxu0 %v6550_v37  ;;  %426 = vmatprep.mubr.f32.mxu0 %v9145_v1  ;;  %v121_v37 = vld [vmem:[%s16869_s1 + $0x238] sm:$0xff]  ;;  %v6594_v41 = vpack.c.bf16 %v112_v34, %v104_v33  ;;  %v6574_v42 = vpack.c.bf16 %v158_v36, %v150_v30  ;;  %v166_v43 = vld [vmem:[%s16869_s1 + $0x3a0] sm:$0xff]  ;;  %v120_v45 = vld [vmem:[%s16869_s1 + $0x230] sm:$0xff] }
  0x3a   :  { %6553 = vmatprep.subr.bf16.mxu0 %v6552_v39  ;;  %356 = vmatmul.mubr.f32.vlgmr.msra.gmra.mrb[0].mxu1 %v9418_v31  ;;  %v167_v39 = vld [vmem:[%s16869_s1 + $0x3a8] sm:$0xff]  ;;  %v6596_v44 = vpack.c.bf16 %v129_v38, %v121_v37  ;;  %v128_v46 = vld [vmem:[%s16869_s1 + $0x270] sm:$0xff]  ;;  %v137_v49 = vld [vmem:[%s16869_s1 + $0x2b8] sm:$0xff] }
  0x3b   :  { %6583 = vmatpush1.bf16.msra.mxu1 %v6582_v5  ;;  %497 = vmatprep.mubr.f32.mxu1 %v9145_v1  ;;  %v142_v1 = vld [vmem:[%s16869_s1 + $0x2e0] sm:$0xff]  ;;  %v6576_v47 = vpack.c.bf16 %v175_v40, %v167_v39  ;;  %v529_v51 = vld [vmem:[%s16871_s3 + $0x8] sm:$0xff]  ;;  %v6598_v53 = vpack.c.bf16 %v128_v46, %v120_v45  ;;  %v136_v56 = vld [vmem:[%s16869_s1 + $0x2b0] sm:$0xff] }
  0x3c   :  { %6585 = vmatprep.subr.bf16.mxu1 %v6584_v8  ;;  %v6570_v29 = vpack.c.bf16 %v142_v1, %v134_v19  ;;  %v545_v52 = vld [vmem:[%s16871_s3 + $0x88] sm:$0xff]  ;;  %v153_v58 = vld [vmem:[%s16869_s1 + $0x338] sm:$0xff]  ;;  %v528_v61 = vld [vmem:[%s16871_s3] sm:$0xff] }
  0x3d   :  { %6555 = vmatpush1.bf16.msra.mxu0 %v6554_v48  ;;  %v174_v48 = vld [vmem:[%s16869_s1 + $0x3e0] sm:$0xff]  ;;  %v161_v59 = vld [vmem:[%s16869_s1 + $0x378] sm:$0xff]  ;;  %v6612_v60 = vpack.c.bf16 %v545_v52, %v529_v51  ;;  %v561_v63 = vld [vmem:[%s16871_s3 + $0x108] sm:$0xff] }
  0x3e   :  { %6557 = vmatprep.subr.bf16.mxu0 %v6556_v50  ;;  %v145_v50 = vld [vmem:[%s16869_s1 + $0x2f8] sm:$0xff]  ;;  %v6578_v54 = vpack.c.bf16 %v174_v48, %v166_v43  ;;  %v577_v0 = vld [vmem:[%s16871_s3 + $0x188] sm:$0xff]  ;;  %v6604_v3 = vpack.c.bf16 %v161_v59, %v153_v58  ;;  %v152_v4 = vld [vmem:[%s16869_s1 + $0x330] sm:$0xff] }
  0x3f   :  { %6587 = vmatpush1.bf16.msra.mxu1 %v6586_v17  ;;  %v6600_v55 = vpack.c.bf16 %v145_v50, %v137_v49  ;;  %v160_v5 = vld [vmem:[%s16869_s1 + $0x370] sm:$0xff]  ;;  %v177_v8 = vld [vmem:[%s16869_s1 + $0x3f8] sm:$0xff]  ;;  %v6616_v9 = vpack.c.bf16 %v577_v0, %v561_v63  ;;  %v560_v10 = vld [vmem:[%s16871_s3 + $0x100] sm:$0xff] }
  0x40   :  { %6589 = vmatprep.subr.bf16.mxu1 %v6588_v20  ;;  %v593_v12 = vld [vmem:[%s16871_s3 + $0x208] sm:$0xff]  ;;  %v6606_v14 = vpack.c.bf16 %v160_v5, %v152_v4  ;;  %v168_v16 = vld [vmem:[%s16869_s1 + $0x3b0] sm:$0xff]  ;;  %v547_v20 = vld [vmem:[%s16871_s3 + $0x98] sm:$0xff] }
  0x41   :  { %6559 = vmatpush1.bf16.msra.mxu0 %v6558_v57  ;;  %v144_v57 = vld [vmem:[%s16869_s1 + $0x2f0] sm:$0xff]  ;;  %v609_v13 = vld [vmem:[%s16871_s3 + $0x288] sm:$0xff]  ;;  %v592_v22 = vld [vmem:[%s16871_s3 + $0x200] sm:$0xff] }
  0x42   :  { %6561 = vmatprep.subr.bf16.mxu0 %v6560_v62  ;;  %v544_v62 = vld [vmem:[%s16871_s3 + $0x80] sm:$0xff]  ;;  %v6602_v2 = vpack.c.bf16 %v144_v57, %v136_v56  ;;  %v176_v17 = vld [vmem:[%s16869_s1 + $0x3f0] sm:$0xff]  ;;  %v6620_v21 = vpack.c.bf16 %v609_v13, %v593_v12  ;;  %v625_v1 = vld [vmem:[%s16871_s3 + $0x308] sm:$0xff] }
  0x43   :  { %6591 = vmatpush1.bf16.msra.mxu1 %v6590_v28  ;;  %v6614_v7 = vpack.c.bf16 %v544_v62, %v528_v61  ;;  %v641_v24 = vld [vmem:[%s16871_s3 + $0x388] sm:$0xff]  ;;  %v6610_v25 = vpack.c.bf16 %v176_v17, %v168_v16  ;;  %v530_v27 = vld [vmem:[%s16871_s3 + $0x10] sm:$0xff]  ;;  %v624_v34 = vld [vmem:[%s16871_s3 + $0x300] sm:$0xff] }
  0x44   :  { %6593 = vmatprep.subr.bf16.mxu1 %v6592_v32  ;;  %v546_v28 = vld [vmem:[%s16871_s3 + $0x90] sm:$0xff]  ;;  %v579_v32 = vld [vmem:[%s16871_s3 + $0x198] sm:$0xff]  ;;  %v6624_v33 = vpack.c.bf16 %v641_v24, %v625_v1  ;;  %v657_v36 = vld [vmem:[%s16871_s3 + $0x408] sm:$0xff] }
  0x45   :  { %6563 = vmatpush1.bf16.msra.mxu0 %v6562_v6  ;;  %v169_v6 = vld [vmem:[%s16869_s1 + $0x3b8] sm:$0xff]  ;;  %v673_v37 = vld [vmem:[%s16871_s3 + $0x488] sm:$0xff]  ;;  %v6870_v38 = vpack.c.bf16 %v546_v28, %v530_v27  ;;  %v562_v40 = vld [vmem:[%s16871_s3 + $0x110] sm:$0xff] }
  0x46   :  { %6565 = vmatprep.subr.bf16.mxu0 %v6564_v11  ;;  %v576_v11 = vld [vmem:[%s16871_s3 + $0x180] sm:$0xff]  ;;  %v6608_v15 = vpack.c.bf16 %v177_v8, %v169_v6  ;;  %v6628_v45 = vpack.c.bf16 %v673_v37, %v657_v36  ;;  %v689_v48 = vld [vmem:[%s16871_s3 + $0x508] sm:$0xff]  ;;  %v594_v52 = vld [vmem:[%s16871_s3 + $0x210] sm:$0xff] }
  0x47   :  { %6595 = vmatpush1.bf16.msra.mxu1 %v6594_v41  ;;  %v6618_v19 = vpack.c.bf16 %v576_v11, %v560_v10  ;;  %v578_v41 = vld [vmem:[%s16871_s3 + $0x190] sm:$0xff]  ;;  %v656_v46 = vld [vmem:[%s16871_s3 + $0x400] sm:$0xff]  ;;  %v705_v49 = vld [vmem:[%s16871_s3 + $0x588] sm:$0xff] }
  0x48   :  { %6597 = vmatprep.subr.bf16.mxu1 %v6596_v44  ;;  %v611_v44 = vld [vmem:[%s16871_s3 + $0x298] sm:$0xff]  ;;  %v6874_v50 = vpack.c.bf16 %v578_v41, %v562_v40  ;;  %v6632_v56 = vpack.c.bf16 %v705_v49, %v689_v48  ;;  %v688_v57 = vld [vmem:[%s16871_s3 + $0x500] sm:$0xff]  ;;  %v721_v59 = vld [vmem:[%s16871_s3 + $0x608] sm:$0xff] }
  0x49   :  { %6567 = vmatpush1.bf16.msra.mxu0 %v6566_v18  ;;  %v531_v18 = vld [vmem:[%s16871_s3 + $0x18] sm:$0xff]  ;;  %v704_v58 = vld [vmem:[%s16871_s3 + $0x580] sm:$0xff]  ;;  %v626_v63 = vld [vmem:[%s16871_s3 + $0x310] sm:$0xff] }
  0x4a   :  { %6569 = vmatprep.subr.bf16.mxu0 %v6568_v23  ;;  %v608_v23 = vld [vmem:[%s16871_s3 + $0x280] sm:$0xff]  ;;  %v6868_v26 = vpack.c.bf16 %v547_v20, %v531_v18  ;;  %v642_v0 = vld [vmem:[%s16871_s3 + $0x390] sm:$0xff]  ;;  %v675_v4 = vld [vmem:[%s16871_s3 + $0x498] sm:$0xff] }
  0x4b   :  { %6599 = vmatpush1.bf16.msra.mxu1 %v6598_v53  ;;  %v6622_v30 = vpack.c.bf16 %v608_v23, %v592_v22  ;;  %v627_v53 = vld [vmem:[%s16871_s3 + $0x318] sm:$0xff]  ;;  %v720_v6 = vld [vmem:[%s16871_s3 + $0x600] sm:$0xff]  ;;  %v753_v8 = vld [vmem:[%s16871_s3 + $0x708] sm:$0xff]  ;;  %v6882_v10 = vpack.c.bf16 %v642_v0, %v626_v63 }
  0x4c   :  { %6601 = vmatprep.subr.bf16.mxu1 %v6600_v55  ;;  %v643_v55 = vld [vmem:[%s16871_s3 + $0x398] sm:$0xff]  ;;  %v658_v12 = vld [vmem:[%s16871_s3 + $0x410] sm:$0xff]  ;;  %v752_v18 = vld [vmem:[%s16871_s3 + $0x700] sm:$0xff] }
  0x4d   :  { %6571 = vmatpush1.bf16.msra.mxu0 %v6570_v29  ;;  %v563_v29 = vld [vmem:[%s16871_s3 + $0x118] sm:$0xff]  ;;  %v6880_v62 = vpack.c.bf16 %v643_v55, %v627_v53  ;;  %v674_v13 = vld [vmem:[%s16871_s3 + $0x490] sm:$0xff]  ;;  %v785_v20 = vld [vmem:[%s16871_s3 + $0x808] sm:$0xff] }
  0x4e   :  { %6573 = vmatprep.subr.bf16.mxu0 %v6572_v35  ;;  %v640_v35 = vld [vmem:[%s16871_s3 + $0x380] sm:$0xff]  ;;  %v6872_v39 = vpack.c.bf16 %v579_v32, %v563_v29  ;;  %v707_v16 = vld [vmem:[%s16871_s3 + $0x598] sm:$0xff]  ;;  %v6886_v22 = vpack.c.bf16 %v674_v13, %v658_v12  ;;  %v690_v1 = vld [vmem:[%s16871_s3 + $0x510] sm:$0xff] }
  0x4f   :  { %6603 = vmatpush1.bf16.msra.mxu1 %v6602_v2  ;;  %v6626_v43 = vpack.c.bf16 %v640_v35, %v624_v34  ;;  %v659_v2 = vld [vmem:[%s16871_s3 + $0x418] sm:$0xff]  ;;  %v706_v24 = vld [vmem:[%s16871_s3 + $0x590] sm:$0xff]  ;;  %v784_v29 = vld [vmem:[%s16871_s3 + $0x800] sm:$0xff] }
  0x50   :  { %6605 = vmatprep.subr.bf16.mxu1 %v6604_v3  ;;  %v6634_v3 = vpack.c.bf16 %v704_v58, %v688_v57  ;;  %v6884_v11 = vpack.c.bf16 %v675_v4, %v659_v2  ;;  %v739_v27 = vld [vmem:[%s16871_s3 + $0x698] sm:$0xff]  ;;  %v817_v32 = vld [vmem:[%s16871_s3 + $0x908] sm:$0xff]  ;;  %v6890_v34 = vpack.c.bf16 %v706_v24, %v690_v1  ;;  %v722_v36 = vld [vmem:[%s16871_s3 + $0x610] sm:$0xff] }
  0x51   :  { %6575 = vmatpush1.bf16.msra.mxu0 %v6574_v42  ;;  %v595_v42 = vld [vmem:[%s16871_s3 + $0x218] sm:$0xff]  ;;  %v738_v37 = vld [vmem:[%s16871_s3 + $0x690] sm:$0xff]  ;;  %v848_v53 = vld [vmem:[%s16871_s3 + $0xa00] sm:$0xff] }
  0x52   :  { %6577 = vmatprep.subr.bf16.mxu0 %v6576_v47  ;;  %v672_v47 = vld [vmem:[%s16871_s3 + $0x480] sm:$0xff]  ;;  %v6876_v51 = vpack.c.bf16 %v611_v44, %v595_v42  ;;  %v771_v40 = vld [vmem:[%s16871_s3 + $0x798] sm:$0xff]  ;;  %v849_v44 = vld [vmem:[%s16871_s3 + $0xa08] sm:$0xff] }
  0x53   :  { %6607 = vmatpush1.bf16.msra.mxu1 %v6606_v14  ;;  %v691_v14 = vld [vmem:[%s16871_s3 + $0x518] sm:$0xff]  ;;  %v816_v42 = vld [vmem:[%s16871_s3 + $0x900] sm:$0xff]  ;;  %v754_v48 = vld [vmem:[%s16871_s3 + $0x710] sm:$0xff] }
  0x54   :  { %6609 = vmatprep.subr.bf16.mxu1 %v6608_v15  ;;  %v6888_v23 = vpack.c.bf16 %v707_v16, %v691_v14  ;;  %v770_v49 = vld [vmem:[%s16871_s3 + $0x790] sm:$0xff]  ;;  %v881_v55 = vld [vmem:[%s16871_s3 + $0xb08] sm:$0xff]  ;;  %v835_v63 = vld [vmem:[%s16871_s3 + $0x998] sm:$0xff] }
  0x55   :  { %6579 = vmatpush1.bf16.msra.mxu0 %v6578_v54  ;;  %v6630_v54 = vpack.c.bf16 %v672_v47, %v656_v46  ;;  %v6894_v46 = vpack.c.bf16 %v738_v37, %v722_v36  ;;  %v6898_v57 = vpack.c.bf16 %v770_v49, %v754_v48  ;;  %v880_v2 = vld [vmem:[%s16871_s3 + $0xb00] sm:$0xff]  ;;  %v913_v4 = vld [vmem:[%s16871_s3 + $0xc08] sm:$0xff]  ;;  %v867_v12 = vld [vmem:[%s16871_s3 + $0xa98] sm:$0xff] }
  0x56   :  { %6613 = vmatprep.subr.bf16.mxu0 %v6612_v60  ;;  %v737_v60 = vld [vmem:[%s16871_s3 + $0x688] sm:$0xff]  ;;  %v912_v14 = vld [vmem:[%s16871_s3 + $0xc00] sm:$0xff]  ;;  %v899_v1 = vld [vmem:[%s16871_s3 + $0xb98] sm:$0xff] }
  0x57   :  { %6611 = vmatpush1.bf16.msra.mxu1 %v6610_v25  ;;  %v6636_v5 = vpack.c.bf16 %v737_v60, %v721_v59  ;;  %v723_v25 = vld [vmem:[%s16871_s3 + $0x618] sm:$0xff]  ;;  %v786_v59 = vld [vmem:[%s16871_s3 + $0x810] sm:$0xff]  ;;  %v945_v16 = vld [vmem:[%s16871_s3 + $0xd08] sm:$0xff] }
  0x58   :  { %427 = vmatmul.mubr.f32.vlgmr.msra.gmra.mrb[2].mxu0 %v9418_v31  ;;  %6869 = vmatprep.subr.bf16.mxu1 %v6868_v26  ;;  %v6892_v35 = vpack.c.bf16 %v739_v27, %v723_v25  ;;  %v802_v60 = vld [vmem:[%s16871_s3 + $0x890] sm:$0xff]  ;;  %v944_v25 = vld [vmem:[%s16871_s3 + $0xd00] sm:$0xff]  ;;  %v977_v27 = vld [vmem:[%s16871_s3 + $0xe08] sm:$0xff] }
  0x59   :  { %6615 = vmatpush1.bf16.msra.mxu0 %v6614_v7  ;;  %v736_v7 = vld [vmem:[%s16871_s3 + $0x680] sm:$0xff]  ;;  %v931_v36 = vld [vmem:[%s16871_s3 + $0xc98] sm:$0xff]  ;;  %vm6127_vm13 = vmneg %vm4968_vm8 }
  0x5a   :  { %6617 = vmatprep.subr.bf16.mxu0 %v6616_v9  ;;  %498 = vmatmul.mubr.f32.vlgmr.msra.gmra.mrb[2].mxu1 %v9418_v31  ;;  %v610_v31 = vld [vmem:[%s16871_s3 + $0x290] sm:$0xff]  ;;  %v769_v9 = vld [vmem:[%s16871_s3 + $0x788] sm:$0xff]  ;;  %v6638_v15 = vpack.c.bf16 %v736_v7, %v720_v6  ;;  %v6902_v6 = vpack.c.bf16 %v802_v60, %v786_v59  ;;  %v963_v48 = vld [vmem:[%s16871_s3 + $0xd98] sm:$0xff] }
  0x5b   :  { %6871 = vmatpush1.bf16.msra.mxu1 %v6870_v38  ;;  %v6878_v61 = vpack.c.bf16 %v610_v31, %v594_v52  ;;  %v6640_v17 = vpack.c.bf16 %v769_v9, %v753_v8  ;;  %v755_v38 = vld [vmem:[%s16871_s3 + $0x718] sm:$0xff]  ;;  %v818_v8 = vld [vmem:[%s16871_s3 + $0x910] sm:$0xff] }
  0x5c   :  { %6873 = vmatprep.subr.bf16.mxu1 %v6872_v39  ;;  %v6896_v47 = vpack.c.bf16 %v771_v40, %v755_v38  ;;  %v803_v52 = vld [vmem:[%s16871_s3 + $0x898] sm:$0xff]  ;;  %v834_v9 = vld [vmem:[%s16871_s3 + $0x990] sm:$0xff]  ;;  %v976_v38 = vld [vmem:[%s16871_s3 + $0xe00] sm:$0xff] }
  0x5d   :  { %6619 = vmatpush1.bf16.msra.mxu0 %v6618_v19  ;;  %v768_v19 = vld [vmem:[%s16871_s3 + $0x780] sm:$0xff]  ;;  %v1009_v40 = vld [vmem:[%s16871_s3 + $0xf08] sm:$0xff]  ;;  %v995_v59 = vld [vmem:[%s16871_s3 + $0xe98] sm:$0xff] }
  0x5e   :  { %6621 = vmatprep.subr.bf16.mxu0 %v6620_v21  ;;  %v801_v21 = vld [vmem:[%s16871_s3 + $0x888] sm:$0xff]  ;;  %v6642_v26 = vpack.c.bf16 %v768_v19, %v752_v18  ;;  %v6906_v18 = vpack.c.bf16 %v834_v9, %v818_v8  ;;  %v1043_v8 = vld [vmem:[%s16871_s3 + $0x1018] sm:$0xff] }
  0x5f   :  { %6875 = vmatpush1.bf16.msra.mxu1 %v6874_v50  ;;  %v6644_v28 = vpack.c.bf16 %v801_v21, %v785_v20  ;;  %v787_v50 = vld [vmem:[%s16871_s3 + $0x818] sm:$0xff]  ;;  %v850_v20 = vld [vmem:[%s16871_s3 + $0xa10] sm:$0xff] }
  0x60   :  { %6877 = vmatprep.subr.bf16.mxu1 %v6876_v51  ;;  %v6900_v58 = vpack.c.bf16 %v803_v52, %v787_v50  ;;  %v866_v21 = vld [vmem:[%s16871_s3 + $0xa90] sm:$0xff]  ;;  %v1008_v50 = vld [vmem:[%s16871_s3 + $0xf00] sm:$0xff]  ;;  %v1041_v52 = vld [vmem:[%s16871_s3 + $0x1008] sm:$0xff] }
  0x61   :  { %6623 = vmatpush1.bf16.msra.mxu0 %v6622_v30  ;;  %v800_v30 = vld [vmem:[%s16871_s3 + $0x880] sm:$0xff]  ;;  %v1059_v9 = vld [vmem:[%s16871_s3 + $0x1098] sm:$0xff] }
  0x62   :  { %6625 = vmatprep.subr.bf16.mxu0 %v6624_v33  ;;  %v833_v33 = vld [vmem:[%s16871_s3 + $0x988] sm:$0xff]  ;;  %v6646_v39 = vpack.c.bf16 %v800_v30, %v784_v29  ;;  %v6910_v29 = vpack.c.bf16 %v866_v21, %v850_v20 }
  0x63   :  { %6879 = vmatpush1.bf16.msra.mxu1 %v6878_v61  ;;  %v6648_v41 = vpack.c.bf16 %v833_v33, %v817_v32  ;;  %v819_v61 = vld [vmem:[%s16871_s3 + $0x918] sm:$0xff]  ;;  %v882_v32 = vld [vmem:[%s16871_s3 + $0xb10] sm:$0xff] }
  0x64   :  { %6881 = vmatprep.subr.bf16.mxu1 %v6880_v62  ;;  %v6904_v7 = vpack.c.bf16 %v835_v63, %v819_v61  ;;  %v898_v33 = vld [vmem:[%s16871_s3 + $0xb90] sm:$0xff] }
  0x65   :  { %6627 = vmatpush1.bf16.msra.mxu0 %v6626_v43  ;;  %v832_v43 = vld [vmem:[%s16871_s3 + $0x980] sm:$0xff]  ;;  %v978_v63 = vld [vmem:[%s16871_s3 + $0xe10] sm:$0xff] }
  0x66   :  { %6629 = vmatprep.subr.bf16.mxu0 %v6628_v45  ;;  %v865_v45 = vld [vmem:[%s16871_s3 + $0xa88] sm:$0xff]  ;;  %v6650_v51 = vpack.c.bf16 %v832_v43, %v816_v42  ;;  %v6914_v42 = vpack.c.bf16 %v898_v33, %v882_v32 }
  0x67   :  { %6883 = vmatpush1.bf16.msra.mxu1 %v6882_v10  ;;  %v6652_v31 = vpack.c.bf16 %v865_v45, %v849_v44  ;;  %v851_v10 = vld [vmem:[%s16871_s3 + $0xa18] sm:$0xff]  ;;  %v914_v44 = vld [vmem:[%s16871_s3 + $0xc10] sm:$0xff] }
  0x68   :  { %6885 = vmatprep.subr.bf16.mxu1 %v6884_v11  ;;  %v6908_v19 = vpack.c.bf16 %v867_v12, %v851_v10  ;;  %v930_v45 = vld [vmem:[%s16871_s3 + $0xc90] sm:$0xff]  ;;  %v180_v12 = vlaneseq }
  0x69   :  { %6631 = vmatpush1.bf16.msra.mxu0 %v6630_v54  ;;  %v864_v54 = vld [vmem:[%s16871_s3 + $0xa80] sm:$0xff] }
  0x6a   :  { %6633 = vmatprep.subr.bf16.mxu0 %v6632_v56  ;;  %v897_v56 = vld [vmem:[%s16871_s3 + $0xb88] sm:$0xff]  ;;  %v6654_v62 = vpack.c.bf16 %v864_v54, %v848_v53  ;;  %v6918_v53 = vpack.c.bf16 %v930_v45, %v914_v44 }
  0x6b   :  { %6887 = vmatpush1.bf16.msra.mxu1 %v6886_v22  ;;  %v6656_v0 = vpack.c.bf16 %v897_v56, %v881_v55  ;;  %v883_v22 = vld [vmem:[%s16871_s3 + $0xb18] sm:$0xff]  ;;  %v946_v55 = vld [vmem:[%s16871_s3 + $0xd10] sm:$0xff]  ;;  %v1121_v45 = vld [vmem:[%s16871_s3 + $0x1288] sm:$0xff] }
  0x6c   :  { %6889 = vmatprep.subr.bf16.mxu1 %v6888_v23  ;;  %v6912_v30 = vpack.c.bf16 %v899_v1, %v883_v22  ;;  %v962_v56 = vld [vmem:[%s16871_s3 + $0xd90] sm:$0xff]  ;;  %v1040_v22 = vld [vmem:[%s16871_s3 + $0x1000] sm:$0xff] }
  0x6d   :  { %6635 = vmatpush1.bf16.msra.mxu0 %v6634_v3  ;;  %v896_v3 = vld [vmem:[%s16871_s3 + $0xb80] sm:$0xff]  ;;  %v6922_v61 = vpack.c.bf16 %v962_v56, %v946_v55  ;;  %v1122_v55 = vld [vmem:[%s16871_s3 + $0x1290] sm:$0xff]  ;;  %v1137_v56 = vld [vmem:[%s16871_s3 + $0x1308] sm:$0xff] }
  0x6e   :  { %6637 = vmatprep.subr.bf16.mxu0 %v6636_v5  ;;  %v929_v5 = vld [vmem:[%s16871_s3 + $0xc88] sm:$0xff]  ;;  %v6658_v11 = vpack.c.bf16 %v896_v3, %v880_v2  ;;  %v1011_v2 = vld [vmem:[%s16871_s3 + $0xf18] sm:$0xff] }
  0x6f   :  { %6891 = vmatpush1.bf16.msra.mxu1 %v6890_v34  ;;  %v6660_v13 = vpack.c.bf16 %v929_v5, %v913_v4  ;;  %v915_v34 = vld [vmem:[%s16871_s3 + $0xc18] sm:$0xff] }
  0x70   :  { %6893 = vmatprep.subr.bf16.mxu1 %v6892_v35  ;;  %v6916_v43 = vpack.c.bf16 %v931_v36, %v915_v34  ;;  %v1027_v3 = vld [vmem:[%s16871_s3 + $0xf98] sm:$0xff]  ;;  %v1088_v36 = vld [vmem:[%s16871_s3 + $0x1180] sm:$0xff] }
  0x71   :  { %6639 = vmatpush1.bf16.msra.mxu0 %v6638_v15  ;;  %v928_v15 = vld [vmem:[%s16871_s3 + $0xc80] sm:$0xff]  ;;  %v6928_v5 = vpack.c.bf16 %v1027_v3, %v1011_v2 }
  0x72   :  { %6641 = vmatprep.subr.bf16.mxu0 %v6640_v17  ;;  %v961_v17 = vld [vmem:[%s16871_s3 + $0xd88] sm:$0xff]  ;;  %v6662_v23 = vpack.c.bf16 %v928_v15, %v912_v14  ;;  %v10022_v15 = vld [vmem:[%s16870_s2] sm:$0xff] }
  0x73   :  { %6895 = vmatpush1.bf16.msra.mxu1 %v6894_v46  ;;  %v6664_v24 = vpack.c.bf16 %v961_v17, %v945_v16  ;;  %v947_v46 = vld [vmem:[%s16871_s3 + $0xd18] sm:$0xff]  ;;  %v1152_v2 = vld [vmem:[%s16871_s3 + $0x1380] sm:$0xff] }
  0x74   :  { %6897 = vmatprep.subr.bf16.mxu1 %v6896_v47  ;;  %v6920_v54 = vpack.c.bf16 %v963_v48, %v947_v46  ;;  %v1107_v46 = vld [vmem:[%s16871_s3 + $0x1218] sm:$0xff] }
  0x75   :  { %6643 = vmatpush1.bf16.msra.mxu0 %v6642_v26  ;;  %v960_v26 = vld [vmem:[%s16871_s3 + $0xd80] sm:$0xff] }
  0x76   :  { %6645 = vmatprep.subr.bf16.mxu0 %v6644_v28  ;;  %v993_v28 = vld [vmem:[%s16871_s3 + $0xe88] sm:$0xff]  ;;  %v6666_v35 = vpack.c.bf16 %v960_v26, %v944_v25  ;;  %v1058_v25 = vld [vmem:[%s16871_s3 + $0x1090] sm:$0xff] }
  0x77   :  { %6899 = vmatpush1.bf16.msra.mxu1 %v6898_v57  ;;  %v6668_v37 = vpack.c.bf16 %v993_v28, %v977_v27  ;;  %v1073_v26 = vld [vmem:[%s16871_s3 + $0x1108] sm:$0xff] }
  0x78   :  { %6901 = vmatprep.subr.bf16.mxu1 %v6900_v58  ;;  %v979_v58 = vld [vmem:[%s16871_s3 + $0xe18] sm:$0xff]  ;;  %v1089_v28 = vld [vmem:[%s16871_s3 + $0x1188] sm:$0xff] }
  0x79   :  { %6647 = vmatpush1.bf16.msra.mxu0 %v6646_v39  ;;  %v992_v39 = vld [vmem:[%s16871_s3 + $0xe80] sm:$0xff] }
  0x7a   :  { %6649 = vmatprep.subr.bf16.mxu0 %v6648_v41  ;;  %v1025_v41 = vld [vmem:[%s16871_s3 + $0xf88] sm:$0xff]  ;;  %v6670_v47 = vpack.c.bf16 %v992_v39, %v976_v38  ;;  %v6680_v39 = vpack.c.bf16 %v1089_v28, %v1073_v26  ;;  %v1219_v28 = vld [vmem:[%s16871_s3 + $0x1598] sm:$0xff] }
  0x7b   :  { %6903 = vmatpush1.bf16.msra.mxu1 %v6902_v6  ;;  %v6672_v49 = vpack.c.bf16 %v1025_v41, %v1009_v40  ;;  %v1010_v6 = vld [vmem:[%s16871_s3 + $0xf10] sm:$0xff]  ;;  %v1217_v26 = vld [vmem:[%s16871_s3 + $0x1588] sm:$0xff] }
  0x7c   :  { %6905 = vmatprep.subr.bf16.mxu1 %v6904_v7  ;;  %v1026_v7 = vld [vmem:[%s16871_s3 + $0xf90] sm:$0xff] }
  0x7d   :  { %6651 = vmatpush1.bf16.msra.mxu0 %v6650_v51  ;;  %v1024_v51 = vld [vmem:[%s16871_s3 + $0xf80] sm:$0xff]  ;;  %v6930_v10 = vpack.c.bf16 %v1026_v7, %v1010_v6  ;;  %v1074_v41 = vld [vmem:[%s16871_s3 + $0x1110] sm:$0xff] }
  0x7e   :  { %6653 = vmatprep.subr.bf16.mxu0 %v6652_v31  ;;  %v1057_v31 = vld [vmem:[%s16871_s3 + $0x1088] sm:$0xff]  ;;  %v6674_v57 = vpack.c.bf16 %v1024_v51, %v1008_v50  ;;  %v1104_v50 = vld [vmem:[%s16871_s3 + $0x1200] sm:$0xff]  ;;  %v1138_v6 = vld [vmem:[%s16871_s3 + $0x1310] sm:$0xff] }
  0x7f   :  { %6907 = vmatpush1.bf16.msra.mxu1 %v6906_v18  ;;  %v6676_v60 = vpack.c.bf16 %v1057_v31, %v1041_v52  ;;  %v1120_v51 = vld [vmem:[%s16871_s3 + $0x1280] sm:$0xff]  ;;  %v1154_v7 = vld [vmem:[%s16871_s3 + $0x1390] sm:$0xff] }
  0x80   :  { %6909 = vmatprep.subr.bf16.mxu1 %v6908_v19 }
  0x81   :  { %6655 = vmatpush1.bf16.msra.mxu0 %v6654_v62  ;;  %v6924_v62 = vpack.c.bf16 %v995_v59, %v979_v58  ;;  %v1139_v58 = vld [vmem:[%s16871_s3 + $0x1318] sm:$0xff] }
  0x82   :  { %6657 = vmatprep.subr.bf16.mxu0 %v6656_v0  ;;  %v994_v0 = vld [vmem:[%s16871_s3 + $0xe90] sm:$0xff]  ;;  %v1155_v59 = vld [vmem:[%s16871_s3 + $0x1398] sm:$0xff] }
  0x83   :  { %6911 = vmatpush1.bf16.msra.mxu1 %v6910_v29  ;;  %v6926_v4 = vpack.c.bf16 %v994_v0, %v978_v63  ;;  %v1075_v29 = vld [vmem:[%s16871_s3 + $0x1118] sm:$0xff]  ;;  %v1136_v0 = vld [vmem:[%s16871_s3 + $0x1300] sm:$0xff] }
  0x84   :  { %6913 = vmatprep.subr.bf16.mxu1 %v6912_v30  ;;  %v1091_v30 = vld [vmem:[%s16871_s3 + $0x1198] sm:$0xff] }
  0x85   :  { %6659 = vmatpush1.bf16.msra.mxu0 %v6658_v11  ;;  %v6932_v11 = vpack.c.bf16 %v1059_v9, %v1043_v8  ;;  %v6936_v40 = vpack.c.bf16 %v1091_v30, %v1075_v29  ;;  %v1169_v8 = vld [vmem:[%s16871_s3 + $0x1408] sm:$0xff] }
  0x86   :  { %6661 = vmatprep.subr.bf16.mxu0 %v6660_v13  ;;  %v10014_v13 = vshrl.u32 %v180_v12, 7  ;;  %v1185_v9 = vld [vmem:[%s16871_s3 + $0x1488] sm:$0xff] }
  0x87   :  { %6915 = vmatpush1.bf16.msra.mxu1 %v6914_v42  ;;  %v1090_v42 = vld [vmem:[%s16871_s3 + $0x1190] sm:$0xff] }
  0x88   :  { %6917 = vmatprep.subr.bf16.mxu1 %v6916_v43  ;;  %v10017_v14 = vsub.s32 0, %v10014_v13  ;;  %v10025_v16 = vsub.s32 1, %v10014_v13  ;;  %v1105_v43 = vld [vmem:[%s16871_s3 + $0x1208] sm:$0xff] }
  0x89   :  { %6663 = vmatpush1.bf16.msra.mxu0 %v6662_v23  ;;  %v1056_v23 = vld [vmem:[%s16871_s3 + $0x1080] sm:$0xff]  ;;  %v6684_v31 = vpack.c.bf16 %v1121_v45, %v1105_v43  ;;  %v1251_v43 = vld [vmem:[%s16871_s3 + $0x1698] sm:$0xff] }
  0x8a   :  { %6665 = vmatprep.subr.bf16.mxu0 %v6664_v24  ;;  %v183_v17 = vrot.slane %v10022_v15, %v10017_v14  ;;  %v187_v18 = vrot.slane %v10022_v15, %v10025_v16  ;;  %v1042_v24 = vld [vmem:[%s16871_s3 + $0x1010] sm:$0xff]  ;;  %v6678_v33 = vpack.c.bf16 %v1056_v23, %v1040_v22  ;;  %v6692_v22 = vpack.c.bf16 %v1185_v9, %v1169_v8  ;;  %v1296_v9 = vld [vmem:[%s16871_s3 + $0x1800] sm:$0xff] }
  0x8b   :  { %6919 = vmatpush1.bf16.msra.mxu1 %v6918_v53  ;;  %v6934_v34 = vpack.c.bf16 %v1058_v25, %v1042_v24  ;;  %v1186_v24 = vld [vmem:[%s16871_s3 + $0x1490] sm:$0xff]  ;;  %v1201_v25 = vld [vmem:[%s16871_s3 + $0x1508] sm:$0xff] }
  0x8c   :  { %6921 = vmatprep.subr.bf16.mxu1 %v6920_v54  ;;  %v1106_v54 = vld [vmem:[%s16871_s3 + $0x1210] sm:$0xff] }
  0x8d   :  { %6667 = vmatpush1.bf16.msra.mxu0 %v6666_v35  ;;  %v1072_v35 = vld [vmem:[%s16871_s3 + $0x1100] sm:$0xff]  ;;  %v6942_v63 = vpack.c.bf16 %v1122_v55, %v1106_v54  ;;  %v1267_v54 = vld [vmem:[%s16871_s3 + $0x1718] sm:$0xff] }
  0x8e   :  { %6669 = vmatprep.subr.bf16.mxu0 %v6668_v37  ;;  %v10062_v37 = vsub.s32 3, %v10014_v13  ;;  %v6682_v48 = vpack.c.bf16 %v1088_v36, %v1072_v35  ;;  %v1202_v36 = vld [vmem:[%s16871_s3 + $0x1510] sm:$0xff]  ;;  %v1283_v55 = vld [vmem:[%s16871_s3 + $0x1798] sm:$0xff] }
  0x8f   :  { %6923 = vmatpush1.bf16.msra.mxu1 %v6922_v61 }
  0x90   :  { %6925 = vmatprep.subr.bf16.mxu1 %v6924_v62  ;;  %v195_v52 = vrot.slane %v10022_v15, %v10062_v37  ;;  %v6686_v62 = vpack.c.bf16 %v1120_v51, %v1104_v50  ;;  %v1234_v51 = vld [vmem:[%s16871_s3 + $0x1610] sm:$0xff] }
  0x91   :  { %6671 = vmatpush1.bf16.msra.mxu0 %v6670_v47  ;;  %v1123_v47 = vld [vmem:[%s16871_s3 + $0x1298] sm:$0xff] }
  0x92   :  { %6673 = vmatprep.subr.bf16.mxu0 %v6672_v49  ;;  %v6938_v49 = vpack.c.bf16 %v1090_v42, %v1074_v41  ;;  %v6940_v53 = vpack.c.bf16 %v1123_v47, %v1107_v46  ;;  %v1249_v41 = vld [vmem:[%s16871_s3 + $0x1688] sm:$0xff]  ;;  %v1235_v42 = vld [vmem:[%s16871_s3 + $0x1618] sm:$0xff]  ;;  %v1232_v47 = vld [vmem:[%s16871_s3 + $0x1600] sm:$0xff] }
  0x93   :  { %6927 = vmatpush1.bf16.msra.mxu1 %v6926_v4  ;;  %v6956_v50 = vpack.c.bf16 %v1251_v43, %v1235_v42  ;;  %v1376_v42 = vld [vmem:[%s16871_s3 + $0x1a80] sm:$0xff] }
  0x94   :  { %6929 = vmatprep.subr.bf16.mxu1 %v6928_v5  ;;  %v6944_v5 = vpack.c.bf16 %v1155_v59, %v1139_v58  ;;  %v1264_v58 = vld [vmem:[%s16871_s3 + $0x1700] sm:$0xff] }
  0x95   :  { %6675 = vmatpush1.bf16.msra.mxu0 %v6674_v57  ;;  %v1153_v57 = vld [vmem:[%s16871_s3 + $0x1388] sm:$0xff]  ;;  %v1280_v59 = vld [vmem:[%s16871_s3 + $0x1780] sm:$0xff] }
  0x96   :  { %6677 = vmatprep.subr.bf16.mxu0 %v6676_v60  ;;  %v6688_v4 = vpack.c.bf16 %v1153_v57, %v1137_v56 }
  0x97   :  { %6931 = vmatpush1.bf16.msra.mxu1 %v6930_v10  ;;  %v1171_v10 = vld [vmem:[%s16871_s3 + $0x1418] sm:$0xff] }
  0x98   :  { %6933 = vmatprep.subr.bf16.mxu1 %v6932_v11  ;;  %v1187_v11 = vld [vmem:[%s16871_s3 + $0x1498] sm:$0xff] }
  0x99   :  { %v6948_v23 = vpack.c.bf16 %v1187_v11, %v1171_v10  ;;  %v1312_v10 = vld [vmem:[%s16871_s3 + $0x1880] sm:$0xff] }
 0x10b   :  { %v286_v19 = vpop.f32.mrb[0].mxu0 }
 0x10c   :  { %v287_v20 = vadd.f32 %v286_v19, %v183_v17  ;;  %v288_v21 = vpop.f32.mrb[1].mxu0  ;;  %v6690_v17 = vpack.c.bf16 %v1152_v2, %v1136_v0  ;;  %v1168_v19 = vld [vmem:[%s16871_s3 + $0x1400] sm:$0xff]  ;;  %v1282_v0 = vld [vmem:[%s16871_s3 + $0x1790] sm:$0xff]  ;;  %v1297_v2 = vld [vmem:[%s16871_s3 + $0x1808] sm:$0xff] }
 0x10d   :  { %v289_v1 = vadd.f32 %v288_v21, %v187_v18  ;;  %v10116_v60 = vpop.f32.mrb[0].mxu1  ;;  %v6946_v18 = vpack.c.bf16 %v1154_v7, %v1138_v6  ;;  %v6706_v7 = vpack.c.bf16 %v1280_v59, %v1264_v58  ;;  %v1394_v59 = vld [vmem:[%s16871_s3 + $0x1b10] sm:$0xff] }
 0x10e   :  { %v512_v27 = vmul.f32 0.2, %v287_v20  ;;  %vm504_vm0 = vcmp.gt.f32.partialorder %v287_v20, 0.0  ;;  %v359_v61 = vpop.f32.mrb[1].mxu1 }
 0x10f   :  { %vm505_vm1 = vcmp.gt.f32.partialorder %v289_v1, 0.0  ;;  %v513_v32 = vmul.f32 0.2, %v289_v1  ;;  %v360_v3 = vadd.f32 %v359_v61, %v195_v52  ;;  %v1250_v52 = vld [vmem:[%s16871_s3 + $0x1690] sm:$0xff] }
 0x110   :  { %v10075_v44 = vsel %vm504_vm0, %v287_v20, %v512_v27  ;;  %v1184_v20 = vld [vmem:[%s16871_s3 + $0x1480] sm:$0xff]  ;;  %v1203_v27 = vld [vmem:[%s16871_s3 + $0x1518] sm:$0xff]  ;;  %v6958_v57 = vpack.c.bf16 %v1250_v52, %v1234_v51 }
 0x111   :  { %v10064_v38 = vsel %vm505_vm1, %v289_v1, %v513_v32  ;;  %vm507_vm2 = vcmp.gt.f32.partialorder %v360_v3, 0.0  ;;  %v515_v12 = vmul.f32 0.2, %v360_v3  ;;  %v1170_v1 = vld [vmem:[%s16871_s3 + $0x1410] sm:$0xff]  ;;  %v6694_v29 = vpack.c.bf16 %v1184_v20, %v1168_v19  ;;  %v1200_v32 = vld [vmem:[%s16871_s3 + $0x1500] sm:$0xff]  ;;  %v1329_v20 = vld [vmem:[%s16871_s3 + $0x1908] sm:$0xff] }
 0x112   :  { %2724 = vmatprep.mubr.f32.mxu0 %v10064_v38  ;;  %3008 = vmatprep.mubr.f32.mxu1 %v10064_v38  ;;  %v6950_v30 = vpack.c.bf16 %v1186_v24, %v1170_v1  ;;  %v6952_v35 = vpack.c.bf16 %v1219_v28, %v1203_v27  ;;  %v1314_v19 = vld [vmem:[%s16871_s3 + $0x1890] sm:$0xff]  ;;  %v1347_v1 = vld [vmem:[%s16871_s3 + $0x1998] sm:$0xff]  ;;  %v6710_v24 = vpack.c.bf16 %v1312_v10, %v1296_v9  ;;  %v1344_v27 = vld [vmem:[%s16871_s3 + $0x1980] sm:$0xff] }
 0x113   :  { %2725 = vmatmul.mubr.f32.vlgmr.msra.gmra.mrb[4].mxu0 %v10075_v44  ;;  %3009 = vmatmul.mubr.f32.vlgmr.msra.gmra.mrb[4].mxu1 %v10075_v44  ;;  %v10148_v21 = vsel %vm507_vm2, %v360_v3, %v515_v12  ;;  %v1313_v3 = vld [vmem:[%s16871_s3 + $0x1888] sm:$0xff]  ;;  %v1411_v51 = vld [vmem:[%s16871_s3 + $0x1b98] sm:$0xff]  ;;  %v1426_v10 = vld [vmem:[%s16871_s3 + $0x1c10] sm:$0xff] }
 0x114   :  { %6679 = vmatpush1.bf16.msra.mxu0 %v6678_v33  ;;  %6935 = vmatpush1.bf16.msra.mxu1 %v6934_v34  ;;  %v1216_v33 = vld [vmem:[%s16871_s3 + $0x1580] sm:$0xff]  ;;  %v6696_v34 = vpack.c.bf16 %v1217_v26, %v1201_v25  ;;  %v6708_v12 = vpack.c.bf16 %v1313_v3, %v1297_v2  ;;  %v1443_v2 = vld [vmem:[%s16871_s3 + $0x1c98] sm:$0xff] }
 0x115   :  { %6681 = vmatprep.subr.bf16.mxu0 %v6680_v39  ;;  %6937 = vmatprep.subr.bf16.mxu1 %v6936_v40  ;;  %v1218_v39 = vld [vmem:[%s16871_s3 + $0x1590] sm:$0xff]  ;;  %v1233_v40 = vld [vmem:[%s16871_s3 + $0x1608] sm:$0xff]  ;;  %v6698_v45 = vpack.c.bf16 %v1216_v33, %v1200_v32  ;;  %v1328_v26 = vld [vmem:[%s16871_s3 + $0x1900] sm:$0xff] }
 0x116   :  { %2795 = vmatprep.mubr.f32.mxu0 %v10148_v21  ;;  %3079 = vmatprep.mubr.f32.mxu1 %v10148_v21  ;;  %v6954_v46 = vpack.c.bf16 %v1218_v39, %v1202_v36  ;;  %v1346_v32 = vld [vmem:[%s16871_s3 + $0x1990] sm:$0xff]  ;;  %v1361_v33 = vld [vmem:[%s16871_s3 + $0x1a08] sm:$0xff]  ;;  %v1379_v36 = vld [vmem:[%s16871_s3 + $0x1a98] sm:$0xff]  ;;  %v6714_v39 = vpack.c.bf16 %v1344_v27, %v1328_v26 }
 0x117   :  { %v1458_v27 = vld [vmem:[%s16871_s3 + $0x1d10] sm:$0xff] }
 0x118   :  { %6683 = vmatpush1.bf16.msra.mxu0 %v6682_v48  ;;  %6939 = vmatpush1.bf16.msra.mxu1 %v6938_v49  ;;  %v1248_v48 = vld [vmem:[%s16871_s3 + $0x1680] sm:$0xff]  ;;  %v6700_v49 = vpack.c.bf16 %v1249_v41, %v1233_v40 }
 0x119   :  { %6685 = vmatprep.subr.bf16.mxu0 %v6684_v31  ;;  %6941 = vmatprep.subr.bf16.mxu1 %v6940_v53  ;;  %v1265_v31 = vld [vmem:[%s16871_s3 + $0x1708] sm:$0xff]  ;;  %v6702_v56 = vpack.c.bf16 %v1248_v48, %v1232_v47  ;;  %v1360_v41 = vld [vmem:[%s16871_s3 + $0x1a00] sm:$0xff]  ;;  %v1378_v47 = vld [vmem:[%s16871_s3 + $0x1a90] sm:$0xff] }
 0x11a   :  { %v1281_v53 = vld [vmem:[%s16871_s3 + $0x1788] sm:$0xff] }
 0x11b   :  { %v6704_v61 = vpack.c.bf16 %v1281_v53, %v1265_v31  ;;  %v1393_v48 = vld [vmem:[%s16871_s3 + $0x1b08] sm:$0xff]  ;;  %v6718_v53 = vpack.c.bf16 %v1376_v42, %v1360_v41  ;;  %v1504_v41 = vld [vmem:[%s16871_s3 + $0x1e80] sm:$0xff] }
 0x11c   :  { %6687 = vmatpush1.bf16.msra.mxu0 %v6686_v62  ;;  %6943 = vmatpush1.bf16.msra.mxu1 %v6942_v63  ;;  %v6960_v62 = vpack.c.bf16 %v1283_v55, %v1267_v54  ;;  %v1266_v63 = vld [vmem:[%s16871_s3 + $0x1710] sm:$0xff]  ;;  %v1392_v55 = vld [vmem:[%s16871_s3 + $0x1b00] sm:$0xff] }
 0x11d   :  { %6689 = vmatprep.subr.bf16.mxu0 %v6688_v4  ;;  %6945 = vmatprep.subr.bf16.mxu1 %v6944_v5  ;;  %v1299_v4 = vld [vmem:[%s16871_s3 + $0x1818] sm:$0xff]  ;;  %v6962_v8 = vpack.c.bf16 %v1282_v0, %v1266_v63  ;;  %v1441_v63 = vld [vmem:[%s16871_s3 + $0x1c88] sm:$0xff] }
 0x11e   :  { %v1315_v5 = vld [vmem:[%s16871_s3 + $0x1898] sm:$0xff] }
 0x11f   :  { %v1427_v0 = vld [vmem:[%s16871_s3 + $0x1c18] sm:$0xff] }
 0x120   :  { %6691 = vmatpush1.bf16.msra.mxu0 %v6690_v17  ;;  %6947 = vmatpush1.bf16.msra.mxu1 %v6946_v18  ;;  %v6964_v17 = vpack.c.bf16 %v1315_v5, %v1299_v4  ;;  %v1298_v18 = vld [vmem:[%s16871_s3 + $0x1810] sm:$0xff]  ;;  %v1424_v5 = vld [vmem:[%s16871_s3 + $0x1c00] sm:$0xff]  ;;  %v6980_v9 = vpack.c.bf16 %v1443_v2, %v1427_v0  ;;  %v1569_v0 = vld [vmem:[%s16871_s3 + $0x2088] sm:$0xff] }
 0x121   :  { %6693 = vmatprep.subr.bf16.mxu0 %v6692_v22  ;;  %6949 = vmatprep.subr.bf16.mxu1 %v6948_v23  ;;  %v1345_v22 = vld [vmem:[%s16871_s3 + $0x1988] sm:$0xff]  ;;  %v1331_v23 = vld [vmem:[%s16871_s3 + $0x1918] sm:$0xff]  ;;  %v6966_v25 = vpack.c.bf16 %v1314_v19, %v1298_v18 }
 0x122   :  { %v6712_v28 = vpack.c.bf16 %v1345_v22, %v1329_v20  ;;  %v1473_v18 = vld [vmem:[%s16871_s3 + $0x1d88] sm:$0xff]  ;;  %v1459_v19 = vld [vmem:[%s16871_s3 + $0x1d18] sm:$0xff] }
 0x123   :  { %v1475_v20 = vld [vmem:[%s16871_s3 + $0x1d98] sm:$0xff] }
 0x124   :  { %6695 = vmatpush1.bf16.msra.mxu0 %v6694_v29  ;;  %6951 = vmatpush1.bf16.msra.mxu1 %v6950_v30  ;;  %v6968_v29 = vpack.c.bf16 %v1347_v1, %v1331_v23  ;;  %v1330_v30 = vld [vmem:[%s16871_s3 + $0x1910] sm:$0xff]  ;;  %v1456_v1 = vld [vmem:[%s16871_s3 + $0x1d00] sm:$0xff]  ;;  %v6984_v26 = vpack.c.bf16 %v1475_v20, %v1459_v19  ;;  %v1555_v2 = vld [vmem:[%s16871_s3 + $0x2018] sm:$0xff] }
 0x125   :  { %6697 = vmatprep.subr.bf16.mxu0 %v6696_v34  ;;  %6953 = vmatprep.subr.bf16.mxu1 %v6952_v35  ;;  %v1377_v34 = vld [vmem:[%s16871_s3 + $0x1a88] sm:$0xff]  ;;  %v1363_v35 = vld [vmem:[%s16871_s3 + $0x1a18] sm:$0xff]  ;;  %v6970_v40 = vpack.c.bf16 %v1346_v32, %v1330_v30  ;;  %v10386_v30 = vsub.s32 2, %v10014_v13 }
 0x126   :  { %v6716_v43 = vpack.c.bf16 %v1377_v34, %v1361_v33  ;;  %v1505_v32 = vld [vmem:[%s16871_s3 + $0x1e88] sm:$0xff]  ;;  %v1491_v33 = vld [vmem:[%s16871_s3 + $0x1e18] sm:$0xff] }
 0x127   :  { %v1507_v34 = vld [vmem:[%s16871_s3 + $0x1e98] sm:$0xff]  ;;  %v1601_v19 = vld [vmem:[%s16871_s3 + $0x2188] sm:$0xff] }
 0x128   :  { %6699 = vmatpush1.bf16.msra.mxu0 %v6698_v45  ;;  %6955 = vmatpush1.bf16.msra.mxu1 %v6954_v46  ;;  %v6972_v45 = vpack.c.bf16 %v1379_v36, %v1363_v35  ;;  %v1362_v46 = vld [vmem:[%s16871_s3 + $0x1a10] sm:$0xff]  ;;  %v10398_v35 = vsub.s32 5, %v10014_v13  ;;  %v1587_v20 = vld [vmem:[%s16871_s3 + $0x2118] sm:$0xff] }
 0x129   :  { %6701 = vmatprep.subr.bf16.mxu0 %v6700_v49  ;;  %6957 = vmatprep.subr.bf16.mxu1 %v6956_v50  ;;  %v1409_v49 = vld [vmem:[%s16871_s3 + $0x1b88] sm:$0xff]  ;;  %v1395_v50 = vld [vmem:[%s16871_s3 + $0x1b18] sm:$0xff]  ;;  %v6974_v54 = vpack.c.bf16 %v1378_v47, %v1362_v46  ;;  %v1506_v46 = vld [vmem:[%s16871_s3 + $0x1e90] sm:$0xff] }
 0x12a   :  { %v6976_v58 = vpack.c.bf16 %v1411_v51, %v1395_v50  ;;  %v1521_v47 = vld [vmem:[%s16871_s3 + $0x1f08] sm:$0xff]  ;;  %v1523_v50 = vld [vmem:[%s16871_s3 + $0x1f18] sm:$0xff] }
 0x12b   :  { %v10242_v6 = vpop.f32.mrb[2].mxu0  ;;  %v1539_v51 = vld [vmem:[%s16871_s3 + $0x1f98] sm:$0xff] }
 0x12c   :  { %6703 = vmatpush1.bf16.msra.mxu0 %v6702_v56  ;;  %6959 = vmatpush1.bf16.msra.mxu1 %v6958_v57  ;;  %v10250_v11 = vpop.f32.mrb[3].mxu0  ;;  %v1408_v56 = vld [vmem:[%s16871_s3 + $0x1b80] sm:$0xff]  ;;  %v6720_v57 = vpack.c.bf16 %v1409_v49, %v1393_v48  ;;  %v191_v48 = vrot.slane %v10022_v15, %v10386_v30  ;;  %v1537_v49 = vld [vmem:[%s16871_s3 + $0x1f88] sm:$0xff] }
 0x12d   :  { %6705 = vmatprep.subr.bf16.mxu0 %v6704_v61  ;;  %6961 = vmatprep.subr.bf16.mxu1 %v6960_v62  ;;  %v10318_v52 = vpop.f32.mrb[2].mxu1  ;;  %v1410_v61 = vld [vmem:[%s16871_s3 + $0x1b90] sm:$0xff]  ;;  %v1425_v62 = vld [vmem:[%s16871_s3 + $0x1c08] sm:$0xff]  ;;  %v6722_v3 = vpack.c.bf16 %v1408_v56, %v1392_v55  ;;  %v1520_v56 = vld [vmem:[%s16871_s3 + $0x1f00] sm:$0xff] }
 0x12e   :  { %v10320_v31 = vpop.f32.mrb[3].mxu1  ;;  %v6978_v4 = vpack.c.bf16 %v1410_v61, %v1394_v59  ;;  %v6992_v59 = vpack.c.bf16 %v1539_v51, %v1523_v50  ;;  %v1538_v61 = vld [vmem:[%s16871_s3 + $0x1f90] sm:$0xff]  ;;  %v1649_v51 = vld [vmem:[%s16871_s3 + $0x2308] sm:$0xff] }
 0x12f   :  { %v1634_v50 = vld [vmem:[%s16871_s3 + $0x2290] sm:$0xff] }
 0x130   :  { %6707 = vmatpush1.bf16.msra.mxu0 %v6706_v7  ;;  %6963 = vmatpush1.bf16.msra.mxu1 %v6962_v8  ;;  %v1440_v7 = vld [vmem:[%s16871_s3 + $0x1c80] sm:$0xff]  ;;  %v6724_v8 = vpack.c.bf16 %v1441_v63, %v1425_v62  ;;  %v1553_v62 = vld [vmem:[%s16871_s3 + $0x2008] sm:$0xff]  ;;  %v358_v63 = vadd.f32 %v10116_v60, %v191_v48 }
 0x131   :  { %6709 = vmatprep.subr.bf16.mxu0 %v6708_v12  ;;  %6965 = vmatprep.subr.bf16.mxu1 %v6964_v17  ;;  %v1442_v12 = vld [vmem:[%s16871_s3 + $0x1c90] sm:$0xff]  ;;  %v1457_v17 = vld [vmem:[%s16871_s3 + $0x1d08] sm:$0xff]  ;;  %v6726_v22 = vpack.c.bf16 %v1440_v7, %v1424_v5  ;;  %v1552_v60 = vld [vmem:[%s16871_s3 + $0x2000] sm:$0xff] }
 0x132   :  { %v6982_v23 = vpack.c.bf16 %v1442_v12, %v1426_v10  ;;  %v1570_v12 = vld [vmem:[%s16871_s3 + $0x2090] sm:$0xff]  ;;  %vm506_vm3 = vcmp.gt.f32.partialorder %v358_v63, 0.0 }
 0x134   :  { %6711 = vmatpush1.bf16.msra.mxu0 %v6710_v24  ;;  %6967 = vmatpush1.bf16.msra.mxu1 %v6966_v25  ;;  %v1472_v24 = vld [vmem:[%s16871_s3 + $0x1d80] sm:$0xff]  ;;  %v6728_v25 = vpack.c.bf16 %v1473_v18, %v1457_v17  ;;  %v1585_v17 = vld [vmem:[%s16871_s3 + $0x2108] sm:$0xff]  ;;  %v514_v18 = vmul.f32 0.2, %v358_v63 }
 0x135   :  { %6713 = vmatprep.subr.bf16.mxu0 %v6712_v28  ;;  %6969 = vmatprep.subr.bf16.mxu1 %v6968_v29  ;;  %v1474_v28 = vld [vmem:[%s16871_s3 + $0x1d90] sm:$0xff]  ;;  %v1489_v29 = vld [vmem:[%s16871_s3 + $0x1e08] sm:$0xff]  ;;  %v6730_v36 = vpack.c.bf16 %v1472_v24, %v1456_v1 }
 0x136   :  { %v6732_v42 = vpack.c.bf16 %v1505_v32, %v1489_v29  ;;  %v1586_v29 = vld [vmem:[%s16871_s3 + $0x2110] sm:$0xff] }
 0x137   :  { %v1602_v32 = vld [vmem:[%s16871_s3 + $0x2190] sm:$0xff] }
 0x138   :  { %6715 = vmatpush1.bf16.msra.mxu0 %v6714_v39  ;;  %6971 = vmatpush1.bf16.msra.mxu1 %v6970_v40  ;;  %v6986_v39 = vpack.c.bf16 %v1474_v28, %v1458_v27  ;;  %v1488_v40 = vld [vmem:[%s16871_s3 + $0x1e00] sm:$0xff]  ;;  %v6744_v27 = vpack.c.bf16 %v1601_v19, %v1585_v17  ;;  %v1713_v17 = vld [vmem:[%s16871_s3 + $0x2508] sm:$0xff]  ;;  %v1715_v19 = vld [vmem:[%s16871_s3 + $0x2518] sm:$0xff] }
 0x139   :  { %6717 = vmatprep.subr.bf16.mxu0 %v6716_v43  ;;  %6973 = vmatprep.subr.bf16.mxu1 %v6972_v45  ;;  %v6988_v43 = vpack.c.bf16 %v1507_v34, %v1491_v33  ;;  %v1490_v45 = vld [vmem:[%s16871_s3 + $0x1e10] sm:$0xff]  ;;  %v1617_v33 = vld [vmem:[%s16871_s3 + $0x2208] sm:$0xff]  ;;  %v10494_v34 = vsel %vm506_vm3, %v358_v63, %v514_v18  ;;  %vm5846_vm3 = vcmask 523264  }
 0x13a   :  { %v6990_v55 = vpack.c.bf16 %v1506_v46, %v1490_v45  ;;  %v1616_v45 = vld [vmem:[%s16871_s3 + $0x2200] sm:$0xff]  ;;  %v1666_v63 = vld [vmem:[%s16871_s3 + $0x2390] sm:$0xff]  ;;  %v1729_v18 = vld [vmem:[%s16871_s3 + $0x2588] sm:$0xff] }
 0x13b   :  { %v1632_v46 = vld [vmem:[%s16871_s3 + $0x2280] sm:$0xff] }
 0x13c   :  { %6719 = vmatpush1.bf16.msra.mxu0 %v6718_v53  ;;  %6975 = vmatpush1.bf16.msra.mxu1 %v6974_v54  ;;  %v203_v53 = vrot.slane %v10022_v15, %v10398_v35  ;;  %v6734_v54 = vpack.c.bf16 %v1504_v41, %v1488_v40  ;;  %v1522_v15 = vld [vmem:[%s16871_s3 + $0x1f10] sm:$0xff]  ;;  %v1635_v40 = vld [vmem:[%s16871_s3 + $0x2298] sm:$0xff] }
 0x13d   :  { %6721 = vmatprep.subr.bf16.mxu0 %v6720_v57  ;;  %6977 = vmatprep.subr.bf16.mxu1 %v6976_v58  ;;  %v1536_v57 = vld [vmem:[%s16871_s3 + $0x1f80] sm:$0xff]  ;;  %v6736_v58 = vpack.c.bf16 %v1537_v49, %v1521_v47  ;;  %v6994_v7 = vpack.c.bf16 %v1538_v61, %v1522_v15  ;;  %v1618_v49 = vld [vmem:[%s16871_s3 + $0x2210] sm:$0xff] }
 0x13e   :  { %v6738_v5 = vpack.c.bf16 %v1536_v57, %v1520_v56  ;;  %v6750_v56 = vpack.c.bf16 %v1632_v46, %v1616_v45  ;;  %v7006_v57 = vpack.c.bf16 %v1634_v50, %v1618_v49  ;;  %v1777_v49 = vld [vmem:[%s16871_s3 + $0x2708] sm:$0xff] }
 0x13f   :  { %v1793_v50 = vld [vmem:[%s16871_s3 + $0x2788] sm:$0xff] }
 0x140   :  { %6723 = vmatpush1.bf16.msra.mxu0 %v6722_v3  ;;  %6979 = vmatpush1.bf16.msra.mxu1 %v6978_v4  ;;  %v1571_v3 = vld [vmem:[%s16871_s3 + $0x2098] sm:$0xff]  ;;  %v431_v4 = vadd.f32 %v10250_v11, %v203_v53  ;;  %v1554_v11 = vld [vmem:[%s16871_s3 + $0x2010] sm:$0xff]  ;;  %v1665_v53 = vld [vmem:[%s16871_s3 + $0x2388] sm:$0xff] }
 0x141   :  { %6725 = vmatprep.subr.bf16.mxu0 %v6724_v8  ;;  %6981 = vmatprep.subr.bf16.mxu1 %v6980_v9  ;;  %v1568_v8 = vld [vmem:[%s16871_s3 + $0x2080] sm:$0xff]  ;;  %v6740_v9 = vpack.c.bf16 %v1569_v0, %v1553_v62  ;;  %v6996_v10 = vpack.c.bf16 %v1571_v3, %v1555_v2  ;;  %v6998_v24 = vpack.c.bf16 %v1570_v12, %v1554_v11  ;;  %v1650_v62 = vld [vmem:[%s16871_s3 + $0x2310] sm:$0xff]  ;;  %v1681_v0 = vld [vmem:[%s16871_s3 + $0x2408] sm:$0xff] }
 0x142   :  { %v6742_v1 = vpack.c.bf16 %v1568_v8, %v1552_v60  ;;  %vm509_vm4 = vcmp.gt.f32.partialorder %v431_v4, 0.0  ;;  %v6752_v15 = vpack.c.bf16 %v1665_v53, %v1649_v51  ;;  %v1697_v2 = vld [vmem:[%s16871_s3 + $0x2488] sm:$0xff]  ;;  %v1683_v3 = vld [vmem:[%s16871_s3 + $0x2418] sm:$0xff]  ;;  %v1680_v60 = vld [vmem:[%s16871_s3 + $0x2400] sm:$0xff] }
 0x143   :  { %v1696_v8 = vld [vmem:[%s16871_s3 + $0x2480] sm:$0xff]  ;;  %v1682_v11 = vld [vmem:[%s16871_s3 + $0x2410] sm:$0xff]  ;;  %v1779_v51 = vld [vmem:[%s16871_s3 + $0x2718] sm:$0xff] }
 0x144   :  { %6727 = vmatpush1.bf16.msra.mxu0 %v6726_v22  ;;  %6983 = vmatpush1.bf16.msra.mxu1 %v6982_v23  ;;  %v1603_v22 = vld [vmem:[%s16871_s3 + $0x2198] sm:$0xff]  ;;  %v517_v23 = vmul.f32 0.2, %v431_v4  ;;  %v1698_v12 = vld [vmem:[%s16871_s3 + $0x2490] sm:$0xff] }
 0x145   :  { %6729 = vmatprep.subr.bf16.mxu0 %v6728_v25  ;;  %6985 = vmatprep.subr.bf16.mxu1 %v6984_v26  ;;  %v1584_v25 = vld [vmem:[%s16871_s3 + $0x2100] sm:$0xff]  ;;  %v7000_v28 = vpack.c.bf16 %v1603_v22, %v1587_v20  ;;  %v1731_v20 = vld [vmem:[%s16871_s3 + $0x2598] sm:$0xff]  ;;  %v6758_v22 = vpack.c.bf16 %v1696_v8, %v1680_v60 }
 0x146   :  { %v1600_v26 = vld [vmem:[%s16871_s3 + $0x2180] sm:$0xff]  ;;  %v10507_v41 = vsel %vm509_vm4, %v431_v4, %v517_v23  ;;  %v1699_v4 = vld [vmem:[%s16871_s3 + $0x2498] sm:$0xff]  ;;  %v7014_v23 = vpack.c.bf16 %v1698_v12, %v1682_v11  ;;  %v1841_v11 = vld [vmem:[%s16871_s3 + $0x2908] sm:$0xff] }
 0x147   :  { %v1795_v53 = vld [vmem:[%s16871_s3 + $0x2798] sm:$0xff]  ;;  %v1857_v12 = vld [vmem:[%s16871_s3 + $0x2988] sm:$0xff] }
 0x148   :  { %6731 = vmatpush1.bf16.msra.mxu0 %v6730_v36  ;;  %6987 = vmatpush1.bf16.msra.mxu1 %v6986_v39  ;;  %v1633_v36 = vld [vmem:[%s16871_s3 + $0x2288] sm:$0xff]  ;;  %v1619_v39 = vld [vmem:[%s16871_s3 + $0x2218] sm:$0xff] }
 0x149   :  { %6733 = vmatprep.subr.bf16.mxu0 %v6732_v42  ;;  %6989 = vmatprep.subr.bf16.mxu1 %v6988_v43  ;;  %v6746_v42 = vpack.c.bf16 %v1600_v26, %v1584_v25  ;;  %v7002_v43 = vpack.c.bf16 %v1602_v32, %v1586_v29  ;;  %v6748_v47 = vpack.c.bf16 %v1633_v36, %v1617_v33  ;;  %v1745_v29 = vld [vmem:[%s16871_s3 + $0x2608] sm:$0xff]  ;;  %v1747_v33 = vld [vmem:[%s16871_s3 + $0x2618] sm:$0xff] }
 0x14a   :  { %v7004_v48 = vpack.c.bf16 %v1635_v40, %v1619_v39  ;;  %v6760_v25 = vpack.c.bf16 %v1729_v18, %v1713_v17  ;;  %v7016_v26 = vpack.c.bf16 %v1731_v20, %v1715_v19  ;;  %v1761_v32 = vld [vmem:[%s16871_s3 + $0x2688] sm:$0xff]  ;;  %v1763_v36 = vld [vmem:[%s16871_s3 + $0x2698] sm:$0xff] }
 0x14b   :  { %v6764_v45 = vpack.c.bf16 %v1761_v32, %v1745_v29  ;;  %v7020_v46 = vpack.c.bf16 %v1763_v36, %v1747_v33  ;;  %v1843_v17 = vld [vmem:[%s16871_s3 + $0x2918] sm:$0xff] }
 0x14c   :  { %6735 = vmatpush1.bf16.msra.mxu0 %v6734_v54  ;;  %6991 = vmatpush1.bf16.msra.mxu1 %v6990_v55  ;;  %v1651_v54 = vld [vmem:[%s16871_s3 + $0x2318] sm:$0xff] }
 0x14d   :  { %6737 = vmatprep.subr.bf16.mxu0 %v6736_v58  ;;  %6993 = vmatprep.subr.bf16.mxu1 %v6992_v59  ;;  %v1667_v55 = vld [vmem:[%s16871_s3 + $0x2398] sm:$0xff]  ;;  %v1648_v58 = vld [vmem:[%s16871_s3 + $0x2300] sm:$0xff] }
 0x14e   :  { %v1664_v59 = vld [vmem:[%s16871_s3 + $0x2380] sm:$0xff]  ;;  %v7008_v61 = vpack.c.bf16 %v1667_v55, %v1651_v54  ;;  %v1859_v18 = vld [vmem:[%s16871_s3 + $0x2998] sm:$0xff] }
 0x14f   :  { %v1875_v29 = vld [vmem:[%s16871_s3 + $0x2a18] sm:$0xff] }
 0x150   :  { %6739 = vmatpush1.bf16.msra.mxu0 %v6738_v5  ;;  %6995 = vmatpush1.bf16.msra.mxu1 %v6994_v7  ;;  %v6754_v5 = vpack.c.bf16 %v1664_v59, %v1648_v58  ;;  %v7010_v7 = vpack.c.bf16 %v1666_v63, %v1650_v62  ;;  %v6768_v58 = vpack.c.bf16 %v1793_v50, %v1777_v49  ;;  %v1809_v62 = vld [vmem:[%s16871_s3 + $0x2808] sm:$0xff]  ;;  %v1891_v32 = vld [vmem:[%s16871_s3 + $0x2a98] sm:$0xff] }
 0x151   :  { %6741 = vmatprep.subr.bf16.mxu0 %v6740_v9  ;;  %6997 = vmatprep.subr.bf16.mxu1 %v6996_v10  ;;  %v6756_v9 = vpack.c.bf16 %v1697_v2, %v1681_v0  ;;  %v7012_v10 = vpack.c.bf16 %v1699_v4, %v1683_v3  ;;  %v7024_v59 = vpack.c.bf16 %v1795_v53, %v1779_v51  ;;  %v1825_v63 = vld [vmem:[%s16871_s3 + $0x2888] sm:$0xff]  ;;  %v1811_v0 = vld [vmem:[%s16871_s3 + $0x2818] sm:$0xff] }
 0x152   :  { %v1827_v2 = vld [vmem:[%s16871_s3 + $0x2898] sm:$0xff]  ;;  %v6772_v60 = vpack.c.bf16 %v1825_v63, %v1809_v62 }
 0x153   :  { %2796 = vmatmul.mubr.f32.vlgmr.msra.gmra.mrb[4].mxu0 %v10494_v34  ;;  %3080 = vmatmul.mubr.f32.vlgmr.msra.gmra.mrb[4].mxu1 %v10494_v34  ;;  %v7028_v8 = vpack.c.bf16 %v1827_v2, %v1811_v0  ;;  %v1907_v49 = vld [vmem:[%s16871_s3 + $0x2b18] sm:$0xff] }
 0x154   :  { %6743 = vmatpush1.bf16.msra.mxu0 %v6742_v1  ;;  %6999 = vmatpush1.bf16.msra.mxu1 %v6998_v24  ;;  %v1712_v1 = vld [vmem:[%s16871_s3 + $0x2500] sm:$0xff]  ;;  %v1923_v50 = vld [vmem:[%s16871_s3 + $0x2b98] sm:$0xff] }
 0x155   :  { %6745 = vmatprep.subr.bf16.mxu0 %v6744_v27  ;;  %7001 = vmatprep.subr.bf16.mxu1 %v7000_v28  ;;  %v1728_v24 = vld [vmem:[%s16871_s3 + $0x2580] sm:$0xff]  ;;  %v1714_v27 = vld [vmem:[%s16871_s3 + $0x2510] sm:$0xff]  ;;  %v1939_v62 = vld [vmem:[%s16871_s3 + $0x2c18] sm:$0xff] }
 0x156   :  { %2866 = vmatprep.mubr.f32.mxu0 %v10507_v41  ;;  %3150 = vmatprep.mubr.f32.mxu1 %v10507_v41  ;;  %v1730_v28 = vld [vmem:[%s16871_s3 + $0x2590] sm:$0xff]  ;;  %v6762_v39 = vpack.c.bf16 %v1728_v24, %v1712_v1  ;;  %v6776_v1 = vpack.c.bf16 %v1857_v12, %v1841_v11  ;;  %v7032_v24 = vpack.c.bf16 %v1859_v18, %v1843_v17  ;;  %v1955_v63 = vld [vmem:[%s16871_s3 + $0x2c98] sm:$0xff] }
 0x157   :  { %v7018_v40 = vpack.c.bf16 %v1730_v28, %v1714_v27  ;;  %v1873_v27 = vld [vmem:[%s16871_s3 + $0x2a08] sm:$0xff]  ;;  %v1971_v11 = vld [vmem:[%s16871_s3 + $0x2d18] sm:$0xff] }
 0x158   :  { %6747 = vmatpush1.bf16.msra.mxu0 %v6746_v42  ;;  %7003 = vmatpush1.bf16.msra.mxu1 %v7002_v43  ;;  %v1744_v42 = vld [vmem:[%s16871_s3 + $0x2600] sm:$0xff]  ;;  %v1889_v28 = vld [vmem:[%s16871_s3 + $0x2a88] sm:$0xff]  ;;  %v1987_v12 = vld [vmem:[%s16871_s3 + $0x2d98] sm:$0xff] }
 0x159   :  { %6749 = vmatprep.subr.bf16.mxu0 %v6748_v47  ;;  %7005 = vmatprep.subr.bf16.mxu1 %v7004_v48  ;;  %v1760_v43 = vld [vmem:[%s16871_s3 + $0x2680] sm:$0xff]  ;;  %v1746_v47 = vld [vmem:[%s16871_s3 + $0x2610] sm:$0xff] }
 0x15a   :  { %v1762_v48 = vld [vmem:[%s16871_s3 + $0x2690] sm:$0xff]  ;;  %v6766_v54 = vpack.c.bf16 %v1760_v43, %v1744_v42  ;;  %v6780_v42 = vpack.c.bf16 %v1889_v28, %v1873_v27  ;;  %v7036_v43 = vpack.c.bf16 %v1891_v32, %v1875_v29  ;;  %v2017_v27 = vld [vmem:[%s16871_s3 + $0x2e88] sm:$0xff]  ;;  %v2003_v28 = vld [vmem:[%s16871_s3 + $0x2e18] sm:$0xff]  ;;  %v10803_v32 = vsub.s32 7, %v10014_v13 }
 0x15b   :  { %v7022_v55 = vpack.c.bf16 %v1762_v48, %v1746_v47  ;;  %v1905_v47 = vld [vmem:[%s16871_s3 + $0x2b08] sm:$0xff]  ;;  %v2019_v29 = vld [vmem:[%s16871_s3 + $0x2e98] sm:$0xff] }
 0x15c   :  { %6751 = vmatpush1.bf16.msra.mxu0 %v6750_v56  ;;  %7007 = vmatpush1.bf16.msra.mxu1 %v7006_v57  ;;  %v1776_v56 = vld [vmem:[%s16871_s3 + $0x2700] sm:$0xff]  ;;  %v1921_v48 = vld [vmem:[%s16871_s3 + $0x2b88] sm:$0xff] }
 0x15d   :  { %6753 = vmatprep.subr.bf16.mxu0 %v6752_v15  ;;  %7009 = vmatprep.subr.bf16.mxu1 %v7008_v61  ;;  %v1792_v57 = vld [vmem:[%s16871_s3 + $0x2780] sm:$0xff]  ;;  %v1778_v15 = vld [vmem:[%s16871_s3 + $0x2710] sm:$0xff] }
 0x15e   :  { %v1794_v61 = vld [vmem:[%s16871_s3 + $0x2790] sm:$0xff]  ;;  %v6770_v3 = vpack.c.bf16 %v1792_v57, %v1776_v56  ;;  %v6784_v56 = vpack.c.bf16 %v1921_v48, %v1905_v47  ;;  %v7040_v57 = vpack.c.bf16 %v1923_v50, %v1907_v49  ;;  %v2033_v47 = vld [vmem:[%s16871_s3 + $0x2f08] sm:$0xff]  ;;  %v10823_v48 = vld [vmem:[%s16870_s2] sm:$0xff] }
 0x15f   :  { %v7026_v4 = vpack.c.bf16 %v1794_v61, %v1778_v15  ;;  %v1937_v15 = vld [vmem:[%s16871_s3 + $0x2c08] sm:$0xff] }
 0x160   :  { %6755 = vmatpush1.bf16.msra.mxu0 %v6754_v5  ;;  %7011 = vmatpush1.bf16.msra.mxu1 %v7010_v7  ;;  %v1808_v5 = vld [vmem:[%s16871_s3 + $0x2800] sm:$0xff]  ;;  %v1953_v61 = vld [vmem:[%s16871_s3 + $0x2c88] sm:$0xff] }
 0x161   :  { %6757 = vmatprep.subr.bf16.mxu0 %v6756_v9  ;;  %7013 = vmatprep.subr.bf16.mxu1 %v7012_v10  ;;  %v1824_v7 = vld [vmem:[%s16871_s3 + $0x2880] sm:$0xff]  ;;  %v1810_v9 = vld [vmem:[%s16871_s3 + $0x2810] sm:$0xff]  ;;  %v2049_v50 = vld [vmem:[%s16871_s3 + $0x2f88] sm:$0xff] }
 0x162   :  { %v1826_v10 = vld [vmem:[%s16871_s3 + $0x2890] sm:$0xff]  ;;  %v6774_v19 = vpack.c.bf16 %v1824_v7, %v1808_v5  ;;  %v6788_v5 = vpack.c.bf16 %v1953_v61, %v1937_v15  ;;  %v7044_v7 = vpack.c.bf16 %v1955_v63, %v1939_v62  ;;  %v2065_v63 = vld [vmem:[%s16871_s3 + $0x3008] sm:$0xff] }
 0x163   :  { %v7030_v20 = vpack.c.bf16 %v1826_v10, %v1810_v9  ;;  %v1969_v9 = vld [vmem:[%s16871_s3 + $0x2d08] sm:$0xff]  ;;  %v2034_v61 = vld [vmem:[%s16871_s3 + $0x2f10] sm:$0xff] }
 0x164   :  { %6759 = vmatpush1.bf16.msra.mxu0 %v6758_v22  ;;  %7015 = vmatpush1.bf16.msra.mxu1 %v7014_v23  ;;  %v1840_v22 = vld [vmem:[%s16871_s3 + $0x2900] sm:$0xff]  ;;  %v1985_v10 = vld [vmem:[%s16871_s3 + $0x2d88] sm:$0xff]  ;;  %v2050_v62 = vld [vmem:[%s16871_s3 + $0x2f90] sm:$0xff] }
 0x165   :  { %6761 = vmatprep.subr.bf16.mxu0 %v6760_v25  ;;  %7017 = vmatprep.subr.bf16.mxu1 %v7016_v26  ;;  %v1856_v23 = vld [vmem:[%s16871_s3 + $0x2980] sm:$0xff]  ;;  %v1842_v25 = vld [vmem:[%s16871_s3 + $0x2910] sm:$0xff] }
 0x166   :  { %v1858_v26 = vld [vmem:[%s16871_s3 + $0x2990] sm:$0xff]  ;;  %v6778_v33 = vpack.c.bf16 %v1856_v23, %v1840_v22  ;;  %v6792_v22 = vpack.c.bf16 %v1985_v10, %v1969_v9  ;;  %v7048_v23 = vpack.c.bf16 %v1987_v12, %v1971_v11  ;;  %v2097_v12 = vld [vmem:[%s16871_s3 + $0x3108] sm:$0xff] }
 0x167   :  { %v7034_v36 = vpack.c.bf16 %v1858_v26, %v1842_v25  ;;  %v2001_v25 = vld [vmem:[%s16871_s3 + $0x2e08] sm:$0xff]  ;;  %v10791_v26 = vsub.s32 4, %v10014_v13  ;;  %v2082_v11 = vld [vmem:[%s16871_s3 + $0x3090] sm:$0xff] }
 0x168   :  { %6763 = vmatpush1.bf16.msra.mxu0 %v6762_v39  ;;  %7019 = vmatpush1.bf16.msra.mxu1 %v7018_v40  ;;  %v1872_v39 = vld [vmem:[%s16871_s3 + $0x2a00] sm:$0xff] }
 0x169   :  { %6765 = vmatprep.subr.bf16.mxu0 %v6764_v45  ;;  %7021 = vmatprep.subr.bf16.mxu1 %v7020_v46  ;;  %v1888_v40 = vld [vmem:[%s16871_s3 + $0x2a80] sm:$0xff]  ;;  %v1874_v45 = vld [vmem:[%s16871_s3 + $0x2a10] sm:$0xff]  ;;  %v199_v49 = vrot.slane %v10823_v48, %v10791_v26 }
 0x16a   :  { %v1890_v46 = vld [vmem:[%s16871_s3 + $0x2a90] sm:$0xff]  ;;  %v6782_v51 = vpack.c.bf16 %v1888_v40, %v1872_v39  ;;  %v2000_v39 = vld [vmem:[%s16871_s3 + $0x2e00] sm:$0xff] }
 0x16b   :  { %v7038_v53 = vpack.c.bf16 %v1890_v46, %v1874_v45  ;;  %v2016_v40 = vld [vmem:[%s16871_s3 + $0x2e80] sm:$0xff]  ;;  %v2002_v45 = vld [vmem:[%s16871_s3 + $0x2e10] sm:$0xff] }
 0x16c   :  { %6767 = vmatpush1.bf16.msra.mxu0 %v6766_v54  ;;  %7023 = vmatpush1.bf16.msra.mxu1 %v7022_v55  ;;  %v1904_v54 = vld [vmem:[%s16871_s3 + $0x2b00] sm:$0xff]  ;;  %v2018_v46 = vld [vmem:[%s16871_s3 + $0x2e90] sm:$0xff] }
 0x16d   :  { %6769 = vmatprep.subr.bf16.mxu0 %v6768_v58  ;;  %7025 = vmatprep.subr.bf16.mxu1 %v7024_v59  ;;  %v1920_v55 = vld [vmem:[%s16871_s3 + $0x2b80] sm:$0xff]  ;;  %v1906_v58 = vld [vmem:[%s16871_s3 + $0x2b10] sm:$0xff] }
 0x16e   :  { %v1922_v59 = vld [vmem:[%s16871_s3 + $0x2b90] sm:$0xff]  ;;  %v6786_v0 = vpack.c.bf16 %v1920_v55, %v1904_v54  ;;  %v211_v54 = vrot.slane %v10823_v48, %v10803_v32  ;;  %v6798_v55 = vpack.c.bf16 %v2016_v40, %v2000_v39  ;;  %v2145_v40 = vld [vmem:[%s16871_s3 + $0x3288] sm:$0xff] }
 0x16f   :  { %v7042_v2 = vpack.c.bf16 %v1922_v59, %v1906_v58  ;;  %v2048_v58 = vld [vmem:[%s16871_s3 + $0x2f80] sm:$0xff]  ;;  %v6800_v59 = vpack.c.bf16 %v2049_v50, %v2033_v47 }
 0x170   :  { %6771 = vmatpush1.bf16.msra.mxu0 %v6770_v3  ;;  %7027 = vmatpush1.bf16.msra.mxu1 %v7026_v4  ;;  %v1936_v3 = vld [vmem:[%s16871_s3 + $0x2c00] sm:$0xff] }
 0x171   :  { %6773 = vmatprep.subr.bf16.mxu0 %v6772_v60  ;;  %7029 = vmatprep.subr.bf16.mxu1 %v7028_v8  ;;  %v1952_v4 = vld [vmem:[%s16871_s3 + $0x2c80] sm:$0xff]  ;;  %v1938_v60 = vld [vmem:[%s16871_s3 + $0x2c10] sm:$0xff] }
 0x172   :  { %v1954_v8 = vld [vmem:[%s16871_s3 + $0x2c90] sm:$0xff]  ;;  %v6790_v17 = vpack.c.bf16 %v1952_v4, %v1936_v3  ;;  %v2067_v3 = vld [vmem:[%s16871_s3 + $0x3018] sm:$0xff]  ;;  %v2144_v50 = vld [vmem:[%s16871_s3 + $0x3280] sm:$0xff] }
 0x173   :  { %v7046_v18 = vpack.c.bf16 %v1954_v8, %v1938_v60  ;;  %v2083_v4 = vld [vmem:[%s16871_s3 + $0x3098] sm:$0xff]  ;;  %v7058_v60 = vpack.c.bf16 %v2050_v62, %v2034_v61  ;;  %v2080_v8 = vld [vmem:[%s16871_s3 + $0x3080] sm:$0xff] }
 0x174   :  { %6775 = vmatpush1.bf16.msra.mxu0 %v6774_v19  ;;  %7031 = vmatpush1.bf16.msra.mxu1 %v7030_v20  ;;  %v1968_v19 = vld [vmem:[%s16871_s3 + $0x2d00] sm:$0xff]  ;;  %v7060_v10 = vpack.c.bf16 %v2083_v4, %v2067_v3  ;;  %v2162_v3 = vld [vmem:[%s16871_s3 + $0x3310] sm:$0xff] }
 0x175   :  { %6777 = vmatprep.subr.bf16.mxu0 %v6776_v1  ;;  %7033 = vmatprep.subr.bf16.mxu1 %v7032_v24  ;;  %v1984_v20 = vld [vmem:[%s16871_s3 + $0x2d80] sm:$0xff]  ;;  %v1970_v1 = vld [vmem:[%s16871_s3 + $0x2d10] sm:$0xff] }
 0x176   :  { %v1986_v24 = vld [vmem:[%s16871_s3 + $0x2d90] sm:$0xff]  ;;  %v2160_v62 = vld [vmem:[%s16871_s3 + $0x3300] sm:$0xff] }
 0x177   :  { %v2178_v4 = vld [vmem:[%s16871_s3 + $0x3390] sm:$0xff] }
 0x178   :  { %6779 = vmatpush1.bf16.msra.mxu0 %v6778_v33  ;;  %7035 = vmatpush1.bf16.msra.mxu1 %v7034_v36  ;;  %v6794_v33 = vpack.c.bf16 %v1984_v20, %v1968_v19  ;;  %v7050_v36 = vpack.c.bf16 %v1986_v24, %v1970_v1  ;;  %v2099_v19 = vld [vmem:[%s16871_s3 + $0x3118] sm:$0xff]  ;;  %v2096_v24 = vld [vmem:[%s16871_s3 + $0x3100] sm:$0xff] }
 0x179   :  { %6781 = vmatprep.subr.bf16.mxu0 %v6780_v42  ;;  %7037 = vmatprep.subr.bf16.mxu1 %v7036_v43  ;;  %v6796_v42 = vpack.c.bf16 %v2017_v27, %v2001_v25  ;;  %v7052_v43 = vpack.c.bf16 %v2019_v29, %v2003_v28  ;;  %v2115_v20 = vld [vmem:[%s16871_s3 + $0x3198] sm:$0xff]  ;;  %v2112_v25 = vld [vmem:[%s16871_s3 + $0x3180] sm:$0xff]  ;;  %v2098_v29 = vld [vmem:[%s16871_s3 + $0x3110] sm:$0xff] }
 0x17a   :  { %v7064_v28 = vpack.c.bf16 %v2115_v20, %v2099_v19  ;;  %v2225_v19 = vld [vmem:[%s16871_s3 + $0x3508] sm:$0xff] }
 0x17b   :  { %v2241_v20 = vld [vmem:[%s16871_s3 + $0x3588] sm:$0xff] }
 0x17c   :  { %6783 = vmatpush1.bf16.msra.mxu0 %v6782_v51  ;;  %7039 = vmatpush1.bf16.msra.mxu1 %v7038_v53  ;;  %v2035_v51 = vld [vmem:[%s16871_s3 + $0x2f18] sm:$0xff] }
 0x17d   :  { %6785 = vmatprep.subr.bf16.mxu0 %v6784_v56  ;;  %7041 = vmatprep.subr.bf16.mxu1 %v7040_v57  ;;  %v2051_v53 = vld [vmem:[%s16871_s3 + $0x2f98] sm:$0xff]  ;;  %v7054_v56 = vpack.c.bf16 %v2018_v46, %v2002_v45  ;;  %v2032_v57 = vld [vmem:[%s16871_s3 + $0x2f00] sm:$0xff]  ;;  %v6810_v46 = vpack.c.bf16 %v2112_v25, %v2096_v24 }
 0x17e   :  { %v7056_v15 = vpack.c.bf16 %v2051_v53, %v2035_v51  ;;  %v2224_v25 = vld [vmem:[%s16871_s3 + $0x3500] sm:$0xff] }
 0x180   :  { %6787 = vmatpush1.bf16.msra.mxu0 %v6786_v0  ;;  %7043 = vmatpush1.bf16.msra.mxu1 %v7042_v2  ;;  %v429_v0 = vadd.f32 %v10242_v6, %v199_v49  ;;  %v2081_v2 = vld [vmem:[%s16871_s3 + $0x3088] sm:$0xff]  ;;  %v2064_v6 = vld [vmem:[%s16871_s3 + $0x3000] sm:$0xff] }
 0x181   :  { %6789 = vmatprep.subr.bf16.mxu0 %v6788_v5  ;;  %7045 = vmatprep.subr.bf16.mxu1 %v7044_v7  ;;  %v502_v5 = vadd.f32 %v10320_v31, %v211_v54  ;;  %v6802_v7 = vpack.c.bf16 %v2048_v58, %v2032_v57  ;;  %v6804_v9 = vpack.c.bf16 %v2081_v2, %v2065_v63  ;;  %v2066_v31 = vld [vmem:[%s16871_s3 + $0x3010] sm:$0xff]  ;;  %v2128_v49 = vld [vmem:[%s16871_s3 + $0x3200] sm:$0xff]  ;;  %v2177_v57 = vld [vmem:[%s16871_s3 + $0x3388] sm:$0xff] }
 0x182   :  { %vm508_vm5 = vcmp.gt.f32.partialorder %v429_v0, 0.0  ;;  %v7062_v1 = vpack.c.bf16 %v2082_v11, %v2066_v31  ;;  %v2130_v54 = vld [vmem:[%s16871_s3 + $0x3210] sm:$0xff]  ;;  %v2163_v58 = vld [vmem:[%s16871_s3 + $0x3318] sm:$0xff]  ;;  %v2176_v63 = vld [vmem:[%s16871_s3 + $0x3380] sm:$0xff] }
 0x183   :  { %vm511_vm6 = vcmp.gt.f32.partialorder %v502_v5, 0.0  ;;  %v2208_v31 = vld [vmem:[%s16871_s3 + $0x3480] sm:$0xff] }
 0x184   :  { %6791 = vmatpush1.bf16.msra.mxu0 %v6790_v17  ;;  %7047 = vmatpush1.bf16.msra.mxu1 %v7046_v18  ;;  %v516_v17 = vmul.f32 0.2, %v429_v0  ;;  %v2113_v18 = vld [vmem:[%s16871_s3 + $0x3188] sm:$0xff] }
 0x185   :  { %6793 = vmatprep.subr.bf16.mxu0 %v6792_v22  ;;  %7049 = vmatprep.subr.bf16.mxu1 %v7048_v23  ;;  %v519_v22 = vmul.f32 0.2, %v502_v5  ;;  %v6806_v23 = vpack.c.bf16 %v2080_v8, %v2064_v6  ;;  %v6808_v27 = vpack.c.bf16 %v2113_v18, %v2097_v12  ;;  %v2211_v6 = vld [vmem:[%s16871_s3 + $0x3498] sm:$0xff]  ;;  %v6818_v8 = vpack.c.bf16 %v2176_v63, %v2160_v62  ;;  %v2210_v18 = vld [vmem:[%s16871_s3 + $0x3490] sm:$0xff]  ;;  %v2288_v63 = vld [vmem:[%s16871_s3 + $0x3700] sm:$0xff] }
 0x186   :  { %v10904_v39 = vsel %vm508_vm5, %v429_v0, %v516_v17  ;;  %v2194_v17 = vld [vmem:[%s16871_s3 + $0x3410] sm:$0xff] }
 0x187   :  { %v10917_v45 = vsel %vm511_vm6, %v502_v5, %v519_v22  ;;  %v2193_v5 = vld [vmem:[%s16871_s3 + $0x3408] sm:$0xff]  ;;  %v2227_v22 = vld [vmem:[%s16871_s3 + $0x3518] sm:$0xff]  ;;  %v7078_v24 = vpack.c.bf16 %v2210_v18, %v2194_v17  ;;  %v2322_v18 = vld [vmem:[%s16871_s3 + $0x3810] sm:$0xff] }
 0x188   :  { %6795 = vmatpush1.bf16.msra.mxu0 %v6794_v33  ;;  %7051 = vmatpush1.bf16.msra.mxu1 %v7050_v36  ;;  %v2114_v33 = vld [vmem:[%s16871_s3 + $0x3190] sm:$0xff]  ;;  %v2129_v36 = vld [vmem:[%s16871_s3 + $0x3208] sm:$0xff] }
 0x189   :  { %6797 = vmatprep.subr.bf16.mxu0 %v6796_v42  ;;  %7053 = vmatprep.subr.bf16.mxu1 %v7052_v43  ;;  %v2131_v42 = vld [vmem:[%s16871_s3 + $0x3218] sm:$0xff]  ;;  %v7066_v47 = vpack.c.bf16 %v2114_v33, %v2098_v29  ;;  %v6812_v51 = vpack.c.bf16 %v2145_v40, %v2129_v36  ;;  %v2226_v33 = vld [vmem:[%s16871_s3 + $0x3510] sm:$0xff]  ;;  %v2257_v40 = vld [vmem:[%s16871_s3 + $0x3608] sm:$0xff] }
 0x18a   :  { %v2147_v43 = vld [vmem:[%s16871_s3 + $0x3298] sm:$0xff]  ;;  %v2242_v36 = vld [vmem:[%s16871_s3 + $0x3590] sm:$0xff] }
 0x18b   :  { %v7068_v53 = vpack.c.bf16 %v2147_v43, %v2131_v42  ;;  %v2273_v42 = vld [vmem:[%s16871_s3 + $0x3688] sm:$0xff]  ;;  %v2259_v43 = vld [vmem:[%s16871_s3 + $0x3618] sm:$0xff] }
 0x18c   :  { %6799 = vmatpush1.bf16.msra.mxu0 %v6798_v55  ;;  %7055 = vmatpush1.bf16.msra.mxu1 %v7054_v56  ;;  %v2146_v55 = vld [vmem:[%s16871_s3 + $0x3290] sm:$0xff]  ;;  %v2161_v56 = vld [vmem:[%s16871_s3 + $0x3308] sm:$0xff] }
 0x18d   :  { %6801 = vmatprep.subr.bf16.mxu0 %v6800_v59  ;;  %7057 = vmatprep.subr.bf16.mxu1 %v7056_v15  ;;  %v2179_v59 = vld [vmem:[%s16871_s3 + $0x3398] sm:$0xff]  ;;  %v6814_v15 = vpack.c.bf16 %v2144_v50, %v2128_v49  ;;  %v7070_v61 = vpack.c.bf16 %v2146_v55, %v2130_v54  ;;  %v6816_v0 = vpack.c.bf16 %v2177_v57, %v2161_v56  ;;  %v2256_v50 = vld [vmem:[%s16871_s3 + $0x3600] sm:$0xff]  ;;  %v2258_v55 = vld [vmem:[%s16871_s3 + $0x3610] sm:$0xff] }
 0x18e   :  { %v7072_v2 = vpack.c.bf16 %v2179_v59, %v2163_v58  ;;  %v7082_v49 = vpack.c.bf16 %v2242_v36, %v2226_v33  ;;  %v2274_v56 = vld [vmem:[%s16871_s3 + $0x3690] sm:$0xff]  ;;  %v2289_v57 = vld [vmem:[%s16871_s3 + $0x3708] sm:$0xff]  ;;  %v2291_v59 = vld [vmem:[%s16871_s3 + $0x3718] sm:$0xff] }
 0x18f   :  { %v2305_v58 = vld [vmem:[%s16871_s3 + $0x3788] sm:$0xff]  ;;  %v7086_v62 = vpack.c.bf16 %v2274_v56, %v2258_v55  ;;  %v2354_v36 = vld [vmem:[%s16871_s3 + $0x3910] sm:$0xff] }
 0x190   :  { %6803 = vmatpush1.bf16.msra.mxu0 %v6802_v7  ;;  %7059 = vmatpush1.bf16.msra.mxu1 %v7058_v60  ;;  %v2209_v7 = vld [vmem:[%s16871_s3 + $0x3488] sm:$0xff]  ;;  %v2195_v60 = vld [vmem:[%s16871_s3 + $0x3418] sm:$0xff]  ;;  %v2386_v56 = vld [vmem:[%s16871_s3 + $0x3a10] sm:$0xff] }
 0x191   :  { %6805 = vmatprep.subr.bf16.mxu0 %v6804_v9  ;;  %7061 = vmatprep.subr.bf16.mxu1 %v7060_v10  ;;  %v7074_v9 = vpack.c.bf16 %v2178_v4, %v2162_v3  ;;  %v2192_v10 = vld [vmem:[%s16871_s3 + $0x3400] sm:$0xff]  ;;  %v6820_v11 = vpack.c.bf16 %v2209_v7, %v2193_v5  ;;  %v7076_v12 = vpack.c.bf16 %v2211_v6, %v2195_v60  ;;  %v2290_v4 = vld [vmem:[%s16871_s3 + $0x3710] sm:$0xff]  ;;  %v2321_v7 = vld [vmem:[%s16871_s3 + $0x3808] sm:$0xff] }
 0x192   :  { %v2306_v5 = vld [vmem:[%s16871_s3 + $0x3790] sm:$0xff]  ;;  %v2337_v60 = vld [vmem:[%s16871_s3 + $0x3888] sm:$0xff]  ;;  %v2323_v6 = vld [vmem:[%s16871_s3 + $0x3818] sm:$0xff] }
 0x193   :  { %2867 = vmatmul.mubr.f32.vlgmr.msra.gmra.mrb[4].mxu0 %v10904_v39  ;;  %3151 = vmatmul.mubr.f32.vlgmr.msra.gmra.mrb[4].mxu1 %v10904_v39 }
 0x194   :  { %6807 = vmatpush1.bf16.msra.mxu0 %v6806_v23  ;;  %7063 = vmatpush1.bf16.msra.mxu1 %v7062_v1  ;;  %v2243_v23 = vld [vmem:[%s16871_s3 + $0x3598] sm:$0xff]  ;;  %v6822_v1 = vpack.c.bf16 %v2208_v31, %v2192_v10  ;;  %v7090_v10 = vpack.c.bf16 %v2306_v5, %v2290_v4  ;;  %v2320_v31 = vld [vmem:[%s16871_s3 + $0x3800] sm:$0xff]  ;;  %v2418_v5 = vld [vmem:[%s16871_s3 + $0x3b10] sm:$0xff] }
 0x195   :  { %6809 = vmatprep.subr.bf16.mxu0 %v6808_v27  ;;  %7065 = vmatprep.subr.bf16.mxu1 %v7064_v28  ;;  %v2240_v27 = vld [vmem:[%s16871_s3 + $0x3580] sm:$0xff]  ;;  %v6824_v28 = vpack.c.bf16 %v2241_v20, %v2225_v19  ;;  %v7080_v29 = vpack.c.bf16 %v2243_v23, %v2227_v22  ;;  %v2338_v19 = vld [vmem:[%s16871_s3 + $0x3890] sm:$0xff]  ;;  %v2353_v20 = vld [vmem:[%s16871_s3 + $0x3908] sm:$0xff] }
 0x196   :  { %2937 = vmatprep.mubr.f32.mxu0 %v10917_v45  ;;  %3221 = vmatprep.mubr.f32.mxu1 %v10917_v45  ;;  %v2369_v22 = vld [vmem:[%s16871_s3 + $0x3988] sm:$0xff]  ;;  %v2355_v23 = vld [vmem:[%s16871_s3 + $0x3918] sm:$0xff] }
 0x198   :  { %6811 = vmatpush1.bf16.msra.mxu0 %v6810_v46  ;;  %7067 = vmatpush1.bf16.msra.mxu1 %v7066_v47  ;;  %v2275_v46 = vld [vmem:[%s16871_s3 + $0x3698] sm:$0xff]  ;;  %v6826_v47 = vpack.c.bf16 %v2240_v27, %v2224_v25  ;;  %v7094_v25 = vpack.c.bf16 %v2338_v19, %v2322_v18  ;;  %v2352_v27 = vld [vmem:[%s16871_s3 + $0x3900] sm:$0xff]  ;;  %v2450_v19 = vld [vmem:[%s16871_s3 + $0x3c10] sm:$0xff] }
 0x199   :  { %6813 = vmatprep.subr.bf16.mxu0 %v6812_v51  ;;  %7069 = vmatprep.subr.bf16.mxu1 %v7068_v53  ;;  %v2272_v51 = vld [vmem:[%s16871_s3 + $0x3680] sm:$0xff]  ;;  %v6828_v53 = vpack.c.bf16 %v2273_v42, %v2257_v40  ;;  %v7084_v54 = vpack.c.bf16 %v2275_v46, %v2259_v43  ;;  %v2370_v40 = vld [vmem:[%s16871_s3 + $0x3990] sm:$0xff]  ;;  %v2385_v42 = vld [vmem:[%s16871_s3 + $0x3a08] sm:$0xff] }
 0x19a   :  { %v2401_v43 = vld [vmem:[%s16871_s3 + $0x3a88] sm:$0xff]  ;;  %v2387_v46 = vld [vmem:[%s16871_s3 + $0x3a18] sm:$0xff] }
 0x19c   :  { %6815 = vmatpush1.bf16.msra.mxu0 %v6814_v15  ;;  %7071 = vmatpush1.bf16.msra.mxu1 %v7070_v61  ;;  %v2307_v15 = vld [vmem:[%s16871_s3 + $0x3798] sm:$0xff]  ;;  %v6830_v61 = vpack.c.bf16 %v2272_v51, %v2256_v50  ;;  %v7098_v50 = vpack.c.bf16 %v2370_v40, %v2354_v36  ;;  %v2384_v51 = vld [vmem:[%s16871_s3 + $0x3a00] sm:$0xff]  ;;  %v2482_v40 = vld [vmem:[%s16871_s3 + $0x3d10] sm:$0xff] }
 0x19d   :  { %6817 = vmatprep.subr.bf16.mxu0 %v6816_v0  ;;  %7073 = vmatprep.subr.bf16.mxu1 %v7072_v2  ;;  %v2304_v0 = vld [vmem:[%s16871_s3 + $0x3780] sm:$0xff]  ;;  %v6832_v2 = vpack.c.bf16 %v2305_v58, %v2289_v57  ;;  %v7088_v3 = vpack.c.bf16 %v2307_v15, %v2291_v59  ;;  %v2402_v57 = vld [vmem:[%s16871_s3 + $0x3a90] sm:$0xff]  ;;  %v2417_v58 = vld [vmem:[%s16871_s3 + $0x3b08] sm:$0xff] }
 0x19e   :  { %v2433_v59 = vld [vmem:[%s16871_s3 + $0x3b88] sm:$0xff]  ;;  %v2419_v15 = vld [vmem:[%s16871_s3 + $0x3b18] sm:$0xff] }
 0x1a0   :  { %6819 = vmatpush1.bf16.msra.mxu0 %v6818_v8  ;;  %7075 = vmatpush1.bf16.msra.mxu1 %v7074_v9  ;;  %v2339_v8 = vld [vmem:[%s16871_s3 + $0x3898] sm:$0xff]  ;;  %v6834_v9 = vpack.c.bf16 %v2304_v0, %v2288_v63  ;;  %v7102_v63 = vpack.c.bf16 %v2402_v57, %v2386_v56  ;;  %v2416_v0 = vld [vmem:[%s16871_s3 + $0x3b00] sm:$0xff]  ;;  %v2514_v57 = vld [vmem:[%s16871_s3 + $0x3e10] sm:$0xff] }
 0x1a1   :  { %6821 = vmatprep.subr.bf16.mxu0 %v6820_v11  ;;  %7077 = vmatprep.subr.bf16.mxu1 %v7076_v12  ;;  %v2336_v11 = vld [vmem:[%s16871_s3 + $0x3880] sm:$0xff]  ;;  %v6836_v12 = vpack.c.bf16 %v2337_v60, %v2321_v7  ;;  %v7092_v17 = vpack.c.bf16 %v2339_v8, %v2323_v6  ;;  %v2434_v7 = vld [vmem:[%s16871_s3 + $0x3b90] sm:$0xff]  ;;  %v2449_v60 = vld [vmem:[%s16871_s3 + $0x3c08] sm:$0xff] }
 0x1a2   :  { %v2465_v6 = vld [vmem:[%s16871_s3 + $0x3c88] sm:$0xff]  ;;  %v2451_v8 = vld [vmem:[%s16871_s3 + $0x3c18] sm:$0xff] }
 0x1a4   :  { %6823 = vmatpush1.bf16.msra.mxu0 %v6822_v1  ;;  %7079 = vmatpush1.bf16.msra.mxu1 %v7078_v24  ;;  %v2371_v1 = vld [vmem:[%s16871_s3 + $0x3998] sm:$0xff]  ;;  %v6838_v24 = vpack.c.bf16 %v2336_v11, %v2320_v31  ;;  %v7106_v31 = vpack.c.bf16 %v2434_v7, %v2418_v5  ;;  %v2448_v11 = vld [vmem:[%s16871_s3 + $0x3c00] sm:$0xff]  ;;  %v2546_v7 = vld [vmem:[%s16871_s3 + $0x3f10] sm:$0xff] }
 0x1a5   :  { %6825 = vmatprep.subr.bf16.mxu0 %v6824_v28  ;;  %7081 = vmatprep.subr.bf16.mxu1 %v7080_v29  ;;  %v2368_v28 = vld [vmem:[%s16871_s3 + $0x3980] sm:$0xff]  ;;  %v6840_v29 = vpack.c.bf16 %v2369_v22, %v2353_v20  ;;  %v7096_v33 = vpack.c.bf16 %v2371_v1, %v2355_v23  ;;  %v2466_v20 = vld [vmem:[%s16871_s3 + $0x3c90] sm:$0xff]  ;;  %v2481_v22 = vld [vmem:[%s16871_s3 + $0x3d08] sm:$0xff] }
 0x1a6   :  { %v2497_v23 = vld [vmem:[%s16871_s3 + $0x3d88] sm:$0xff]  ;;  %v2483_v1 = vld [vmem:[%s16871_s3 + $0x3d18] sm:$0xff] }
 0x1a8   :  { %6827 = vmatpush1.bf16.msra.mxu0 %v6826_v47  ;;  %7083 = vmatpush1.bf16.msra.mxu1 %v7082_v49  ;;  %v2403_v47 = vld [vmem:[%s16871_s3 + $0x3a98] sm:$0xff]  ;;  %v6842_v49 = vpack.c.bf16 %v2368_v28, %v2352_v27  ;;  %v7110_v27 = vpack.c.bf16 %v2466_v20, %v2450_v19  ;;  %v2480_v28 = vld [vmem:[%s16871_s3 + $0x3d00] sm:$0xff] }
 0x1a9   :  { %6829 = vmatprep.subr.bf16.mxu0 %v6828_v53  ;;  %7085 = vmatprep.subr.bf16.mxu1 %v7084_v54  ;;  %v2400_v53 = vld [vmem:[%s16871_s3 + $0x3a80] sm:$0xff]  ;;  %v6844_v54 = vpack.c.bf16 %v2401_v43, %v2385_v42  ;;  %v7100_v55 = vpack.c.bf16 %v2403_v47, %v2387_v46  ;;  %v2498_v42 = vld [vmem:[%s16871_s3 + $0x3d90] sm:$0xff]  ;;  %v2513_v43 = vld [vmem:[%s16871_s3 + $0x3e08] sm:$0xff]  ;;  %v11201_v46 = vsub.s32 6, %v10014_v13 }
 0x1aa   :  { %v2529_v47 = vld [vmem:[%s16871_s3 + $0x3e88] sm:$0xff]  ;;  %v2512_v13 = vld [vmem:[%s16871_s3 + $0x3e00] sm:$0xff] }
 0x1ab   :  { %v548_v19 = vld [vmem:[%s16871_s3 + $0xa0] sm:$0xff] }
 0x1ac   :  { %6831 = vmatpush1.bf16.msra.mxu0 %v6830_v61  ;;  %7087 = vmatpush1.bf16.msra.mxu1 %v7086_v62  ;;  %v2435_v61 = vld [vmem:[%s16871_s3 + $0x3b98] sm:$0xff]  ;;  %v6846_v62 = vpack.c.bf16 %v2400_v53, %v2384_v51  ;;  %v7114_v53 = vpack.c.bf16 %v2498_v42, %v2482_v40  ;;  %v566_v40 = vld [vmem:[%s16871_s3 + $0x130] sm:$0xff] }
 0x1ad   :  { %6833 = vmatprep.subr.bf16.mxu0 %v6832_v2  ;;  %7089 = vmatprep.subr.bf16.mxu1 %v7088_v3  ;;  %v2432_v2 = vld [vmem:[%s16871_s3 + $0x3b80] sm:$0xff]  ;;  %v6848_v3 = vpack.c.bf16 %v2433_v59, %v2417_v58  ;;  %v7104_v4 = vpack.c.bf16 %v2435_v61, %v2419_v15  ;;  %v2530_v58 = vld [vmem:[%s16871_s3 + $0x3e90] sm:$0xff]  ;;  %v2545_v59 = vld [vmem:[%s16871_s3 + $0x3f08] sm:$0xff]  ;;  %v207_v15 = vrot.slane %v10823_v48, %v11201_v46 }
 0x1ae   :  { %v2561_v61 = vld [vmem:[%s16871_s3 + $0x3f88] sm:$0xff]  ;;  %v2544_v48 = vld [vmem:[%s16871_s3 + $0x3f00] sm:$0xff] }
 0x1b0   :  { %6835 = vmatpush1.bf16.msra.mxu0 %v6834_v9  ;;  %7091 = vmatpush1.bf16.msra.mxu1 %v7090_v10  ;;  %v2467_v9 = vld [vmem:[%s16871_s3 + $0x3c98] sm:$0xff]  ;;  %v6850_v10 = vpack.c.bf16 %v2432_v2, %v2416_v0  ;;  %v7118_v2 = vpack.c.bf16 %v2530_v58, %v2514_v57  ;;  %v596_v57 = vld [vmem:[%s16871_s3 + $0x220] sm:$0xff] }
 0x1b1   :  { %6837 = vmatprep.subr.bf16.mxu0 %v6836_v12  ;;  %7093 = vmatprep.subr.bf16.mxu1 %v7092_v17  ;;  %v2464_v12 = vld [vmem:[%s16871_s3 + $0x3c80] sm:$0xff]  ;;  %v6852_v17 = vpack.c.bf16 %v2465_v6, %v2449_v60  ;;  %v7108_v18 = vpack.c.bf16 %v2467_v9, %v2451_v8  ;;  %v2562_v60 = vld [vmem:[%s16871_s3 + $0x3f90] sm:$0xff]  ;;  %v533_v6 = vld [vmem:[%s16871_s3 + $0x28] sm:$0xff]  ;;  %v500_v8 = vadd.f32 %v10318_v52, %v207_v15 }
 0x1b2   :  { %v549_v9 = vld [vmem:[%s16871_s3 + $0xa8] sm:$0xff]  ;;  %v612_v58 = vld [vmem:[%s16871_s3 + $0x2a0] sm:$0xff] }
 0x1b3   :  { %v518_v20 = vmul.f32 0.2, %v500_v8  ;;  %vm510_vm7 = vcmp.gt.f32.partialorder %v500_v8, 0.0 }
 0x1b4   :  { %6839 = vmatpush1.bf16.msra.mxu0 %v6838_v24  ;;  %7095 = vmatpush1.bf16.msra.mxu1 %v7094_v25  ;;  %v2499_v24 = vld [vmem:[%s16871_s3 + $0x3d98] sm:$0xff]  ;;  %v6854_v25 = vpack.c.bf16 %v2464_v12, %v2448_v11  ;;  %v7122_v12 = vpack.c.bf16 %v2562_v60, %v2546_v7  ;;  %v644_v7 = vld [vmem:[%s16871_s3 + $0x3a0] sm:$0xff]  ;;  %v630_v60 = vld [vmem:[%s16871_s3 + $0x330] sm:$0xff] }
 0x1b5   :  { %6841 = vmatprep.subr.bf16.mxu0 %v6840_v29  ;;  %7097 = vmatprep.subr.bf16.mxu1 %v7096_v33  ;;  %v2496_v29 = vld [vmem:[%s16871_s3 + $0x3d80] sm:$0xff]  ;;  %v6856_v33 = vpack.c.bf16 %v2497_v23, %v2481_v22  ;;  %v7112_v36 = vpack.c.bf16 %v2499_v24, %v2483_v1  ;;  %v534_v22 = vld [vmem:[%s16871_s3 + $0x30] sm:$0xff]  ;;  %v565_v1 = vld [vmem:[%s16871_s3 + $0x128] sm:$0xff]  ;;  %v11296_v42 = vsel %vm510_vm7, %v500_v8, %v518_v20 }
 0x1b6   :  { %v6858_v51 = vpack.c.bf16 %v2496_v29, %v2480_v28  ;;  %v550_v23 = vld [vmem:[%s16871_s3 + $0xb0] sm:$0xff]  ;;  %v581_v24 = vld [vmem:[%s16871_s3 + $0x1a8] sm:$0xff] }
 0x1b7   :  { %v7382_v29 = vpack.c.bf16 %v550_v23, %v534_v22  ;;  %v646_v8 = vld [vmem:[%s16871_s3 + $0x3b0] sm:$0xff] }
 0x1b8   :  { %6843 = vmatpush1.bf16.msra.mxu0 %v6842_v49  ;;  %7099 = vmatpush1.bf16.msra.mxu1 %v7098_v50  ;;  %v2515_v49 = vld [vmem:[%s16871_s3 + $0x3e18] sm:$0xff]  ;;  %v662_v20 = vld [vmem:[%s16871_s3 + $0x430] sm:$0xff] }
 0x1b9   :  { %6845 = vmatprep.subr.bf16.mxu0 %v6844_v54  ;;  %7101 = vmatprep.subr.bf16.mxu1 %v7100_v55  ;;  %v2531_v50 = vld [vmem:[%s16871_s3 + $0x3e98] sm:$0xff]  ;;  %v2528_v54 = vld [vmem:[%s16871_s3 + $0x3e80] sm:$0xff]  ;;  %v6860_v55 = vpack.c.bf16 %v2529_v47, %v2513_v43  ;;  %v7128_v43 = vpack.c.bf16 %v581_v24, %v565_v1  ;;  %v678_v23 = vld [vmem:[%s16871_s3 + $0x4b0] sm:$0xff] }
 0x1ba   :  { %v7116_v56 = vpack.c.bf16 %v2531_v50, %v2515_v49  ;;  %v6862_v0 = vpack.c.bf16 %v2528_v54, %v2512_v13  ;;  %v582_v49 = vld [vmem:[%s16871_s3 + $0x1b0] sm:$0xff]  ;;  %v597_v50 = vld [vmem:[%s16871_s3 + $0x228] sm:$0xff]  ;;  %v615_v13 = vld [vmem:[%s16871_s3 + $0x2b8] sm:$0xff] }
 0x1bb   :  { %v693_v1 = vld [vmem:[%s16871_s3 + $0x528] sm:$0xff] }
 0x1bc   :  { %6847 = vmatpush1.bf16.msra.mxu0 %v6846_v62  ;;  %7103 = vmatpush1.bf16.msra.mxu1 %v7102_v63  ;;  %v2547_v62 = vld [vmem:[%s16871_s3 + $0x3f18] sm:$0xff]  ;;  %v709_v24 = vld [vmem:[%s16871_s3 + $0x5a8] sm:$0xff] }
 0x1bd   :  { %6849 = vmatprep.subr.bf16.mxu0 %v6848_v3  ;;  %7105 = vmatprep.subr.bf16.mxu1 %v7104_v4  ;;  %v2563_v63 = vld [vmem:[%s16871_s3 + $0x3f98] sm:$0xff]  ;;  %v2560_v3 = vld [vmem:[%s16871_s3 + $0x3f80] sm:$0xff]  ;;  %v6864_v4 = vpack.c.bf16 %v2561_v61, %v2545_v59  ;;  %v598_v59 = vld [vmem:[%s16871_s3 + $0x230] sm:$0xff] }
 0x1be   :  { %v7120_v5 = vpack.c.bf16 %v2563_v63, %v2547_v62  ;;  %v6866_v11 = vpack.c.bf16 %v2560_v3, %v2544_v48  ;;  %v614_v61 = vld [vmem:[%s16871_s3 + $0x2b0] sm:$0xff]  ;;  %v629_v62 = vld [vmem:[%s16871_s3 + $0x328] sm:$0xff]  ;;  %v7134_v48 = vpack.c.bf16 %v612_v58, %v596_v57  ;;  %v724_v57 = vld [vmem:[%s16871_s3 + $0x620] sm:$0xff] }
 0x1bf   :  { %v645_v63 = vld [vmem:[%s16871_s3 + $0x3a8] sm:$0xff]  ;;  %v7390_v3 = vpack.c.bf16 %v614_v61, %v598_v59  ;;  %v740_v58 = vld [vmem:[%s16871_s3 + $0x6a0] sm:$0xff]  ;;  %v726_v59 = vld [vmem:[%s16871_s3 + $0x630] sm:$0xff] }
 0x1c0   :  { %6851 = vmatpush1.bf16.msra.mxu0 %v6850_v10  ;;  %7107 = vmatpush1.bf16.msra.mxu1 %v7106_v31  ;;  %v535_v10 = vld [vmem:[%s16871_s3 + $0x38] sm:$0xff]  ;;  %v742_v61 = vld [vmem:[%s16871_s3 + $0x6b0] sm:$0xff] }
 0x1c1   :  { %6853 = vmatprep.subr.bf16.mxu0 %v6852_v17  ;;  %7109 = vmatprep.subr.bf16.mxu1 %v7108_v18  ;;  %v551_v31 = vld [vmem:[%s16871_s3 + $0xb8] sm:$0xff]  ;;  %v7124_v17 = vpack.c.bf16 %v549_v9, %v533_v6  ;;  %v532_v18 = vld [vmem:[%s16871_s3 + $0x20] sm:$0xff]  ;;  %v661_v9 = vld [vmem:[%s16871_s3 + $0x428] sm:$0xff] }
 0x1c2   :  { %v7380_v52 = vpack.c.bf16 %v551_v31, %v535_v10  ;;  %v7126_v28 = vpack.c.bf16 %v548_v19, %v532_v18  ;;  %v677_v10 = vld [vmem:[%s16871_s3 + $0x4a8] sm:$0xff]  ;;  %v663_v31 = vld [vmem:[%s16871_s3 + $0x438] sm:$0xff]  ;;  %v660_v18 = vld [vmem:[%s16871_s3 + $0x420] sm:$0xff] }
 0x1c3   :  { %v676_v19 = vld [vmem:[%s16871_s3 + $0x4a0] sm:$0xff] }
 0x1c4   :  { %6855 = vmatpush1.bf16.msra.mxu0 %v6854_v25  ;;  %7111 = vmatpush1.bf16.msra.mxu1 %v7110_v27  ;;  %v567_v25 = vld [vmem:[%s16871_s3 + $0x138] sm:$0xff] }
 0x1c5   :  { %6857 = vmatprep.subr.bf16.mxu0 %v6856_v33  ;;  %7113 = vmatprep.subr.bf16.mxu1 %v7112_v36  ;;  %v583_v27 = vld [vmem:[%s16871_s3 + $0x1b8] sm:$0xff]  ;;  %v564_v33 = vld [vmem:[%s16871_s3 + $0x120] sm:$0xff] }
 0x1c6   :  { %v580_v36 = vld [vmem:[%s16871_s3 + $0x1a0] sm:$0xff]  ;;  %v7384_v47 = vpack.c.bf16 %v583_v27, %v567_v25  ;;  %v695_v25 = vld [vmem:[%s16871_s3 + $0x538] sm:$0xff] }
 0x1c7   :  { %v7130_v54 = vpack.c.bf16 %v580_v36, %v564_v33  ;;  %v711_v27 = vld [vmem:[%s16871_s3 + $0x5b8] sm:$0xff]  ;;  %v7144_v33 = vpack.c.bf16 %v709_v24, %v693_v1  ;;  %v692_v36 = vld [vmem:[%s16871_s3 + $0x520] sm:$0xff]  ;;  %v821_v1 = vld [vmem:[%s16871_s3 + $0x928] sm:$0xff] }
 0x1c8   :  { %6859 = vmatpush1.bf16.msra.mxu0 %v6858_v51  ;;  %7115 = vmatpush1.bf16.msra.mxu1 %v7114_v53  ;;  %v613_v51 = vld [vmem:[%s16871_s3 + $0x2a8] sm:$0xff]  ;;  %v599_v53 = vld [vmem:[%s16871_s3 + $0x238] sm:$0xff] }
 0x1c9   :  { %6861 = vmatprep.subr.bf16.mxu0 %v6860_v55  ;;  %7117 = vmatprep.subr.bf16.mxu1 %v7116_v56  ;;  %v7386_v55 = vpack.c.bf16 %v582_v49, %v566_v40  ;;  %v7132_v56 = vpack.c.bf16 %v613_v51, %v597_v50  ;;  %v7388_v15 = vpack.c.bf16 %v615_v13, %v599_v53  ;;  %v708_v40 = vld [vmem:[%s16871_s3 + $0x5a0] sm:$0xff]  ;;  %v710_v49 = vld [vmem:[%s16871_s3 + $0x5b0] sm:$0xff]  ;;  %v725_v50 = vld [vmem:[%s16871_s3 + $0x628] sm:$0xff] }
 0x1ca   :  { %v741_v51 = vld [vmem:[%s16871_s3 + $0x6a8] sm:$0xff]  ;;  %v727_v53 = vld [vmem:[%s16871_s3 + $0x638] sm:$0xff] }
 0x1cb   :  { %v743_v13 = vld [vmem:[%s16871_s3 + $0x6b8] sm:$0xff]  ;;  %v837_v24 = vld [vmem:[%s16871_s3 + $0x9a8] sm:$0xff] }
 0x1cc   :  { %6863 = vmatpush1.bf16.msra.mxu0 %v6862_v0  ;;  %7119 = vmatpush1.bf16.msra.mxu1 %v7118_v2  ;;  %v631_v0 = vld [vmem:[%s16871_s3 + $0x338] sm:$0xff] }
 0x1cd   :  { %6865 = vmatprep.subr.bf16.mxu0 %v6864_v4  ;;  %7121 = vmatprep.subr.bf16.mxu1 %v7120_v5  ;;  %v647_v2 = vld [vmem:[%s16871_s3 + $0x3b8] sm:$0xff]  ;;  %v7136_v4 = vpack.c.bf16 %v645_v63, %v629_v62  ;;  %v628_v5 = vld [vmem:[%s16871_s3 + $0x320] sm:$0xff]  ;;  %v757_v62 = vld [vmem:[%s16871_s3 + $0x728] sm:$0xff] }
 0x1ce   :  { %v7392_v6 = vpack.c.bf16 %v647_v2, %v631_v0  ;;  %v773_v63 = vld [vmem:[%s16871_s3 + $0x7a8] sm:$0xff]  ;;  %v759_v0 = vld [vmem:[%s16871_s3 + $0x738] sm:$0xff] }
 0x1cf   :  { %v775_v2 = vld [vmem:[%s16871_s3 + $0x7b8] sm:$0xff] }
 0x1d0   :  { %6867 = vmatpush1.bf16.msra.mxu0 %v6866_v11  ;;  %7123 = vmatpush1.bf16.msra.mxu1 %v7122_v12  ;;  %v679_v11 = vld [vmem:[%s16871_s3 + $0x4b8] sm:$0xff]  ;;  %v7138_v12 = vpack.c.bf16 %v644_v7, %v628_v5  ;;  %v756_v5 = vld [vmem:[%s16871_s3 + $0x720] sm:$0xff] }
 0x1d1   :  { %7125 = vmatprep.subr.bf16.mxu0 %v7124_v17  ;;  %7381 = vmatprep.subr.bf16.mxu1 %v7380_v52  ;;  %v7394_v17 = vpack.c.bf16 %v646_v8, %v630_v60  ;;  %v7140_v52 = vpack.c.bf16 %v677_v10, %v661_v9  ;;  %v7396_v22 = vpack.c.bf16 %v679_v11, %v663_v31  ;;  %v772_v7 = vld [vmem:[%s16871_s3 + $0x7a0] sm:$0xff]  ;;  %v758_v60 = vld [vmem:[%s16871_s3 + $0x730] sm:$0xff]  ;;  %v789_v9 = vld [vmem:[%s16871_s3 + $0x828] sm:$0xff] }
 0x1d2   :  { %v774_v8 = vld [vmem:[%s16871_s3 + $0x7b0] sm:$0xff]  ;;  %v805_v10 = vld [vmem:[%s16871_s3 + $0x8a8] sm:$0xff]  ;;  %v791_v31 = vld [vmem:[%s16871_s3 + $0x838] sm:$0xff] }
 0x1d3   :  { %2938 = vmatmul.mubr.f32.vlgmr.msra.gmra.mrb[4].mxu0 %v11296_v42  ;;  %3222 = vmatmul.mubr.f32.vlgmr.msra.gmra.mrb[4].mxu1 %v11296_v42  ;;  %v807_v11 = vld [vmem:[%s16871_s3 + $0x8b8] sm:$0xff] }
 0x1d4   :  { %7127 = vmatpush1.bf16.msra.mxu0 %v7126_v28  ;;  %3292 = vmatprep.mubr.f32.mxu0 %v10064_v38  ;;  %v7142_v28 = vpack.c.bf16 %v676_v19, %v660_v18  ;;  %v788_v18 = vld [vmem:[%s16871_s3 + $0x820] sm:$0xff] }
 0x1d5   :  { %7383 = vmatpush1.bf16.msra.mxu1 %v7382_v29  ;;  %3576 = vmatprep.mubr.f32.mxu1 %v10064_v38  ;;  %v7398_v29 = vpack.c.bf16 %v678_v23, %v662_v20  ;;  %v804_v19 = vld [vmem:[%s16871_s3 + $0x8a0] sm:$0xff]  ;;  %v790_v20 = vld [vmem:[%s16871_s3 + $0x830] sm:$0xff] }
 0x1d6   :  { %7129 = vmatprep.subr.bf16.mxu0 %v7128_v43  ;;  %7385 = vmatprep.subr.bf16.mxu1 %v7384_v47  ;;  %v694_v43 = vld [vmem:[%s16871_s3 + $0x530] sm:$0xff]  ;;  %v7400_v47 = vpack.c.bf16 %v711_v27, %v695_v25  ;;  %v823_v25 = vld [vmem:[%s16871_s3 + $0x938] sm:$0xff] }
 0x1d7   :  { %v806_v23 = vld [vmem:[%s16871_s3 + $0x8b0] sm:$0xff]  ;;  %v839_v27 = vld [vmem:[%s16871_s3 + $0x9b8] sm:$0xff] }
 0x1d8   :  { %7131 = vmatpush1.bf16.msra.mxu0 %v7130_v54  ;;  %v7146_v54 = vpack.c.bf16 %v708_v40, %v692_v36  ;;  %v820_v36 = vld [vmem:[%s16871_s3 + $0x920] sm:$0xff] }
 0x1d9   :  { %7387 = vmatpush1.bf16.msra.mxu1 %v7386_v55  ;;  %7133 = vmatprep.subr.bf16.mxu0 %v7132_v56  ;;  %v7402_v55 = vpack.c.bf16 %v710_v49, %v694_v43  ;;  %v7148_v56 = vpack.c.bf16 %v741_v51, %v725_v50  ;;  %v836_v40 = vld [vmem:[%s16871_s3 + $0x9a0] sm:$0xff]  ;;  %v822_v43 = vld [vmem:[%s16871_s3 + $0x930] sm:$0xff]  ;;  %v853_v50 = vld [vmem:[%s16871_s3 + $0xa28] sm:$0xff] }
 0x1da   :  { %7389 = vmatprep.subr.bf16.mxu1 %v7388_v15  ;;  %v7404_v15 = vpack.c.bf16 %v743_v13, %v727_v53  ;;  %v838_v49 = vld [vmem:[%s16871_s3 + $0x9b0] sm:$0xff]  ;;  %v869_v51 = vld [vmem:[%s16871_s3 + $0xaa8] sm:$0xff]  ;;  %v855_v53 = vld [vmem:[%s16871_s3 + $0xa38] sm:$0xff] }
 0x1db   :  { %v871_v13 = vld [vmem:[%s16871_s3 + $0xab8] sm:$0xff] }
 0x1dc   :  { %7135 = vmatpush1.bf16.msra.mxu0 %v7134_v48  ;;  %v7150_v48 = vpack.c.bf16 %v740_v58, %v724_v57  ;;  %v852_v57 = vld [vmem:[%s16871_s3 + $0xa20] sm:$0xff] }
 0x1dd   :  { %7391 = vmatpush1.bf16.msra.mxu1 %v7390_v3  ;;  %7137 = vmatprep.subr.bf16.mxu0 %v7136_v4  ;;  %v7406_v3 = vpack.c.bf16 %v742_v61, %v726_v59  ;;  %v7152_v4 = vpack.c.bf16 %v773_v63, %v757_v62  ;;  %v868_v58 = vld [vmem:[%s16871_s3 + $0xaa0] sm:$0xff]  ;;  %v854_v59 = vld [vmem:[%s16871_s3 + $0xa30] sm:$0xff]  ;;  %v885_v62 = vld [vmem:[%s16871_s3 + $0xb28] sm:$0xff] }
 0x1de   :  { %7393 = vmatprep.subr.bf16.mxu1 %v7392_v6  ;;  %v7408_v6 = vpack.c.bf16 %v775_v2, %v759_v0  ;;  %v870_v61 = vld [vmem:[%s16871_s3 + $0xab0] sm:$0xff]  ;;  %v901_v63 = vld [vmem:[%s16871_s3 + $0xba8] sm:$0xff]  ;;  %v887_v0 = vld [vmem:[%s16871_s3 + $0xb38] sm:$0xff] }
 0x1df   :  { %v903_v2 = vld [vmem:[%s16871_s3 + $0xbb8] sm:$0xff] }
 0x1e0   :  { %7139 = vmatpush1.bf16.msra.mxu0 %v7138_v12  ;;  %v7154_v12 = vpack.c.bf16 %v772_v7, %v756_v5  ;;  %v884_v5 = vld [vmem:[%s16871_s3 + $0xb20] sm:$0xff] }
 0x1e1   :  { %7395 = vmatpush1.bf16.msra.mxu1 %v7394_v17  ;;  %7141 = vmatprep.subr.bf16.mxu0 %v7140_v52  ;;  %v7410_v17 = vpack.c.bf16 %v774_v8, %v758_v60  ;;  %v7156_v52 = vpack.c.bf16 %v805_v10, %v789_v9  ;;  %v900_v7 = vld [vmem:[%s16871_s3 + $0xba0] sm:$0xff]  ;;  %v886_v60 = vld [vmem:[%s16871_s3 + $0xb30] sm:$0xff]  ;;  %v917_v9 = vld [vmem:[%s16871_s3 + $0xc28] sm:$0xff] }
 0x1e2   :  { %7397 = vmatprep.subr.bf16.mxu1 %v7396_v22  ;;  %v7412_v22 = vpack.c.bf16 %v807_v11, %v791_v31  ;;  %v902_v8 = vld [vmem:[%s16871_s3 + $0xbb0] sm:$0xff]  ;;  %v933_v10 = vld [vmem:[%s16871_s3 + $0xca8] sm:$0xff]  ;;  %v919_v31 = vld [vmem:[%s16871_s3 + $0xc38] sm:$0xff] }
 0x1e3   :  { %v935_v11 = vld [vmem:[%s16871_s3 + $0xcb8] sm:$0xff] }
 0x1e4   :  { %7143 = vmatpush1.bf16.msra.mxu0 %v7142_v28  ;;  %v7158_v28 = vpack.c.bf16 %v804_v19, %v788_v18  ;;  %v916_v18 = vld [vmem:[%s16871_s3 + $0xc20] sm:$0xff] }
 0x1e5   :  { %7399 = vmatpush1.bf16.msra.mxu1 %v7398_v29  ;;  %7145 = vmatprep.subr.bf16.mxu0 %v7144_v33  ;;  %v7414_v29 = vpack.c.bf16 %v806_v23, %v790_v20  ;;  %v7160_v33 = vpack.c.bf16 %v837_v24, %v821_v1  ;;  %v932_v19 = vld [vmem:[%s16871_s3 + $0xca0] sm:$0xff]  ;;  %v918_v20 = vld [vmem:[%s16871_s3 + $0xc30] sm:$0xff]  ;;  %v949_v1 = vld [vmem:[%s16871_s3 + $0xd28] sm:$0xff] }
 0x1e6   :  { %7401 = vmatprep.subr.bf16.mxu1 %v7400_v47  ;;  %v7416_v47 = vpack.c.bf16 %v839_v27, %v823_v25  ;;  %v934_v23 = vld [vmem:[%s16871_s3 + $0xcb0] sm:$0xff]  ;;  %v965_v24 = vld [vmem:[%s16871_s3 + $0xda8] sm:$0xff]  ;;  %v951_v25 = vld [vmem:[%s16871_s3 + $0xd38] sm:$0xff] }
 0x1e7   :  { %v967_v27 = vld [vmem:[%s16871_s3 + $0xdb8] sm:$0xff] }
 0x1e8   :  { %7147 = vmatpush1.bf16.msra.mxu0 %v7146_v54  ;;  %v7162_v54 = vpack.c.bf16 %v836_v40, %v820_v36  ;;  %v948_v36 = vld [vmem:[%s16871_s3 + $0xd20] sm:$0xff] }
 0x1e9   :  { %7403 = vmatpush1.bf16.msra.mxu1 %v7402_v55  ;;  %7149 = vmatprep.subr.bf16.mxu0 %v7148_v56  ;;  %v7418_v55 = vpack.c.bf16 %v838_v49, %v822_v43  ;;  %v7164_v56 = vpack.c.bf16 %v869_v51, %v853_v50  ;;  %v964_v40 = vld [vmem:[%s16871_s3 + $0xda0] sm:$0xff]  ;;  %v950_v43 = vld [vmem:[%s16871_s3 + $0xd30] sm:$0xff]  ;;  %v981_v50 = vld [vmem:[%s16871_s3 + $0xe28] sm:$0xff] }
 0x1ea   :  { %7405 = vmatprep.subr.bf16.mxu1 %v7404_v15  ;;  %v7420_v15 = vpack.c.bf16 %v871_v13, %v855_v53  ;;  %v966_v49 = vld [vmem:[%s16871_s3 + $0xdb0] sm:$0xff]  ;;  %v997_v51 = vld [vmem:[%s16871_s3 + $0xea8] sm:$0xff]  ;;  %v983_v53 = vld [vmem:[%s16871_s3 + $0xe38] sm:$0xff] }
 0x1eb   :  { %v999_v13 = vld [vmem:[%s16871_s3 + $0xeb8] sm:$0xff] }
 0x1ec   :  { %7151 = vmatpush1.bf16.msra.mxu0 %v7150_v48  ;;  %v7166_v48 = vpack.c.bf16 %v868_v58, %v852_v57  ;;  %v980_v57 = vld [vmem:[%s16871_s3 + $0xe20] sm:$0xff] }
 0x1ed   :  { %7407 = vmatpush1.bf16.msra.mxu1 %v7406_v3  ;;  %7153 = vmatprep.subr.bf16.mxu0 %v7152_v4  ;;  %v7422_v3 = vpack.c.bf16 %v870_v61, %v854_v59  ;;  %v7168_v4 = vpack.c.bf16 %v901_v63, %v885_v62  ;;  %v996_v58 = vld [vmem:[%s16871_s3 + $0xea0] sm:$0xff]  ;;  %v982_v59 = vld [vmem:[%s16871_s3 + $0xe30] sm:$0xff]  ;;  %v1013_v62 = vld [vmem:[%s16871_s3 + $0xf28] sm:$0xff] }
 0x1ee   :  { %7409 = vmatprep.subr.bf16.mxu1 %v7408_v6  ;;  %v7424_v6 = vpack.c.bf16 %v903_v2, %v887_v0  ;;  %v998_v61 = vld [vmem:[%s16871_s3 + $0xeb0] sm:$0xff]  ;;  %v1029_v63 = vld [vmem:[%s16871_s3 + $0xfa8] sm:$0xff]  ;;  %v1015_v0 = vld [vmem:[%s16871_s3 + $0xf38] sm:$0xff] }
 0x1ef   :  { %v1031_v2 = vld [vmem:[%s16871_s3 + $0xfb8] sm:$0xff] }
 0x1f0   :  { %7155 = vmatpush1.bf16.msra.mxu0 %v7154_v12  ;;  %v7170_v12 = vpack.c.bf16 %v900_v7, %v884_v5  ;;  %v1012_v5 = vld [vmem:[%s16871_s3 + $0xf20] sm:$0xff] }
 0x1f1   :  { %7411 = vmatpush1.bf16.msra.mxu1 %v7410_v17  ;;  %7157 = vmatprep.subr.bf16.mxu0 %v7156_v52  ;;  %v7426_v17 = vpack.c.bf16 %v902_v8, %v886_v60  ;;  %v7172_v52 = vpack.c.bf16 %v933_v10, %v917_v9  ;;  %v1028_v7 = vld [vmem:[%s16871_s3 + $0xfa0] sm:$0xff]  ;;  %v1014_v60 = vld [vmem:[%s16871_s3 + $0xf30] sm:$0xff]  ;;  %v1045_v9 = vld [vmem:[%s16871_s3 + $0x1028] sm:$0xff] }
 0x1f2   :  { %7413 = vmatprep.subr.bf16.mxu1 %v7412_v22  ;;  %v7428_v22 = vpack.c.bf16 %v935_v11, %v919_v31  ;;  %v1030_v8 = vld [vmem:[%s16871_s3 + $0xfb0] sm:$0xff]  ;;  %v1061_v10 = vld [vmem:[%s16871_s3 + $0x10a8] sm:$0xff]  ;;  %v1047_v31 = vld [vmem:[%s16871_s3 + $0x1038] sm:$0xff] }
 0x1f3   :  { %v1063_v11 = vld [vmem:[%s16871_s3 + $0x10b8] sm:$0xff] }
 0x1f4   :  { %7159 = vmatpush1.bf16.msra.mxu0 %v7158_v28  ;;  %v7174_v28 = vpack.c.bf16 %v932_v19, %v916_v18  ;;  %v1044_v18 = vld [vmem:[%s16871_s3 + $0x1020] sm:$0xff] }
 0x1f5   :  { %7415 = vmatpush1.bf16.msra.mxu1 %v7414_v29  ;;  %7161 = vmatprep.subr.bf16.mxu0 %v7160_v33  ;;  %v7430_v29 = vpack.c.bf16 %v934_v23, %v918_v20  ;;  %v7176_v33 = vpack.c.bf16 %v965_v24, %v949_v1  ;;  %v1060_v19 = vld [vmem:[%s16871_s3 + $0x10a0] sm:$0xff]  ;;  %v7444_v20 = vpack.c.bf16 %v1063_v11, %v1047_v31  ;;  %v1062_v23 = vld [vmem:[%s16871_s3 + $0x10b0] sm:$0xff]  ;;  %v1077_v1 = vld [vmem:[%s16871_s3 + $0x1128] sm:$0xff] }
 0x1f6   :  { %7417 = vmatprep.subr.bf16.mxu1 %v7416_v47  ;;  %v7432_v47 = vpack.c.bf16 %v967_v27, %v951_v25  ;;  %v1093_v24 = vld [vmem:[%s16871_s3 + $0x11a8] sm:$0xff]  ;;  %v7190_v25 = vpack.c.bf16 %v1060_v19, %v1044_v18  ;;  %v1079_v27 = vld [vmem:[%s16871_s3 + $0x1138] sm:$0xff]  ;;  %v1172_v18 = vld [vmem:[%s16871_s3 + $0x1420] sm:$0xff] }
 0x1f7   :  { %v1175_v31 = vld [vmem:[%s16871_s3 + $0x1438] sm:$0xff]  ;;  %v1188_v19 = vld [vmem:[%s16871_s3 + $0x14a0] sm:$0xff] }
 0x1f8   :  { %7163 = vmatpush1.bf16.msra.mxu0 %v7162_v54  ;;  %v7178_v54 = vpack.c.bf16 %v964_v40, %v948_v36  ;;  %v1092_v36 = vld [vmem:[%s16871_s3 + $0x11a0] sm:$0xff]  ;;  %v1078_v40 = vld [vmem:[%s16871_s3 + $0x1130] sm:$0xff]  ;;  %v1191_v11 = vld [vmem:[%s16871_s3 + $0x14b8] sm:$0xff] }
 0x1f9   :  { %7419 = vmatpush1.bf16.msra.mxu1 %v7418_v55  ;;  %7165 = vmatprep.subr.bf16.mxu0 %v7164_v56  ;;  %v7434_v55 = vpack.c.bf16 %v966_v49, %v950_v43  ;;  %v7180_v56 = vpack.c.bf16 %v997_v51, %v981_v50  ;;  %v7192_v43 = vpack.c.bf16 %v1093_v24, %v1077_v1  ;;  %v1109_v49 = vld [vmem:[%s16871_s3 + $0x1228] sm:$0xff] }
 0x1fa   :  { %7421 = vmatprep.subr.bf16.mxu1 %v7420_v15  ;;  %v7436_v15 = vpack.c.bf16 %v999_v13, %v983_v53  ;;  %v1125_v50 = vld [vmem:[%s16871_s3 + $0x12a8] sm:$0xff]  ;;  %v1111_v53 = vld [vmem:[%s16871_s3 + $0x1238] sm:$0xff] }
 0x1fb   :  { %v1127_v13 = vld [vmem:[%s16871_s3 + $0x12b8] sm:$0xff]  ;;  %v1205_v1 = vld [vmem:[%s16871_s3 + $0x1528] sm:$0xff] }
 0x1fc   :  { %7167 = vmatpush1.bf16.msra.mxu0 %v7166_v48  ;;  %v7182_v48 = vpack.c.bf16 %v996_v58, %v980_v57  ;;  %v1108_v57 = vld [vmem:[%s16871_s3 + $0x1220] sm:$0xff]  ;;  %v1221_v24 = vld [vmem:[%s16871_s3 + $0x15a8] sm:$0xff] }
 0x1fd   :  { %7423 = vmatpush1.bf16.msra.mxu1 %v7422_v3  ;;  %7169 = vmatprep.subr.bf16.mxu0 %v7168_v4  ;;  %v7438_v3 = vpack.c.bf16 %v998_v61, %v982_v59  ;;  %v7184_v4 = vpack.c.bf16 %v1029_v63, %v1013_v62  ;;  %v1124_v58 = vld [vmem:[%s16871_s3 + $0x12a0] sm:$0xff]  ;;  %v1110_v59 = vld [vmem:[%s16871_s3 + $0x1230] sm:$0xff]  ;;  %v1141_v62 = vld [vmem:[%s16871_s3 + $0x1328] sm:$0xff] }
 0x1fe   :  { %7425 = vmatprep.subr.bf16.mxu1 %v7424_v6  ;;  %v7440_v6 = vpack.c.bf16 %v1031_v2, %v1015_v0  ;;  %v1126_v61 = vld [vmem:[%s16871_s3 + $0x12b0] sm:$0xff]  ;;  %v1157_v63 = vld [vmem:[%s16871_s3 + $0x13a8] sm:$0xff]  ;;  %v1143_v0 = vld [vmem:[%s16871_s3 + $0x1338] sm:$0xff] }
 0x1ff   :  { %v1159_v2 = vld [vmem:[%s16871_s3 + $0x13b8] sm:$0xff] }
 0x200   :  { %7171 = vmatpush1.bf16.msra.mxu0 %v7170_v12  ;;  %v7186_v12 = vpack.c.bf16 %v1028_v7, %v1012_v5  ;;  %v1140_v5 = vld [vmem:[%s16871_s3 + $0x1320] sm:$0xff] }
 0x201   :  { %7427 = vmatpush1.bf16.msra.mxu1 %v7426_v17  ;;  %7173 = vmatprep.subr.bf16.mxu0 %v7172_v52  ;;  %v7442_v17 = vpack.c.bf16 %v1030_v8, %v1014_v60  ;;  %v7188_v52 = vpack.c.bf16 %v1061_v10, %v1045_v9  ;;  %v1156_v7 = vld [vmem:[%s16871_s3 + $0x13a0] sm:$0xff]  ;;  %v1142_v60 = vld [vmem:[%s16871_s3 + $0x1330] sm:$0xff]  ;;  %v1173_v9 = vld [vmem:[%s16871_s3 + $0x1428] sm:$0xff] }
 0x202   :  { %7429 = vmatprep.subr.bf16.mxu1 %v7428_v22  ;;  %v1046_v22 = vld [vmem:[%s16871_s3 + $0x1030] sm:$0xff]  ;;  %v1189_v10 = vld [vmem:[%s16871_s3 + $0x14a8] sm:$0xff] }
 0x203   :  { %v1158_v8 = vld [vmem:[%s16871_s3 + $0x13b0] sm:$0xff] }
 0x204   :  { %7175 = vmatpush1.bf16.msra.mxu0 %v7174_v28  ;;  %v1095_v28 = vld [vmem:[%s16871_s3 + $0x11b8] sm:$0xff] }
 0x205   :  { %7431 = vmatpush1.bf16.msra.mxu1 %v7430_v29  ;;  %7177 = vmatprep.subr.bf16.mxu0 %v7176_v33  ;;  %v7446_v29 = vpack.c.bf16 %v1062_v23, %v1046_v22  ;;  %v1076_v33 = vld [vmem:[%s16871_s3 + $0x1120] sm:$0xff]  ;;  %v7448_v51 = vpack.c.bf16 %v1095_v28, %v1079_v27  ;;  %v7460_v22 = vpack.c.bf16 %v1191_v11, %v1175_v31  ;;  %v1190_v23 = vld [vmem:[%s16871_s3 + $0x14b0] sm:$0xff]  ;;  %v1223_v27 = vld [vmem:[%s16871_s3 + $0x15b8] sm:$0xff] }
 0x206   :  { %7433 = vmatprep.subr.bf16.mxu1 %v7432_v47  ;;  %v1094_v47 = vld [vmem:[%s16871_s3 + $0x11b0] sm:$0xff]  ;;  %v7206_v28 = vpack.c.bf16 %v1188_v19, %v1172_v18  ;;  %v1303_v31 = vld [vmem:[%s16871_s3 + $0x1838] sm:$0xff]  ;;  %v1300_v18 = vld [vmem:[%s16871_s3 + $0x1820] sm:$0xff] }
 0x207   :  { %v1319_v11 = vld [vmem:[%s16871_s3 + $0x18b8] sm:$0xff]  ;;  %v1316_v19 = vld [vmem:[%s16871_s3 + $0x18a0] sm:$0xff] }
 0x208   :  { %7179 = vmatpush1.bf16.msra.mxu0 %v7178_v54  ;;  %v7194_v54 = vpack.c.bf16 %v1092_v36, %v1076_v33  ;;  %v7208_v33 = vpack.c.bf16 %v1221_v24, %v1205_v1  ;;  %v1204_v36 = vld [vmem:[%s16871_s3 + $0x1520] sm:$0xff]  ;;  %v1333_v1 = vld [vmem:[%s16871_s3 + $0x1928] sm:$0xff] }
 0x209   :  { %7435 = vmatpush1.bf16.msra.mxu1 %v7434_v55  ;;  %7181 = vmatprep.subr.bf16.mxu0 %v7180_v56  ;;  %v7450_v55 = vpack.c.bf16 %v1094_v47, %v1078_v40  ;;  %v7196_v56 = vpack.c.bf16 %v1125_v50, %v1109_v49  ;;  %v1220_v40 = vld [vmem:[%s16871_s3 + $0x15a0] sm:$0xff]  ;;  %v1222_v49 = vld [vmem:[%s16871_s3 + $0x15b0] sm:$0xff]  ;;  %v1237_v50 = vld [vmem:[%s16871_s3 + $0x1628] sm:$0xff] }
 0x20a   :  { %7437 = vmatprep.subr.bf16.mxu1 %v7436_v15  ;;  %v7452_v15 = vpack.c.bf16 %v1127_v13, %v1111_v53  ;;  %v1239_v53 = vld [vmem:[%s16871_s3 + $0x1638] sm:$0xff]  ;;  %v1349_v24 = vld [vmem:[%s16871_s3 + $0x19a8] sm:$0xff] }
 0x20b   :  { %v1255_v13 = vld [vmem:[%s16871_s3 + $0x16b8] sm:$0xff] }
 0x20c   :  { %7183 = vmatpush1.bf16.msra.mxu0 %v7182_v48  ;;  %v7198_v48 = vpack.c.bf16 %v1124_v58, %v1108_v57  ;;  %v1236_v57 = vld [vmem:[%s16871_s3 + $0x1620] sm:$0xff] }
 0x20d   :  { %7439 = vmatpush1.bf16.msra.mxu1 %v7438_v3  ;;  %7185 = vmatprep.subr.bf16.mxu0 %v7184_v4  ;;  %v7454_v3 = vpack.c.bf16 %v1126_v61, %v1110_v59  ;;  %v7200_v4 = vpack.c.bf16 %v1157_v63, %v1141_v62  ;;  %v1252_v58 = vld [vmem:[%s16871_s3 + $0x16a0] sm:$0xff]  ;;  %v1238_v59 = vld [vmem:[%s16871_s3 + $0x1630] sm:$0xff]  ;;  %v1269_v62 = vld [vmem:[%s16871_s3 + $0x1728] sm:$0xff] }
 0x20e   :  { %7441 = vmatprep.subr.bf16.mxu1 %v7440_v6  ;;  %v7456_v6 = vpack.c.bf16 %v1159_v2, %v1143_v0  ;;  %v1254_v61 = vld [vmem:[%s16871_s3 + $0x16b0] sm:$0xff]  ;;  %v1285_v63 = vld [vmem:[%s16871_s3 + $0x17a8] sm:$0xff]  ;;  %v1271_v0 = vld [vmem:[%s16871_s3 + $0x1738] sm:$0xff] }
 0x20f   :  { %v1287_v2 = vld [vmem:[%s16871_s3 + $0x17b8] sm:$0xff] }
 0x210   :  { %7187 = vmatpush1.bf16.msra.mxu0 %v7186_v12  ;;  %v7202_v12 = vpack.c.bf16 %v1156_v7, %v1140_v5  ;;  %v1268_v5 = vld [vmem:[%s16871_s3 + $0x1720] sm:$0xff] }
 0x211   :  { %7443 = vmatpush1.bf16.msra.mxu1 %v7442_v17  ;;  %7189 = vmatprep.subr.bf16.mxu0 %v7188_v52  ;;  %v7458_v17 = vpack.c.bf16 %v1158_v8, %v1142_v60  ;;  %v7204_v52 = vpack.c.bf16 %v1189_v10, %v1173_v9  ;;  %v1284_v7 = vld [vmem:[%s16871_s3 + $0x17a0] sm:$0xff]  ;;  %v1270_v60 = vld [vmem:[%s16871_s3 + $0x1730] sm:$0xff]  ;;  %v1301_v9 = vld [vmem:[%s16871_s3 + $0x1828] sm:$0xff] }
 0x212   :  { %7445 = vmatprep.subr.bf16.mxu1 %v7444_v20  ;;  %v1174_v20 = vld [vmem:[%s16871_s3 + $0x1430] sm:$0xff]  ;;  %v1317_v10 = vld [vmem:[%s16871_s3 + $0x18a8] sm:$0xff] }
 0x213   :  { %3293 = vmatmul.mubr.f32.vlgmr.msra.gmra.mrb[6].mxu0 %v10075_v44  ;;  %v1286_v8 = vld [vmem:[%s16871_s3 + $0x17b0] sm:$0xff] }
 0x214   :  { %3577 = vmatmul.mubr.f32.vlgmr.msra.gmra.mrb[6].mxu1 %v10075_v44  ;;  %7191 = vmatpush1.bf16.msra.mxu0 %v7190_v25  ;;  %v1207_v25 = vld [vmem:[%s16871_s3 + $0x1538] sm:$0xff] }
 0x215   :  { %3363 = vmatprep.mubr.f32.mxu0 %v10148_v21  ;;  %7447 = vmatpush1.bf16.msra.mxu1 %v7446_v29  ;;  %v7462_v29 = vpack.c.bf16 %v1190_v23, %v1174_v20  ;;  %v7464_v47 = vpack.c.bf16 %v1223_v27, %v1207_v25  ;;  %v1302_v20 = vld [vmem:[%s16871_s3 + $0x1830] sm:$0xff]  ;;  %v1335_v25 = vld [vmem:[%s16871_s3 + $0x1938] sm:$0xff] }
 0x216   :  { %3647 = vmatprep.mubr.f32.mxu1 %v10148_v21  ;;  %7193 = vmatprep.subr.bf16.mxu0 %v7192_v43  ;;  %v1206_v43 = vld [vmem:[%s16871_s3 + $0x1530] sm:$0xff]  ;;  %v1351_v27 = vld [vmem:[%s16871_s3 + $0x19b8] sm:$0xff] }
 0x217   :  { %7449 = vmatprep.subr.bf16.mxu1 %v7448_v51  ;;  %v1253_v51 = vld [vmem:[%s16871_s3 + $0x16a8] sm:$0xff]  ;;  %v1318_v23 = vld [vmem:[%s16871_s3 + $0x18b0] sm:$0xff] }
 0x218   :  { %7195 = vmatpush1.bf16.msra.mxu0 %v7194_v54  ;;  %v7210_v54 = vpack.c.bf16 %v1220_v40, %v1204_v36  ;;  %v1332_v36 = vld [vmem:[%s16871_s3 + $0x1920] sm:$0xff] }
 0x219   :  { %7451 = vmatpush1.bf16.msra.mxu1 %v7450_v55  ;;  %7197 = vmatprep.subr.bf16.mxu0 %v7196_v56  ;;  %v7466_v55 = vpack.c.bf16 %v1222_v49, %v1206_v43  ;;  %v7212_v56 = vpack.c.bf16 %v1253_v51, %v1237_v50  ;;  %v1348_v40 = vld [vmem:[%s16871_s3 + $0x19a0] sm:$0xff]  ;;  %v1334_v43 = vld [vmem:[%s16871_s3 + $0x1930] sm:$0xff]  ;;  %v1365_v50 = vld [vmem:[%s16871_s3 + $0x1a28] sm:$0xff] }
 0x21a   :  { %7453 = vmatprep.subr.bf16.mxu1 %v7452_v15  ;;  %v7468_v15 = vpack.c.bf16 %v1255_v13, %v1239_v53  ;;  %v1350_v49 = vld [vmem:[%s16871_s3 + $0x19b0] sm:$0xff]  ;;  %v1381_v51 = vld [vmem:[%s16871_s3 + $0x1aa8] sm:$0xff]  ;;  %v1367_v53 = vld [vmem:[%s16871_s3 + $0x1a38] sm:$0xff] }
 0x21b   :  { %v1383_v13 = vld [vmem:[%s16871_s3 + $0x1ab8] sm:$0xff] }
 0x21c   :  { %7199 = vmatpush1.bf16.msra.mxu0 %v7198_v48  ;;  %v7214_v48 = vpack.c.bf16 %v1252_v58, %v1236_v57  ;;  %v1364_v57 = vld [vmem:[%s16871_s3 + $0x1a20] sm:$0xff] }
 0x21d   :  { %7455 = vmatpush1.bf16.msra.mxu1 %v7454_v3  ;;  %7201 = vmatprep.subr.bf16.mxu0 %v7200_v4  ;;  %v7470_v3 = vpack.c.bf16 %v1254_v61, %v1238_v59  ;;  %v7216_v4 = vpack.c.bf16 %v1285_v63, %v1269_v62  ;;  %v1380_v58 = vld [vmem:[%s16871_s3 + $0x1aa0] sm:$0xff]  ;;  %v1366_v59 = vld [vmem:[%s16871_s3 + $0x1a30] sm:$0xff]  ;;  %v1397_v62 = vld [vmem:[%s16871_s3 + $0x1b28] sm:$0xff] }
 0x21e   :  { %7457 = vmatprep.subr.bf16.mxu1 %v7456_v6  ;;  %v7472_v6 = vpack.c.bf16 %v1287_v2, %v1271_v0  ;;  %v1382_v61 = vld [vmem:[%s16871_s3 + $0x1ab0] sm:$0xff]  ;;  %v1413_v63 = vld [vmem:[%s16871_s3 + $0x1ba8] sm:$0xff]  ;;  %v1399_v0 = vld [vmem:[%s16871_s3 + $0x1b38] sm:$0xff] }
 0x21f   :  { %v1415_v2 = vld [vmem:[%s16871_s3 + $0x1bb8] sm:$0xff] }
 0x220   :  { %7203 = vmatpush1.bf16.msra.mxu0 %v7202_v12  ;;  %v7218_v12 = vpack.c.bf16 %v1284_v7, %v1268_v5  ;;  %v1396_v5 = vld [vmem:[%s16871_s3 + $0x1b20] sm:$0xff] }
 0x221   :  { %7459 = vmatpush1.bf16.msra.mxu1 %v7458_v17  ;;  %7205 = vmatprep.subr.bf16.mxu0 %v7204_v52  ;;  %v7474_v17 = vpack.c.bf16 %v1286_v8, %v1270_v60  ;;  %v7220_v52 = vpack.c.bf16 %v1317_v10, %v1301_v9  ;;  %v1412_v7 = vld [vmem:[%s16871_s3 + $0x1ba0] sm:$0xff]  ;;  %v1398_v60 = vld [vmem:[%s16871_s3 + $0x1b30] sm:$0xff]  ;;  %v1429_v9 = vld [vmem:[%s16871_s3 + $0x1c28] sm:$0xff] }
 0x222   :  { %7461 = vmatprep.subr.bf16.mxu1 %v7460_v22  ;;  %v7476_v22 = vpack.c.bf16 %v1319_v11, %v1303_v31  ;;  %v1414_v8 = vld [vmem:[%s16871_s3 + $0x1bb0] sm:$0xff]  ;;  %v1445_v10 = vld [vmem:[%s16871_s3 + $0x1ca8] sm:$0xff]  ;;  %v1431_v31 = vld [vmem:[%s16871_s3 + $0x1c38] sm:$0xff] }
 0x223   :  { %v1447_v11 = vld [vmem:[%s16871_s3 + $0x1cb8] sm:$0xff] }
 0x224   :  { %7207 = vmatpush1.bf16.msra.mxu0 %v7206_v28  ;;  %v7222_v28 = vpack.c.bf16 %v1316_v19, %v1300_v18  ;;  %v1428_v18 = vld [vmem:[%s16871_s3 + $0x1c20] sm:$0xff] }
 0x225   :  { %7463 = vmatpush1.bf16.msra.mxu1 %v7462_v29  ;;  %7209 = vmatprep.subr.bf16.mxu0 %v7208_v33  ;;  %v7478_v29 = vpack.c.bf16 %v1318_v23, %v1302_v20  ;;  %v7224_v33 = vpack.c.bf16 %v1349_v24, %v1333_v1  ;;  %v1444_v19 = vld [vmem:[%s16871_s3 + $0x1ca0] sm:$0xff]  ;;  %v1430_v20 = vld [vmem:[%s16871_s3 + $0x1c30] sm:$0xff]  ;;  %v1461_v1 = vld [vmem:[%s16871_s3 + $0x1d28] sm:$0xff] }
 0x226   :  { %7465 = vmatprep.subr.bf16.mxu1 %v7464_v47  ;;  %v7480_v47 = vpack.c.bf16 %v1351_v27, %v1335_v25  ;;  %v1446_v23 = vld [vmem:[%s16871_s3 + $0x1cb0] sm:$0xff]  ;;  %v1477_v24 = vld [vmem:[%s16871_s3 + $0x1da8] sm:$0xff]  ;;  %v1463_v25 = vld [vmem:[%s16871_s3 + $0x1d38] sm:$0xff] }
 0x227   :  { %v1479_v27 = vld [vmem:[%s16871_s3 + $0x1db8] sm:$0xff] }
 0x228   :  { %7211 = vmatpush1.bf16.msra.mxu0 %v7210_v54  ;;  %v7226_v54 = vpack.c.bf16 %v1348_v40, %v1332_v36  ;;  %v1460_v36 = vld [vmem:[%s16871_s3 + $0x1d20] sm:$0xff] }
 0x229   :  { %7467 = vmatpush1.bf16.msra.mxu1 %v7466_v55  ;;  %7213 = vmatprep.subr.bf16.mxu0 %v7212_v56  ;;  %v7482_v55 = vpack.c.bf16 %v1350_v49, %v1334_v43  ;;  %v7228_v56 = vpack.c.bf16 %v1381_v51, %v1365_v50  ;;  %v1476_v40 = vld [vmem:[%s16871_s3 + $0x1da0] sm:$0xff]  ;;  %v1462_v43 = vld [vmem:[%s16871_s3 + $0x1d30] sm:$0xff]  ;;  %v1493_v50 = vld [vmem:[%s16871_s3 + $0x1e28] sm:$0xff] }
 0x22a   :  { %7469 = vmatprep.subr.bf16.mxu1 %v7468_v15  ;;  %v7484_v15 = vpack.c.bf16 %v1383_v13, %v1367_v53  ;;  %v1478_v49 = vld [vmem:[%s16871_s3 + $0x1db0] sm:$0xff]  ;;  %v1509_v51 = vld [vmem:[%s16871_s3 + $0x1ea8] sm:$0xff]  ;;  %v1495_v53 = vld [vmem:[%s16871_s3 + $0x1e38] sm:$0xff] }
 0x22b   :  { %v1511_v13 = vld [vmem:[%s16871_s3 + $0x1eb8] sm:$0xff] }
 0x22c   :  { %7215 = vmatpush1.bf16.msra.mxu0 %v7214_v48  ;;  %v7230_v48 = vpack.c.bf16 %v1380_v58, %v1364_v57  ;;  %v1492_v57 = vld [vmem:[%s16871_s3 + $0x1e20] sm:$0xff] }
 0x22d   :  { %7471 = vmatpush1.bf16.msra.mxu1 %v7470_v3  ;;  %7217 = vmatprep.subr.bf16.mxu0 %v7216_v4  ;;  %v7486_v3 = vpack.c.bf16 %v1382_v61, %v1366_v59  ;;  %v7232_v4 = vpack.c.bf16 %v1413_v63, %v1397_v62  ;;  %v1508_v58 = vld [vmem:[%s16871_s3 + $0x1ea0] sm:$0xff]  ;;  %v1494_v59 = vld [vmem:[%s16871_s3 + $0x1e30] sm:$0xff]  ;;  %v1525_v62 = vld [vmem:[%s16871_s3 + $0x1f28] sm:$0xff] }
 0x22e   :  { %7473 = vmatprep.subr.bf16.mxu1 %v7472_v6  ;;  %v7488_v6 = vpack.c.bf16 %v1415_v2, %v1399_v0  ;;  %v1510_v61 = vld [vmem:[%s16871_s3 + $0x1eb0] sm:$0xff]  ;;  %v1541_v63 = vld [vmem:[%s16871_s3 + $0x1fa8] sm:$0xff]  ;;  %v1527_v0 = vld [vmem:[%s16871_s3 + $0x1f38] sm:$0xff] }
 0x22f   :  { %v1543_v2 = vld [vmem:[%s16871_s3 + $0x1fb8] sm:$0xff] }
 0x230   :  { %7219 = vmatpush1.bf16.msra.mxu0 %v7218_v12  ;;  %v7234_v12 = vpack.c.bf16 %v1412_v7, %v1396_v5  ;;  %v1524_v5 = vld [vmem:[%s16871_s3 + $0x1f20] sm:$0xff] }
 0x231   :  { %7475 = vmatpush1.bf16.msra.mxu1 %v7474_v17  ;;  %7221 = vmatprep.subr.bf16.mxu0 %v7220_v52  ;;  %v7490_v17 = vpack.c.bf16 %v1414_v8, %v1398_v60  ;;  %v7236_v52 = vpack.c.bf16 %v1445_v10, %v1429_v9  ;;  %v1540_v7 = vld [vmem:[%s16871_s3 + $0x1fa0] sm:$0xff]  ;;  %v1526_v60 = vld [vmem:[%s16871_s3 + $0x1f30] sm:$0xff]  ;;  %v1557_v9 = vld [vmem:[%s16871_s3 + $0x2028] sm:$0xff] }
 0x232   :  { %7477 = vmatprep.subr.bf16.mxu1 %v7476_v22  ;;  %v7492_v22 = vpack.c.bf16 %v1447_v11, %v1431_v31  ;;  %v1542_v8 = vld [vmem:[%s16871_s3 + $0x1fb0] sm:$0xff]  ;;  %v1573_v10 = vld [vmem:[%s16871_s3 + $0x20a8] sm:$0xff]  ;;  %v1559_v31 = vld [vmem:[%s16871_s3 + $0x2038] sm:$0xff] }
 0x233   :  { %v1575_v11 = vld [vmem:[%s16871_s3 + $0x20b8] sm:$0xff] }
 0x234   :  { %7223 = vmatpush1.bf16.msra.mxu0 %v7222_v28  ;;  %v7238_v28 = vpack.c.bf16 %v1444_v19, %v1428_v18  ;;  %v1556_v18 = vld [vmem:[%s16871_s3 + $0x2020] sm:$0xff] }
 0x235   :  { %7479 = vmatpush1.bf16.msra.mxu1 %v7478_v29  ;;  %7225 = vmatprep.subr.bf16.mxu0 %v7224_v33  ;;  %v7494_v29 = vpack.c.bf16 %v1446_v23, %v1430_v20  ;;  %v7240_v33 = vpack.c.bf16 %v1477_v24, %v1461_v1  ;;  %v1572_v19 = vld [vmem:[%s16871_s3 + $0x20a0] sm:$0xff]  ;;  %v7508_v20 = vpack.c.bf16 %v1575_v11, %v1559_v31  ;;  %v1574_v23 = vld [vmem:[%s16871_s3 + $0x20b0] sm:$0xff]  ;;  %v1589_v1 = vld [vmem:[%s16871_s3 + $0x2128] sm:$0xff] }
 0x236   :  { %7481 = vmatprep.subr.bf16.mxu1 %v7480_v47  ;;  %v7496_v47 = vpack.c.bf16 %v1479_v27, %v1463_v25  ;;  %v1605_v24 = vld [vmem:[%s16871_s3 + $0x21a8] sm:$0xff]  ;;  %v7254_v25 = vpack.c.bf16 %v1572_v19, %v1556_v18  ;;  %v1591_v27 = vld [vmem:[%s16871_s3 + $0x2138] sm:$0xff]  ;;  %v1684_v18 = vld [vmem:[%s16871_s3 + $0x2420] sm:$0xff] }
 0x237   :  { %v1687_v31 = vld [vmem:[%s16871_s3 + $0x2438] sm:$0xff]  ;;  %v1700_v19 = vld [vmem:[%s16871_s3 + $0x24a0] sm:$0xff] }
 0x238   :  { %7227 = vmatpush1.bf16.msra.mxu0 %v7226_v54  ;;  %v7242_v54 = vpack.c.bf16 %v1476_v40, %v1460_v36  ;;  %v1604_v36 = vld [vmem:[%s16871_s3 + $0x21a0] sm:$0xff]  ;;  %v1590_v40 = vld [vmem:[%s16871_s3 + $0x2130] sm:$0xff]  ;;  %v1703_v11 = vld [vmem:[%s16871_s3 + $0x24b8] sm:$0xff] }
 0x239   :  { %7483 = vmatpush1.bf16.msra.mxu1 %v7482_v55  ;;  %7229 = vmatprep.subr.bf16.mxu0 %v7228_v56  ;;  %v7498_v55 = vpack.c.bf16 %v1478_v49, %v1462_v43  ;;  %v7244_v56 = vpack.c.bf16 %v1509_v51, %v1493_v50  ;;  %v7256_v43 = vpack.c.bf16 %v1605_v24, %v1589_v1  ;;  %v1621_v49 = vld [vmem:[%s16871_s3 + $0x2228] sm:$0xff] }
 0x23a   :  { %7485 = vmatprep.subr.bf16.mxu1 %v7484_v15  ;;  %v7500_v15 = vpack.c.bf16 %v1511_v13, %v1495_v53  ;;  %v1637_v50 = vld [vmem:[%s16871_s3 + $0x22a8] sm:$0xff]  ;;  %v1623_v53 = vld [vmem:[%s16871_s3 + $0x2238] sm:$0xff] }
 0x23b   :  { %v1639_v13 = vld [vmem:[%s16871_s3 + $0x22b8] sm:$0xff]  ;;  %v1717_v1 = vld [vmem:[%s16871_s3 + $0x2528] sm:$0xff] }
 0x23c   :  { %7231 = vmatpush1.bf16.msra.mxu0 %v7230_v48  ;;  %v7246_v48 = vpack.c.bf16 %v1508_v58, %v1492_v57  ;;  %v1620_v57 = vld [vmem:[%s16871_s3 + $0x2220] sm:$0xff]  ;;  %v1733_v24 = vld [vmem:[%s16871_s3 + $0x25a8] sm:$0xff] }
 0x23d   :  { %7487 = vmatpush1.bf16.msra.mxu1 %v7486_v3  ;;  %7233 = vmatprep.subr.bf16.mxu0 %v7232_v4  ;;  %v7502_v3 = vpack.c.bf16 %v1510_v61, %v1494_v59  ;;  %v7248_v4 = vpack.c.bf16 %v1541_v63, %v1525_v62  ;;  %v1636_v58 = vld [vmem:[%s16871_s3 + $0x22a0] sm:$0xff]  ;;  %v1622_v59 = vld [vmem:[%s16871_s3 + $0x2230] sm:$0xff]  ;;  %v1653_v62 = vld [vmem:[%s16871_s3 + $0x2328] sm:$0xff] }
 0x23e   :  { %7489 = vmatprep.subr.bf16.mxu1 %v7488_v6  ;;  %v7504_v6 = vpack.c.bf16 %v1543_v2, %v1527_v0  ;;  %v1638_v61 = vld [vmem:[%s16871_s3 + $0x22b0] sm:$0xff]  ;;  %v1669_v63 = vld [vmem:[%s16871_s3 + $0x23a8] sm:$0xff]  ;;  %v1655_v0 = vld [vmem:[%s16871_s3 + $0x2338] sm:$0xff] }
 0x23f   :  { %v1671_v2 = vld [vmem:[%s16871_s3 + $0x23b8] sm:$0xff] }
 0x240   :  { %7235 = vmatpush1.bf16.msra.mxu0 %v7234_v12  ;;  %v7250_v12 = vpack.c.bf16 %v1540_v7, %v1524_v5  ;;  %v1652_v5 = vld [vmem:[%s16871_s3 + $0x2320] sm:$0xff] }
 0x241   :  { %7491 = vmatpush1.bf16.msra.mxu1 %v7490_v17  ;;  %7237 = vmatprep.subr.bf16.mxu0 %v7236_v52  ;;  %v7506_v17 = vpack.c.bf16 %v1542_v8, %v1526_v60  ;;  %v7252_v52 = vpack.c.bf16 %v1573_v10, %v1557_v9  ;;  %v1668_v7 = vld [vmem:[%s16871_s3 + $0x23a0] sm:$0xff]  ;;  %v1654_v60 = vld [vmem:[%s16871_s3 + $0x2330] sm:$0xff]  ;;  %v1685_v9 = vld [vmem:[%s16871_s3 + $0x2428] sm:$0xff] }
 0x242   :  { %7493 = vmatprep.subr.bf16.mxu1 %v7492_v22  ;;  %v1558_v22 = vld [vmem:[%s16871_s3 + $0x2030] sm:$0xff]  ;;  %v1701_v10 = vld [vmem:[%s16871_s3 + $0x24a8] sm:$0xff] }
 0x243   :  { %v1670_v8 = vld [vmem:[%s16871_s3 + $0x23b0] sm:$0xff] }
 0x244   :  { %7239 = vmatpush1.bf16.msra.mxu0 %v7238_v28  ;;  %v1607_v28 = vld [vmem:[%s16871_s3 + $0x21b8] sm:$0xff] }
 0x245   :  { %7495 = vmatpush1.bf16.msra.mxu1 %v7494_v29  ;;  %7241 = vmatprep.subr.bf16.mxu0 %v7240_v33  ;;  %v7510_v29 = vpack.c.bf16 %v1574_v23, %v1558_v22  ;;  %v1588_v33 = vld [vmem:[%s16871_s3 + $0x2120] sm:$0xff]  ;;  %v7512_v51 = vpack.c.bf16 %v1607_v28, %v1591_v27  ;;  %v7524_v22 = vpack.c.bf16 %v1703_v11, %v1687_v31  ;;  %v1702_v23 = vld [vmem:[%s16871_s3 + $0x24b0] sm:$0xff]  ;;  %v1735_v27 = vld [vmem:[%s16871_s3 + $0x25b8] sm:$0xff] }
 0x246   :  { %7497 = vmatprep.subr.bf16.mxu1 %v7496_v47  ;;  %v1606_v47 = vld [vmem:[%s16871_s3 + $0x21b0] sm:$0xff]  ;;  %v7270_v28 = vpack.c.bf16 %v1700_v19, %v1684_v18  ;;  %v1815_v31 = vld [vmem:[%s16871_s3 + $0x2838] sm:$0xff]  ;;  %v1812_v18 = vld [vmem:[%s16871_s3 + $0x2820] sm:$0xff] }
 0x247   :  { %v1831_v11 = vld [vmem:[%s16871_s3 + $0x28b8] sm:$0xff]  ;;  %v1828_v19 = vld [vmem:[%s16871_s3 + $0x28a0] sm:$0xff] }
 0x248   :  { %7243 = vmatpush1.bf16.msra.mxu0 %v7242_v54  ;;  %v7258_v54 = vpack.c.bf16 %v1604_v36, %v1588_v33  ;;  %v7272_v33 = vpack.c.bf16 %v1733_v24, %v1717_v1  ;;  %v1716_v36 = vld [vmem:[%s16871_s3 + $0x2520] sm:$0xff]  ;;  %v1845_v1 = vld [vmem:[%s16871_s3 + $0x2928] sm:$0xff] }
 0x249   :  { %7499 = vmatpush1.bf16.msra.mxu1 %v7498_v55  ;;  %7245 = vmatprep.subr.bf16.mxu0 %v7244_v56  ;;  %v7514_v55 = vpack.c.bf16 %v1606_v47, %v1590_v40  ;;  %v7260_v56 = vpack.c.bf16 %v1637_v50, %v1621_v49  ;;  %v1732_v40 = vld [vmem:[%s16871_s3 + $0x25a0] sm:$0xff]  ;;  %v1734_v49 = vld [vmem:[%s16871_s3 + $0x25b0] sm:$0xff]  ;;  %v1749_v50 = vld [vmem:[%s16871_s3 + $0x2628] sm:$0xff] }
 0x24a   :  { %7501 = vmatprep.subr.bf16.mxu1 %v7500_v15  ;;  %v7516_v15 = vpack.c.bf16 %v1639_v13, %v1623_v53  ;;  %v1751_v53 = vld [vmem:[%s16871_s3 + $0x2638] sm:$0xff]  ;;  %v1861_v24 = vld [vmem:[%s16871_s3 + $0x29a8] sm:$0xff] }
 0x24b   :  { %v1767_v13 = vld [vmem:[%s16871_s3 + $0x26b8] sm:$0xff] }
 0x24c   :  { %7247 = vmatpush1.bf16.msra.mxu0 %v7246_v48  ;;  %v7262_v48 = vpack.c.bf16 %v1636_v58, %v1620_v57  ;;  %v1748_v57 = vld [vmem:[%s16871_s3 + $0x2620] sm:$0xff] }
 0x24d   :  { %7503 = vmatpush1.bf16.msra.mxu1 %v7502_v3  ;;  %7249 = vmatprep.subr.bf16.mxu0 %v7248_v4  ;;  %v7518_v3 = vpack.c.bf16 %v1638_v61, %v1622_v59  ;;  %v7264_v4 = vpack.c.bf16 %v1669_v63, %v1653_v62  ;;  %v1764_v58 = vld [vmem:[%s16871_s3 + $0x26a0] sm:$0xff]  ;;  %v1750_v59 = vld [vmem:[%s16871_s3 + $0x2630] sm:$0xff]  ;;  %v1781_v62 = vld [vmem:[%s16871_s3 + $0x2728] sm:$0xff] }
 0x24e   :  { %7505 = vmatprep.subr.bf16.mxu1 %v7504_v6  ;;  %v7520_v6 = vpack.c.bf16 %v1671_v2, %v1655_v0  ;;  %v1766_v61 = vld [vmem:[%s16871_s3 + $0x26b0] sm:$0xff]  ;;  %v1797_v63 = vld [vmem:[%s16871_s3 + $0x27a8] sm:$0xff]  ;;  %v1783_v0 = vld [vmem:[%s16871_s3 + $0x2738] sm:$0xff] }
 0x24f   :  { %v1799_v2 = vld [vmem:[%s16871_s3 + $0x27b8] sm:$0xff] }
 0x250   :  { %7251 = vmatpush1.bf16.msra.mxu0 %v7250_v12  ;;  %v7266_v12 = vpack.c.bf16 %v1668_v7, %v1652_v5  ;;  %v1780_v5 = vld [vmem:[%s16871_s3 + $0x2720] sm:$0xff] }
 0x251   :  { %7507 = vmatpush1.bf16.msra.mxu1 %v7506_v17  ;;  %7253 = vmatprep.subr.bf16.mxu0 %v7252_v52  ;;  %v7522_v17 = vpack.c.bf16 %v1670_v8, %v1654_v60  ;;  %v7268_v52 = vpack.c.bf16 %v1701_v10, %v1685_v9  ;;  %v1796_v7 = vld [vmem:[%s16871_s3 + $0x27a0] sm:$0xff]  ;;  %v1782_v60 = vld [vmem:[%s16871_s3 + $0x2730] sm:$0xff]  ;;  %v1813_v9 = vld [vmem:[%s16871_s3 + $0x2828] sm:$0xff] }
 0x252   :  { %7509 = vmatprep.subr.bf16.mxu1 %v7508_v20  ;;  %v1686_v20 = vld [vmem:[%s16871_s3 + $0x2430] sm:$0xff]  ;;  %v1829_v10 = vld [vmem:[%s16871_s3 + $0x28a8] sm:$0xff] }
 0x253   :  { %3364 = vmatmul.mubr.f32.vlgmr.msra.gmra.mrb[6].mxu0 %v10494_v34  ;;  %v1798_v8 = vld [vmem:[%s16871_s3 + $0x27b0] sm:$0xff] }
 0x254   :  { %3648 = vmatmul.mubr.f32.vlgmr.msra.gmra.mrb[6].mxu1 %v10494_v34  ;;  %7255 = vmatpush1.bf16.msra.mxu0 %v7254_v25  ;;  %v1719_v25 = vld [vmem:[%s16871_s3 + $0x2538] sm:$0xff] }
 0x255   :  { %3434 = vmatprep.mubr.f32.mxu0 %v10507_v41  ;;  %7511 = vmatpush1.bf16.msra.mxu1 %v7510_v29  ;;  %v7526_v29 = vpack.c.bf16 %v1702_v23, %v1686_v20  ;;  %v7528_v47 = vpack.c.bf16 %v1735_v27, %v1719_v25  ;;  %v1814_v20 = vld [vmem:[%s16871_s3 + $0x2830] sm:$0xff]  ;;  %v1847_v25 = vld [vmem:[%s16871_s3 + $0x2938] sm:$0xff] }
 0x256   :  { %3718 = vmatprep.mubr.f32.mxu1 %v10507_v41  ;;  %7257 = vmatprep.subr.bf16.mxu0 %v7256_v43  ;;  %v1718_v43 = vld [vmem:[%s16871_s3 + $0x2530] sm:$0xff]  ;;  %v1863_v27 = vld [vmem:[%s16871_s3 + $0x29b8] sm:$0xff] }
 0x257   :  { %7513 = vmatprep.subr.bf16.mxu1 %v7512_v51  ;;  %v1765_v51 = vld [vmem:[%s16871_s3 + $0x26a8] sm:$0xff]  ;;  %v1830_v23 = vld [vmem:[%s16871_s3 + $0x28b0] sm:$0xff] }
 0x258   :  { %7259 = vmatpush1.bf16.msra.mxu0 %v7258_v54  ;;  %v7274_v54 = vpack.c.bf16 %v1732_v40, %v1716_v36  ;;  %v1844_v36 = vld [vmem:[%s16871_s3 + $0x2920] sm:$0xff] }
 0x259   :  { %7515 = vmatpush1.bf16.msra.mxu1 %v7514_v55  ;;  %7261 = vmatprep.subr.bf16.mxu0 %v7260_v56  ;;  %v7530_v55 = vpack.c.bf16 %v1734_v49, %v1718_v43  ;;  %v7276_v56 = vpack.c.bf16 %v1765_v51, %v1749_v50  ;;  %v1860_v40 = vld [vmem:[%s16871_s3 + $0x29a0] sm:$0xff]  ;;  %v1846_v43 = vld [vmem:[%s16871_s3 + $0x2930] sm:$0xff]  ;;  %v1877_v50 = vld [vmem:[%s16871_s3 + $0x2a28] sm:$0xff] }
 0x25a   :  { %7517 = vmatprep.subr.bf16.mxu1 %v7516_v15  ;;  %v7532_v15 = vpack.c.bf16 %v1767_v13, %v1751_v53  ;;  %v1862_v49 = vld [vmem:[%s16871_s3 + $0x29b0] sm:$0xff]  ;;  %v1893_v51 = vld [vmem:[%s16871_s3 + $0x2aa8] sm:$0xff]  ;;  %v1879_v53 = vld [vmem:[%s16871_s3 + $0x2a38] sm:$0xff] }
 0x25b   :  { %v1895_v13 = vld [vmem:[%s16871_s3 + $0x2ab8] sm:$0xff] }
 0x25c   :  { %7263 = vmatpush1.bf16.msra.mxu0 %v7262_v48  ;;  %v7278_v48 = vpack.c.bf16 %v1764_v58, %v1748_v57  ;;  %v1876_v57 = vld [vmem:[%s16871_s3 + $0x2a20] sm:$0xff] }
 0x25d   :  { %7519 = vmatpush1.bf16.msra.mxu1 %v7518_v3  ;;  %7265 = vmatprep.subr.bf16.mxu0 %v7264_v4  ;;  %v7534_v3 = vpack.c.bf16 %v1766_v61, %v1750_v59  ;;  %v7280_v4 = vpack.c.bf16 %v1797_v63, %v1781_v62  ;;  %v1892_v58 = vld [vmem:[%s16871_s3 + $0x2aa0] sm:$0xff]  ;;  %v1878_v59 = vld [vmem:[%s16871_s3 + $0x2a30] sm:$0xff]  ;;  %v1909_v62 = vld [vmem:[%s16871_s3 + $0x2b28] sm:$0xff] }
 0x25e   :  { %7521 = vmatprep.subr.bf16.mxu1 %v7520_v6  ;;  %v7536_v6 = vpack.c.bf16 %v1799_v2, %v1783_v0  ;;  %v1894_v61 = vld [vmem:[%s16871_s3 + $0x2ab0] sm:$0xff]  ;;  %v1925_v63 = vld [vmem:[%s16871_s3 + $0x2ba8] sm:$0xff]  ;;  %v1911_v0 = vld [vmem:[%s16871_s3 + $0x2b38] sm:$0xff] }
 0x25f   :  { %v1927_v2 = vld [vmem:[%s16871_s3 + $0x2bb8] sm:$0xff] }
 0x260   :  { %7267 = vmatpush1.bf16.msra.mxu0 %v7266_v12  ;;  %v7282_v12 = vpack.c.bf16 %v1796_v7, %v1780_v5  ;;  %v1908_v5 = vld [vmem:[%s16871_s3 + $0x2b20] sm:$0xff] }
 0x261   :  { %7523 = vmatpush1.bf16.msra.mxu1 %v7522_v17  ;;  %7269 = vmatprep.subr.bf16.mxu0 %v7268_v52  ;;  %v7538_v17 = vpack.c.bf16 %v1798_v8, %v1782_v60  ;;  %v7284_v52 = vpack.c.bf16 %v1829_v10, %v1813_v9  ;;  %v1924_v7 = vld [vmem:[%s16871_s3 + $0x2ba0] sm:$0xff]  ;;  %v1910_v60 = vld [vmem:[%s16871_s3 + $0x2b30] sm:$0xff]  ;;  %v1941_v9 = vld [vmem:[%s16871_s3 + $0x2c28] sm:$0xff] }
 0x262   :  { %7525 = vmatprep.subr.bf16.mxu1 %v7524_v22  ;;  %v7540_v22 = vpack.c.bf16 %v1831_v11, %v1815_v31  ;;  %v1926_v8 = vld [vmem:[%s16871_s3 + $0x2bb0] sm:$0xff]  ;;  %v1957_v10 = vld [vmem:[%s16871_s3 + $0x2ca8] sm:$0xff]  ;;  %v1943_v31 = vld [vmem:[%s16871_s3 + $0x2c38] sm:$0xff] }
 0x263   :  { %v1959_v11 = vld [vmem:[%s16871_s3 + $0x2cb8] sm:$0xff] }
 0x264   :  { %7271 = vmatpush1.bf16.msra.mxu0 %v7270_v28  ;;  %v7286_v28 = vpack.c.bf16 %v1828_v19, %v1812_v18  ;;  %v1940_v18 = vld [vmem:[%s16871_s3 + $0x2c20] sm:$0xff] }
 0x265   :  { %7527 = vmatpush1.bf16.msra.mxu1 %v7526_v29  ;;  %7273 = vmatprep.subr.bf16.mxu0 %v7272_v33  ;;  %v7542_v29 = vpack.c.bf16 %v1830_v23, %v1814_v20  ;;  %v7288_v33 = vpack.c.bf16 %v1861_v24, %v1845_v1  ;;  %v1956_v19 = vld [vmem:[%s16871_s3 + $0x2ca0] sm:$0xff]  ;;  %v1942_v20 = vld [vmem:[%s16871_s3 + $0x2c30] sm:$0xff]  ;;  %v1973_v1 = vld [vmem:[%s16871_s3 + $0x2d28] sm:$0xff] }
 0x266   :  { %7529 = vmatprep.subr.bf16.mxu1 %v7528_v47  ;;  %v7544_v47 = vpack.c.bf16 %v1863_v27, %v1847_v25  ;;  %v1958_v23 = vld [vmem:[%s16871_s3 + $0x2cb0] sm:$0xff]  ;;  %v1989_v24 = vld [vmem:[%s16871_s3 + $0x2da8] sm:$0xff]  ;;  %v1975_v25 = vld [vmem:[%s16871_s3 + $0x2d38] sm:$0xff] }
 0x267   :  { %v1991_v27 = vld [vmem:[%s16871_s3 + $0x2db8] sm:$0xff] }
 0x268   :  { %7275 = vmatpush1.bf16.msra.mxu0 %v7274_v54  ;;  %v7290_v54 = vpack.c.bf16 %v1860_v40, %v1844_v36  ;;  %v1972_v36 = vld [vmem:[%s16871_s3 + $0x2d20] sm:$0xff] }
 0x269   :  { %7531 = vmatpush1.bf16.msra.mxu1 %v7530_v55  ;;  %7277 = vmatprep.subr.bf16.mxu0 %v7276_v56  ;;  %v7546_v55 = vpack.c.bf16 %v1862_v49, %v1846_v43  ;;  %v7292_v56 = vpack.c.bf16 %v1893_v51, %v1877_v50  ;;  %v1988_v40 = vld [vmem:[%s16871_s3 + $0x2da0] sm:$0xff]  ;;  %v1974_v43 = vld [vmem:[%s16871_s3 + $0x2d30] sm:$0xff]  ;;  %v2005_v50 = vld [vmem:[%s16871_s3 + $0x2e28] sm:$0xff] }
 0x26a   :  { %7533 = vmatprep.subr.bf16.mxu1 %v7532_v15  ;;  %v7548_v15 = vpack.c.bf16 %v1895_v13, %v1879_v53  ;;  %v1990_v49 = vld [vmem:[%s16871_s3 + $0x2db0] sm:$0xff]  ;;  %v2021_v51 = vld [vmem:[%s16871_s3 + $0x2ea8] sm:$0xff]  ;;  %v2007_v53 = vld [vmem:[%s16871_s3 + $0x2e38] sm:$0xff] }
 0x26b   :  { %v2023_v13 = vld [vmem:[%s16871_s3 + $0x2eb8] sm:$0xff] }
 0x26c   :  { %7279 = vmatpush1.bf16.msra.mxu0 %v7278_v48  ;;  %v7294_v48 = vpack.c.bf16 %v1892_v58, %v1876_v57  ;;  %v2004_v57 = vld [vmem:[%s16871_s3 + $0x2e20] sm:$0xff] }
 0x26d   :  { %7535 = vmatpush1.bf16.msra.mxu1 %v7534_v3  ;;  %7281 = vmatprep.subr.bf16.mxu0 %v7280_v4  ;;  %v7550_v3 = vpack.c.bf16 %v1894_v61, %v1878_v59  ;;  %v7296_v4 = vpack.c.bf16 %v1925_v63, %v1909_v62  ;;  %v2020_v58 = vld [vmem:[%s16871_s3 + $0x2ea0] sm:$0xff]  ;;  %v2006_v59 = vld [vmem:[%s16871_s3 + $0x2e30] sm:$0xff]  ;;  %v2037_v62 = vld [vmem:[%s16871_s3 + $0x2f28] sm:$0xff] }
 0x26e   :  { %7537 = vmatprep.subr.bf16.mxu1 %v7536_v6  ;;  %v7552_v6 = vpack.c.bf16 %v1927_v2, %v1911_v0  ;;  %v2022_v61 = vld [vmem:[%s16871_s3 + $0x2eb0] sm:$0xff]  ;;  %v2053_v63 = vld [vmem:[%s16871_s3 + $0x2fa8] sm:$0xff]  ;;  %v2039_v0 = vld [vmem:[%s16871_s3 + $0x2f38] sm:$0xff] }
 0x26f   :  { %v2055_v2 = vld [vmem:[%s16871_s3 + $0x2fb8] sm:$0xff] }
 0x270   :  { %7283 = vmatpush1.bf16.msra.mxu0 %v7282_v12  ;;  %v7298_v12 = vpack.c.bf16 %v1924_v7, %v1908_v5  ;;  %v2036_v5 = vld [vmem:[%s16871_s3 + $0x2f20] sm:$0xff] }
 0x271   :  { %7539 = vmatpush1.bf16.msra.mxu1 %v7538_v17  ;;  %7285 = vmatprep.subr.bf16.mxu0 %v7284_v52  ;;  %v7554_v17 = vpack.c.bf16 %v1926_v8, %v1910_v60  ;;  %v7300_v52 = vpack.c.bf16 %v1957_v10, %v1941_v9  ;;  %v2052_v7 = vld [vmem:[%s16871_s3 + $0x2fa0] sm:$0xff]  ;;  %v2038_v60 = vld [vmem:[%s16871_s3 + $0x2f30] sm:$0xff]  ;;  %v2069_v9 = vld [vmem:[%s16871_s3 + $0x3028] sm:$0xff] }
 0x272   :  { %7541 = vmatprep.subr.bf16.mxu1 %v7540_v22  ;;  %v7556_v22 = vpack.c.bf16 %v1959_v11, %v1943_v31  ;;  %v2054_v8 = vld [vmem:[%s16871_s3 + $0x2fb0] sm:$0xff]  ;;  %v2085_v10 = vld [vmem:[%s16871_s3 + $0x30a8] sm:$0xff]  ;;  %v2071_v31 = vld [vmem:[%s16871_s3 + $0x3038] sm:$0xff] }
 0x273   :  { %v2087_v11 = vld [vmem:[%s16871_s3 + $0x30b8] sm:$0xff] }
 0x274   :  { %7287 = vmatpush1.bf16.msra.mxu0 %v7286_v28  ;;  %v7302_v28 = vpack.c.bf16 %v1956_v19, %v1940_v18  ;;  %v2068_v18 = vld [vmem:[%s16871_s3 + $0x3020] sm:$0xff] }
 0x275   :  { %7543 = vmatpush1.bf16.msra.mxu1 %v7542_v29  ;;  %7289 = vmatprep.subr.bf16.mxu0 %v7288_v33  ;;  %v7558_v29 = vpack.c.bf16 %v1958_v23, %v1942_v20  ;;  %v7304_v33 = vpack.c.bf16 %v1989_v24, %v1973_v1  ;;  %v2084_v19 = vld [vmem:[%s16871_s3 + $0x30a0] sm:$0xff]  ;;  %v7572_v20 = vpack.c.bf16 %v2087_v11, %v2071_v31  ;;  %v2086_v23 = vld [vmem:[%s16871_s3 + $0x30b0] sm:$0xff]  ;;  %v2101_v1 = vld [vmem:[%s16871_s3 + $0x3128] sm:$0xff] }
 0x276   :  { %7545 = vmatprep.subr.bf16.mxu1 %v7544_v47  ;;  %v7560_v47 = vpack.c.bf16 %v1991_v27, %v1975_v25  ;;  %v2117_v24 = vld [vmem:[%s16871_s3 + $0x31a8] sm:$0xff]  ;;  %v7318_v25 = vpack.c.bf16 %v2084_v19, %v2068_v18  ;;  %v2103_v27 = vld [vmem:[%s16871_s3 + $0x3138] sm:$0xff]  ;;  %v2196_v18 = vld [vmem:[%s16871_s3 + $0x3420] sm:$0xff] }
 0x277   :  { %v2199_v31 = vld [vmem:[%s16871_s3 + $0x3438] sm:$0xff]  ;;  %v2212_v19 = vld [vmem:[%s16871_s3 + $0x34a0] sm:$0xff] }
 0x278   :  { %7291 = vmatpush1.bf16.msra.mxu0 %v7290_v54  ;;  %v7306_v54 = vpack.c.bf16 %v1988_v40, %v1972_v36  ;;  %v2116_v36 = vld [vmem:[%s16871_s3 + $0x31a0] sm:$0xff]  ;;  %v2102_v40 = vld [vmem:[%s16871_s3 + $0x3130] sm:$0xff]  ;;  %v2215_v11 = vld [vmem:[%s16871_s3 + $0x34b8] sm:$0xff] }
 0x279   :  { %7547 = vmatpush1.bf16.msra.mxu1 %v7546_v55  ;;  %7293 = vmatprep.subr.bf16.mxu0 %v7292_v56  ;;  %v7562_v55 = vpack.c.bf16 %v1990_v49, %v1974_v43  ;;  %v7308_v56 = vpack.c.bf16 %v2021_v51, %v2005_v50  ;;  %v7320_v43 = vpack.c.bf16 %v2117_v24, %v2101_v1  ;;  %v2133_v49 = vld [vmem:[%s16871_s3 + $0x3228] sm:$0xff] }
 0x27a   :  { %7549 = vmatprep.subr.bf16.mxu1 %v7548_v15  ;;  %v7564_v15 = vpack.c.bf16 %v2023_v13, %v2007_v53  ;;  %v2149_v50 = vld [vmem:[%s16871_s3 + $0x32a8] sm:$0xff]  ;;  %v2135_v53 = vld [vmem:[%s16871_s3 + $0x3238] sm:$0xff] }
 0x27b   :  { %v2151_v13 = vld [vmem:[%s16871_s3 + $0x32b8] sm:$0xff]  ;;  %v2229_v1 = vld [vmem:[%s16871_s3 + $0x3528] sm:$0xff] }
 0x27c   :  { %7295 = vmatpush1.bf16.msra.mxu0 %v7294_v48  ;;  %v7310_v48 = vpack.c.bf16 %v2020_v58, %v2004_v57  ;;  %v2132_v57 = vld [vmem:[%s16871_s3 + $0x3220] sm:$0xff]  ;;  %v2245_v24 = vld [vmem:[%s16871_s3 + $0x35a8] sm:$0xff] }
 0x27d   :  { %7551 = vmatpush1.bf16.msra.mxu1 %v7550_v3  ;;  %7297 = vmatprep.subr.bf16.mxu0 %v7296_v4  ;;  %v7566_v3 = vpack.c.bf16 %v2022_v61, %v2006_v59  ;;  %v7312_v4 = vpack.c.bf16 %v2053_v63, %v2037_v62  ;;  %v2148_v58 = vld [vmem:[%s16871_s3 + $0x32a0] sm:$0xff]  ;;  %v2134_v59 = vld [vmem:[%s16871_s3 + $0x3230] sm:$0xff]  ;;  %v2165_v62 = vld [vmem:[%s16871_s3 + $0x3328] sm:$0xff] }
 0x27e   :  { %7553 = vmatprep.subr.bf16.mxu1 %v7552_v6  ;;  %v7568_v6 = vpack.c.bf16 %v2055_v2, %v2039_v0  ;;  %v2150_v61 = vld [vmem:[%s16871_s3 + $0x32b0] sm:$0xff]  ;;  %v2181_v63 = vld [vmem:[%s16871_s3 + $0x33a8] sm:$0xff]  ;;  %v2167_v0 = vld [vmem:[%s16871_s3 + $0x3338] sm:$0xff] }
 0x27f   :  { %v2183_v2 = vld [vmem:[%s16871_s3 + $0x33b8] sm:$0xff] }
 0x280   :  { %7299 = vmatpush1.bf16.msra.mxu0 %v7298_v12  ;;  %v7314_v12 = vpack.c.bf16 %v2052_v7, %v2036_v5  ;;  %v2164_v5 = vld [vmem:[%s16871_s3 + $0x3320] sm:$0xff] }
 0x281   :  { %7555 = vmatpush1.bf16.msra.mxu1 %v7554_v17  ;;  %7301 = vmatprep.subr.bf16.mxu0 %v7300_v52  ;;  %v7570_v17 = vpack.c.bf16 %v2054_v8, %v2038_v60  ;;  %v7316_v52 = vpack.c.bf16 %v2085_v10, %v2069_v9  ;;  %v2180_v7 = vld [vmem:[%s16871_s3 + $0x33a0] sm:$0xff]  ;;  %v2166_v60 = vld [vmem:[%s16871_s3 + $0x3330] sm:$0xff]  ;;  %v2197_v9 = vld [vmem:[%s16871_s3 + $0x3428] sm:$0xff] }
 0x282   :  { %7557 = vmatprep.subr.bf16.mxu1 %v7556_v22  ;;  %v2070_v22 = vld [vmem:[%s16871_s3 + $0x3030] sm:$0xff]  ;;  %v2213_v10 = vld [vmem:[%s16871_s3 + $0x34a8] sm:$0xff] }
 0x283   :  { %v2182_v8 = vld [vmem:[%s16871_s3 + $0x33b0] sm:$0xff] }
 0x284   :  { %7303 = vmatpush1.bf16.msra.mxu0 %v7302_v28  ;;  %v2119_v28 = vld [vmem:[%s16871_s3 + $0x31b8] sm:$0xff] }
 0x285   :  { %7559 = vmatpush1.bf16.msra.mxu1 %v7558_v29  ;;  %7305 = vmatprep.subr.bf16.mxu0 %v7304_v33  ;;  %v7574_v29 = vpack.c.bf16 %v2086_v23, %v2070_v22  ;;  %v2100_v33 = vld [vmem:[%s16871_s3 + $0x3120] sm:$0xff]  ;;  %v7576_v51 = vpack.c.bf16 %v2119_v28, %v2103_v27  ;;  %v7588_v22 = vpack.c.bf16 %v2215_v11, %v2199_v31  ;;  %v2214_v23 = vld [vmem:[%s16871_s3 + $0x34b0] sm:$0xff]  ;;  %v2247_v27 = vld [vmem:[%s16871_s3 + $0x35b8] sm:$0xff] }
 0x286   :  { %7561 = vmatprep.subr.bf16.mxu1 %v7560_v47  ;;  %v2118_v47 = vld [vmem:[%s16871_s3 + $0x31b0] sm:$0xff]  ;;  %v7334_v28 = vpack.c.bf16 %v2212_v19, %v2196_v18  ;;  %v2292_v18 = vld [vmem:[%s16871_s3 + $0x3720] sm:$0xff] }
 0x287   :  { %v2308_v19 = vld [vmem:[%s16871_s3 + $0x37a0] sm:$0xff] }
 0x288   :  { %7307 = vmatpush1.bf16.msra.mxu0 %v7306_v54  ;;  %v7322_v54 = vpack.c.bf16 %v2116_v36, %v2100_v33  ;;  %v7336_v36 = vpack.c.bf16 %v2245_v24, %v2229_v1  ;;  %v2310_v24 = vld [vmem:[%s16871_s3 + $0x37b0] sm:$0xff] }
 0x289   :  { %7563 = vmatpush1.bf16.msra.mxu1 %v7562_v55  ;;  %7309 = vmatprep.subr.bf16.mxu0 %v7308_v56  ;;  %v7578_v55 = vpack.c.bf16 %v2118_v47, %v2102_v40  ;;  %v7324_v56 = vpack.c.bf16 %v2149_v50, %v2133_v49  ;;  %v2228_v40 = vld [vmem:[%s16871_s3 + $0x3520] sm:$0xff]  ;;  %v2230_v47 = vld [vmem:[%s16871_s3 + $0x3530] sm:$0xff] }
 0x28a   :  { %7565 = vmatprep.subr.bf16.mxu1 %v7564_v15  ;;  %v7580_v15 = vpack.c.bf16 %v2151_v13, %v2135_v53  ;;  %v2246_v50 = vld [vmem:[%s16871_s3 + $0x35b0] sm:$0xff]  ;;  %v2277_v53 = vld [vmem:[%s16871_s3 + $0x36a8] sm:$0xff] }
 0x28c   :  { %7311 = vmatpush1.bf16.msra.mxu0 %v7310_v48  ;;  %v7326_v48 = vpack.c.bf16 %v2148_v58, %v2132_v57 }
 0x28d   :  { %7567 = vmatpush1.bf16.msra.mxu1 %v7566_v3  ;;  %7313 = vmatprep.subr.bf16.mxu0 %v7312_v4  ;;  %v7582_v3 = vpack.c.bf16 %v2150_v61, %v2134_v59  ;;  %v7328_v4 = vpack.c.bf16 %v2181_v63, %v2165_v62  ;;  %v7594_v59 = vpack.c.bf16 %v2246_v50, %v2230_v47  ;;  %v2260_v61 = vld [vmem:[%s16871_s3 + $0x3620] sm:$0xff]  ;;  %v2262_v63 = vld [vmem:[%s16871_s3 + $0x3630] sm:$0xff] }
 0x28e   :  { %7569 = vmatprep.subr.bf16.mxu1 %v7568_v6  ;;  %v7584_v6 = vpack.c.bf16 %v2183_v2, %v2167_v0  ;;  %v2276_v62 = vld [vmem:[%s16871_s3 + $0x36a0] sm:$0xff] }
 0x290   :  { %7315 = vmatpush1.bf16.msra.mxu0 %v7314_v12  ;;  %v7330_v12 = vpack.c.bf16 %v2180_v7, %v2164_v5  ;;  %v2293_v5 = vld [vmem:[%s16871_s3 + $0x3728] sm:$0xff] }
 0x291   :  { %7571 = vmatpush1.bf16.msra.mxu1 %v7570_v17  ;;  %7317 = vmatprep.subr.bf16.mxu0 %v7316_v52  ;;  %v7586_v17 = vpack.c.bf16 %v2182_v8, %v2166_v60  ;;  %v7332_v52 = vpack.c.bf16 %v2213_v10, %v2197_v9  ;;  %v2309_v7 = vld [vmem:[%s16871_s3 + $0x37a8] sm:$0xff]  ;;  %v2295_v9 = vld [vmem:[%s16871_s3 + $0x3738] sm:$0xff] }
 0x292   :  { %7573 = vmatprep.subr.bf16.mxu1 %v7572_v20  ;;  %v2198_v20 = vld [vmem:[%s16871_s3 + $0x3430] sm:$0xff]  ;;  %v2311_v10 = vld [vmem:[%s16871_s3 + $0x37b8] sm:$0xff] }
 0x293   :  { %3435 = vmatmul.mubr.f32.vlgmr.msra.gmra.mrb[6].mxu0 %v10904_v39  ;;  %v7590_v33 = vpack.c.bf16 %v2214_v23, %v2198_v20  ;;  %v2294_v20 = vld [vmem:[%s16871_s3 + $0x3730] sm:$0xff]  ;;  %v7600_v1 = vpack.c.bf16 %v2311_v10, %v2295_v9 }
 0x294   :  { %3719 = vmatmul.mubr.f32.vlgmr.msra.gmra.mrb[6].mxu1 %v10904_v39  ;;  %7319 = vmatpush1.bf16.msra.mxu0 %v7318_v25  ;;  %v2231_v25 = vld [vmem:[%s16871_s3 + $0x3538] sm:$0xff] }
 0x295   :  { %3505 = vmatprep.mubr.f32.mxu0 %v10917_v45  ;;  %7575 = vmatpush1.bf16.msra.mxu1 %v7574_v29  ;;  %v2576_v29 = vld [vmem:[#allocation3] sm:$0xff]  ;;  %v7592_v49 = vpack.c.bf16 %v2247_v27, %v2231_v25 }
 0x296   :  { %3789 = vmatprep.mubr.f32.mxu1 %v10917_v45  ;;  %7321 = vmatprep.subr.bf16.mxu0 %v7320_v43  ;;  %v2244_v43 = vld [vmem:[%s16871_s3 + $0x35a0] sm:$0xff]  ;;  %v2591_v13 = vrot.slane %v2576_v29, %v10386_v30  ;;  %v2595_v57 = vrot.slane %v2576_v29, %v10062_v37  ;;  %v2583_v0 = vrot.slane %v2576_v29, %v10017_v14  ;;  %v2325_v25 = vld [vmem:[%s16871_s3 + $0x3828] sm:$0xff] }
 0x297   :  { %7577 = vmatprep.subr.bf16.mxu1 %v7576_v51  ;;  %v2261_v51 = vld [vmem:[%s16871_s3 + $0x3628] sm:$0xff]  ;;  %v7338_v58 = vpack.c.bf16 %v2244_v43, %v2228_v40  ;;  %v7346_v43 = vpack.c.bf16 %v2308_v19, %v2292_v18 }
 0x298   :  { %7323 = vmatpush1.bf16.msra.mxu0 %v7322_v54  ;;  %v2263_v54 = vld [vmem:[%s16871_s3 + $0x3638] sm:$0xff]  ;;  %v2341_v27 = vld [vmem:[%s16871_s3 + $0x38a8] sm:$0xff] }
 0x299   :  { %7579 = vmatpush1.bf16.msra.mxu1 %v7578_v55  ;;  %7325 = vmatprep.subr.bf16.mxu0 %v7324_v56  ;;  %v2279_v55 = vld [vmem:[%s16871_s3 + $0x36b8] sm:$0xff]  ;;  %v2587_v56 = vrot.slane %v2576_v29, %v10025_v16  ;;  %v7348_v50 = vpack.c.bf16 %v2341_v27, %v2325_v25  ;;  %v2421_v18 = vld [vmem:[%s16871_s3 + $0x3b28] sm:$0xff]  ;;  %v2420_v25 = vld [vmem:[%s16871_s3 + $0x3b20] sm:$0xff] }
 0x29a   :  { %7581 = vmatprep.subr.bf16.mxu1 %v7580_v15  ;;  %v7340_v15 = vpack.c.bf16 %v2277_v53, %v2261_v51  ;;  %v2327_v29 = vld [vmem:[%s16871_s3 + $0x3838] sm:$0xff]  ;;  %v2324_v51 = vld [vmem:[%s16871_s3 + $0x3820] sm:$0xff]  ;;  %v2437_v19 = vld [vmem:[%s16871_s3 + $0x3ba8] sm:$0xff] }
 0x29b   :  { %v2340_v53 = vld [vmem:[%s16871_s3 + $0x38a0] sm:$0xff] }
 0x29c   :  { %7327 = vmatpush1.bf16.msra.mxu0 %v7326_v48  ;;  %v2436_v27 = vld [vmem:[%s16871_s3 + $0x3ba0] sm:$0xff] }
 0x29d   :  { %7583 = vmatpush1.bf16.msra.mxu1 %v7582_v3  ;;  %7329 = vmatprep.subr.bf16.mxu0 %v7328_v4  ;;  %v7596_v3 = vpack.c.bf16 %v2279_v55, %v2263_v54  ;;  %v2278_v4 = vld [vmem:[%s16871_s3 + $0x36b0] sm:$0xff] }
 0x29e   :  { %7585 = vmatprep.subr.bf16.mxu1 %v7584_v6 }
 0x2a0   :  { %7331 = vmatpush1.bf16.msra.mxu0 %v7330_v12  ;;  %v7342_v12 = vpack.c.bf16 %v2276_v62, %v2260_v61  ;;  %v7350_v61 = vpack.c.bf16 %v2340_v53, %v2324_v51  ;;  %v2452_v53 = vld [vmem:[%s16871_s3 + $0x3c20] sm:$0xff] }
 0x2a1   :  { %7587 = vmatpush1.bf16.msra.mxu1 %v7586_v17  ;;  %7333 = vmatprep.subr.bf16.mxu0 %v7332_v52  ;;  %v7598_v17 = vpack.c.bf16 %v2278_v4, %v2262_v63  ;;  %v7344_v52 = vpack.c.bf16 %v2309_v7, %v2293_v5  ;;  %v2374_v4 = vld [vmem:[%s16871_s3 + $0x39b0] sm:$0xff]  ;;  %v2389_v5 = vld [vmem:[%s16871_s3 + $0x3a28] sm:$0xff] }
 0x2a2   :  { %7589 = vmatprep.subr.bf16.mxu1 %v7588_v22  ;;  %v2405_v7 = vld [vmem:[%s16871_s3 + $0x3aa8] sm:$0xff] }
 0x2a3   :  { %v7356_v10 = vpack.c.bf16 %v2405_v7, %v2389_v5  ;;  %v2517_v5 = vld [vmem:[%s16871_s3 + $0x3e28] sm:$0xff] }
 0x2a4   :  { %7335 = vmatpush1.bf16.msra.mxu0 %v7334_v28  ;;  %v2533_v7 = vld [vmem:[%s16871_s3 + $0x3ea8] sm:$0xff] }
 0x2a5   :  { %7591 = vmatpush1.bf16.msra.mxu1 %v7590_v33  ;;  %7337 = vmatprep.subr.bf16.mxu0 %v7336_v36  ;;  %v2343_v33 = vld [vmem:[%s16871_s3 + $0x38b8] sm:$0xff] }
 0x2a6   :  { %v2939_v2 = vpop.f32.mrb[4].mxu0  ;;  %v3223_v48 = vpop.f32.mrb[4].mxu1  ;;  %7593 = vmatprep.subr.bf16.mxu1 %v7592_v49  ;;  %v7602_v49 = vpack.c.bf16 %v2310_v24, %v2294_v20  ;;  %v7604_v55 = vpack.c.bf16 %v2343_v33, %v2327_v29  ;;  %v2423_v20 = vld [vmem:[%s16871_s3 + $0x3b38] sm:$0xff]  ;;  %v7360_v24 = vpack.c.bf16 %v2437_v19, %v2421_v18  ;;  %v2438_v33 = vld [vmem:[%s16871_s3 + $0x3bb0] sm:$0xff]  ;;  %v2549_v18 = vld [vmem:[%s16871_s3 + $0x3f28] sm:$0xff] }
 0x2a7   :  { %v8902_v60 = vadd.f32 %v3223_v48, %v2591_v13  ;;  %v2941_v6 = vpop.f32.mrb[5].mxu0  ;;  %v3225_v8 = vpop.f32.mrb[5].mxu1  ;;  %v8900_v22 = vadd.f32 %v2939_v2, %v2583_v0  ;;  %v2326_v13 = vld [vmem:[%s16871_s3 + $0x3830] sm:$0xff]  ;;  %v2356_v0 = vld [vmem:[%s16871_s3 + $0x3920] sm:$0xff]  ;;  %v2565_v19 = vld [vmem:[%s16871_s3 + $0x3fa8] sm:$0xff] }
 0x2a8   :  { %v8901_v31 = vadd.f32 %v2941_v6, %v2587_v56  ;;  %v8903_v11 = vadd.f32 %v3225_v8, %v2595_v57  ;;  %7339 = vmatpush1.bf16.msra.mxu0 %v7338_v58  ;;  %v2342_v56 = vld [vmem:[%s16871_s3 + $0x38b0] sm:$0xff]  ;;  %v2357_v57 = vld [vmem:[%s16871_s3 + $0x3928] sm:$0xff]  ;;  %v2372_v2 = vld [vmem:[%s16871_s3 + $0x39a0] sm:$0xff] }
 0x2a9   :  { %7595 = vmatpush1.bf16.msra.mxu1 %v7594_v59  ;;  %7341 = vmatprep.subr.bf16.mxu0 %v7340_v15  ;;  %v4936_v28 = vrot.slane %v8902_v60, 4  ;;  %v2373_v58 = vld [vmem:[%s16871_s3 + $0x39a8] sm:$0xff]  ;;  %v2359_v59 = vld [vmem:[%s16871_s3 + $0x3938] sm:$0xff]  ;;  %v7606_v62 = vpack.c.bf16 %v2342_v56, %v2326_v13  ;;  %v2358_v48 = vld [vmem:[%s16871_s3 + $0x3930] sm:$0xff]  ;;  %v7354_v8 = vpack.c.bf16 %v2372_v2, %v2356_v0 }
 0x2aa   :  { %v4933_v23 = vrot.slane %v8901_v31, 6  ;;  %7597 = vmatprep.subr.bf16.mxu1 %v7596_v3  ;;  %v4939_v36 = vrot.slane %v8903_v11, 2  ;;  %v2375_v15 = vld [vmem:[%s16871_s3 + $0x39b8] sm:$0xff]  ;;  %v7352_v63 = vpack.c.bf16 %v2373_v58, %v2357_v57  ;;  %v7610_v9 = vpack.c.bf16 %v2374_v4, %v2358_v48  ;;  %v2388_v31 = vld [vmem:[%s16871_s3 + $0x3a20] sm:$0xff]  ;;  %v2470_v56 = vld [vmem:[%s16871_s3 + $0x3cb0] sm:$0xff] }
 0x2ab   :  { %v7608_v3 = vpack.c.bf16 %v2375_v15, %v2359_v59  ;;  %v2391_v60 = vld [vmem:[%s16871_s3 + $0x3a38] sm:$0xff]  ;;  %v2404_v11 = vld [vmem:[%s16871_s3 + $0x3aa0] sm:$0xff]  ;;  %v2485_v57 = vld [vmem:[%s16871_s3 + $0x3d28] sm:$0xff] }
 0x2ac   :  { %7343 = vmatpush1.bf16.msra.mxu0 %v7342_v12  ;;  %v4969_v40 = vsel %vm4968_vm8, %v8900_v22, %v4933_v23  ;;  %v2407_v6 = vld [vmem:[%s16871_s3 + $0x3ab8] sm:$0xff]  ;;  %v2390_v12 = vld [vmem:[%s16871_s3 + $0x3a30] sm:$0xff]  ;;  %v7358_v23 = vpack.c.bf16 %v2404_v11, %v2388_v31  ;;  %v2468_v13 = vld [vmem:[%s16871_s3 + $0x3ca0] sm:$0xff] }
 0x2ad   :  { %7599 = vmatpush1.bf16.msra.mxu1 %v7598_v17  ;;  %7345 = vmatprep.subr.bf16.mxu0 %v7344_v52  ;;  %v4971_v47 = vsel %vm4970_vm9, %v4969_v40, %v4936_v28  ;;  %v7612_v17 = vpack.c.bf16 %v2407_v6, %v2391_v60  ;;  %v2406_v52 = vld [vmem:[%s16871_s3 + $0x3ab0] sm:$0xff]  ;;  %v2439_v22 = vld [vmem:[%s16871_s3 + $0x3bb8] sm:$0xff]  ;;  %v2469_v40 = vld [vmem:[%s16871_s3 + $0x3ca8] sm:$0xff] }
 0x2ae   :  { %7601 = vmatprep.subr.bf16.mxu1 %v7600_v1  ;;  %v4973_v54 = vsel %vm4972_vm10, %v4971_v47, %v4939_v36  ;;  %v7614_v1 = vpack.c.bf16 %v2406_v52, %v2390_v12  ;;  %v2422_v28 = vld [vmem:[%s16871_s3 + $0x3b30] sm:$0xff]  ;;  %v7616_v29 = vpack.c.bf16 %v2439_v22, %v2423_v20  ;;  %v2453_v36 = vld [vmem:[%s16871_s3 + $0x3c28] sm:$0xff]  ;;  %v2471_v47 = vld [vmem:[%s16871_s3 + $0x3cb8] sm:$0xff] }
 0x2af   :  { %4987 = vrot.lane.b32.xlu0 %v4973_v54, %s9146_s16  ;;  %v7364_v51 = vpack.c.bf16 %v2469_v40, %v2453_v36  ;;  %v2454_v54 = vld [vmem:[%s16871_s3 + $0x3c30] sm:$0xff]  ;;  %v2501_v58 = vld [vmem:[%s16871_s3 + $0x3da8] sm:$0xff]  ;;  %v2487_v59 = vld [vmem:[%s16871_s3 + $0x3d38] sm:$0xff] }
 0x2b0   :  { %7347 = vmatpush1.bf16.msra.mxu0 %v7346_v43  ;;  %v2455_v43 = vld [vmem:[%s16871_s3 + $0x3c38] sm:$0xff]  ;;  %v2484_v0 = vld [vmem:[%s16871_s3 + $0x3d20] sm:$0xff]  ;;  %v2486_v48 = vld [vmem:[%s16871_s3 + $0x3d30] sm:$0xff] }
 0x2b1   :  { %7603 = vmatpush1.bf16.msra.mxu1 %v7602_v49  ;;  %7349 = vmatprep.subr.bf16.mxu0 %v7348_v50  ;;  %v7362_v49 = vpack.c.bf16 %v2436_v27, %v2420_v25  ;;  %v7618_v50 = vpack.c.bf16 %v2438_v33, %v2422_v28  ;;  %v2503_v15 = vld [vmem:[%s16871_s3 + $0x3db8] sm:$0xff]  ;;  %v2500_v2 = vld [vmem:[%s16871_s3 + $0x3da0] sm:$0xff]  ;;  %v2502_v4 = vld [vmem:[%s16871_s3 + $0x3db0] sm:$0xff] }
 0x2b2   :  { %7605 = vmatprep.subr.bf16.mxu1 %v7604_v55  ;;  %v7620_v55 = vpack.c.bf16 %v2471_v47, %v2455_v43  ;;  %v2519_v60 = vld [vmem:[%s16871_s3 + $0x3e38] sm:$0xff]  ;;  %v2516_v31 = vld [vmem:[%s16871_s3 + $0x3e20] sm:$0xff]  ;;  %v2518_v12 = vld [vmem:[%s16871_s3 + $0x3e30] sm:$0xff] }
 0x2b3   :  { %v2535_v6 = vld [vmem:[%s16871_s3 + $0x3eb8] sm:$0xff]  ;;  %v2532_v11 = vld [vmem:[%s16871_s3 + $0x3ea0] sm:$0xff]  ;;  %v2534_v52 = vld [vmem:[%s16871_s3 + $0x3eb0] sm:$0xff] }
 0x2b4   :  { %7351 = vmatpush1.bf16.msra.mxu0 %v7350_v61  ;;  %v7366_v61 = vpack.c.bf16 %v2468_v13, %v2452_v53  ;;  %v2551_v20 = vld [vmem:[%s16871_s3 + $0x3f38] sm:$0xff]  ;;  %v2548_v25 = vld [vmem:[%s16871_s3 + $0x3f20] sm:$0xff]  ;;  %v2550_v28 = vld [vmem:[%s16871_s3 + $0x3f30] sm:$0xff] }
 0x2b5   :  { %7607 = vmatpush1.bf16.msra.mxu1 %v7606_v62  ;;  %7353 = vmatprep.subr.bf16.mxu0 %v7352_v63  ;;  %v7622_v62 = vpack.c.bf16 %v2470_v56, %v2454_v54  ;;  %v7368_v63 = vpack.c.bf16 %v2501_v58, %v2485_v57  ;;  %v2567_v22 = vld [vmem:[%s16871_s3 + $0x3fb8] sm:$0xff]  ;;  %v2564_v27 = vld [vmem:[%s16871_s3 + $0x3fa0] sm:$0xff]  ;;  %v2566_v33 = vld [vmem:[%s16871_s3 + $0x3fb0] sm:$0xff] }
 0x2b6   :  { %7609 = vmatprep.subr.bf16.mxu1 %v7608_v3  ;;  %v7624_v3 = vpack.c.bf16 %v2503_v15, %v2487_v59  ;;  %v537_v36 = vld [vmem:[%s16871_s3 + $0x48] sm:$0xff]  ;;  %v539_v43 = vld [vmem:[%s16871_s3 + $0x58] sm:$0xff]  ;;  %v536_v53 = vld [vmem:[%s16871_s3 + $0x40] sm:$0xff] }
 0x2b7   :  { %v553_v40 = vld [vmem:[%s16871_s3 + $0xc8] sm:$0xff]  ;;  %v555_v47 = vld [vmem:[%s16871_s3 + $0xd8] sm:$0xff]  ;;  %v552_v13 = vld [vmem:[%s16871_s3 + $0xc0] sm:$0xff] }
 0x2b8   :  { %7355 = vmatpush1.bf16.msra.mxu0 %v7354_v8  ;;  %v7370_v8 = vpack.c.bf16 %v2500_v2, %v2484_v0  ;;  %v7892_v54 = vpack.c.bf16 %v555_v47, %v539_v43  ;;  %v554_v56 = vld [vmem:[%s16871_s3 + $0xd0] sm:$0xff]  ;;  %v569_v57 = vld [vmem:[%s16871_s3 + $0x148] sm:$0xff]  ;;  %v7638_v59 = vpack.c.bf16 %v552_v13, %v536_v53  ;;  %v571_v15 = vld [vmem:[%s16871_s3 + $0x158] sm:$0xff] }
 0x2b9   :  { %7611 = vmatpush1.bf16.msra.mxu1 %v7610_v9  ;;  %7357 = vmatprep.subr.bf16.mxu0 %v7356_v10  ;;  %v7626_v9 = vpack.c.bf16 %v2502_v4, %v2486_v48  ;;  %v7372_v10 = vpack.c.bf16 %v2533_v7, %v2517_v5  ;;  %v585_v58 = vld [vmem:[%s16871_s3 + $0x1c8] sm:$0xff]  ;;  %v584_v0 = vld [vmem:[%s16871_s3 + $0x1c0] sm:$0xff]  ;;  %v570_v2 = vld [vmem:[%s16871_s3 + $0x150] sm:$0xff] }
 0x2ba   :  { %7613 = vmatprep.subr.bf16.mxu1 %v7612_v17  ;;  %v7628_v17 = vpack.c.bf16 %v2535_v6, %v2519_v60  ;;  %v7640_v48 = vpack.c.bf16 %v585_v58, %v569_v57  ;;  %v601_v4 = vld [vmem:[%s16871_s3 + $0x248] sm:$0xff]  ;;  %v603_v60 = vld [vmem:[%s16871_s3 + $0x258] sm:$0xff]  ;;  %v664_v53 = vld [vmem:[%s16871_s3 + $0x440] sm:$0xff] }
 0x2bb   :  { %v617_v5 = vld [vmem:[%s16871_s3 + $0x2c8] sm:$0xff]  ;;  %v619_v6 = vld [vmem:[%s16871_s3 + $0x2d8] sm:$0xff]  ;;  %v680_v13 = vld [vmem:[%s16871_s3 + $0x4c0] sm:$0xff] }
 0x2bc   :  { %7359 = vmatpush1.bf16.msra.mxu0 %v7358_v23  ;;  %v7374_v23 = vpack.c.bf16 %v2532_v11, %v2516_v31  ;;  %v600_v31 = vld [vmem:[%s16871_s3 + $0x240] sm:$0xff]  ;;  %v667_v43 = vld [vmem:[%s16871_s3 + $0x458] sm:$0xff]  ;;  %v697_v57 = vld [vmem:[%s16871_s3 + $0x548] sm:$0xff] }
 0x2bd   :  { %7615 = vmatpush1.bf16.msra.mxu1 %v7614_v1  ;;  %7361 = vmatprep.subr.bf16.mxu0 %v7360_v24  ;;  %v7630_v1 = vpack.c.bf16 %v2534_v52, %v2518_v12  ;;  %v7376_v24 = vpack.c.bf16 %v2565_v19, %v2549_v18  ;;  %v616_v11 = vld [vmem:[%s16871_s3 + $0x2c0] sm:$0xff]  ;;  %v602_v12 = vld [vmem:[%s16871_s3 + $0x250] sm:$0xff]  ;;  %v633_v18 = vld [vmem:[%s16871_s3 + $0x348] sm:$0xff] }
 0x2be   :  { %7617 = vmatprep.subr.bf16.mxu1 %v7616_v29  ;;  %v7632_v29 = vpack.c.bf16 %v2567_v22, %v2551_v20  ;;  %v618_v52 = vld [vmem:[%s16871_s3 + $0x2d0] sm:$0xff]  ;;  %v649_v19 = vld [vmem:[%s16871_s3 + $0x3c8] sm:$0xff]  ;;  %v635_v20 = vld [vmem:[%s16871_s3 + $0x358] sm:$0xff] }
 0x2bf   :  { %v651_v22 = vld [vmem:[%s16871_s3 + $0x3d8] sm:$0xff]  ;;  %v713_v58 = vld [vmem:[%s16871_s3 + $0x5c8] sm:$0xff] }
 0x2c0   :  { %7363 = vmatpush1.bf16.msra.mxu0 %v7362_v49  ;;  %v7378_v49 = vpack.c.bf16 %v2564_v27, %v2548_v25  ;;  %v632_v25 = vld [vmem:[%s16871_s3 + $0x340] sm:$0xff]  ;;  %v683_v47 = vld [vmem:[%s16871_s3 + $0x4d8] sm:$0xff] }
 0x2c1   :  { %7619 = vmatpush1.bf16.msra.mxu1 %v7618_v50  ;;  %7365 = vmatprep.subr.bf16.mxu0 %v7364_v51  ;;  %v7634_v50 = vpack.c.bf16 %v2566_v33, %v2550_v28  ;;  %v7636_v51 = vpack.c.bf16 %v553_v40, %v537_v36  ;;  %v648_v27 = vld [vmem:[%s16871_s3 + $0x3c0] sm:$0xff]  ;;  %v634_v28 = vld [vmem:[%s16871_s3 + $0x350] sm:$0xff]  ;;  %v665_v36 = vld [vmem:[%s16871_s3 + $0x448] sm:$0xff] }
 0x2c2   :  { %7621 = vmatprep.subr.bf16.mxu1 %v7620_v55  ;;  %v538_v55 = vld [vmem:[%s16871_s3 + $0x50] sm:$0xff]  ;;  %v681_v40 = vld [vmem:[%s16871_s3 + $0x4c8] sm:$0xff] }
 0x2c3   :  { %v650_v33 = vld [vmem:[%s16871_s3 + $0x3d0] sm:$0xff] }
 0x2c4   :  { %7367 = vmatpush1.bf16.msra.mxu0 %v7366_v61  ;;  %v587_v61 = vld [vmem:[%s16871_s3 + $0x1d8] sm:$0xff] }
 0x2c5   :  { %7623 = vmatpush1.bf16.msra.mxu1 %v7622_v62  ;;  %7369 = vmatprep.subr.bf16.mxu0 %v7368_v63  ;;  %v7894_v62 = vpack.c.bf16 %v554_v56, %v538_v55  ;;  %v568_v63 = vld [vmem:[%s16871_s3 + $0x140] sm:$0xff]  ;;  %v7896_v7 = vpack.c.bf16 %v587_v61, %v571_v15  ;;  %v7908_v55 = vpack.c.bf16 %v683_v47, %v667_v43  ;;  %v682_v56 = vld [vmem:[%s16871_s3 + $0x4d0] sm:$0xff]  ;;  %v715_v15 = vld [vmem:[%s16871_s3 + $0x5d8] sm:$0xff] }
 0x2c6   :  { %7625 = vmatprep.subr.bf16.mxu1 %v7624_v3  ;;  %v586_v3 = vld [vmem:[%s16871_s3 + $0x1d0] sm:$0xff]  ;;  %v7654_v61 = vpack.c.bf16 %v680_v13, %v664_v53  ;;  %v795_v43 = vld [vmem:[%s16871_s3 + $0x858] sm:$0xff]  ;;  %v792_v53 = vld [vmem:[%s16871_s3 + $0x840] sm:$0xff] }
 0x2c7   :  { %v811_v47 = vld [vmem:[%s16871_s3 + $0x8d8] sm:$0xff]  ;;  %v808_v13 = vld [vmem:[%s16871_s3 + $0x8c0] sm:$0xff] }
 0x2c8   :  { %7371 = vmatpush1.bf16.msra.mxu0 %v7370_v8  ;;  %v7642_v8 = vpack.c.bf16 %v584_v0, %v568_v63  ;;  %v7656_v63 = vpack.c.bf16 %v713_v58, %v697_v57  ;;  %v696_v0 = vld [vmem:[%s16871_s3 + $0x540] sm:$0xff]  ;;  %v825_v57 = vld [vmem:[%s16871_s3 + $0x948] sm:$0xff] }
 0x2c9   :  { %7627 = vmatpush1.bf16.msra.mxu1 %v7626_v9  ;;  %7373 = vmatprep.subr.bf16.mxu0 %v7372_v10  ;;  %v7898_v9 = vpack.c.bf16 %v586_v3, %v570_v2  ;;  %v7644_v10 = vpack.c.bf16 %v617_v5, %v601_v4  ;;  %v712_v2 = vld [vmem:[%s16871_s3 + $0x5c0] sm:$0xff]  ;;  %v714_v4 = vld [vmem:[%s16871_s3 + $0x5d0] sm:$0xff]  ;;  %v729_v5 = vld [vmem:[%s16871_s3 + $0x648] sm:$0xff] }
 0x2ca   :  { %7629 = vmatprep.subr.bf16.mxu1 %v7628_v17  ;;  %v7900_v17 = vpack.c.bf16 %v619_v6, %v603_v60  ;;  %v731_v60 = vld [vmem:[%s16871_s3 + $0x658] sm:$0xff]  ;;  %v841_v58 = vld [vmem:[%s16871_s3 + $0x9c8] sm:$0xff] }
 0x2cb   :  { %v747_v6 = vld [vmem:[%s16871_s3 + $0x6d8] sm:$0xff] }
 0x2cc   :  { %7375 = vmatpush1.bf16.msra.mxu0 %v7374_v23  ;;  %v7646_v23 = vpack.c.bf16 %v616_v11, %v600_v31  ;;  %v728_v31 = vld [vmem:[%s16871_s3 + $0x640] sm:$0xff] }
 0x2cd   :  { %7631 = vmatpush1.bf16.msra.mxu1 %v7630_v1  ;;  %7377 = vmatprep.subr.bf16.mxu0 %v7376_v24  ;;  %v7902_v1 = vpack.c.bf16 %v618_v52, %v602_v12  ;;  %v7648_v24 = vpack.c.bf16 %v649_v19, %v633_v18  ;;  %v744_v11 = vld [vmem:[%s16871_s3 + $0x6c0] sm:$0xff]  ;;  %v730_v12 = vld [vmem:[%s16871_s3 + $0x650] sm:$0xff]  ;;  %v761_v18 = vld [vmem:[%s16871_s3 + $0x748] sm:$0xff] }
 0x2ce   :  { %7633 = vmatprep.subr.bf16.mxu1 %v7632_v29  ;;  %v7904_v29 = vpack.c.bf16 %v651_v22, %v635_v20  ;;  %v746_v52 = vld [vmem:[%s16871_s3 + $0x6d0] sm:$0xff]  ;;  %v777_v19 = vld [vmem:[%s16871_s3 + $0x7c8] sm:$0xff]  ;;  %v763_v20 = vld [vmem:[%s16871_s3 + $0x758] sm:$0xff] }
 0x2cf   :  { %v779_v22 = vld [vmem:[%s16871_s3 + $0x7d8] sm:$0xff] }
 0x2d0   :  { %7379 = vmatpush1.bf16.msra.mxu0 %v7378_v49  ;;  %v7650_v49 = vpack.c.bf16 %v648_v27, %v632_v25  ;;  %v760_v25 = vld [vmem:[%s16871_s3 + $0x740] sm:$0xff] }
 0x2d1   :  { %7635 = vmatpush1.bf16.msra.mxu1 %v7634_v50  ;;  %7637 = vmatprep.subr.bf16.mxu0 %v7636_v51  ;;  %v7906_v50 = vpack.c.bf16 %v650_v33, %v634_v28  ;;  %v7652_v51 = vpack.c.bf16 %v681_v40, %v665_v36  ;;  %v776_v27 = vld [vmem:[%s16871_s3 + $0x7c0] sm:$0xff]  ;;  %v762_v28 = vld [vmem:[%s16871_s3 + $0x750] sm:$0xff]  ;;  %v793_v36 = vld [vmem:[%s16871_s3 + $0x848] sm:$0xff] }
 0x2d2   :  { %7893 = vmatprep.subr.bf16.mxu1 %v7892_v54  ;;  %v666_v54 = vld [vmem:[%s16871_s3 + $0x450] sm:$0xff]  ;;  %v809_v40 = vld [vmem:[%s16871_s3 + $0x8c8] sm:$0xff] }
 0x2d3   :  { %3506 = vmatmul.mubr.f32.vlgmr.msra.gmra.mrb[6].mxu0 %v11296_v42  ;;  %v778_v33 = vld [vmem:[%s16871_s3 + $0x7d0] sm:$0xff] }
 0x2d4   :  { %3790 = vmatmul.mubr.f32.vlgmr.msra.gmra.mrb[6].mxu1 %v11296_v42  ;;  %7639 = vmatpush1.bf16.msra.mxu0 %v7638_v59  ;;  %v699_v59 = vld [vmem:[%s16871_s3 + $0x558] sm:$0xff] }
 0x2d5   :  { %3860 = vmatprep.mubr.f32.mxu0 %v10064_v38  ;;  %7895 = vmatpush1.bf16.msra.mxu1 %v7894_v62  ;;  %v7910_v62 = vpack.c.bf16 %v682_v56, %v666_v54  ;;  %v7912_v3 = vpack.c.bf16 %v715_v15, %v699_v59  ;;  %v794_v54 = vld [vmem:[%s16871_s3 + $0x850] sm:$0xff]  ;;  %v827_v59 = vld [vmem:[%s16871_s3 + $0x958] sm:$0xff] }
 0x2d6   :  { %4144 = vmatprep.mubr.f32.mxu1 %v10064_v38  ;;  %7641 = vmatprep.subr.bf16.mxu0 %v7640_v48  ;;  %v698_v48 = vld [vmem:[%s16871_s3 + $0x550] sm:$0xff]  ;;  %v843_v15 = vld [vmem:[%s16871_s3 + $0x9d8] sm:$0xff] }
 0x2d7   :  { %7897 = vmatprep.subr.bf16.mxu1 %v7896_v7  ;;  %v745_v7 = vld [vmem:[%s16871_s3 + $0x6c8] sm:$0xff]  ;;  %v810_v56 = vld [vmem:[%s16871_s3 + $0x8d0] sm:$0xff] }
 0x2d8   :  { %7643 = vmatpush1.bf16.msra.mxu0 %v7642_v8  ;;  %v7658_v8 = vpack.c.bf16 %v712_v2, %v696_v0  ;;  %v824_v0 = vld [vmem:[%s16871_s3 + $0x940] sm:$0xff] }
 0x2d9   :  { %7899 = vmatpush1.bf16.msra.mxu1 %v7898_v9  ;;  %7645 = vmatprep.subr.bf16.mxu0 %v7644_v10  ;;  %v7914_v9 = vpack.c.bf16 %v714_v4, %v698_v48  ;;  %v7660_v10 = vpack.c.bf16 %v745_v7, %v729_v5  ;;  %v840_v2 = vld [vmem:[%s16871_s3 + $0x9c0] sm:$0xff]  ;;  %v826_v48 = vld [vmem:[%s16871_s3 + $0x950] sm:$0xff]  ;;  %v857_v5 = vld [vmem:[%s16871_s3 + $0xa48] sm:$0xff] }
 0x2da   :  { %7901 = vmatprep.subr.bf16.mxu1 %v7900_v17  ;;  %v7916_v17 = vpack.c.bf16 %v747_v6, %v731_v60  ;;  %v842_v4 = vld [vmem:[%s16871_s3 + $0x9d0] sm:$0xff]  ;;  %v873_v7 = vld [vmem:[%s16871_s3 + $0xac8] sm:$0xff]  ;;  %v859_v60 = vld [vmem:[%s16871_s3 + $0xa58] sm:$0xff] }
 0x2db   :  { %v875_v6 = vld [vmem:[%s16871_s3 + $0xad8] sm:$0xff] }
 0x2dc   :  { %7647 = vmatpush1.bf16.msra.mxu0 %v7646_v23  ;;  %v7662_v23 = vpack.c.bf16 %v744_v11, %v728_v31  ;;  %v856_v31 = vld [vmem:[%s16871_s3 + $0xa40] sm:$0xff] }
 0x2dd   :  { %7903 = vmatpush1.bf16.msra.mxu1 %v7902_v1  ;;  %7649 = vmatprep.subr.bf16.mxu0 %v7648_v24  ;;  %v7918_v1 = vpack.c.bf16 %v746_v52, %v730_v12  ;;  %v7664_v24 = vpack.c.bf16 %v777_v19, %v761_v18  ;;  %v872_v11 = vld [vmem:[%s16871_s3 + $0xac0] sm:$0xff]  ;;  %v858_v12 = vld [vmem:[%s16871_s3 + $0xa50] sm:$0xff]  ;;  %v889_v18 = vld [vmem:[%s16871_s3 + $0xb48] sm:$0xff] }
 0x2de   :  { %7905 = vmatprep.subr.bf16.mxu1 %v7904_v29  ;;  %v7920_v29 = vpack.c.bf16 %v779_v22, %v763_v20  ;;  %v874_v52 = vld [vmem:[%s16871_s3 + $0xad0] sm:$0xff]  ;;  %v905_v19 = vld [vmem:[%s16871_s3 + $0xbc8] sm:$0xff]  ;;  %v891_v20 = vld [vmem:[%s16871_s3 + $0xb58] sm:$0xff] }
 0x2df   :  { %v907_v22 = vld [vmem:[%s16871_s3 + $0xbd8] sm:$0xff] }
 0x2e0   :  { %7651 = vmatpush1.bf16.msra.mxu0 %v7650_v49  ;;  %v7666_v49 = vpack.c.bf16 %v776_v27, %v760_v25  ;;  %v888_v25 = vld [vmem:[%s16871_s3 + $0xb40] sm:$0xff] }
 0x2e1   :  { %7907 = vmatpush1.bf16.msra.mxu1 %v7906_v50  ;;  %7653 = vmatprep.subr.bf16.mxu0 %v7652_v51  ;;  %v7922_v50 = vpack.c.bf16 %v778_v33, %v762_v28  ;;  %v7668_v51 = vpack.c.bf16 %v809_v40, %v793_v36  ;;  %v904_v27 = vld [vmem:[%s16871_s3 + $0xbc0] sm:$0xff]  ;;  %v890_v28 = vld [vmem:[%s16871_s3 + $0xb50] sm:$0xff]  ;;  %v921_v36 = vld [vmem:[%s16871_s3 + $0xc48] sm:$0xff] }
 0x2e2   :  { %7909 = vmatprep.subr.bf16.mxu1 %v7908_v55  ;;  %v7924_v55 = vpack.c.bf16 %v811_v47, %v795_v43  ;;  %v906_v33 = vld [vmem:[%s16871_s3 + $0xbd0] sm:$0xff]  ;;  %v937_v40 = vld [vmem:[%s16871_s3 + $0xcc8] sm:$0xff]  ;;  %v923_v43 = vld [vmem:[%s16871_s3 + $0xc58] sm:$0xff] }
 0x2e3   :  { %v939_v47 = vld [vmem:[%s16871_s3 + $0xcd8] sm:$0xff] }
 0x2e4   :  { %7655 = vmatpush1.bf16.msra.mxu0 %v7654_v61  ;;  %v7670_v61 = vpack.c.bf16 %v808_v13, %v792_v53  ;;  %v920_v53 = vld [vmem:[%s16871_s3 + $0xc40] sm:$0xff] }
 0x2e5   :  { %7911 = vmatpush1.bf16.msra.mxu1 %v7910_v62  ;;  %7657 = vmatprep.subr.bf16.mxu0 %v7656_v63  ;;  %v7926_v62 = vpack.c.bf16 %v810_v56, %v794_v54  ;;  %v7672_v63 = vpack.c.bf16 %v841_v58, %v825_v57  ;;  %v936_v13 = vld [vmem:[%s16871_s3 + $0xcc0] sm:$0xff]  ;;  %v922_v54 = vld [vmem:[%s16871_s3 + $0xc50] sm:$0xff]  ;;  %v953_v57 = vld [vmem:[%s16871_s3 + $0xd48] sm:$0xff] }
 0x2e6   :  { %7913 = vmatprep.subr.bf16.mxu1 %v7912_v3  ;;  %v7928_v3 = vpack.c.bf16 %v843_v15, %v827_v59  ;;  %v938_v56 = vld [vmem:[%s16871_s3 + $0xcd0] sm:$0xff]  ;;  %v969_v58 = vld [vmem:[%s16871_s3 + $0xdc8] sm:$0xff]  ;;  %v955_v59 = vld [vmem:[%s16871_s3 + $0xd58] sm:$0xff] }
 0x2e7   :  { %v971_v15 = vld [vmem:[%s16871_s3 + $0xdd8] sm:$0xff] }
 0x2e8   :  { %7659 = vmatpush1.bf16.msra.mxu0 %v7658_v8  ;;  %v7674_v8 = vpack.c.bf16 %v840_v2, %v824_v0  ;;  %v952_v0 = vld [vmem:[%s16871_s3 + $0xd40] sm:$0xff] }
 0x2e9   :  { %7915 = vmatpush1.bf16.msra.mxu1 %v7914_v9  ;;  %7661 = vmatprep.subr.bf16.mxu0 %v7660_v10  ;;  %v7930_v9 = vpack.c.bf16 %v842_v4, %v826_v48  ;;  %v7676_v10 = vpack.c.bf16 %v873_v7, %v857_v5  ;;  %v968_v2 = vld [vmem:[%s16871_s3 + $0xdc0] sm:$0xff]  ;;  %v954_v48 = vld [vmem:[%s16871_s3 + $0xd50] sm:$0xff]  ;;  %v985_v5 = vld [vmem:[%s16871_s3 + $0xe48] sm:$0xff] }
 0x2ea   :  { %7917 = vmatprep.subr.bf16.mxu1 %v7916_v17  ;;  %v7932_v17 = vpack.c.bf16 %v875_v6, %v859_v60  ;;  %v970_v4 = vld [vmem:[%s16871_s3 + $0xdd0] sm:$0xff]  ;;  %v1001_v7 = vld [vmem:[%s16871_s3 + $0xec8] sm:$0xff]  ;;  %v987_v60 = vld [vmem:[%s16871_s3 + $0xe58] sm:$0xff] }
 0x2eb   :  { %v1003_v6 = vld [vmem:[%s16871_s3 + $0xed8] sm:$0xff] }
 0x2ec   :  { %7663 = vmatpush1.bf16.msra.mxu0 %v7662_v23  ;;  %v7678_v23 = vpack.c.bf16 %v872_v11, %v856_v31  ;;  %v984_v31 = vld [vmem:[%s16871_s3 + $0xe40] sm:$0xff] }
 0x2ed   :  { %7919 = vmatpush1.bf16.msra.mxu1 %v7918_v1  ;;  %7665 = vmatprep.subr.bf16.mxu0 %v7664_v24  ;;  %v7934_v1 = vpack.c.bf16 %v874_v52, %v858_v12  ;;  %v7680_v24 = vpack.c.bf16 %v905_v19, %v889_v18  ;;  %v1000_v11 = vld [vmem:[%s16871_s3 + $0xec0] sm:$0xff]  ;;  %v986_v12 = vld [vmem:[%s16871_s3 + $0xe50] sm:$0xff]  ;;  %v1017_v18 = vld [vmem:[%s16871_s3 + $0xf48] sm:$0xff] }
 0x2ee   :  { %7921 = vmatprep.subr.bf16.mxu1 %v7920_v29  ;;  %v7936_v29 = vpack.c.bf16 %v907_v22, %v891_v20  ;;  %v1002_v52 = vld [vmem:[%s16871_s3 + $0xed0] sm:$0xff]  ;;  %v1033_v19 = vld [vmem:[%s16871_s3 + $0xfc8] sm:$0xff]  ;;  %v1019_v20 = vld [vmem:[%s16871_s3 + $0xf58] sm:$0xff] }
 0x2ef   :  { %v1035_v22 = vld [vmem:[%s16871_s3 + $0xfd8] sm:$0xff] }
 0x2f0   :  { %7667 = vmatpush1.bf16.msra.mxu0 %v7666_v49  ;;  %v7682_v49 = vpack.c.bf16 %v904_v27, %v888_v25  ;;  %v1016_v25 = vld [vmem:[%s16871_s3 + $0xf40] sm:$0xff] }
 0x2f1   :  { %7923 = vmatpush1.bf16.msra.mxu1 %v7922_v50  ;;  %7669 = vmatprep.subr.bf16.mxu0 %v7668_v51  ;;  %v7938_v50 = vpack.c.bf16 %v906_v33, %v890_v28  ;;  %v7684_v51 = vpack.c.bf16 %v937_v40, %v921_v36  ;;  %v1032_v27 = vld [vmem:[%s16871_s3 + $0xfc0] sm:$0xff]  ;;  %v1018_v28 = vld [vmem:[%s16871_s3 + $0xf50] sm:$0xff]  ;;  %v1049_v36 = vld [vmem:[%s16871_s3 + $0x1048] sm:$0xff] }
 0x2f2   :  { %7925 = vmatprep.subr.bf16.mxu1 %v7924_v55  ;;  %v7940_v55 = vpack.c.bf16 %v939_v47, %v923_v43  ;;  %v1034_v33 = vld [vmem:[%s16871_s3 + $0xfd0] sm:$0xff]  ;;  %v1065_v40 = vld [vmem:[%s16871_s3 + $0x10c8] sm:$0xff]  ;;  %v1051_v43 = vld [vmem:[%s16871_s3 + $0x1058] sm:$0xff] }
 0x2f3   :  { %v1067_v47 = vld [vmem:[%s16871_s3 + $0x10d8] sm:$0xff] }
 0x2f4   :  { %7671 = vmatpush1.bf16.msra.mxu0 %v7670_v61  ;;  %v7686_v61 = vpack.c.bf16 %v936_v13, %v920_v53  ;;  %v1048_v53 = vld [vmem:[%s16871_s3 + $0x1040] sm:$0xff] }
 0x2f5   :  { %7927 = vmatpush1.bf16.msra.mxu1 %v7926_v62  ;;  %7673 = vmatprep.subr.bf16.mxu0 %v7672_v63  ;;  %v7942_v62 = vpack.c.bf16 %v938_v56, %v922_v54  ;;  %v7688_v63 = vpack.c.bf16 %v969_v58, %v953_v57  ;;  %v1064_v13 = vld [vmem:[%s16871_s3 + $0x10c0] sm:$0xff]  ;;  %v7956_v54 = vpack.c.bf16 %v1067_v47, %v1051_v43  ;;  %v1066_v56 = vld [vmem:[%s16871_s3 + $0x10d0] sm:$0xff]  ;;  %v1081_v57 = vld [vmem:[%s16871_s3 + $0x1148] sm:$0xff] }
 0x2f6   :  { %7929 = vmatprep.subr.bf16.mxu1 %v7928_v3  ;;  %v7944_v3 = vpack.c.bf16 %v971_v15, %v955_v59  ;;  %v1097_v58 = vld [vmem:[%s16871_s3 + $0x11c8] sm:$0xff]  ;;  %v7702_v59 = vpack.c.bf16 %v1064_v13, %v1048_v53  ;;  %v1083_v15 = vld [vmem:[%s16871_s3 + $0x1158] sm:$0xff]  ;;  %v1176_v53 = vld [vmem:[%s16871_s3 + $0x1440] sm:$0xff] }
 0x2f7   :  { %v1179_v43 = vld [vmem:[%s16871_s3 + $0x1458] sm:$0xff]  ;;  %v1192_v13 = vld [vmem:[%s16871_s3 + $0x14c0] sm:$0xff] }
 0x2f8   :  { %7675 = vmatpush1.bf16.msra.mxu0 %v7674_v8  ;;  %v7690_v8 = vpack.c.bf16 %v968_v2, %v952_v0  ;;  %v1096_v0 = vld [vmem:[%s16871_s3 + $0x11c0] sm:$0xff]  ;;  %v1082_v2 = vld [vmem:[%s16871_s3 + $0x1150] sm:$0xff]  ;;  %v1195_v47 = vld [vmem:[%s16871_s3 + $0x14d8] sm:$0xff] }
 0x2f9   :  { %7931 = vmatpush1.bf16.msra.mxu1 %v7930_v9  ;;  %7677 = vmatprep.subr.bf16.mxu0 %v7676_v10  ;;  %v7946_v9 = vpack.c.bf16 %v970_v4, %v954_v48  ;;  %v7692_v10 = vpack.c.bf16 %v1001_v7, %v985_v5  ;;  %v7704_v48 = vpack.c.bf16 %v1097_v58, %v1081_v57  ;;  %v1113_v4 = vld [vmem:[%s16871_s3 + $0x1248] sm:$0xff] }
 0x2fa   :  { %7933 = vmatprep.subr.bf16.mxu1 %v7932_v17  ;;  %v7948_v17 = vpack.c.bf16 %v1003_v6, %v987_v60  ;;  %v1129_v5 = vld [vmem:[%s16871_s3 + $0x12c8] sm:$0xff]  ;;  %v1115_v60 = vld [vmem:[%s16871_s3 + $0x1258] sm:$0xff] }
 0x2fb   :  { %v1131_v6 = vld [vmem:[%s16871_s3 + $0x12d8] sm:$0xff]  ;;  %v1209_v57 = vld [vmem:[%s16871_s3 + $0x1548] sm:$0xff] }
 0x2fc   :  { %7679 = vmatpush1.bf16.msra.mxu0 %v7678_v23  ;;  %v7694_v23 = vpack.c.bf16 %v1000_v11, %v984_v31  ;;  %v1112_v31 = vld [vmem:[%s16871_s3 + $0x1240] sm:$0xff]  ;;  %v1225_v58 = vld [vmem:[%s16871_s3 + $0x15c8] sm:$0xff] }
 0x2fd   :  { %7935 = vmatpush1.bf16.msra.mxu1 %v7934_v1  ;;  %7681 = vmatprep.subr.bf16.mxu0 %v7680_v24  ;;  %v7950_v1 = vpack.c.bf16 %v1002_v52, %v986_v12  ;;  %v7696_v24 = vpack.c.bf16 %v1033_v19, %v1017_v18  ;;  %v1128_v11 = vld [vmem:[%s16871_s3 + $0x12c0] sm:$0xff]  ;;  %v1114_v12 = vld [vmem:[%s16871_s3 + $0x1250] sm:$0xff]  ;;  %v1145_v18 = vld [vmem:[%s16871_s3 + $0x1348] sm:$0xff] }
 0x2fe   :  { %7937 = vmatprep.subr.bf16.mxu1 %v7936_v29  ;;  %v7952_v29 = vpack.c.bf16 %v1035_v22, %v1019_v20  ;;  %v1130_v52 = vld [vmem:[%s16871_s3 + $0x12d0] sm:$0xff]  ;;  %v1161_v19 = vld [vmem:[%s16871_s3 + $0x13c8] sm:$0xff]  ;;  %v1147_v20 = vld [vmem:[%s16871_s3 + $0x1358] sm:$0xff] }
 0x2ff   :  { %v1163_v22 = vld [vmem:[%s16871_s3 + $0x13d8] sm:$0xff] }
 0x300   :  { %7683 = vmatpush1.bf16.msra.mxu0 %v7682_v49  ;;  %v7698_v49 = vpack.c.bf16 %v1032_v27, %v1016_v25  ;;  %v1144_v25 = vld [vmem:[%s16871_s3 + $0x1340] sm:$0xff] }
 0x301   :  { %7939 = vmatpush1.bf16.msra.mxu1 %v7938_v50  ;;  %7685 = vmatprep.subr.bf16.mxu0 %v7684_v51  ;;  %v7954_v50 = vpack.c.bf16 %v1034_v33, %v1018_v28  ;;  %v7700_v51 = vpack.c.bf16 %v1065_v40, %v1049_v36  ;;  %v1160_v27 = vld [vmem:[%s16871_s3 + $0x13c0] sm:$0xff]  ;;  %v1146_v28 = vld [vmem:[%s16871_s3 + $0x1350] sm:$0xff]  ;;  %v1177_v36 = vld [vmem:[%s16871_s3 + $0x1448] sm:$0xff] }
 0x302   :  { %7941 = vmatprep.subr.bf16.mxu1 %v7940_v55  ;;  %v1050_v55 = vld [vmem:[%s16871_s3 + $0x1050] sm:$0xff]  ;;  %v1193_v40 = vld [vmem:[%s16871_s3 + $0x14c8] sm:$0xff] }
 0x303   :  { %v1162_v33 = vld [vmem:[%s16871_s3 + $0x13d0] sm:$0xff] }
 0x304   :  { %7687 = vmatpush1.bf16.msra.mxu0 %v7686_v61  ;;  %v1099_v61 = vld [vmem:[%s16871_s3 + $0x11d8] sm:$0xff] }
 0x305   :  { %7943 = vmatpush1.bf16.msra.mxu1 %v7942_v62  ;;  %7689 = vmatprep.subr.bf16.mxu0 %v7688_v63  ;;  %v7958_v62 = vpack.c.bf16 %v1066_v56, %v1050_v55  ;;  %v1080_v63 = vld [vmem:[%s16871_s3 + $0x1140] sm:$0xff]  ;;  %v7960_v7 = vpack.c.bf16 %v1099_v61, %v1083_v15  ;;  %v7972_v55 = vpack.c.bf16 %v1195_v47, %v1179_v43  ;;  %v1194_v56 = vld [vmem:[%s16871_s3 + $0x14d0] sm:$0xff]  ;;  %v1227_v15 = vld [vmem:[%s16871_s3 + $0x15d8] sm:$0xff] }
 0x306   :  { %7945 = vmatprep.subr.bf16.mxu1 %v7944_v3  ;;  %v1098_v3 = vld [vmem:[%s16871_s3 + $0x11d0] sm:$0xff]  ;;  %v7718_v61 = vpack.c.bf16 %v1192_v13, %v1176_v53  ;;  %v1272_v47 = vld [vmem:[%s16871_s3 + $0x1740] sm:$0xff]  ;;  %v1305_v13 = vld [vmem:[%s16871_s3 + $0x1848] sm:$0xff] }
 0x307   :  { %v1290_v53 = vld [vmem:[%s16871_s3 + $0x17d0] sm:$0xff] }
 0x308   :  { %7691 = vmatpush1.bf16.msra.mxu0 %v7690_v8  ;;  %v7706_v8 = vpack.c.bf16 %v1096_v0, %v1080_v63  ;;  %v7720_v0 = vpack.c.bf16 %v1225_v58, %v1209_v57 }
 0x309   :  { %7947 = vmatpush1.bf16.msra.mxu1 %v7946_v9  ;;  %7693 = vmatprep.subr.bf16.mxu0 %v7692_v10  ;;  %v7962_v9 = vpack.c.bf16 %v1098_v3, %v1082_v2  ;;  %v7708_v10 = vpack.c.bf16 %v1129_v5, %v1113_v4  ;;  %v1208_v2 = vld [vmem:[%s16871_s3 + $0x1540] sm:$0xff]  ;;  %v1210_v3 = vld [vmem:[%s16871_s3 + $0x1550] sm:$0xff] }
 0x30a   :  { %7949 = vmatprep.subr.bf16.mxu1 %v7948_v17  ;;  %v7964_v17 = vpack.c.bf16 %v1131_v6, %v1115_v60  ;;  %v1226_v60 = vld [vmem:[%s16871_s3 + $0x15d0] sm:$0xff]  ;;  %v1241_v6 = vld [vmem:[%s16871_s3 + $0x1648] sm:$0xff] }
 0x30c   :  { %7695 = vmatpush1.bf16.msra.mxu0 %v7694_v23  ;;  %v7710_v23 = vpack.c.bf16 %v1128_v11, %v1112_v31  ;;  %v1243_v31 = vld [vmem:[%s16871_s3 + $0x1658] sm:$0xff] }
 0x30d   :  { %7951 = vmatpush1.bf16.msra.mxu1 %v7950_v1  ;;  %7697 = vmatprep.subr.bf16.mxu0 %v7696_v24  ;;  %v7966_v1 = vpack.c.bf16 %v1130_v52, %v1114_v12  ;;  %v7712_v24 = vpack.c.bf16 %v1161_v19, %v1145_v18  ;;  %v1259_v11 = vld [vmem:[%s16871_s3 + $0x16d8] sm:$0xff]  ;;  %v7978_v18 = vpack.c.bf16 %v1226_v60, %v1210_v3 }
 0x30e   :  { %7953 = vmatprep.subr.bf16.mxu1 %v7952_v29  ;;  %v7968_v29 = vpack.c.bf16 %v1163_v22, %v1147_v20  ;;  %v1240_v20 = vld [vmem:[%s16871_s3 + $0x1640] sm:$0xff]  ;;  %v1339_v3 = vld [vmem:[%s16871_s3 + $0x1958] sm:$0xff] }
 0x30f   :  { %v1256_v22 = vld [vmem:[%s16871_s3 + $0x16c0] sm:$0xff] }
 0x310   :  { %7699 = vmatpush1.bf16.msra.mxu0 %v7698_v49  ;;  %v7714_v49 = vpack.c.bf16 %v1160_v27, %v1144_v25  ;;  %v1273_v25 = vld [vmem:[%s16871_s3 + $0x1748] sm:$0xff] }
 0x311   :  { %7955 = vmatpush1.bf16.msra.mxu1 %v7954_v50  ;;  %7701 = vmatprep.subr.bf16.mxu0 %v7700_v51  ;;  %v7970_v50 = vpack.c.bf16 %v1162_v33, %v1146_v28  ;;  %v7716_v51 = vpack.c.bf16 %v1193_v40, %v1177_v36  ;;  %v1289_v27 = vld [vmem:[%s16871_s3 + $0x17c8] sm:$0xff]  ;;  %v1275_v28 = vld [vmem:[%s16871_s3 + $0x1758] sm:$0xff]  ;;  %v7726_v36 = vpack.c.bf16 %v1256_v22, %v1240_v20 }
 0x312   :  { %7957 = vmatprep.subr.bf16.mxu1 %v7956_v54  ;;  %v1178_v54 = vld [vmem:[%s16871_s3 + $0x1450] sm:$0xff]  ;;  %v7728_v43 = vpack.c.bf16 %v1289_v27, %v1273_v25  ;;  %v1385_v20 = vld [vmem:[%s16871_s3 + $0x1ac8] sm:$0xff]  ;;  %v1371_v22 = vld [vmem:[%s16871_s3 + $0x1a58] sm:$0xff] }
 0x313   :  { %3861 = vmatmul.mubr.f32.vlgmr.msra.gmra.mrb[8].mxu0 %v10075_v44  ;;  %v7974_v63 = vpack.c.bf16 %v1194_v56, %v1178_v54  ;;  %v1321_v54 = vld [vmem:[%s16871_s3 + $0x18c8] sm:$0xff]  ;;  %v1323_v56 = vld [vmem:[%s16871_s3 + $0x18d8] sm:$0xff]  ;;  %v1368_v27 = vld [vmem:[%s16871_s3 + $0x1a40] sm:$0xff] }
 0x314   :  { %4145 = vmatmul.mubr.f32.vlgmr.msra.gmra.mrb[8].mxu1 %v10075_v44  ;;  %7703 = vmatpush1.bf16.msra.mxu0 %v7702_v59  ;;  %v1211_v59 = vld [vmem:[%s16871_s3 + $0x1558] sm:$0xff] }
 0x315   :  { %3931 = vmatprep.mubr.f32.mxu0 %v10148_v21  ;;  %7959 = vmatpush1.bf16.msra.mxu1 %v7958_v62 }
 0x316   :  { %4215 = vmatprep.mubr.f32.mxu1 %v10148_v21  ;;  %7705 = vmatprep.subr.bf16.mxu0 %v7704_v48  ;;  %v1224_v48 = vld [vmem:[%s16871_s3 + $0x15c0] sm:$0xff] }
 0x317   :  { %7961 = vmatprep.subr.bf16.mxu1 %v7960_v7  ;;  %v7976_v7 = vpack.c.bf16 %v1227_v15, %v1211_v59  ;;  %v7722_v12 = vpack.c.bf16 %v1224_v48, %v1208_v2  ;;  %v7732_v59 = vpack.c.bf16 %v1321_v54, %v1305_v13  ;;  %v1304_v15 = vld [vmem:[%s16871_s3 + $0x1840] sm:$0xff]  ;;  %v1337_v2 = vld [vmem:[%s16871_s3 + $0x1948] sm:$0xff] }
 0x318   :  { %7707 = vmatpush1.bf16.msra.mxu0 %v7706_v8  ;;  %v1257_v8 = vld [vmem:[%s16871_s3 + $0x16c8] sm:$0xff]  ;;  %v1400_v54 = vld [vmem:[%s16871_s3 + $0x1b40] sm:$0xff] }
 0x319   :  { %7963 = vmatpush1.bf16.msra.mxu1 %v7962_v9  ;;  %7709 = vmatprep.subr.bf16.mxu0 %v7708_v10  ;;  %v7724_v19 = vpack.c.bf16 %v1257_v8, %v1241_v6  ;;  %v1353_v48 = vld [vmem:[%s16871_s3 + $0x19c8] sm:$0xff]  ;;  %v1336_v8 = vld [vmem:[%s16871_s3 + $0x1940] sm:$0xff] }
 0x31a   :  { %7965 = vmatprep.subr.bf16.mxu1 %v7964_v17  ;;  %v7736_v6 = vpack.c.bf16 %v1353_v48, %v1337_v2  ;;  %v1432_v48 = vld [vmem:[%s16871_s3 + $0x1c40] sm:$0xff] }
 0x31c   :  { %7711 = vmatpush1.bf16.msra.mxu0 %v7710_v23  ;;  %v1242_v23 = vld [vmem:[%s16871_s3 + $0x1650] sm:$0xff] }
 0x31d   :  { %7967 = vmatpush1.bf16.msra.mxu1 %v7966_v1  ;;  %7713 = vmatprep.subr.bf16.mxu0 %v7712_v24  ;;  %v7980_v1 = vpack.c.bf16 %v1259_v11, %v1243_v31  ;;  %v1258_v24 = vld [vmem:[%s16871_s3 + $0x16d0] sm:$0xff]  ;;  %v1352_v31 = vld [vmem:[%s16871_s3 + $0x19c0] sm:$0xff] }
 0x31e   :  { %7969 = vmatprep.subr.bf16.mxu1 %v7968_v29  ;;  %v1291_v29 = vld [vmem:[%s16871_s3 + $0x17d8] sm:$0xff]  ;;  %v7982_v40 = vpack.c.bf16 %v1258_v24, %v1242_v23  ;;  %v1338_v11 = vld [vmem:[%s16871_s3 + $0x1950] sm:$0xff] }
 0x31f   :  { %v1387_v23 = vld [vmem:[%s16871_s3 + $0x1ad8] sm:$0xff] }
 0x320   :  { %7715 = vmatpush1.bf16.msra.mxu0 %v7714_v49  ;;  %v1288_v49 = vld [vmem:[%s16871_s3 + $0x17c0] sm:$0xff] }
 0x321   :  { %7971 = vmatpush1.bf16.msra.mxu1 %v7970_v50  ;;  %v4988_v62 = vpop.permute.xlu0 %4987  ;;  %7717 = vmatprep.subr.bf16.mxu0 %v7716_v51  ;;  %v1274_v50 = vld [vmem:[%s16871_s3 + $0x1750] sm:$0xff]  ;;  %v7984_v51 = vpack.c.bf16 %v1291_v29, %v1275_v28  ;;  %v7730_v57 = vpack.c.bf16 %v1288_v49, %v1272_v47  ;;  %v1384_v28 = vld [vmem:[%s16871_s3 + $0x1ac0] sm:$0xff]  ;;  %v1417_v47 = vld [vmem:[%s16871_s3 + $0x1bc8] sm:$0xff] }
 0x322   :  { %v5000_v4 = vsel %vm4999_vm11, 0.0, %v4988_v62  ;;  %v13348_v5 = vsel %vm4999_vm11, %v4988_v62, 0.0  ;;  %7973 = vmatprep.subr.bf16.mxu1 %v7972_v55  ;;  %v1307_v55 = vld [vmem:[%s16871_s3 + $0x1858] sm:$0xff]  ;;  %v7986_v58 = vpack.c.bf16 %v1290_v53, %v1274_v50  ;;  %v1306_v62 = vld [vmem:[%s16871_s3 + $0x1850] sm:$0xff] }
 0x323   :  { %v13359_v9 = vrot.slane %v5000_v4, 6  ;;  %v5017_v10 = vrot.slane %v13348_v5, 6  ;;  %v1355_v4 = vld [vmem:[%s16871_s3 + $0x19d8] sm:$0xff]  ;;  %v1370_v29 = vld [vmem:[%s16871_s3 + $0x1a50] sm:$0xff] }
 0x324   :  { %7719 = vmatpush1.bf16.msra.mxu0 %v7718_v61  ;;  %v1320_v61 = vld [vmem:[%s16871_s3 + $0x18c0] sm:$0xff]  ;;  %v1403_v49 = vld [vmem:[%s16871_s3 + $0x1b58] sm:$0xff] }
 0x325   :  { %v13370_v17 = vsel %vm4968_vm8, 0.0, %v13359_v9  ;;  %v13375_v52 = vsel %vm4968_vm8, 0.0, %v5017_v10  ;;  %7975 = vmatpush1.bf16.msra.mxu1 %v7974_v63  ;;  %7721 = vmatprep.subr.bf16.mxu0 %v7720_v0  ;;  %v7988_v63 = vpack.c.bf16 %v1323_v56, %v1307_v55  ;;  %v1322_v0 = vld [vmem:[%s16871_s3 + $0x18d0] sm:$0xff]  ;;  %v1419_v50 = vld [vmem:[%s16871_s3 + $0x1bd8] sm:$0xff]  ;;  %v1416_v55 = vld [vmem:[%s16871_s3 + $0x1bc0] sm:$0xff] }
 0x326   :  { %7977 = vmatprep.subr.bf16.mxu1 %v7976_v7  ;;  %v13403_v33 = vpack.i.bf16 %v13375_v52, %v13370_v17  ;;  %v7734_v7 = vpack.c.bf16 %v1320_v61, %v1304_v15  ;;  %v7990_v60 = vpack.c.bf16 %v1322_v0, %v1306_v62  ;;  %v1402_v56 = vld [vmem:[%s16871_s3 + $0x1b50] sm:$0xff]  ;;  %v1449_v15 = vld [vmem:[%s16871_s3 + $0x1cc8] sm:$0xff]  ;;  %v1435_v61 = vld [vmem:[%s16871_s3 + $0x1c58] sm:$0xff] }
 0x327   :  { %v1451_v62 = vld [vmem:[%s16871_s3 + $0x1cd8] sm:$0xff] }
 0x328   :  { %7723 = vmatpush1.bf16.msra.mxu0 %v7722_v12  ;;  %v7992_v12 = vpack.c.bf16 %v1355_v4, %v1339_v3  ;;  %v1448_v3 = vld [vmem:[%s16871_s3 + $0x1cc0] sm:$0xff]  ;;  %v1434_v4 = vld [vmem:[%s16871_s3 + $0x1c50] sm:$0xff] }
 0x329   :  { %7979 = vmatpush1.bf16.msra.mxu1 %v7978_v18  ;;  %7725 = vmatprep.subr.bf16.mxu0 %v7724_v19  ;;  %v1354_v18 = vld [vmem:[%s16871_s3 + $0x19d0] sm:$0xff]  ;;  %v1369_v19 = vld [vmem:[%s16871_s3 + $0x1a48] sm:$0xff] }
 0x32a   :  { %7981 = vmatprep.subr.bf16.mxu1 %v7980_v1  ;;  %v7738_v1 = vpack.c.bf16 %v1352_v31, %v1336_v8  ;;  %v7994_v24 = vpack.c.bf16 %v1354_v18, %v1338_v11  ;;  %v7740_v25 = vpack.c.bf16 %v1385_v20, %v1369_v19  ;;  %v1481_v8 = vld [vmem:[%s16871_s3 + $0x1dc8] sm:$0xff]  ;;  %v1467_v31 = vld [vmem:[%s16871_s3 + $0x1d58] sm:$0xff]  ;;  %v1464_v20 = vld [vmem:[%s16871_s3 + $0x1d40] sm:$0xff] }
 0x32b   :  { %v1483_v11 = vld [vmem:[%s16871_s3 + $0x1dd8] sm:$0xff] }
 0x32c   :  { %7727 = vmatpush1.bf16.msra.mxu0 %v7726_v36  ;;  %v7996_v36 = vpack.c.bf16 %v1387_v23, %v1371_v22  ;;  %v1480_v22 = vld [vmem:[%s16871_s3 + $0x1dc0] sm:$0xff]  ;;  %v1466_v23 = vld [vmem:[%s16871_s3 + $0x1d50] sm:$0xff] }
 0x32d   :  { %7983 = vmatpush1.bf16.msra.mxu1 %v7982_v40  ;;  %7729 = vmatprep.subr.bf16.mxu0 %v7728_v43  ;;  %v1386_v40 = vld [vmem:[%s16871_s3 + $0x1ad0] sm:$0xff]  ;;  %v1401_v43 = vld [vmem:[%s16871_s3 + $0x1b48] sm:$0xff] }
 0x32e   :  { %7985 = vmatprep.subr.bf16.mxu1 %v7984_v51  ;;  %v7742_v51 = vpack.c.bf16 %v1384_v28, %v1368_v27  ;;  %v7998_v53 = vpack.c.bf16 %v1386_v40, %v1370_v29  ;;  %v7744_v13 = vpack.c.bf16 %v1417_v47, %v1401_v43  ;;  %v1513_v27 = vld [vmem:[%s16871_s3 + $0x1ec8] sm:$0xff]  ;;  %v1499_v28 = vld [vmem:[%s16871_s3 + $0x1e58] sm:$0xff]  ;;  %v1496_v47 = vld [vmem:[%s16871_s3 + $0x1e40] sm:$0xff] }
 0x32f   :  { %v1515_v29 = vld [vmem:[%s16871_s3 + $0x1ed8] sm:$0xff] }
 0x330   :  { %7731 = vmatpush1.bf16.msra.mxu0 %v7730_v57  ;;  %v8000_v57 = vpack.c.bf16 %v1419_v50, %v1403_v49  ;;  %v1512_v49 = vld [vmem:[%s16871_s3 + $0x1ec0] sm:$0xff]  ;;  %v1498_v50 = vld [vmem:[%s16871_s3 + $0x1e50] sm:$0xff] }
 0x331   :  { %7987 = vmatpush1.bf16.msra.mxu1 %v7986_v58  ;;  %7733 = vmatprep.subr.bf16.mxu0 %v7732_v59  ;;  %v1418_v58 = vld [vmem:[%s16871_s3 + $0x1bd0] sm:$0xff]  ;;  %v1433_v59 = vld [vmem:[%s16871_s3 + $0x1c48] sm:$0xff] }
 0x332   :  { %7989 = vmatprep.subr.bf16.mxu1 %v7988_v63  ;;  %v7746_v63 = vpack.c.bf16 %v1416_v55, %v1400_v54  ;;  %v8002_v0 = vpack.c.bf16 %v1418_v58, %v1402_v56  ;;  %v7748_v2 = vpack.c.bf16 %v1449_v15, %v1433_v59  ;;  %v1545_v54 = vld [vmem:[%s16871_s3 + $0x1fc8] sm:$0xff]  ;;  %v1531_v55 = vld [vmem:[%s16871_s3 + $0x1f58] sm:$0xff]  ;;  %v1528_v15 = vld [vmem:[%s16871_s3 + $0x1f40] sm:$0xff] }
 0x333   :  { %v1547_v56 = vld [vmem:[%s16871_s3 + $0x1fd8] sm:$0xff] }
 0x334   :  { %7735 = vmatpush1.bf16.msra.mxu0 %v7734_v7  ;;  %v8004_v7 = vpack.c.bf16 %v1451_v62, %v1435_v61  ;;  %v1544_v61 = vld [vmem:[%s16871_s3 + $0x1fc0] sm:$0xff]  ;;  %v1530_v62 = vld [vmem:[%s16871_s3 + $0x1f50] sm:$0xff] }
 0x335   :  { %7991 = vmatpush1.bf16.msra.mxu1 %v7990_v60  ;;  %7737 = vmatprep.subr.bf16.mxu0 %v7736_v6  ;;  %v1450_v60 = vld [vmem:[%s16871_s3 + $0x1cd0] sm:$0xff]  ;;  %v1465_v6 = vld [vmem:[%s16871_s3 + $0x1d48] sm:$0xff] }
 0x336   :  { %7993 = vmatprep.subr.bf16.mxu1 %v7992_v12  ;;  %v7750_v12 = vpack.c.bf16 %v1448_v3, %v1432_v48  ;;  %v8006_v18 = vpack.c.bf16 %v1450_v60, %v1434_v4  ;;  %v7752_v19 = vpack.c.bf16 %v1481_v8, %v1465_v6  ;;  %v1577_v48 = vld [vmem:[%s16871_s3 + $0x20c8] sm:$0xff]  ;;  %v1563_v3 = vld [vmem:[%s16871_s3 + $0x2058] sm:$0xff]  ;;  %v1560_v8 = vld [vmem:[%s16871_s3 + $0x2040] sm:$0xff] }
 0x337   :  { %v1579_v4 = vld [vmem:[%s16871_s3 + $0x20d8] sm:$0xff] }
 0x338   :  { %7739 = vmatpush1.bf16.msra.mxu0 %v7738_v1  ;;  %v8008_v1 = vpack.c.bf16 %v1483_v11, %v1467_v31  ;;  %v1576_v31 = vld [vmem:[%s16871_s3 + $0x20c0] sm:$0xff]  ;;  %v8020_v11 = vpack.c.bf16 %v1579_v4, %v1563_v3  ;;  %v1658_v4 = vld [vmem:[%s16871_s3 + $0x2350] sm:$0xff] }
 0x339   :  { %7995 = vmatpush1.bf16.msra.mxu1 %v7994_v24  ;;  %7741 = vmatprep.subr.bf16.mxu0 %v7740_v25  ;;  %v1482_v24 = vld [vmem:[%s16871_s3 + $0x1dd0] sm:$0xff]  ;;  %v1497_v25 = vld [vmem:[%s16871_s3 + $0x1e48] sm:$0xff]  ;;  %v1672_v3 = vld [vmem:[%s16871_s3 + $0x23c0] sm:$0xff] }
 0x33a   :  { %7997 = vmatprep.subr.bf16.mxu1 %v7996_v36  ;;  %v7754_v36 = vpack.c.bf16 %v1480_v22, %v1464_v20  ;;  %v8010_v40 = vpack.c.bf16 %v1482_v24, %v1466_v23  ;;  %v7756_v43 = vpack.c.bf16 %v1513_v27, %v1497_v25  ;;  %v1609_v20 = vld [vmem:[%s16871_s3 + $0x21c8] sm:$0xff]  ;;  %v7766_v22 = vpack.c.bf16 %v1576_v31, %v1560_v8  ;;  %v1595_v23 = vld [vmem:[%s16871_s3 + $0x2158] sm:$0xff]  ;;  %v1592_v25 = vld [vmem:[%s16871_s3 + $0x2140] sm:$0xff] }
 0x33b   :  { %v1608_v27 = vld [vmem:[%s16871_s3 + $0x21c0] sm:$0xff]  ;;  %v1705_v8 = vld [vmem:[%s16871_s3 + $0x24c8] sm:$0xff]  ;;  %v1691_v31 = vld [vmem:[%s16871_s3 + $0x2458] sm:$0xff] }
 0x33c   :  { %7743 = vmatpush1.bf16.msra.mxu0 %v7742_v51  ;;  %v8012_v51 = vpack.c.bf16 %v1515_v29, %v1499_v28  ;;  %v1594_v28 = vld [vmem:[%s16871_s3 + $0x2150] sm:$0xff] }
 0x33d   :  { %7999 = vmatpush1.bf16.msra.mxu1 %v7998_v53  ;;  %7745 = vmatprep.subr.bf16.mxu0 %v7744_v13  ;;  %v1514_v53 = vld [vmem:[%s16871_s3 + $0x1ed0] sm:$0xff]  ;;  %v1529_v13 = vld [vmem:[%s16871_s3 + $0x1f48] sm:$0xff] }
 0x33e   :  { %8001 = vmatprep.subr.bf16.mxu1 %v8000_v57  ;;  %v7758_v57 = vpack.c.bf16 %v1512_v49, %v1496_v47  ;;  %v8014_v58 = vpack.c.bf16 %v1514_v53, %v1498_v50  ;;  %v7760_v59 = vpack.c.bf16 %v1545_v54, %v1529_v13  ;;  %v1627_v49 = vld [vmem:[%s16871_s3 + $0x2258] sm:$0xff]  ;;  %v1624_v54 = vld [vmem:[%s16871_s3 + $0x2240] sm:$0xff] }
 0x33f   :  { %v1643_v50 = vld [vmem:[%s16871_s3 + $0x22d8] sm:$0xff] }
 0x340   :  { %7747 = vmatpush1.bf16.msra.mxu0 %v7746_v63  ;;  %v8016_v63 = vpack.c.bf16 %v1547_v56, %v1531_v55  ;;  %v1640_v55 = vld [vmem:[%s16871_s3 + $0x22c0] sm:$0xff]  ;;  %v1626_v56 = vld [vmem:[%s16871_s3 + $0x2250] sm:$0xff] }
 0x341   :  { %8003 = vmatpush1.bf16.msra.mxu1 %v8002_v0  ;;  %7749 = vmatprep.subr.bf16.mxu0 %v7748_v2  ;;  %v1546_v0 = vld [vmem:[%s16871_s3 + $0x1fd0] sm:$0xff]  ;;  %v1561_v2 = vld [vmem:[%s16871_s3 + $0x2048] sm:$0xff] }
 0x342   :  { %8005 = vmatprep.subr.bf16.mxu1 %v8004_v7  ;;  %v7762_v7 = vpack.c.bf16 %v1544_v61, %v1528_v15  ;;  %v8018_v60 = vpack.c.bf16 %v1546_v0, %v1530_v62  ;;  %v7764_v6 = vpack.c.bf16 %v1577_v48, %v1561_v2  ;;  %v1673_v15 = vld [vmem:[%s16871_s3 + $0x23c8] sm:$0xff]  ;;  %v1659_v61 = vld [vmem:[%s16871_s3 + $0x2358] sm:$0xff]  ;;  %v1656_v48 = vld [vmem:[%s16871_s3 + $0x2340] sm:$0xff] }
 0x343   :  { %v1675_v62 = vld [vmem:[%s16871_s3 + $0x23d8] sm:$0xff] }
 0x344   :  { %7751 = vmatpush1.bf16.msra.mxu0 %v7750_v12  ;;  %v1562_v12 = vld [vmem:[%s16871_s3 + $0x2050] sm:$0xff] }
 0x345   :  { %8007 = vmatpush1.bf16.msra.mxu1 %v8006_v18  ;;  %7753 = vmatprep.subr.bf16.mxu0 %v7752_v19  ;;  %v1578_v18 = vld [vmem:[%s16871_s3 + $0x20d0] sm:$0xff]  ;;  %v1593_v19 = vld [vmem:[%s16871_s3 + $0x2148] sm:$0xff] }
 0x346   :  { %8009 = vmatprep.subr.bf16.mxu1 %v8008_v1  ;;  %v1611_v1 = vld [vmem:[%s16871_s3 + $0x21d8] sm:$0xff]  ;;  %v8022_v24 = vpack.c.bf16 %v1578_v18, %v1562_v12  ;;  %v7768_v29 = vpack.c.bf16 %v1609_v20, %v1593_v19  ;;  %v7778_v12 = vpack.c.bf16 %v1672_v3, %v1656_v48  ;;  %v1688_v20 = vld [vmem:[%s16871_s3 + $0x2440] sm:$0xff]  ;;  %v1801_v48 = vld [vmem:[%s16871_s3 + $0x27c8] sm:$0xff] }
 0x347   :  { %v8024_v47 = vpack.c.bf16 %v1611_v1, %v1595_v23  ;;  %v1690_v23 = vld [vmem:[%s16871_s3 + $0x2450] sm:$0xff]  ;;  %v1787_v3 = vld [vmem:[%s16871_s3 + $0x2758] sm:$0xff] }
 0x348   :  { %7755 = vmatpush1.bf16.msra.mxu0 %v7754_v36  ;;  %v1610_v36 = vld [vmem:[%s16871_s3 + $0x21d0] sm:$0xff] }
 0x349   :  { %8011 = vmatpush1.bf16.msra.mxu1 %v8010_v40  ;;  %7757 = vmatprep.subr.bf16.mxu0 %v7756_v43  ;;  %v1625_v40 = vld [vmem:[%s16871_s3 + $0x2248] sm:$0xff]  ;;  %v8026_v53 = vpack.c.bf16 %v1610_v36, %v1594_v28  ;;  %v1723_v28 = vld [vmem:[%s16871_s3 + $0x2558] sm:$0xff] }
 0x34a   :  { %8013 = vmatprep.subr.bf16.mxu1 %v8012_v51  ;;  %v1641_v43 = vld [vmem:[%s16871_s3 + $0x22c8] sm:$0xff]  ;;  %v7770_v51 = vpack.c.bf16 %v1608_v27, %v1592_v25 }
 0x34b   :  { %v7772_v13 = vpack.c.bf16 %v1641_v43, %v1625_v40  ;;  %v1721_v25 = vld [vmem:[%s16871_s3 + $0x2548] sm:$0xff] }
 0x34c   :  { %7759 = vmatpush1.bf16.msra.mxu0 %v7758_v57  ;;  %v8028_v57 = vpack.c.bf16 %v1643_v50, %v1627_v49  ;;  %v1737_v27 = vld [vmem:[%s16871_s3 + $0x25c8] sm:$0xff]  ;;  %v1736_v49 = vld [vmem:[%s16871_s3 + $0x25c0] sm:$0xff]  ;;  %v1722_v50 = vld [vmem:[%s16871_s3 + $0x2550] sm:$0xff] }
 0x34d   :  { %8015 = vmatpush1.bf16.msra.mxu1 %v8014_v58  ;;  %7761 = vmatprep.subr.bf16.mxu0 %v7760_v59  ;;  %v1642_v58 = vld [vmem:[%s16871_s3 + $0x22d0] sm:$0xff]  ;;  %v1657_v59 = vld [vmem:[%s16871_s3 + $0x2348] sm:$0xff]  ;;  %v7784_v43 = vpack.c.bf16 %v1737_v27, %v1721_v25  ;;  %v1816_v27 = vld [vmem:[%s16871_s3 + $0x2840] sm:$0xff] }
 0x34e   :  { %8017 = vmatprep.subr.bf16.mxu1 %v8016_v63  ;;  %v7774_v63 = vpack.c.bf16 %v1640_v55, %v1624_v54  ;;  %v8030_v0 = vpack.c.bf16 %v1642_v58, %v1626_v56  ;;  %v7776_v2 = vpack.c.bf16 %v1673_v15, %v1657_v59  ;;  %v1769_v54 = vld [vmem:[%s16871_s3 + $0x26c8] sm:$0xff]  ;;  %v1755_v55 = vld [vmem:[%s16871_s3 + $0x2658] sm:$0xff]  ;;  %v1752_v15 = vld [vmem:[%s16871_s3 + $0x2640] sm:$0xff] }
 0x34f   :  { %v1771_v56 = vld [vmem:[%s16871_s3 + $0x26d8] sm:$0xff] }
 0x350   :  { %7763 = vmatpush1.bf16.msra.mxu0 %v7762_v7  ;;  %v8032_v7 = vpack.c.bf16 %v1675_v62, %v1659_v61  ;;  %v1768_v61 = vld [vmem:[%s16871_s3 + $0x26c0] sm:$0xff]  ;;  %v1754_v62 = vld [vmem:[%s16871_s3 + $0x2650] sm:$0xff] }
 0x351   :  { %8019 = vmatpush1.bf16.msra.mxu1 %v8018_v60  ;;  %7765 = vmatprep.subr.bf16.mxu0 %v7764_v6  ;;  %v1674_v60 = vld [vmem:[%s16871_s3 + $0x23d0] sm:$0xff]  ;;  %v1689_v6 = vld [vmem:[%s16871_s3 + $0x2448] sm:$0xff] }
 0x352   :  { %8021 = vmatprep.subr.bf16.mxu1 %v8020_v11  ;;  %v1707_v11 = vld [vmem:[%s16871_s3 + $0x24d8] sm:$0xff]  ;;  %v8034_v18 = vpack.c.bf16 %v1674_v60, %v1658_v4  ;;  %v7780_v19 = vpack.c.bf16 %v1705_v8, %v1689_v6  ;;  %v1784_v8 = vld [vmem:[%s16871_s3 + $0x2740] sm:$0xff] }
 0x353   :  { %3932 = vmatmul.mubr.f32.vlgmr.msra.gmra.mrb[8].mxu0 %v10494_v34  ;;  %v8036_v1 = vpack.c.bf16 %v1707_v11, %v1691_v31  ;;  %v1803_v4 = vld [vmem:[%s16871_s3 + $0x27d8] sm:$0xff]  ;;  %v1800_v31 = vld [vmem:[%s16871_s3 + $0x27c0] sm:$0xff]  ;;  %v1786_v11 = vld [vmem:[%s16871_s3 + $0x2750] sm:$0xff] }
 0x354   :  { %4216 = vmatmul.mubr.f32.vlgmr.msra.gmra.mrb[8].mxu1 %v10494_v34  ;;  %7767 = vmatpush1.bf16.msra.mxu0 %v7766_v22  ;;  %v1704_v22 = vld [vmem:[%s16871_s3 + $0x24c0] sm:$0xff] }
 0x355   :  { %4002 = vmatprep.mubr.f32.mxu0 %v10507_v41  ;;  %8023 = vmatpush1.bf16.msra.mxu1 %v8022_v24  ;;  %v1706_v24 = vld [vmem:[%s16871_s3 + $0x24d0] sm:$0xff]  ;;  %v7782_v36 = vpack.c.bf16 %v1704_v22, %v1688_v20  ;;  %v1833_v20 = vld [vmem:[%s16871_s3 + $0x28c8] sm:$0xff]  ;;  %v1819_v22 = vld [vmem:[%s16871_s3 + $0x2858] sm:$0xff] }
 0x356   :  { %4286 = vmatprep.mubr.f32.mxu1 %v10507_v41  ;;  %7769 = vmatprep.subr.bf16.mxu0 %v7768_v29  ;;  %v1739_v29 = vld [vmem:[%s16871_s3 + $0x25d8] sm:$0xff]  ;;  %v8038_v40 = vpack.c.bf16 %v1706_v24, %v1690_v23 }
 0x357   :  { %8025 = vmatprep.subr.bf16.mxu1 %v8024_v47  ;;  %v1720_v47 = vld [vmem:[%s16871_s3 + $0x2540] sm:$0xff]  ;;  %v1835_v23 = vld [vmem:[%s16871_s3 + $0x28d8] sm:$0xff] }
 0x358   :  { %7771 = vmatpush1.bf16.msra.mxu0 %v7770_v51  ;;  %v8040_v51 = vpack.c.bf16 %v1739_v29, %v1723_v28  ;;  %v1832_v28 = vld [vmem:[%s16871_s3 + $0x28c0] sm:$0xff]  ;;  %v1818_v29 = vld [vmem:[%s16871_s3 + $0x2850] sm:$0xff] }
 0x359   :  { %8027 = vmatpush1.bf16.msra.mxu1 %v8026_v53  ;;  %7773 = vmatprep.subr.bf16.mxu0 %v7772_v13  ;;  %v1738_v53 = vld [vmem:[%s16871_s3 + $0x25d0] sm:$0xff]  ;;  %v1753_v13 = vld [vmem:[%s16871_s3 + $0x2648] sm:$0xff] }
 0x35a   :  { %8029 = vmatprep.subr.bf16.mxu1 %v8028_v57  ;;  %v7786_v57 = vpack.c.bf16 %v1736_v49, %v1720_v47  ;;  %v8042_v58 = vpack.c.bf16 %v1738_v53, %v1722_v50  ;;  %v7788_v59 = vpack.c.bf16 %v1769_v54, %v1753_v13  ;;  %v1865_v47 = vld [vmem:[%s16871_s3 + $0x29c8] sm:$0xff]  ;;  %v1851_v49 = vld [vmem:[%s16871_s3 + $0x2958] sm:$0xff]  ;;  %v1848_v54 = vld [vmem:[%s16871_s3 + $0x2940] sm:$0xff] }
 0x35b   :  { %v1867_v50 = vld [vmem:[%s16871_s3 + $0x29d8] sm:$0xff] }
 0x35c   :  { %7775 = vmatpush1.bf16.msra.mxu0 %v7774_v63  ;;  %v8044_v63 = vpack.c.bf16 %v1771_v56, %v1755_v55  ;;  %v1864_v55 = vld [vmem:[%s16871_s3 + $0x29c0] sm:$0xff]  ;;  %v1850_v56 = vld [vmem:[%s16871_s3 + $0x2950] sm:$0xff] }
 0x35d   :  { %8031 = vmatpush1.bf16.msra.mxu1 %v8030_v0  ;;  %7777 = vmatprep.subr.bf16.mxu0 %v7776_v2  ;;  %v1770_v0 = vld [vmem:[%s16871_s3 + $0x26d0] sm:$0xff]  ;;  %v1785_v2 = vld [vmem:[%s16871_s3 + $0x2748] sm:$0xff] }
 0x35e   :  { %8033 = vmatprep.subr.bf16.mxu1 %v8032_v7  ;;  %v7790_v7 = vpack.c.bf16 %v1768_v61, %v1752_v15  ;;  %v8046_v60 = vpack.c.bf16 %v1770_v0, %v1754_v62  ;;  %v7792_v6 = vpack.c.bf16 %v1801_v48, %v1785_v2  ;;  %v1897_v15 = vld [vmem:[%s16871_s3 + $0x2ac8] sm:$0xff]  ;;  %v1883_v61 = vld [vmem:[%s16871_s3 + $0x2a58] sm:$0xff]  ;;  %v1880_v48 = vld [vmem:[%s16871_s3 + $0x2a40] sm:$0xff] }
 0x35f   :  { %v1899_v62 = vld [vmem:[%s16871_s3 + $0x2ad8] sm:$0xff] }
 0x360   :  { %7779 = vmatpush1.bf16.msra.mxu0 %v7778_v12  ;;  %v8048_v12 = vpack.c.bf16 %v1803_v4, %v1787_v3  ;;  %v1896_v3 = vld [vmem:[%s16871_s3 + $0x2ac0] sm:$0xff]  ;;  %v1882_v4 = vld [vmem:[%s16871_s3 + $0x2a50] sm:$0xff] }
 0x361   :  { %8035 = vmatpush1.bf16.msra.mxu1 %v8034_v18  ;;  %7781 = vmatprep.subr.bf16.mxu0 %v7780_v19  ;;  %v1802_v18 = vld [vmem:[%s16871_s3 + $0x27d0] sm:$0xff]  ;;  %v1817_v19 = vld [vmem:[%s16871_s3 + $0x2848] sm:$0xff] }
 0x362   :  { %8037 = vmatprep.subr.bf16.mxu1 %v8036_v1  ;;  %v7794_v1 = vpack.c.bf16 %v1800_v31, %v1784_v8  ;;  %v8050_v24 = vpack.c.bf16 %v1802_v18, %v1786_v11  ;;  %v7796_v25 = vpack.c.bf16 %v1833_v20, %v1817_v19  ;;  %v1929_v8 = vld [vmem:[%s16871_s3 + $0x2bc8] sm:$0xff]  ;;  %v1915_v31 = vld [vmem:[%s16871_s3 + $0x2b58] sm:$0xff]  ;;  %v1912_v20 = vld [vmem:[%s16871_s3 + $0x2b40] sm:$0xff] }
 0x363   :  { %v1931_v11 = vld [vmem:[%s16871_s3 + $0x2bd8] sm:$0xff] }
 0x364   :  { %7783 = vmatpush1.bf16.msra.mxu0 %v7782_v36  ;;  %v8052_v36 = vpack.c.bf16 %v1835_v23, %v1819_v22  ;;  %v1928_v22 = vld [vmem:[%s16871_s3 + $0x2bc0] sm:$0xff]  ;;  %v1914_v23 = vld [vmem:[%s16871_s3 + $0x2b50] sm:$0xff] }
 0x365   :  { %8039 = vmatpush1.bf16.msra.mxu1 %v8038_v40  ;;  %7785 = vmatprep.subr.bf16.mxu0 %v7784_v43  ;;  %v1834_v40 = vld [vmem:[%s16871_s3 + $0x28d0] sm:$0xff]  ;;  %v1849_v43 = vld [vmem:[%s16871_s3 + $0x2948] sm:$0xff] }
 0x366   :  { %8041 = vmatprep.subr.bf16.mxu1 %v8040_v51  ;;  %v7798_v51 = vpack.c.bf16 %v1832_v28, %v1816_v27  ;;  %v8054_v53 = vpack.c.bf16 %v1834_v40, %v1818_v29  ;;  %v7800_v13 = vpack.c.bf16 %v1865_v47, %v1849_v43  ;;  %v1961_v27 = vld [vmem:[%s16871_s3 + $0x2cc8] sm:$0xff]  ;;  %v1947_v28 = vld [vmem:[%s16871_s3 + $0x2c58] sm:$0xff]  ;;  %v1944_v47 = vld [vmem:[%s16871_s3 + $0x2c40] sm:$0xff] }
 0x367   :  { %v1963_v29 = vld [vmem:[%s16871_s3 + $0x2cd8] sm:$0xff] }
 0x368   :  { %7787 = vmatpush1.bf16.msra.mxu0 %v7786_v57  ;;  %v8056_v57 = vpack.c.bf16 %v1867_v50, %v1851_v49  ;;  %v1960_v49 = vld [vmem:[%s16871_s3 + $0x2cc0] sm:$0xff]  ;;  %v1946_v50 = vld [vmem:[%s16871_s3 + $0x2c50] sm:$0xff] }
 0x369   :  { %8043 = vmatpush1.bf16.msra.mxu1 %v8042_v58  ;;  %7789 = vmatprep.subr.bf16.mxu0 %v7788_v59  ;;  %v1866_v58 = vld [vmem:[%s16871_s3 + $0x29d0] sm:$0xff]  ;;  %v1881_v59 = vld [vmem:[%s16871_s3 + $0x2a48] sm:$0xff] }
 0x36a   :  { %8045 = vmatprep.subr.bf16.mxu1 %v8044_v63  ;;  %v7802_v63 = vpack.c.bf16 %v1864_v55, %v1848_v54  ;;  %v8058_v0 = vpack.c.bf16 %v1866_v58, %v1850_v56  ;;  %v7804_v2 = vpack.c.bf16 %v1897_v15, %v1881_v59  ;;  %v1993_v54 = vld [vmem:[%s16871_s3 + $0x2dc8] sm:$0xff]  ;;  %v1979_v55 = vld [vmem:[%s16871_s3 + $0x2d58] sm:$0xff]  ;;  %v1976_v15 = vld [vmem:[%s16871_s3 + $0x2d40] sm:$0xff] }
 0x36b   :  { %v1995_v56 = vld [vmem:[%s16871_s3 + $0x2dd8] sm:$0xff] }
 0x36c   :  { %7791 = vmatpush1.bf16.msra.mxu0 %v7790_v7  ;;  %v8060_v7 = vpack.c.bf16 %v1899_v62, %v1883_v61  ;;  %v1992_v61 = vld [vmem:[%s16871_s3 + $0x2dc0] sm:$0xff]  ;;  %v1978_v62 = vld [vmem:[%s16871_s3 + $0x2d50] sm:$0xff] }
 0x36d   :  { %8047 = vmatpush1.bf16.msra.mxu1 %v8046_v60  ;;  %7793 = vmatprep.subr.bf16.mxu0 %v7792_v6  ;;  %v1898_v60 = vld [vmem:[%s16871_s3 + $0x2ad0] sm:$0xff]  ;;  %v1913_v6 = vld [vmem:[%s16871_s3 + $0x2b48] sm:$0xff] }
 0x36e   :  { %8049 = vmatprep.subr.bf16.mxu1 %v8048_v12  ;;  %v7806_v12 = vpack.c.bf16 %v1896_v3, %v1880_v48  ;;  %v8062_v18 = vpack.c.bf16 %v1898_v60, %v1882_v4  ;;  %v7808_v19 = vpack.c.bf16 %v1929_v8, %v1913_v6  ;;  %v2025_v48 = vld [vmem:[%s16871_s3 + $0x2ec8] sm:$0xff]  ;;  %v2011_v3 = vld [vmem:[%s16871_s3 + $0x2e58] sm:$0xff]  ;;  %v2008_v8 = vld [vmem:[%s16871_s3 + $0x2e40] sm:$0xff] }
 0x36f   :  { %v2027_v4 = vld [vmem:[%s16871_s3 + $0x2ed8] sm:$0xff] }
 0x370   :  { %7795 = vmatpush1.bf16.msra.mxu0 %v7794_v1  ;;  %v8064_v1 = vpack.c.bf16 %v1931_v11, %v1915_v31  ;;  %v2024_v31 = vld [vmem:[%s16871_s3 + $0x2ec0] sm:$0xff]  ;;  %v2010_v11 = vld [vmem:[%s16871_s3 + $0x2e50] sm:$0xff] }
 0x371   :  { %8051 = vmatpush1.bf16.msra.mxu1 %v8050_v24  ;;  %7797 = vmatprep.subr.bf16.mxu0 %v7796_v25  ;;  %v1930_v24 = vld [vmem:[%s16871_s3 + $0x2bd0] sm:$0xff]  ;;  %v1945_v25 = vld [vmem:[%s16871_s3 + $0x2c48] sm:$0xff] }
 0x372   :  { %8053 = vmatprep.subr.bf16.mxu1 %v8052_v36  ;;  %v7810_v36 = vpack.c.bf16 %v1928_v22, %v1912_v20  ;;  %v8066_v40 = vpack.c.bf16 %v1930_v24, %v1914_v23  ;;  %v7812_v43 = vpack.c.bf16 %v1961_v27, %v1945_v25  ;;  %v2057_v20 = vld [vmem:[%s16871_s3 + $0x2fc8] sm:$0xff]  ;;  %v2043_v22 = vld [vmem:[%s16871_s3 + $0x2f58] sm:$0xff]  ;;  %v2040_v27 = vld [vmem:[%s16871_s3 + $0x2f40] sm:$0xff] }
 0x373   :  { %v2059_v23 = vld [vmem:[%s16871_s3 + $0x2fd8] sm:$0xff] }
 0x374   :  { %7799 = vmatpush1.bf16.msra.mxu0 %v7798_v51  ;;  %v8068_v51 = vpack.c.bf16 %v1963_v29, %v1947_v28  ;;  %v2056_v28 = vld [vmem:[%s16871_s3 + $0x2fc0] sm:$0xff]  ;;  %v2042_v29 = vld [vmem:[%s16871_s3 + $0x2f50] sm:$0xff] }
 0x375   :  { %8055 = vmatpush1.bf16.msra.mxu1 %v8054_v53  ;;  %7801 = vmatprep.subr.bf16.mxu0 %v7800_v13  ;;  %v1962_v53 = vld [vmem:[%s16871_s3 + $0x2cd0] sm:$0xff]  ;;  %v1977_v13 = vld [vmem:[%s16871_s3 + $0x2d48] sm:$0xff] }
 0x376   :  { %8057 = vmatprep.subr.bf16.mxu1 %v8056_v57  ;;  %v7814_v57 = vpack.c.bf16 %v1960_v49, %v1944_v47  ;;  %v8070_v58 = vpack.c.bf16 %v1962_v53, %v1946_v50  ;;  %v7816_v59 = vpack.c.bf16 %v1993_v54, %v1977_v13  ;;  %v2089_v47 = vld [vmem:[%s16871_s3 + $0x30c8] sm:$0xff]  ;;  %v2075_v49 = vld [vmem:[%s16871_s3 + $0x3058] sm:$0xff]  ;;  %v2072_v54 = vld [vmem:[%s16871_s3 + $0x3040] sm:$0xff] }
 0x377   :  { %v2091_v50 = vld [vmem:[%s16871_s3 + $0x30d8] sm:$0xff] }
 0x378   :  { %7803 = vmatpush1.bf16.msra.mxu0 %v7802_v63  ;;  %v8072_v63 = vpack.c.bf16 %v1995_v56, %v1979_v55  ;;  %v2088_v55 = vld [vmem:[%s16871_s3 + $0x30c0] sm:$0xff]  ;;  %v8084_v56 = vpack.c.bf16 %v2091_v50, %v2075_v49  ;;  %v2170_v50 = vld [vmem:[%s16871_s3 + $0x3350] sm:$0xff] }
 0x379   :  { %8059 = vmatpush1.bf16.msra.mxu1 %v8058_v0  ;;  %7805 = vmatprep.subr.bf16.mxu0 %v7804_v2  ;;  %v1994_v0 = vld [vmem:[%s16871_s3 + $0x2dd0] sm:$0xff]  ;;  %v2009_v2 = vld [vmem:[%s16871_s3 + $0x2e48] sm:$0xff]  ;;  %v2184_v49 = vld [vmem:[%s16871_s3 + $0x33c0] sm:$0xff] }
 0x37a   :  { %8061 = vmatprep.subr.bf16.mxu1 %v8060_v7  ;;  %v7818_v7 = vpack.c.bf16 %v1992_v61, %v1976_v15  ;;  %v8074_v60 = vpack.c.bf16 %v1994_v0, %v1978_v62  ;;  %v7820_v6 = vpack.c.bf16 %v2025_v48, %v2009_v2  ;;  %v2121_v15 = vld [vmem:[%s16871_s3 + $0x31c8] sm:$0xff]  ;;  %v7830_v61 = vpack.c.bf16 %v2088_v55, %v2072_v54  ;;  %v2107_v62 = vld [vmem:[%s16871_s3 + $0x3158] sm:$0xff]  ;;  %v2104_v2 = vld [vmem:[%s16871_s3 + $0x3140] sm:$0xff] }
 0x37b   :  { %v2120_v48 = vld [vmem:[%s16871_s3 + $0x31c0] sm:$0xff]  ;;  %v2217_v54 = vld [vmem:[%s16871_s3 + $0x34c8] sm:$0xff]  ;;  %v2203_v55 = vld [vmem:[%s16871_s3 + $0x3458] sm:$0xff] }
 0x37c   :  { %7807 = vmatpush1.bf16.msra.mxu0 %v7806_v12  ;;  %v8076_v12 = vpack.c.bf16 %v2027_v4, %v2011_v3  ;;  %v2106_v3 = vld [vmem:[%s16871_s3 + $0x3150] sm:$0xff] }
 0x37d   :  { %8063 = vmatpush1.bf16.msra.mxu1 %v8062_v18  ;;  %7809 = vmatprep.subr.bf16.mxu0 %v7808_v19  ;;  %v2026_v18 = vld [vmem:[%s16871_s3 + $0x2ed0] sm:$0xff]  ;;  %v2041_v19 = vld [vmem:[%s16871_s3 + $0x2f48] sm:$0xff] }
 0x37e   :  { %8065 = vmatprep.subr.bf16.mxu1 %v8064_v1  ;;  %v7822_v1 = vpack.c.bf16 %v2024_v31, %v2008_v8  ;;  %v8078_v24 = vpack.c.bf16 %v2026_v18, %v2010_v11  ;;  %v7824_v25 = vpack.c.bf16 %v2057_v20, %v2041_v19  ;;  %v2139_v31 = vld [vmem:[%s16871_s3 + $0x3258] sm:$0xff]  ;;  %v2136_v20 = vld [vmem:[%s16871_s3 + $0x3240] sm:$0xff] }
 0x37f   :  { %v2155_v11 = vld [vmem:[%s16871_s3 + $0x32d8] sm:$0xff] }
 0x380   :  { %7811 = vmatpush1.bf16.msra.mxu0 %v7810_v36  ;;  %v8080_v36 = vpack.c.bf16 %v2059_v23, %v2043_v22  ;;  %v2152_v22 = vld [vmem:[%s16871_s3 + $0x32c0] sm:$0xff]  ;;  %v2138_v23 = vld [vmem:[%s16871_s3 + $0x3250] sm:$0xff] }
 0x381   :  { %8067 = vmatpush1.bf16.msra.mxu1 %v8066_v40  ;;  %7813 = vmatprep.subr.bf16.mxu0 %v7812_v43  ;;  %v2058_v40 = vld [vmem:[%s16871_s3 + $0x2fd0] sm:$0xff]  ;;  %v2073_v43 = vld [vmem:[%s16871_s3 + $0x3048] sm:$0xff] }
 0x382   :  { %8069 = vmatprep.subr.bf16.mxu1 %v8068_v51  ;;  %v7826_v51 = vpack.c.bf16 %v2056_v28, %v2040_v27  ;;  %v8082_v53 = vpack.c.bf16 %v2058_v40, %v2042_v29  ;;  %v7828_v13 = vpack.c.bf16 %v2089_v47, %v2073_v43  ;;  %v2185_v27 = vld [vmem:[%s16871_s3 + $0x33c8] sm:$0xff]  ;;  %v2171_v28 = vld [vmem:[%s16871_s3 + $0x3358] sm:$0xff]  ;;  %v2168_v47 = vld [vmem:[%s16871_s3 + $0x3340] sm:$0xff] }
 0x383   :  { %v2187_v29 = vld [vmem:[%s16871_s3 + $0x33d8] sm:$0xff] }
 0x384   :  { %7815 = vmatpush1.bf16.msra.mxu0 %v7814_v57  ;;  %v2074_v57 = vld [vmem:[%s16871_s3 + $0x3050] sm:$0xff] }
 0x385   :  { %8071 = vmatpush1.bf16.msra.mxu1 %v8070_v58  ;;  %7817 = vmatprep.subr.bf16.mxu0 %v7816_v59  ;;  %v2090_v58 = vld [vmem:[%s16871_s3 + $0x30d0] sm:$0xff]  ;;  %v2105_v59 = vld [vmem:[%s16871_s3 + $0x3148] sm:$0xff] }
 0x386   :  { %8073 = vmatprep.subr.bf16.mxu1 %v8072_v63  ;;  %v2123_v63 = vld [vmem:[%s16871_s3 + $0x31d8] sm:$0xff]  ;;  %v8086_v0 = vpack.c.bf16 %v2090_v58, %v2074_v57  ;;  %v7832_v4 = vpack.c.bf16 %v2121_v15, %v2105_v59  ;;  %v7842_v57 = vpack.c.bf16 %v2184_v49, %v2168_v47  ;;  %v2200_v15 = vld [vmem:[%s16871_s3 + $0x3440] sm:$0xff]  ;;  %v2266_v47 = vld [vmem:[%s16871_s3 + $0x3650] sm:$0xff] }
 0x387   :  { %v8088_v8 = vpack.c.bf16 %v2123_v63, %v2107_v62  ;;  %v2202_v62 = vld [vmem:[%s16871_s3 + $0x3450] sm:$0xff] }
 0x388   :  { %7819 = vmatpush1.bf16.msra.mxu0 %v7818_v7  ;;  %v2122_v7 = vld [vmem:[%s16871_s3 + $0x31d0] sm:$0xff] }
 0x389   :  { %8075 = vmatpush1.bf16.msra.mxu1 %v8074_v60  ;;  %7821 = vmatprep.subr.bf16.mxu0 %v7820_v6  ;;  %v2137_v60 = vld [vmem:[%s16871_s3 + $0x3248] sm:$0xff]  ;;  %v8090_v18 = vpack.c.bf16 %v2122_v7, %v2106_v3  ;;  %v2235_v3 = vld [vmem:[%s16871_s3 + $0x3558] sm:$0xff] }
 0x38a   :  { %8077 = vmatprep.subr.bf16.mxu1 %v8076_v12  ;;  %v2153_v6 = vld [vmem:[%s16871_s3 + $0x32c8] sm:$0xff]  ;;  %v7834_v12 = vpack.c.bf16 %v2120_v48, %v2104_v2 }
 0x38b   :  { %v7836_v19 = vpack.c.bf16 %v2153_v6, %v2137_v60  ;;  %v2233_v2 = vld [vmem:[%s16871_s3 + $0x3548] sm:$0xff] }
 0x38c   :  { %7823 = vmatpush1.bf16.msra.mxu0 %v7822_v1  ;;  %v8092_v1 = vpack.c.bf16 %v2155_v11, %v2139_v31  ;;  %v2249_v48 = vld [vmem:[%s16871_s3 + $0x35c8] sm:$0xff]  ;;  %v2248_v31 = vld [vmem:[%s16871_s3 + $0x35c0] sm:$0xff]  ;;  %v2234_v11 = vld [vmem:[%s16871_s3 + $0x3550] sm:$0xff] }
 0x38d   :  { %8079 = vmatpush1.bf16.msra.mxu1 %v8078_v24  ;;  %7825 = vmatprep.subr.bf16.mxu0 %v7824_v25  ;;  %v2154_v24 = vld [vmem:[%s16871_s3 + $0x32d0] sm:$0xff]  ;;  %v2169_v25 = vld [vmem:[%s16871_s3 + $0x3348] sm:$0xff]  ;;  %v7848_v6 = vpack.c.bf16 %v2249_v48, %v2233_v2  ;;  %v2296_v48 = vld [vmem:[%s16871_s3 + $0x3740] sm:$0xff] }
 0x38e   :  { %8081 = vmatprep.subr.bf16.mxu1 %v8080_v36  ;;  %v7838_v36 = vpack.c.bf16 %v2152_v22, %v2136_v20  ;;  %v8094_v40 = vpack.c.bf16 %v2154_v24, %v2138_v23  ;;  %v7840_v43 = vpack.c.bf16 %v2185_v27, %v2169_v25  ;;  %v2281_v20 = vld [vmem:[%s16871_s3 + $0x36c8] sm:$0xff]  ;;  %v2267_v22 = vld [vmem:[%s16871_s3 + $0x3658] sm:$0xff] }
 0x38f   :  { %v2283_v23 = vld [vmem:[%s16871_s3 + $0x36d8] sm:$0xff] }
 0x390   :  { %7827 = vmatpush1.bf16.msra.mxu0 %v7826_v51  ;;  %v8096_v51 = vpack.c.bf16 %v2187_v29, %v2171_v28 }
 0x391   :  { %8083 = vmatpush1.bf16.msra.mxu1 %v8082_v53  ;;  %7829 = vmatprep.subr.bf16.mxu0 %v7828_v13  ;;  %v2186_v53 = vld [vmem:[%s16871_s3 + $0x33d0] sm:$0xff]  ;;  %v2201_v13 = vld [vmem:[%s16871_s3 + $0x3448] sm:$0xff] }
 0x392   :  { %8085 = vmatprep.subr.bf16.mxu1 %v8084_v56  ;;  %v2219_v56 = vld [vmem:[%s16871_s3 + $0x34d8] sm:$0xff]  ;;  %v8098_v58 = vpack.c.bf16 %v2186_v53, %v2170_v50  ;;  %v7844_v59 = vpack.c.bf16 %v2217_v54, %v2201_v13  ;;  %v2282_v53 = vld [vmem:[%s16871_s3 + $0x36d0] sm:$0xff]  ;;  %v2297_v13 = vld [vmem:[%s16871_s3 + $0x3748] sm:$0xff] }
 0x393   :  { %4003 = vmatmul.mubr.f32.vlgmr.msra.gmra.mrb[8].mxu0 %v10904_v39  ;;  %v8100_v63 = vpack.c.bf16 %v2219_v56, %v2203_v55  ;;  %v2313_v54 = vld [vmem:[%s16871_s3 + $0x37c8] sm:$0xff] }
 0x394   :  { %4287 = vmatmul.mubr.f32.vlgmr.msra.gmra.mrb[8].mxu1 %v10904_v39  ;;  %7831 = vmatpush1.bf16.msra.mxu0 %v7830_v61  ;;  %v2216_v61 = vld [vmem:[%s16871_s3 + $0x34c0] sm:$0xff]  ;;  %v7856_v2 = vpack.c.bf16 %v2313_v54, %v2297_v13 }
 0x395   :  { %4073 = vmatprep.mubr.f32.mxu0 %v10917_v45  ;;  %8087 = vmatpush1.bf16.msra.mxu1 %v8086_v0  ;;  %v2218_v0 = vld [vmem:[%s16871_s3 + $0x34d0] sm:$0xff]  ;;  %v7846_v7 = vpack.c.bf16 %v2216_v61, %v2200_v15 }
 0x396   :  { %4357 = vmatprep.mubr.f32.mxu1 %v10917_v45  ;;  %7833 = vmatprep.subr.bf16.mxu0 %v7832_v4  ;;  %v2251_v4 = vld [vmem:[%s16871_s3 + $0x35d8] sm:$0xff]  ;;  %v8102_v60 = vpack.c.bf16 %v2218_v0, %v2202_v62  ;;  %v8110_v0 = vpack.c.bf16 %v2282_v53, %v2266_v47  ;;  %v2361_v47 = vld [vmem:[%s16871_s3 + $0x3948] sm:$0xff] }
 0x397   :  { %8089 = vmatprep.subr.bf16.mxu1 %v8088_v8  ;;  %v2232_v8 = vld [vmem:[%s16871_s3 + $0x3540] sm:$0xff] }
 0x398   :  { %7835 = vmatpush1.bf16.msra.mxu0 %v7834_v12  ;;  %v8104_v12 = vpack.c.bf16 %v2251_v4, %v2235_v3  ;;  %v7850_v27 = vpack.c.bf16 %v2248_v31, %v2232_v8  ;;  %v2312_v3 = vld [vmem:[%s16871_s3 + $0x37c0] sm:$0xff]  ;;  %v2298_v4 = vld [vmem:[%s16871_s3 + $0x3750] sm:$0xff]  ;;  %v2329_v31 = vld [vmem:[%s16871_s3 + $0x3848] sm:$0xff] }
 0x399   :  { %8091 = vmatpush1.bf16.msra.mxu1 %v8090_v18  ;;  %7837 = vmatprep.subr.bf16.mxu0 %v7836_v19  ;;  %v2250_v18 = vld [vmem:[%s16871_s3 + $0x35d0] sm:$0xff]  ;;  %v2265_v19 = vld [vmem:[%s16871_s3 + $0x3648] sm:$0xff] }
 0x39a   :  { %8093 = vmatprep.subr.bf16.mxu1 %v8092_v1  ;;  %v9119_v1 = vld [vmem:[#allocation3] sm:$0xff]  ;;  %v8106_v29 = vpack.c.bf16 %v2250_v18, %v2234_v11  ;;  %v2314_v8 = vld [vmem:[%s16871_s3 + $0x37d0] sm:$0xff]  ;;  %v2331_v18 = vld [vmem:[%s16871_s3 + $0x3858] sm:$0xff] }
 0x39b   :  { %v2607_v24 = vrot.slane %v9119_v1, %v11201_v46  ;;  %v2603_v25 = vrot.slane %v9119_v1, %v10398_v35  ;;  %v2611_v28 = vrot.slane %v9119_v1, %v10803_v32  ;;  %v2599_v49 = vrot.slane %v9119_v1, %v10791_v26  ;;  %v2345_v11 = vld [vmem:[%s16871_s3 + $0x38c8] sm:$0xff] }
 0x39c   :  { %7839 = vmatpush1.bf16.msra.mxu0 %v7838_v36  ;;  %v7852_v36 = vpack.c.bf16 %v2281_v20, %v2265_v19  ;;  %v2347_v19 = vld [vmem:[%s16871_s3 + $0x38d8] sm:$0xff] }
 0x39d   :  { %8095 = vmatpush1.bf16.msra.mxu1 %v8094_v40  ;;  %7841 = vmatprep.subr.bf16.mxu0 %v7840_v43  ;;  %v2264_v40 = vld [vmem:[%s16871_s3 + $0x3640] sm:$0xff] }
 0x39e   :  { %8097 = vmatprep.subr.bf16.mxu1 %v8096_v51  ;;  %v2280_v43 = vld [vmem:[%s16871_s3 + $0x36c0] sm:$0xff]  ;;  %v8108_v51 = vpack.c.bf16 %v2283_v23, %v2267_v22  ;;  %v7858_v23 = vpack.c.bf16 %v2312_v3, %v2296_v48 }
 0x39f   :  { %v7854_v62 = vpack.c.bf16 %v2280_v43, %v2264_v40  ;;  %v8116_v40 = vpack.c.bf16 %v2347_v19, %v2331_v18  ;;  %v2346_v43 = vld [vmem:[%s16871_s3 + $0x38d0] sm:$0xff]  ;;  %v2392_v3 = vld [vmem:[%s16871_s3 + $0x3a40] sm:$0xff] }
 0x3a0   :  { %7843 = vmatpush1.bf16.msra.mxu0 %v7842_v57  ;;  %v2299_v57 = vld [vmem:[%s16871_s3 + $0x3758] sm:$0xff] }
 0x3a1   :  { %8099 = vmatpush1.bf16.msra.mxu1 %v8098_v58  ;;  %7845 = vmatprep.subr.bf16.mxu0 %v7844_v59  ;;  %v2315_v58 = vld [vmem:[%s16871_s3 + $0x37d8] sm:$0xff] }
 0x3a2   :  { %8101 = vmatprep.subr.bf16.mxu1 %v8100_v63 }
 0x3a4   :  { %7847 = vmatpush1.bf16.msra.mxu0 %v7846_v7 }
 0x3a5   :  { %8103 = vmatpush1.bf16.msra.mxu1 %v8102_v60  ;;  %7849 = vmatprep.subr.bf16.mxu0 %v7848_v6  ;;  %v8112_v6 = vpack.c.bf16 %v2315_v58, %v2299_v57  ;;  %v2362_v57 = vld [vmem:[%s16871_s3 + $0x3950] sm:$0xff] }
 0x3a6   :  { %v3507_v50 = vpop.f32.mrb[6].mxu0  ;;  %8105 = vmatprep.subr.bf16.mxu1 %v8104_v12 }
 0x3a7   :  { %v3791_v55 = vpop.f32.mrb[6].mxu1  ;;  %v3509_v56 = vpop.f32.mrb[7].mxu0  ;;  %v8904_v7 = vadd.f32 %v3507_v50, %v2599_v49  ;;  %v2377_v49 = vld [vmem:[%s16871_s3 + $0x39c8] sm:$0xff]  ;;  %v2363_v50 = vld [vmem:[%s16871_s3 + $0x3958] sm:$0xff] }
 0x3a8   :  { %v8906_v59 = vadd.f32 %v3791_v55, %v2607_v24  ;;  %v8905_v15 = vadd.f32 %v3509_v56, %v2603_v25  ;;  %v3793_v61 = vpop.f32.mrb[7].mxu1  ;;  %7851 = vmatpush1.bf16.msra.mxu0 %v7850_v27  ;;  %v8114_v24 = vpack.c.bf16 %v2314_v8, %v2298_v4  ;;  %v7860_v25 = vpack.c.bf16 %v2345_v11, %v2329_v31  ;;  %v2328_v27 = vld [vmem:[%s16871_s3 + $0x3840] sm:$0xff]  ;;  %v2425_v8 = vld [vmem:[%s16871_s3 + $0x3b48] sm:$0xff]  ;;  %v2427_v11 = vld [vmem:[%s16871_s3 + $0x3b58] sm:$0xff] }
 0x3a9   :  { %v8907_v63 = vadd.f32 %v3793_v61, %v2611_v28  ;;  %8107 = vmatpush1.bf16.msra.mxu1 %v8106_v29  ;;  %7853 = vmatprep.subr.bf16.mxu0 %v7852_v36  ;;  %v2344_v28 = vld [vmem:[%s16871_s3 + $0x38c0] sm:$0xff]  ;;  %v2330_v29 = vld [vmem:[%s16871_s3 + $0x3850] sm:$0xff]  ;;  %v7864_v54 = vpack.c.bf16 %v2377_v49, %v2361_v47  ;;  %v2409_v61 = vld [vmem:[%s16871_s3 + $0x3ac8] sm:$0xff] }
 0x3aa   :  { %v4942_v60 = vrot.slane %v8905_v15, 6  ;;  %8109 = vmatprep.subr.bf16.mxu1 %v8108_v51  ;;  %v4945_v12 = vrot.slane %v8906_v59, 4  ;;  %v2379_v51 = vld [vmem:[%s16871_s3 + $0x39d8] sm:$0xff]  ;;  %v7862_v53 = vpack.c.bf16 %v2344_v28, %v2328_v27  ;;  %v8118_v13 = vpack.c.bf16 %v2346_v43, %v2330_v29  ;;  %v2360_v55 = vld [vmem:[%s16871_s3 + $0x3940] sm:$0xff]  ;;  %v2378_v59 = vld [vmem:[%s16871_s3 + $0x39d0] sm:$0xff] }
 0x3ab   :  { %v4948_v22 = vrot.slane %v8907_v63, 2  ;;  %v2376_v56 = vld [vmem:[%s16871_s3 + $0x39c0] sm:$0xff]  ;;  %v8120_v58 = vpack.c.bf16 %v2379_v51, %v2363_v50  ;;  %v2393_v15 = vld [vmem:[%s16871_s3 + $0x3a48] sm:$0xff]  ;;  %v2411_v63 = vld [vmem:[%s16871_s3 + $0x3ad8] sm:$0xff] }
 0x3ac   :  { %v4974_v20 = vsel %vm4968_vm8, %v8904_v7, %v4942_v60  ;;  %7855 = vmatpush1.bf16.msra.mxu0 %v7854_v62  ;;  %v2395_v62 = vld [vmem:[%s16871_s3 + $0x3a58] sm:$0xff]  ;;  %v7868_v48 = vpack.c.bf16 %v2409_v61, %v2393_v15  ;;  %v2408_v4 = vld [vmem:[%s16871_s3 + $0x3ac0] sm:$0xff]  ;;  %v2394_v7 = vld [vmem:[%s16871_s3 + $0x3a50] sm:$0xff] }
 0x3ad   :  { %8111 = vmatpush1.bf16.msra.mxu1 %v8110_v0  ;;  %7857 = vmatprep.subr.bf16.mxu0 %v7856_v2  ;;  %v4975_v1 = vsel %vm4970_vm9, %v4974_v20, %v4945_v12  ;;  %v7866_v0 = vpack.c.bf16 %v2376_v56, %v2360_v55  ;;  %v8122_v2 = vpack.c.bf16 %v2378_v59, %v2362_v57  ;;  %v2441_v31 = vld [vmem:[%s16871_s3 + $0x3bc8] sm:$0xff]  ;;  %v2443_v12 = vld [vmem:[%s16871_s3 + $0x3bd8] sm:$0xff]  ;;  %v2456_v49 = vld [vmem:[%s16871_s3 + $0x3c40] sm:$0xff] }
 0x3ae   :  { %8113 = vmatprep.subr.bf16.mxu1 %v8112_v6  ;;  %v4976_v36 = vsel %vm4972_vm10, %v4975_v1, %v4948_v22  ;;  %v8124_v60 = vpack.c.bf16 %v2411_v63, %v2395_v62  ;;  %v2410_v6 = vld [vmem:[%s16871_s3 + $0x3ad0] sm:$0xff]  ;;  %v7870_v18 = vpack.c.bf16 %v2408_v4, %v2392_v3  ;;  %v7872_v20 = vpack.c.bf16 %v2441_v31, %v2425_v8  ;;  %v2424_v22 = vld [vmem:[%s16871_s3 + $0x3b40] sm:$0xff]  ;;  %v2457_v27 = vld [vmem:[%s16871_s3 + $0x3c48] sm:$0xff] }
 0x3af   :  { %4989 = vrot.lane.b32.xlu0 %v4976_v36, %s9146_s16  ;;  %v8126_v19 = vpack.c.bf16 %v2410_v6, %v2394_v7  ;;  %v2426_v1 = vld [vmem:[%s16871_s3 + $0x3b50] sm:$0xff]  ;;  %v2473_v28 = vld [vmem:[%s16871_s3 + $0x3cc8] sm:$0xff]  ;;  %v2459_v29 = vld [vmem:[%s16871_s3 + $0x3c58] sm:$0xff] }
 0x3b0   :  { %7859 = vmatpush1.bf16.msra.mxu0 %v7858_v23  ;;  %v2440_v23 = vld [vmem:[%s16871_s3 + $0x3bc0] sm:$0xff]  ;;  %v2475_v36 = vld [vmem:[%s16871_s3 + $0x3cd8] sm:$0xff]  ;;  %v7876_v47 = vpack.c.bf16 %v2473_v28, %v2457_v27  ;;  %v2458_v51 = vld [vmem:[%s16871_s3 + $0x3c50] sm:$0xff] }
 0x3b1   :  { %8115 = vmatpush1.bf16.msra.mxu1 %v8114_v24  ;;  %7861 = vmatprep.subr.bf16.mxu0 %v7860_v25  ;;  %v8128_v24 = vpack.c.bf16 %v2443_v12, %v2427_v11  ;;  %v2442_v25 = vld [vmem:[%s16871_s3 + $0x3bd0] sm:$0xff]  ;;  %v2472_v50 = vld [vmem:[%s16871_s3 + $0x3cc0] sm:$0xff]  ;;  %v2505_v55 = vld [vmem:[%s16871_s3 + $0x3dc8] sm:$0xff] }
 0x3b2   :  { %8117 = vmatprep.subr.bf16.mxu1 %v8116_v40  ;;  %v7874_v40 = vpack.c.bf16 %v2440_v23, %v2424_v22  ;;  %v8130_v43 = vpack.c.bf16 %v2442_v25, %v2426_v1  ;;  %v2491_v56 = vld [vmem:[%s16871_s3 + $0x3d58] sm:$0xff]  ;;  %v2488_v61 = vld [vmem:[%s16871_s3 + $0x3d40] sm:$0xff]  ;;  %v2490_v63 = vld [vmem:[%s16871_s3 + $0x3d50] sm:$0xff] }
 0x3b3   :  { %8972 = vrot.lane.b32.xlu0 %v13403_v33, %s9147_s9  ;;  %v2507_v57 = vld [vmem:[%s16871_s3 + $0x3dd8] sm:$0xff]  ;;  %v2504_v62 = vld [vmem:[%s16871_s3 + $0x3dc0] sm:$0xff]  ;;  %v2537_v3 = vld [vmem:[%s16871_s3 + $0x3ec8] sm:$0xff] }
 0x3b4   :  { %7863 = vmatpush1.bf16.msra.mxu0 %v7862_v53  ;;  %v8132_v53 = vpack.c.bf16 %v2475_v36, %v2459_v29  ;;  %v2523_v4 = vld [vmem:[%s16871_s3 + $0x3e58] sm:$0xff]  ;;  %v2520_v31 = vld [vmem:[%s16871_s3 + $0x3e40] sm:$0xff]  ;;  %v2522_v12 = vld [vmem:[%s16871_s3 + $0x3e50] sm:$0xff] }
 0x3b5   :  { %8119 = vmatpush1.bf16.msra.mxu1 %v8118_v13  ;;  %7865 = vmatprep.subr.bf16.mxu0 %v7864_v54  ;;  %v2474_v13 = vld [vmem:[%s16871_s3 + $0x3cd0] sm:$0xff]  ;;  %v2489_v54 = vld [vmem:[%s16871_s3 + $0x3d48] sm:$0xff]  ;;  %v2539_v7 = vld [vmem:[%s16871_s3 + $0x3ed8] sm:$0xff] }
 0x3b6   :  { %8121 = vmatprep.subr.bf16.mxu1 %v8120_v58  ;;  %v7878_v58 = vpack.c.bf16 %v2472_v50, %v2456_v49  ;;  %v8134_v59 = vpack.c.bf16 %v2474_v13, %v2458_v51  ;;  %v7880_v15 = vpack.c.bf16 %v2505_v55, %v2489_v54  ;;  %v2536_v11 = vld [vmem:[%s16871_s3 + $0x3ec0] sm:$0xff]  ;;  %v2569_v22 = vld [vmem:[%s16871_s3 + $0x3fc8] sm:$0xff]  ;;  %v2555_v23 = vld [vmem:[%s16871_s3 + $0x3f58] sm:$0xff] }
 0x3b7   :  { %v2571_v1 = vld [vmem:[%s16871_s3 + $0x3fd8] sm:$0xff]  ;;  %v2552_v28 = vld [vmem:[%s16871_s3 + $0x3f40] sm:$0xff]  ;;  %v2554_v36 = vld [vmem:[%s16871_s3 + $0x3f50] sm:$0xff] }
 0x3b8   :  { %7867 = vmatpush1.bf16.msra.mxu0 %v7866_v0  ;;  %v8136_v0 = vpack.c.bf16 %v2507_v57, %v2491_v56  ;;  %v2568_v29 = vld [vmem:[%s16871_s3 + $0x3fc0] sm:$0xff]  ;;  %v557_v49 = vld [vmem:[%s16871_s3 + $0xe8] sm:$0xff]  ;;  %v543_v50 = vld [vmem:[%s16871_s3 + $0x78] sm:$0xff] }
 0x3b9   :  { %8123 = vmatpush1.bf16.msra.mxu1 %v8122_v2  ;;  %7869 = vmatprep.subr.bf16.mxu0 %v7868_v48  ;;  %v2506_v2 = vld [vmem:[%s16871_s3 + $0x3dd0] sm:$0xff]  ;;  %v2521_v48 = vld [vmem:[%s16871_s3 + $0x3e48] sm:$0xff]  ;;  %v559_v51 = vld [vmem:[%s16871_s3 + $0xf8] sm:$0xff] }
 0x3ba   :  { %8125 = vmatprep.subr.bf16.mxu1 %v8124_v60  ;;  %v7882_v60 = vpack.c.bf16 %v2504_v62, %v2488_v61  ;;  %v8138_v6 = vpack.c.bf16 %v2506_v2, %v2490_v63  ;;  %v7884_v8 = vpack.c.bf16 %v2537_v3, %v2521_v48  ;;  %v540_v55 = vld [vmem:[%s16871_s3 + $0x60] sm:$0xff]  ;;  %v8404_v57 = vpack.c.bf16 %v559_v51, %v543_v50  ;;  %v589_v61 = vld [vmem:[%s16871_s3 + $0x1e8] sm:$0xff]  ;;  %v575_v63 = vld [vmem:[%s16871_s3 + $0x178] sm:$0xff] }
 0x3bb   :  { %v556_v56 = vld [vmem:[%s16871_s3 + $0xe0] sm:$0xff]  ;;  %v638_v50 = vld [vmem:[%s16871_s3 + $0x370] sm:$0xff] }
 0x3bc   :  { %7871 = vmatpush1.bf16.msra.mxu0 %v7870_v18  ;;  %v8140_v18 = vpack.c.bf16 %v2539_v7, %v2523_v4  ;;  %v8150_v62 = vpack.c.bf16 %v556_v56, %v540_v55  ;;  %v572_v48 = vld [vmem:[%s16871_s3 + $0x160] sm:$0xff]  ;;  %v574_v4 = vld [vmem:[%s16871_s3 + $0x170] sm:$0xff]  ;;  %v671_v55 = vld [vmem:[%s16871_s3 + $0x478] sm:$0xff] }
 0x3bd   :  { %8127 = vmatpush1.bf16.msra.mxu1 %v8126_v19  ;;  %7873 = vmatprep.subr.bf16.mxu0 %v7872_v20  ;;  %v2538_v19 = vld [vmem:[%s16871_s3 + $0x3ed0] sm:$0xff]  ;;  %v2553_v20 = vld [vmem:[%s16871_s3 + $0x3f48] sm:$0xff]  ;;  %v588_v3 = vld [vmem:[%s16871_s3 + $0x1e0] sm:$0xff] }
 0x3be   :  { %8129 = vmatprep.subr.bf16.mxu1 %v8128_v24  ;;  %v7886_v24 = vpack.c.bf16 %v2536_v11, %v2520_v31  ;;  %v8142_v25 = vpack.c.bf16 %v2538_v19, %v2522_v12  ;;  %v7888_v27 = vpack.c.bf16 %v2569_v22, %v2553_v20  ;;  %v607_v11 = vld [vmem:[%s16871_s3 + $0x278] sm:$0xff]  ;;  %v604_v22 = vld [vmem:[%s16871_s3 + $0x260] sm:$0xff] }
 0x3bf   :  { %v623_v12 = vld [vmem:[%s16871_s3 + $0x2f8] sm:$0xff] }
 0x3c0   :  { %7875 = vmatpush1.bf16.msra.mxu0 %v7874_v40  ;;  %v8144_v40 = vpack.c.bf16 %v2571_v1, %v2555_v23  ;;  %v620_v23 = vld [vmem:[%s16871_s3 + $0x2e0] sm:$0xff]  ;;  %v606_v1 = vld [vmem:[%s16871_s3 + $0x270] sm:$0xff]  ;;  %v687_v56 = vld [vmem:[%s16871_s3 + $0x4f8] sm:$0xff] }
 0x3c1   :  { %8131 = vmatpush1.bf16.msra.mxu1 %v8130_v43  ;;  %7877 = vmatprep.subr.bf16.mxu0 %v7876_v47  ;;  %v2570_v43 = vld [vmem:[%s16871_s3 + $0x3fd0] sm:$0xff]  ;;  %v541_v47 = vld [vmem:[%s16871_s3 + $0x68] sm:$0xff] }
 0x3c2   :  { %8133 = vmatprep.subr.bf16.mxu1 %v8132_v53  ;;  %v7890_v53 = vpack.c.bf16 %v2568_v29, %v2552_v28  ;;  %v8146_v13 = vpack.c.bf16 %v2570_v43, %v2554_v36  ;;  %v8148_v54 = vpack.c.bf16 %v557_v49, %v541_v47  ;;  %v653_v28 = vld [vmem:[%s16871_s3 + $0x3e8] sm:$0xff]  ;;  %v639_v29 = vld [vmem:[%s16871_s3 + $0x378] sm:$0xff]  ;;  %v8158_v36 = vpack.c.bf16 %v620_v23, %v604_v22  ;;  %v636_v47 = vld [vmem:[%s16871_s3 + $0x360] sm:$0xff] }
 0x3c3   :  { %v652_v49 = vld [vmem:[%s16871_s3 + $0x3e0] sm:$0xff]  ;;  %v735_v22 = vld [vmem:[%s16871_s3 + $0x678] sm:$0xff] }
 0x3c4   :  { %7879 = vmatpush1.bf16.msra.mxu0 %v7878_v58  ;;  %v542_v58 = vld [vmem:[%s16871_s3 + $0x70] sm:$0xff]  ;;  %v751_v23 = vld [vmem:[%s16871_s3 + $0x6f8] sm:$0xff] }
 0x3c5   :  { %8135 = vmatpush1.bf16.msra.mxu1 %v8134_v59  ;;  %7881 = vmatprep.subr.bf16.mxu0 %v7880_v15  ;;  %v558_v59 = vld [vmem:[%s16871_s3 + $0xf0] sm:$0xff]  ;;  %v573_v15 = vld [vmem:[%s16871_s3 + $0x168] sm:$0xff] }
 0x3c6   :  { %8137 = vmatprep.subr.bf16.mxu1 %v8136_v0  ;;  %v591_v0 = vld [vmem:[%s16871_s3 + $0x1f8] sm:$0xff]  ;;  %v8406_v2 = vpack.c.bf16 %v558_v59, %v542_v58  ;;  %v8152_v7 = vpack.c.bf16 %v589_v61, %v573_v15  ;;  %v668_v15 = vld [vmem:[%s16871_s3 + $0x460] sm:$0xff] }
 0x3c7   :  { %v8408_v31 = vpack.c.bf16 %v591_v0, %v575_v63  ;;  %v684_v61 = vld [vmem:[%s16871_s3 + $0x4e0] sm:$0xff]  ;;  %v8420_v63 = vpack.c.bf16 %v687_v56, %v671_v55  ;;  %v686_v0 = vld [vmem:[%s16871_s3 + $0x4f0] sm:$0xff] }
 0x3c8   :  { %7883 = vmatpush1.bf16.msra.mxu0 %v7882_v60  ;;  %v590_v60 = vld [vmem:[%s16871_s3 + $0x1f0] sm:$0xff] }
 0x3c9   :  { %8139 = vmatpush1.bf16.msra.mxu1 %v8138_v6  ;;  %7885 = vmatprep.subr.bf16.mxu0 %v7884_v8  ;;  %v605_v6 = vld [vmem:[%s16871_s3 + $0x268] sm:$0xff]  ;;  %v8410_v19 = vpack.c.bf16 %v590_v60, %v574_v4  ;;  %v719_v4 = vld [vmem:[%s16871_s3 + $0x5f8] sm:$0xff]  ;;  %v766_v55 = vld [vmem:[%s16871_s3 + $0x770] sm:$0xff] }
 0x3ca   :  { %8141 = vmatprep.subr.bf16.mxu1 %v8140_v18  ;;  %v621_v8 = vld [vmem:[%s16871_s3 + $0x2e8] sm:$0xff]  ;;  %v8154_v18 = vpack.c.bf16 %v588_v3, %v572_v48  ;;  %v703_v3 = vld [vmem:[%s16871_s3 + $0x578] sm:$0xff] }
 0x3cb   :  { %v8156_v20 = vpack.c.bf16 %v621_v8, %v605_v6  ;;  %v717_v48 = vld [vmem:[%s16871_s3 + $0x5e8] sm:$0xff]  ;;  %v700_v8 = vld [vmem:[%s16871_s3 + $0x560] sm:$0xff] }
 0x3cc   :  { %7887 = vmatpush1.bf16.msra.mxu0 %v7886_v24  ;;  %v8412_v24 = vpack.c.bf16 %v623_v12, %v607_v11  ;;  %v702_v11 = vld [vmem:[%s16871_s3 + $0x570] sm:$0xff]  ;;  %v8424_v12 = vpack.c.bf16 %v719_v4, %v703_v3 }
 0x3cd   :  { %8143 = vmatpush1.bf16.msra.mxu1 %v8142_v25  ;;  %7889 = vmatprep.subr.bf16.mxu0 %v7888_v27  ;;  %v622_v25 = vld [vmem:[%s16871_s3 + $0x2f0] sm:$0xff]  ;;  %v637_v27 = vld [vmem:[%s16871_s3 + $0x368] sm:$0xff] }
 0x3ce   :  { %8145 = vmatprep.subr.bf16.mxu1 %v8144_v40  ;;  %v8414_v40 = vpack.c.bf16 %v622_v25, %v606_v1  ;;  %v8160_v43 = vpack.c.bf16 %v653_v28, %v637_v27  ;;  %v732_v27 = vld [vmem:[%s16871_s3 + $0x660] sm:$0xff]  ;;  %v798_v3 = vld [vmem:[%s16871_s3 + $0x870] sm:$0xff] }
 0x3cf   :  { %v748_v28 = vld [vmem:[%s16871_s3 + $0x6e0] sm:$0xff] }
 0x3d0   :  { %7891 = vmatpush1.bf16.msra.mxu0 %v7890_v53  ;;  %v654_v53 = vld [vmem:[%s16871_s3 + $0x3f0] sm:$0xff] }
 0x3d1   :  { %8147 = vmatpush1.bf16.msra.mxu1 %v8146_v13  ;;  %8149 = vmatprep.subr.bf16.mxu0 %v8148_v54  ;;  %v669_v13 = vld [vmem:[%s16871_s3 + $0x468] sm:$0xff]  ;;  %v8418_v58 = vpack.c.bf16 %v654_v53, %v638_v50  ;;  %v8174_v50 = vpack.c.bf16 %v748_v28, %v732_v27  ;;  %v863_v27 = vld [vmem:[%s16871_s3 + $0xa78] sm:$0xff] }
 0x3d2   :  { %8405 = vmatprep.subr.bf16.mxu1 %v8404_v57  ;;  %v685_v54 = vld [vmem:[%s16871_s3 + $0x4e8] sm:$0xff]  ;;  %v8162_v57 = vpack.c.bf16 %v652_v49, %v636_v47  ;;  %v767_v47 = vld [vmem:[%s16871_s3 + $0x778] sm:$0xff] }
 0x3d3   :  { %4074 = vmatmul.mubr.f32.vlgmr.msra.gmra.mrb[8].mxu0 %v11296_v42  ;;  %v8164_v59 = vpack.c.bf16 %v685_v54, %v669_v13  ;;  %v783_v49 = vld [vmem:[%s16871_s3 + $0x7f8] sm:$0xff]  ;;  %v764_v13 = vld [vmem:[%s16871_s3 + $0x760] sm:$0xff] }
 0x3d4   :  { %4358 = vmatmul.mubr.f32.vlgmr.msra.gmra.mrb[8].mxu1 %v11296_v42  ;;  %8151 = vmatpush1.bf16.msra.mxu0 %v8150_v62  ;;  %v670_v62 = vld [vmem:[%s16871_s3 + $0x470] sm:$0xff]  ;;  %v780_v54 = vld [vmem:[%s16871_s3 + $0x7e0] sm:$0xff]  ;;  %v8432_v56 = vpack.c.bf16 %v783_v49, %v767_v47  ;;  %v879_v28 = vld [vmem:[%s16871_s3 + $0xaf8] sm:$0xff] }
 0x3d5   :  { %4428 = vmatprep.mubr.f32.mxu0 %v10064_v38  ;;  %8407 = vmatpush1.bf16.msra.mxu1 %v8406_v2  ;;  %v701_v2 = vld [vmem:[%s16871_s3 + $0x568] sm:$0xff]  ;;  %v8422_v60 = vpack.c.bf16 %v686_v0, %v670_v62  ;;  %v8178_v62 = vpack.c.bf16 %v780_v54, %v764_v13  ;;  %v862_v47 = vld [vmem:[%s16871_s3 + $0xa70] sm:$0xff]  ;;  %v8444_v49 = vpack.c.bf16 %v879_v28, %v863_v27  ;;  %v895_v13 = vld [vmem:[%s16871_s3 + $0xb78] sm:$0xff] }
 0x3d6   :  { %4712 = vmatprep.mubr.f32.mxu1 %v10064_v38  ;;  %8153 = vmatprep.subr.bf16.mxu0 %v8152_v7  ;;  %v655_v38 = vld [vmem:[%s16871_s3 + $0x3f8] sm:$0xff]  ;;  %v8166_v7 = vpack.c.bf16 %v684_v61, %v668_v15  ;;  %v8168_v6 = vpack.c.bf16 %v717_v48, %v701_v2  ;;  %v796_v2 = vld [vmem:[%s16871_s3 + $0x860] sm:$0xff]  ;;  %v958_v27 = vld [vmem:[%s16871_s3 + $0xd70] sm:$0xff] }
 0x3d7   :  { %8409 = vmatprep.subr.bf16.mxu1 %v8408_v31  ;;  %v8416_v51 = vpack.c.bf16 %v655_v38, %v639_v29  ;;  %v716_v31 = vld [vmem:[%s16871_s3 + $0x5e0] sm:$0xff]  ;;  %v734_v29 = vld [vmem:[%s16871_s3 + $0x670] sm:$0xff]  ;;  %v8428_v38 = vpack.c.bf16 %v751_v23, %v735_v22  ;;  %v799_v15 = vld [vmem:[%s16871_s3 + $0x878] sm:$0xff] }
 0x3d8   :  { %8155 = vmatpush1.bf16.msra.mxu0 %v8154_v18  ;;  %v718_v18 = vld [vmem:[%s16871_s3 + $0x5f0] sm:$0xff]  ;;  %v8170_v1 = vpack.c.bf16 %v716_v31, %v700_v8  ;;  %v815_v61 = vld [vmem:[%s16871_s3 + $0x8f8] sm:$0xff]  ;;  %v812_v48 = vld [vmem:[%s16871_s3 + $0x8e0] sm:$0xff] }
 0x3d9   :  { %8411 = vmatpush1.bf16.msra.mxu1 %v8410_v19  ;;  %8157 = vmatprep.subr.bf16.mxu0 %v8156_v20  ;;  %v733_v19 = vld [vmem:[%s16871_s3 + $0x668] sm:$0xff]  ;;  %v8436_v4 = vpack.c.bf16 %v815_v61, %v799_v15  ;;  %v831_v8 = vld [vmem:[%s16871_s3 + $0x978] sm:$0xff]  ;;  %v830_v22 = vld [vmem:[%s16871_s3 + $0x970] sm:$0xff] }
 0x3da   :  { %8413 = vmatprep.subr.bf16.mxu1 %v8412_v24  ;;  %v749_v20 = vld [vmem:[%s16871_s3 + $0x6e8] sm:$0xff]  ;;  %v8426_v24 = vpack.c.bf16 %v718_v18, %v702_v11  ;;  %v847_v31 = vld [vmem:[%s16871_s3 + $0x9f8] sm:$0xff]  ;;  %v8182_v11 = vpack.c.bf16 %v812_v48, %v796_v2  ;;  %v894_v15 = vld [vmem:[%s16871_s3 + $0xb70] sm:$0xff] }
 0x3db   :  { %v8172_v25 = vpack.c.bf16 %v749_v20, %v733_v19  ;;  %v828_v19 = vld [vmem:[%s16871_s3 + $0x960] sm:$0xff]  ;;  %v8440_v23 = vpack.c.bf16 %v847_v31, %v831_v8  ;;  %v911_v54 = vld [vmem:[%s16871_s3 + $0xbf8] sm:$0xff]  ;;  %v926_v8 = vld [vmem:[%s16871_s3 + $0xc70] sm:$0xff] }
 0x3dc   :  { %8159 = vmatpush1.bf16.msra.mxu0 %v8158_v36  ;;  %v750_v36 = vld [vmem:[%s16871_s3 + $0x6f0] sm:$0xff]  ;;  %v844_v20 = vld [vmem:[%s16871_s3 + $0x9e0] sm:$0xff]  ;;  %v8448_v61 = vpack.c.bf16 %v911_v54, %v895_v13  ;;  %v927_v2 = vld [vmem:[%s16871_s3 + $0xc78] sm:$0xff] }
 0x3dd   :  { %8415 = vmatpush1.bf16.msra.mxu1 %v8414_v40  ;;  %8161 = vmatprep.subr.bf16.mxu0 %v8160_v43  ;;  %v765_v40 = vld [vmem:[%s16871_s3 + $0x768] sm:$0xff]  ;;  %v943_v48 = vld [vmem:[%s16871_s3 + $0xcf8] sm:$0xff]  ;;  %v990_v13 = vld [vmem:[%s16871_s3 + $0xe70] sm:$0xff] }
 0x3de   :  { %8417 = vmatprep.subr.bf16.mxu1 %v8416_v51  ;;  %v781_v43 = vld [vmem:[%s16871_s3 + $0x7e8] sm:$0xff]  ;;  %v8430_v51 = vpack.c.bf16 %v750_v36, %v734_v29  ;;  %v8186_v29 = vpack.c.bf16 %v844_v20, %v828_v19  ;;  %v8452_v31 = vpack.c.bf16 %v943_v48, %v927_v2  ;;  %v959_v19 = vld [vmem:[%s16871_s3 + $0xd78] sm:$0xff]  ;;  %v1022_v2 = vld [vmem:[%s16871_s3 + $0xf70] sm:$0xff] }
 0x3df   :  { %v8176_v53 = vpack.c.bf16 %v781_v43, %v765_v40  ;;  %v860_v40 = vld [vmem:[%s16871_s3 + $0xa60] sm:$0xff]  ;;  %v975_v20 = vld [vmem:[%s16871_s3 + $0xdf8] sm:$0xff] }
 0x3e0   :  { %8163 = vmatpush1.bf16.msra.mxu0 %v8162_v57  ;;  %v782_v57 = vld [vmem:[%s16871_s3 + $0x7f0] sm:$0xff]  ;;  %v876_v43 = vld [vmem:[%s16871_s3 + $0xae0] sm:$0xff]  ;;  %v8456_v28 = vpack.c.bf16 %v975_v20, %v959_v19 }
 0x3e1   :  { %8419 = vmatpush1.bf16.msra.mxu1 %v8418_v58  ;;  %8165 = vmatprep.subr.bf16.mxu0 %v8164_v59  ;;  %v797_v58 = vld [vmem:[%s16871_s3 + $0x868] sm:$0xff]  ;;  %v1054_v20 = vld [vmem:[%s16871_s3 + $0x1070] sm:$0xff] }
 0x3e2   :  { %8421 = vmatprep.subr.bf16.mxu1 %v8420_v63  ;;  %v813_v59 = vld [vmem:[%s16871_s3 + $0x8e8] sm:$0xff]  ;;  %v8434_v63 = vpack.c.bf16 %v782_v57, %v766_v55  ;;  %v8190_v55 = vpack.c.bf16 %v876_v43, %v860_v40  ;;  %v991_v40 = vld [vmem:[%s16871_s3 + $0xe78] sm:$0xff] }
 0x3e3   :  { %v8180_v0 = vpack.c.bf16 %v813_v59, %v797_v58  ;;  %v892_v58 = vld [vmem:[%s16871_s3 + $0xb60] sm:$0xff]  ;;  %v1007_v43 = vld [vmem:[%s16871_s3 + $0xef8] sm:$0xff] }
 0x3e4   :  { %8167 = vmatpush1.bf16.msra.mxu0 %v8166_v7  ;;  %v814_v7 = vld [vmem:[%s16871_s3 + $0x8f0] sm:$0xff]  ;;  %v908_v59 = vld [vmem:[%s16871_s3 + $0xbe0] sm:$0xff]  ;;  %v8460_v54 = vpack.c.bf16 %v1007_v43, %v991_v40 }
 0x3e5   :  { %8423 = vmatpush1.bf16.msra.mxu1 %v8422_v60  ;;  %8169 = vmatprep.subr.bf16.mxu0 %v8168_v6  ;;  %v829_v60 = vld [vmem:[%s16871_s3 + $0x968] sm:$0xff]  ;;  %v1102_v43 = vld [vmem:[%s16871_s3 + $0x11f0] sm:$0xff] }
 0x3e6   :  { %8425 = vmatprep.subr.bf16.mxu1 %v8424_v12  ;;  %v845_v6 = vld [vmem:[%s16871_s3 + $0x9e8] sm:$0xff]  ;;  %v8438_v12 = vpack.c.bf16 %v814_v7, %v798_v3  ;;  %v8194_v3 = vpack.c.bf16 %v908_v59, %v892_v58  ;;  %v1023_v58 = vld [vmem:[%s16871_s3 + $0xf78] sm:$0xff] }
 0x3e7   :  { %v8184_v18 = vpack.c.bf16 %v845_v6, %v829_v60  ;;  %v924_v60 = vld [vmem:[%s16871_s3 + $0xc60] sm:$0xff]  ;;  %v1039_v59 = vld [vmem:[%s16871_s3 + $0xff8] sm:$0xff] }
 0x3e8   :  { %8171 = vmatpush1.bf16.msra.mxu0 %v8170_v1  ;;  %v846_v1 = vld [vmem:[%s16871_s3 + $0x9f0] sm:$0xff]  ;;  %v940_v6 = vld [vmem:[%s16871_s3 + $0xce0] sm:$0xff]  ;;  %v8464_v48 = vpack.c.bf16 %v1039_v59, %v1023_v58 }
 0x3e9   :  { %8427 = vmatpush1.bf16.msra.mxu1 %v8426_v24  ;;  %8173 = vmatprep.subr.bf16.mxu0 %v8172_v25  ;;  %v861_v24 = vld [vmem:[%s16871_s3 + $0xa68] sm:$0xff]  ;;  %v1118_v58 = vld [vmem:[%s16871_s3 + $0x1270] sm:$0xff] }
 0x3ea   :  { %8429 = vmatprep.subr.bf16.mxu1 %v8428_v38  ;;  %v877_v25 = vld [vmem:[%s16871_s3 + $0xae8] sm:$0xff]  ;;  %v8442_v38 = vpack.c.bf16 %v846_v1, %v830_v22  ;;  %v8198_v22 = vpack.c.bf16 %v940_v6, %v924_v60  ;;  %v1055_v60 = vld [vmem:[%s16871_s3 + $0x1078] sm:$0xff]  ;;  %v1134_v59 = vld [vmem:[%s16871_s3 + $0x12f0] sm:$0xff] }
 0x3eb   :  { %v8188_v36 = vpack.c.bf16 %v877_v25, %v861_v24  ;;  %v956_v24 = vld [vmem:[%s16871_s3 + $0xd60] sm:$0xff]  ;;  %v1071_v6 = vld [vmem:[%s16871_s3 + $0x10f8] sm:$0xff] }
 0x3ec   :  { %8175 = vmatpush1.bf16.msra.mxu0 %v8174_v50  ;;  %v878_v50 = vld [vmem:[%s16871_s3 + $0xaf0] sm:$0xff]  ;;  %v972_v25 = vld [vmem:[%s16871_s3 + $0xde0] sm:$0xff]  ;;  %v8468_v19 = vpack.c.bf16 %v1071_v6, %v1055_v60  ;;  %v1181_v6 = vld [vmem:[%s16871_s3 + $0x1468] sm:$0xff] }
 0x3ed   :  { %8431 = vmatpush1.bf16.msra.mxu1 %v8430_v51  ;;  %8177 = vmatprep.subr.bf16.mxu0 %v8176_v53  ;;  %v893_v51 = vld [vmem:[%s16871_s3 + $0xb68] sm:$0xff]  ;;  %v1166_v60 = vld [vmem:[%s16871_s3 + $0x13f0] sm:$0xff] }
 0x3ee   :  { %8433 = vmatprep.subr.bf16.mxu1 %v8432_v56  ;;  %v909_v53 = vld [vmem:[%s16871_s3 + $0xbe8] sm:$0xff]  ;;  %v8446_v56 = vpack.c.bf16 %v878_v50, %v862_v47  ;;  %v8202_v47 = vpack.c.bf16 %v972_v25, %v956_v24  ;;  %v1087_v25 = vld [vmem:[%s16871_s3 + $0x1178] sm:$0xff] }
 0x3ef   :  { %v8192_v57 = vpack.c.bf16 %v909_v53, %v893_v51  ;;  %v988_v51 = vld [vmem:[%s16871_s3 + $0xe60] sm:$0xff] }
 0x3f0   :  { %8179 = vmatpush1.bf16.msra.mxu0 %v8178_v62  ;;  %v910_v62 = vld [vmem:[%s16871_s3 + $0xbf0] sm:$0xff]  ;;  %v1004_v53 = vld [vmem:[%s16871_s3 + $0xee0] sm:$0xff] }
 0x3f1   :  { %8435 = vmatpush1.bf16.msra.mxu1 %v8434_v63  ;;  %8181 = vmatprep.subr.bf16.mxu0 %v8180_v0  ;;  %v925_v63 = vld [vmem:[%s16871_s3 + $0xc68] sm:$0xff] }
 0x3f2   :  { %8437 = vmatprep.subr.bf16.mxu1 %v8436_v4  ;;  %v941_v0 = vld [vmem:[%s16871_s3 + $0xce8] sm:$0xff]  ;;  %v8450_v4 = vpack.c.bf16 %v910_v62, %v894_v15  ;;  %v8206_v15 = vpack.c.bf16 %v1004_v53, %v988_v51  ;;  %v1119_v51 = vld [vmem:[%s16871_s3 + $0x1278] sm:$0xff] }
 0x3f3   :  { %v8196_v7 = vpack.c.bf16 %v941_v0, %v925_v63  ;;  %v1020_v63 = vld [vmem:[%s16871_s3 + $0xf60] sm:$0xff]  ;;  %v1135_v53 = vld [vmem:[%s16871_s3 + $0x12f8] sm:$0xff] }
 0x3f4   :  { %8183 = vmatpush1.bf16.msra.mxu0 %v8182_v11  ;;  %v942_v11 = vld [vmem:[%s16871_s3 + $0xcf0] sm:$0xff]  ;;  %v1036_v0 = vld [vmem:[%s16871_s3 + $0xfe0] sm:$0xff] }
 0x3f5   :  { %8439 = vmatpush1.bf16.msra.mxu1 %v8438_v12  ;;  %8185 = vmatprep.subr.bf16.mxu0 %v8184_v18  ;;  %v957_v12 = vld [vmem:[%s16871_s3 + $0xd68] sm:$0xff] }
 0x3f6   :  { %8441 = vmatprep.subr.bf16.mxu1 %v8440_v23  ;;  %v973_v18 = vld [vmem:[%s16871_s3 + $0xde8] sm:$0xff]  ;;  %v8454_v23 = vpack.c.bf16 %v942_v11, %v926_v8  ;;  %v8210_v8 = vpack.c.bf16 %v1036_v0, %v1020_v63  ;;  %v8478_v0 = vpack.c.bf16 %v1134_v59, %v1118_v58  ;;  %v1260_v59 = vld [vmem:[%s16871_s3 + $0x16e0] sm:$0xff] }
 0x3f7   :  { %v8200_v1 = vpack.c.bf16 %v973_v18, %v957_v12  ;;  %v1052_v12 = vld [vmem:[%s16871_s3 + $0x1060] sm:$0xff] }
 0x3f8   :  { %8187 = vmatpush1.bf16.msra.mxu0 %v8186_v29  ;;  %v974_v29 = vld [vmem:[%s16871_s3 + $0xdf0] sm:$0xff]  ;;  %v1068_v18 = vld [vmem:[%s16871_s3 + $0x10e0] sm:$0xff] }
 0x3f9   :  { %8443 = vmatpush1.bf16.msra.mxu1 %v8442_v38  ;;  %8189 = vmatprep.subr.bf16.mxu0 %v8188_v36  ;;  %v989_v38 = vld [vmem:[%s16871_s3 + $0xe68] sm:$0xff]  ;;  %v8214_v24 = vpack.c.bf16 %v1068_v18, %v1052_v12 }
 0x3fa   :  { %8445 = vmatprep.subr.bf16.mxu1 %v8444_v49  ;;  %v1005_v36 = vld [vmem:[%s16871_s3 + $0xee8] sm:$0xff]  ;;  %v8458_v49 = vpack.c.bf16 %v974_v29, %v958_v27  ;;  %v1103_v27 = vld [vmem:[%s16871_s3 + $0x11f8] sm:$0xff]  ;;  %v1084_v29 = vld [vmem:[%s16871_s3 + $0x1160] sm:$0xff] }
 0x3fb   :  { %v8204_v50 = vpack.c.bf16 %v1005_v36, %v989_v38  ;;  %v1100_v38 = vld [vmem:[%s16871_s3 + $0x11e0] sm:$0xff]  ;;  %v1086_v36 = vld [vmem:[%s16871_s3 + $0x1170] sm:$0xff] }
 0x3fc   :  { %8191 = vmatpush1.bf16.msra.mxu0 %v8190_v55  ;;  %v1006_v55 = vld [vmem:[%s16871_s3 + $0xef0] sm:$0xff] }
 0x3fd   :  { %8447 = vmatpush1.bf16.msra.mxu1 %v8446_v56  ;;  %8193 = vmatprep.subr.bf16.mxu0 %v8192_v57  ;;  %v1021_v56 = vld [vmem:[%s16871_s3 + $0xf68] sm:$0xff] }
 0x3fe   :  { %8449 = vmatprep.subr.bf16.mxu1 %v8448_v61  ;;  %v1037_v57 = vld [vmem:[%s16871_s3 + $0xfe8] sm:$0xff]  ;;  %v8462_v61 = vpack.c.bf16 %v1006_v55, %v990_v13  ;;  %v8218_v13 = vpack.c.bf16 %v1100_v38, %v1084_v29  ;;  %v1231_v29 = vld [vmem:[%s16871_s3 + $0x15f8] sm:$0xff] }
 0x3ff   :  { %v8208_v62 = vpack.c.bf16 %v1037_v57, %v1021_v56  ;;  %v1116_v56 = vld [vmem:[%s16871_s3 + $0x1260] sm:$0xff] }
 0x400   :  { %8195 = vmatpush1.bf16.msra.mxu0 %v8194_v3  ;;  %v1038_v3 = vld [vmem:[%s16871_s3 + $0xff0] sm:$0xff]  ;;  %v1132_v57 = vld [vmem:[%s16871_s3 + $0x12e0] sm:$0xff] }
 0x401   :  { %8451 = vmatpush1.bf16.msra.mxu1 %v8450_v4  ;;  %8197 = vmatprep.subr.bf16.mxu0 %v8196_v7  ;;  %v1053_v4 = vld [vmem:[%s16871_s3 + $0x1068] sm:$0xff]  ;;  %v8222_v63 = vpack.c.bf16 %v1132_v57, %v1116_v56 }
 0x402   :  { %8453 = vmatprep.subr.bf16.mxu1 %v8452_v31  ;;  %v1069_v7 = vld [vmem:[%s16871_s3 + $0x10e8] sm:$0xff]  ;;  %v8466_v31 = vpack.c.bf16 %v1038_v3, %v1022_v2  ;;  %v1164_v3 = vld [vmem:[%s16871_s3 + $0x13e0] sm:$0xff] }
 0x403   :  { %v8212_v11 = vpack.c.bf16 %v1069_v7, %v1053_v4  ;;  %v1150_v4 = vld [vmem:[%s16871_s3 + $0x1370] sm:$0xff] }
 0x404   :  { %8199 = vmatpush1.bf16.msra.mxu0 %v8198_v22  ;;  %v1070_v22 = vld [vmem:[%s16871_s3 + $0x10f0] sm:$0xff]  ;;  %v8482_v18 = vpack.c.bf16 %v1166_v60, %v1150_v4  ;;  %v1292_v60 = vld [vmem:[%s16871_s3 + $0x17e0] sm:$0xff] }
 0x405   :  { %8455 = vmatpush1.bf16.msra.mxu1 %v8454_v23  ;;  %8201 = vmatprep.subr.bf16.mxu0 %v8200_v1  ;;  %v1085_v23 = vld [vmem:[%s16871_s3 + $0x1168] sm:$0xff] }
 0x406   :  { %8457 = vmatprep.subr.bf16.mxu1 %v8456_v28  ;;  %v1101_v1 = vld [vmem:[%s16871_s3 + $0x11e8] sm:$0xff]  ;;  %v8470_v28 = vpack.c.bf16 %v1070_v22, %v1054_v20  ;;  %v1180_v20 = vld [vmem:[%s16871_s3 + $0x1460] sm:$0xff] }
 0x407   :  { %v8216_v40 = vpack.c.bf16 %v1101_v1, %v1085_v23  ;;  %v1196_v22 = vld [vmem:[%s16871_s3 + $0x14e0] sm:$0xff]  ;;  %v1182_v23 = vld [vmem:[%s16871_s3 + $0x1470] sm:$0xff] }
 0x408   :  { %8203 = vmatpush1.bf16.msra.mxu0 %v8202_v47  ;;  %v1117_v47 = vld [vmem:[%s16871_s3 + $0x1268] sm:$0xff]  ;;  %v8230_v38 = vpack.c.bf16 %v1196_v22, %v1180_v20 }
 0x409   :  { %8459 = vmatpush1.bf16.msra.mxu1 %v8458_v49  ;;  %8205 = vmatprep.subr.bf16.mxu0 %v8204_v50  ;;  %v1133_v49 = vld [vmem:[%s16871_s3 + $0x12e8] sm:$0xff]  ;;  %v8472_v50 = vpack.c.bf16 %v1103_v27, %v1087_v25 }
 0x40a   :  { %8461 = vmatprep.subr.bf16.mxu1 %v8460_v54  ;;  %v8474_v54 = vpack.c.bf16 %v1102_v43, %v1086_v36  ;;  %v8220_v55 = vpack.c.bf16 %v1133_v49, %v1117_v47  ;;  %v1213_v25 = vld [vmem:[%s16871_s3 + $0x1568] sm:$0xff]  ;;  %v1212_v43 = vld [vmem:[%s16871_s3 + $0x1560] sm:$0xff]  ;;  %v1214_v49 = vld [vmem:[%s16871_s3 + $0x1570] sm:$0xff] }
 0x40b   :  { %v1229_v27 = vld [vmem:[%s16871_s3 + $0x15e8] sm:$0xff]  ;;  %v1228_v47 = vld [vmem:[%s16871_s3 + $0x15e0] sm:$0xff] }
 0x40c   :  { %8207 = vmatpush1.bf16.msra.mxu0 %v8206_v15  ;;  %v1149_v15 = vld [vmem:[%s16871_s3 + $0x1368] sm:$0xff]  ;;  %v8234_v56 = vpack.c.bf16 %v1228_v47, %v1212_v43 }
 0x40d   :  { %8463 = vmatpush1.bf16.msra.mxu1 %v8462_v61  ;;  %8209 = vmatprep.subr.bf16.mxu0 %v8208_v62  ;;  %v1165_v61 = vld [vmem:[%s16871_s3 + $0x13e8] sm:$0xff]  ;;  %v1151_v62 = vld [vmem:[%s16871_s3 + $0x1378] sm:$0xff] }
 0x40e   :  { %8465 = vmatprep.subr.bf16.mxu1 %v8464_v48  ;;  %v8224_v2 = vpack.c.bf16 %v1165_v61, %v1149_v15  ;;  %v1148_v48 = vld [vmem:[%s16871_s3 + $0x1360] sm:$0xff]  ;;  %v1246_v15 = vld [vmem:[%s16871_s3 + $0x1670] sm:$0xff] }
 0x40f   :  { %v8226_v12 = vpack.c.bf16 %v1164_v3, %v1148_v48 }
 0x410   :  { %8211 = vmatpush1.bf16.msra.mxu0 %v8210_v8  ;;  %v1197_v8 = vld [vmem:[%s16871_s3 + $0x14e8] sm:$0xff] }
 0x411   :  { %8467 = vmatpush1.bf16.msra.mxu1 %v8466_v31  ;;  %8213 = vmatprep.subr.bf16.mxu0 %v8212_v11  ;;  %v1183_v31 = vld [vmem:[%s16871_s3 + $0x1478] sm:$0xff] }
 0x412   :  { %8469 = vmatprep.subr.bf16.mxu1 %v8468_v19  ;;  %v1199_v11 = vld [vmem:[%s16871_s3 + $0x14f8] sm:$0xff]  ;;  %v8228_v19 = vpack.c.bf16 %v1197_v8, %v1181_v6  ;;  %v1278_v6 = vld [vmem:[%s16871_s3 + $0x1770] sm:$0xff] }
 0x413   :  { %4429 = vmatmul.mubr.f32.vlgmr.msra.gmra.mrb[10].mxu0 %v10075_v44  ;;  %v8484_v1 = vpack.c.bf16 %v1199_v11, %v1183_v31  ;;  %v1294_v31 = vld [vmem:[%s16871_s3 + $0x17f0] sm:$0xff]  ;;  %v1309_v11 = vld [vmem:[%s16871_s3 + $0x1868] sm:$0xff] }
 0x414   :  { %4713 = vmatmul.mubr.f32.vlgmr.msra.gmra.mrb[10].mxu1 %v10075_v44  ;;  %8215 = vmatpush1.bf16.msra.mxu0 %v8214_v24  ;;  %v8476_v44 = vpack.c.bf16 %v1135_v53, %v1119_v51  ;;  %v1198_v24 = vld [vmem:[%s16871_s3 + $0x14f0] sm:$0xff]  ;;  %v1245_v53 = vld [vmem:[%s16871_s3 + $0x1668] sm:$0xff]  ;;  %v8498_v22 = vpack.c.bf16 %v1294_v31, %v1278_v6  ;;  %v1420_v31 = vld [vmem:[%s16871_s3 + $0x1be0] sm:$0xff] }
 0x415   :  { %4499 = vmatprep.mubr.f32.mxu0 %v10148_v21  ;;  %8471 = vmatpush1.bf16.msra.mxu1 %v8470_v28  ;;  %v1215_v28 = vld [vmem:[%s16871_s3 + $0x1578] sm:$0xff]  ;;  %v8486_v36 = vpack.c.bf16 %v1198_v24, %v1182_v23  ;;  %v1230_v51 = vld [vmem:[%s16871_s3 + $0x15f0] sm:$0xff]  ;;  %v1324_v24 = vld [vmem:[%s16871_s3 + $0x18e0] sm:$0xff] }
 0x416   :  { %4783 = vmatprep.mubr.f32.mxu1 %v10148_v21  ;;  %8217 = vmatprep.subr.bf16.mxu0 %v8216_v40  ;;  %v1167_v21 = vld [vmem:[%s16871_s3 + $0x13f8] sm:$0xff]  ;;  %v8232_v40 = vpack.c.bf16 %v1229_v27, %v1213_v25  ;;  %v8490_v57 = vpack.c.bf16 %v1230_v51, %v1214_v49  ;;  %v1310_v25 = vld [vmem:[%s16871_s3 + $0x1870] sm:$0xff]  ;;  %v1356_v51 = vld [vmem:[%s16871_s3 + $0x19e0] sm:$0xff] }
 0x417   :  { %8473 = vmatprep.subr.bf16.mxu1 %v8472_v50  ;;  %v8480_v7 = vpack.c.bf16 %v1167_v21, %v1151_v62  ;;  %v8488_v50 = vpack.c.bf16 %v1231_v29, %v1215_v28  ;;  %v1262_v62 = vld [vmem:[%s16871_s3 + $0x16f0] sm:$0xff]  ;;  %v1277_v21 = vld [vmem:[%s16871_s3 + $0x1768] sm:$0xff] }
 0x418   :  { %8219 = vmatpush1.bf16.msra.mxu0 %v8218_v13  ;;  %v1261_v13 = vld [vmem:[%s16871_s3 + $0x16e8] sm:$0xff]  ;;  %v8494_v3 = vpack.c.bf16 %v1262_v62, %v1246_v15  ;;  %v1326_v28 = vld [vmem:[%s16871_s3 + $0x18f0] sm:$0xff]  ;;  %v1388_v62 = vld [vmem:[%s16871_s3 + $0x1ae0] sm:$0xff] }
 0x419   :  { %8475 = vmatpush1.bf16.msra.mxu1 %v8474_v54  ;;  %8221 = vmatprep.subr.bf16.mxu0 %v8220_v55  ;;  %v1247_v54 = vld [vmem:[%s16871_s3 + $0x1678] sm:$0xff]  ;;  %v8236_v58 = vpack.c.bf16 %v1261_v13, %v1245_v53  ;;  %v1341_v29 = vld [vmem:[%s16871_s3 + $0x1968] sm:$0xff]  ;;  %v8502_v47 = vpack.c.bf16 %v1326_v28, %v1310_v25  ;;  %v1342_v53 = vld [vmem:[%s16871_s3 + $0x1970] sm:$0xff] }
 0x41a   :  { %8477 = vmatprep.subr.bf16.mxu1 %v8476_v44  ;;  %v1263_v55 = vld [vmem:[%s16871_s3 + $0x16f8] sm:$0xff]  ;;  %v1244_v44 = vld [vmem:[%s16871_s3 + $0x1660] sm:$0xff] }
 0x41b   :  { %v8492_v61 = vpack.c.bf16 %v1263_v55, %v1247_v54  ;;  %v8238_v48 = vpack.c.bf16 %v1260_v59, %v1244_v44  ;;  %v1358_v54 = vld [vmem:[%s16871_s3 + $0x19f0] sm:$0xff]  ;;  %v1373_v55 = vld [vmem:[%s16871_s3 + $0x1a68] sm:$0xff]  ;;  %v1452_v28 = vld [vmem:[%s16871_s3 + $0x1ce0] sm:$0xff] }
 0x41c   :  { %8223 = vmatpush1.bf16.msra.mxu0 %v8222_v63  ;;  %v1293_v63 = vld [vmem:[%s16871_s3 + $0x17e8] sm:$0xff]  ;;  %v8506_v59 = vpack.c.bf16 %v1358_v54, %v1342_v53  ;;  %v1484_v54 = vld [vmem:[%s16871_s3 + $0x1de0] sm:$0xff] }
 0x41d   :  { %8479 = vmatpush1.bf16.msra.mxu1 %v8478_v0  ;;  %8225 = vmatprep.subr.bf16.mxu0 %v8224_v2  ;;  %v1279_v0 = vld [vmem:[%s16871_s3 + $0x1778] sm:$0xff]  ;;  %v8240_v4 = vpack.c.bf16 %v1293_v63, %v1277_v21  ;;  %v1374_v21 = vld [vmem:[%s16871_s3 + $0x1a70] sm:$0xff] }
 0x41e   :  { %8481 = vmatprep.subr.bf16.mxu1 %v8480_v7  ;;  %v1295_v2 = vld [vmem:[%s16871_s3 + $0x17f8] sm:$0xff]  ;;  %v1276_v7 = vld [vmem:[%s16871_s3 + $0x1760] sm:$0xff] }
 0x41f   :  { %v8496_v8 = vpack.c.bf16 %v1295_v2, %v1279_v0  ;;  %v8242_v20 = vpack.c.bf16 %v1292_v60, %v1276_v7  ;;  %v1390_v0 = vld [vmem:[%s16871_s3 + $0x1af0] sm:$0xff]  ;;  %v1405_v2 = vld [vmem:[%s16871_s3 + $0x1b68] sm:$0xff] }
 0x420   :  { %8227 = vmatpush1.bf16.msra.mxu0 %v8226_v12  ;;  %v1325_v12 = vld [vmem:[%s16871_s3 + $0x18e8] sm:$0xff]  ;;  %v8510_v60 = vpack.c.bf16 %v1390_v0, %v1374_v21  ;;  %v1516_v0 = vld [vmem:[%s16871_s3 + $0x1ee0] sm:$0xff] }
 0x421   :  { %8483 = vmatpush1.bf16.msra.mxu1 %v8482_v18  ;;  %8229 = vmatprep.subr.bf16.mxu0 %v8228_v19  ;;  %v1311_v18 = vld [vmem:[%s16871_s3 + $0x1878] sm:$0xff]  ;;  %v8244_v23 = vpack.c.bf16 %v1325_v12, %v1309_v11  ;;  %v1406_v11 = vld [vmem:[%s16871_s3 + $0x1b70] sm:$0xff] }
 0x422   :  { %8485 = vmatprep.subr.bf16.mxu1 %v8484_v1  ;;  %v1327_v19 = vld [vmem:[%s16871_s3 + $0x18f8] sm:$0xff]  ;;  %v1308_v1 = vld [vmem:[%s16871_s3 + $0x1860] sm:$0xff] }
 0x423   :  { %v8500_v27 = vpack.c.bf16 %v1327_v19, %v1311_v18  ;;  %v8246_v43 = vpack.c.bf16 %v1324_v24, %v1308_v1  ;;  %v1422_v18 = vld [vmem:[%s16871_s3 + $0x1bf0] sm:$0xff]  ;;  %v1437_v19 = vld [vmem:[%s16871_s3 + $0x1c68] sm:$0xff] }
 0x424   :  { %8231 = vmatpush1.bf16.msra.mxu0 %v8230_v38  ;;  %v1357_v38 = vld [vmem:[%s16871_s3 + $0x19e8] sm:$0xff]  ;;  %v8514_v24 = vpack.c.bf16 %v1422_v18, %v1406_v11  ;;  %v1548_v18 = vld [vmem:[%s16871_s3 + $0x1fe0] sm:$0xff] }
 0x425   :  { %8487 = vmatpush1.bf16.msra.mxu1 %v8486_v36  ;;  %8233 = vmatprep.subr.bf16.mxu0 %v8232_v40  ;;  %v1343_v36 = vld [vmem:[%s16871_s3 + $0x1978] sm:$0xff]  ;;  %v8248_v49 = vpack.c.bf16 %v1357_v38, %v1341_v29  ;;  %v1438_v29 = vld [vmem:[%s16871_s3 + $0x1c70] sm:$0xff] }
 0x426   :  { %8489 = vmatprep.subr.bf16.mxu1 %v8488_v50  ;;  %v1359_v40 = vld [vmem:[%s16871_s3 + $0x19f8] sm:$0xff]  ;;  %v1340_v50 = vld [vmem:[%s16871_s3 + $0x1960] sm:$0xff] }
 0x427   :  { %v8504_v13 = vpack.c.bf16 %v1359_v40, %v1343_v36  ;;  %v8250_v44 = vpack.c.bf16 %v1356_v51, %v1340_v50  ;;  %v1454_v36 = vld [vmem:[%s16871_s3 + $0x1cf0] sm:$0xff]  ;;  %v1469_v40 = vld [vmem:[%s16871_s3 + $0x1d68] sm:$0xff] }
 0x428   :  { %8235 = vmatpush1.bf16.msra.mxu0 %v8234_v56  ;;  %v1389_v56 = vld [vmem:[%s16871_s3 + $0x1ae8] sm:$0xff]  ;;  %v8518_v51 = vpack.c.bf16 %v1454_v36, %v1438_v29  ;;  %v1580_v36 = vld [vmem:[%s16871_s3 + $0x20e0] sm:$0xff] }
 0x429   :  { %8491 = vmatpush1.bf16.msra.mxu1 %v8490_v57  ;;  %8237 = vmatprep.subr.bf16.mxu0 %v8236_v58  ;;  %v1375_v57 = vld [vmem:[%s16871_s3 + $0x1a78] sm:$0xff]  ;;  %v8252_v15 = vpack.c.bf16 %v1389_v56, %v1373_v55  ;;  %v1470_v55 = vld [vmem:[%s16871_s3 + $0x1d70] sm:$0xff] }
 0x42a   :  { %8493 = vmatprep.subr.bf16.mxu1 %v8492_v61  ;;  %v1391_v58 = vld [vmem:[%s16871_s3 + $0x1af8] sm:$0xff]  ;;  %v1372_v61 = vld [vmem:[%s16871_s3 + $0x1a60] sm:$0xff] }
 0x42b   :  { %v8508_v63 = vpack.c.bf16 %v1391_v58, %v1375_v57  ;;  %v8254_v7 = vpack.c.bf16 %v1388_v62, %v1372_v61  ;;  %v1486_v57 = vld [vmem:[%s16871_s3 + $0x1df0] sm:$0xff]  ;;  %v1501_v58 = vld [vmem:[%s16871_s3 + $0x1e68] sm:$0xff] }
 0x42c   :  { %8239 = vmatpush1.bf16.msra.mxu0 %v8238_v48  ;;  %v1421_v48 = vld [vmem:[%s16871_s3 + $0x1be8] sm:$0xff]  ;;  %v8522_v62 = vpack.c.bf16 %v1486_v57, %v1470_v55  ;;  %v1596_v55 = vld [vmem:[%s16871_s3 + $0x2160] sm:$0xff]  ;;  %v1598_v57 = vld [vmem:[%s16871_s3 + $0x2170] sm:$0xff] }
 0x42d   :  { %8495 = vmatpush1.bf16.msra.mxu1 %v8494_v3  ;;  %8241 = vmatprep.subr.bf16.mxu0 %v8240_v4  ;;  %v1407_v3 = vld [vmem:[%s16871_s3 + $0x1b78] sm:$0xff]  ;;  %v8256_v6 = vpack.c.bf16 %v1421_v48, %v1405_v2  ;;  %v1502_v2 = vld [vmem:[%s16871_s3 + $0x1e70] sm:$0xff] }
 0x42e   :  { %8497 = vmatprep.subr.bf16.mxu1 %v8496_v8  ;;  %v1423_v4 = vld [vmem:[%s16871_s3 + $0x1bf8] sm:$0xff]  ;;  %v1404_v8 = vld [vmem:[%s16871_s3 + $0x1b60] sm:$0xff] }
 0x42f   :  { %v8512_v12 = vpack.c.bf16 %v1423_v4, %v1407_v3  ;;  %v8258_v1 = vpack.c.bf16 %v1420_v31, %v1404_v8  ;;  %v1518_v3 = vld [vmem:[%s16871_s3 + $0x1ef0] sm:$0xff]  ;;  %v1533_v4 = vld [vmem:[%s16871_s3 + $0x1f68] sm:$0xff] }
 0x430   :  { %8243 = vmatpush1.bf16.msra.mxu0 %v8242_v20  ;;  %v1453_v20 = vld [vmem:[%s16871_s3 + $0x1ce8] sm:$0xff]  ;;  %v8526_v31 = vpack.c.bf16 %v1518_v3, %v1502_v2  ;;  %v1644_v3 = vld [vmem:[%s16871_s3 + $0x22e0] sm:$0xff] }
 0x431   :  { %8499 = vmatpush1.bf16.msra.mxu1 %v8498_v22  ;;  %8245 = vmatprep.subr.bf16.mxu0 %v8244_v23  ;;  %v1439_v22 = vld [vmem:[%s16871_s3 + $0x1c78] sm:$0xff]  ;;  %v8260_v25 = vpack.c.bf16 %v1453_v20, %v1437_v19  ;;  %v1534_v19 = vld [vmem:[%s16871_s3 + $0x1f70] sm:$0xff] }
 0x432   :  { %8501 = vmatprep.subr.bf16.mxu1 %v8500_v27  ;;  %v1455_v23 = vld [vmem:[%s16871_s3 + $0x1cf8] sm:$0xff]  ;;  %v1436_v27 = vld [vmem:[%s16871_s3 + $0x1c60] sm:$0xff] }
 0x433   :  { %v8516_v38 = vpack.c.bf16 %v1455_v23, %v1439_v22  ;;  %v8262_v50 = vpack.c.bf16 %v1452_v28, %v1436_v27  ;;  %v1550_v22 = vld [vmem:[%s16871_s3 + $0x1ff0] sm:$0xff]  ;;  %v1565_v23 = vld [vmem:[%s16871_s3 + $0x2068] sm:$0xff] }
 0x434   :  { %8247 = vmatpush1.bf16.msra.mxu0 %v8246_v43  ;;  %v1485_v43 = vld [vmem:[%s16871_s3 + $0x1de8] sm:$0xff]  ;;  %v8530_v28 = vpack.c.bf16 %v1550_v22, %v1534_v19  ;;  %v1676_v19 = vld [vmem:[%s16871_s3 + $0x23e0] sm:$0xff] }
 0x435   :  { %8503 = vmatpush1.bf16.msra.mxu1 %v8502_v47  ;;  %8249 = vmatprep.subr.bf16.mxu0 %v8248_v49  ;;  %v1471_v47 = vld [vmem:[%s16871_s3 + $0x1d78] sm:$0xff]  ;;  %v8264_v53 = vpack.c.bf16 %v1485_v43, %v1469_v40  ;;  %v1566_v43 = vld [vmem:[%s16871_s3 + $0x2070] sm:$0xff] }
 0x436   :  { %8505 = vmatprep.subr.bf16.mxu1 %v8504_v13  ;;  %v1487_v49 = vld [vmem:[%s16871_s3 + $0x1df8] sm:$0xff]  ;;  %v1468_v13 = vld [vmem:[%s16871_s3 + $0x1d60] sm:$0xff] }
 0x437   :  { %v8520_v56 = vpack.c.bf16 %v1487_v49, %v1471_v47  ;;  %v8266_v61 = vpack.c.bf16 %v1484_v54, %v1468_v13  ;;  %v1582_v47 = vld [vmem:[%s16871_s3 + $0x20f0] sm:$0xff]  ;;  %v1597_v49 = vld [vmem:[%s16871_s3 + $0x2168] sm:$0xff]  ;;  %v1615_v13 = vld [vmem:[%s16871_s3 + $0x21f8] sm:$0xff] }
 0x438   :  { %8251 = vmatpush1.bf16.msra.mxu0 %v8250_v44  ;;  %v1517_v44 = vld [vmem:[%s16871_s3 + $0x1ee8] sm:$0xff]  ;;  %v8534_v54 = vpack.c.bf16 %v1582_v47, %v1566_v43  ;;  %v1694_v43 = vld [vmem:[%s16871_s3 + $0x2470] sm:$0xff] }
 0x439   :  { %8507 = vmatpush1.bf16.msra.mxu1 %v8506_v59  ;;  %8253 = vmatprep.subr.bf16.mxu0 %v8252_v15  ;;  %v1503_v59 = vld [vmem:[%s16871_s3 + $0x1e78] sm:$0xff]  ;;  %v8268_v21 = vpack.c.bf16 %v1517_v44, %v1501_v58  ;;  %v1614_v44 = vld [vmem:[%s16871_s3 + $0x21f0] sm:$0xff] }
 0x43a   :  { %8509 = vmatprep.subr.bf16.mxu1 %v8508_v63  ;;  %v1519_v15 = vld [vmem:[%s16871_s3 + $0x1ef8] sm:$0xff]  ;;  %v1500_v63 = vld [vmem:[%s16871_s3 + $0x1e60] sm:$0xff] }
 0x43b   :  { %v8524_v48 = vpack.c.bf16 %v1519_v15, %v1503_v59  ;;  %v8270_v8 = vpack.c.bf16 %v1516_v0, %v1500_v63  ;;  %v1629_v59 = vld [vmem:[%s16871_s3 + $0x2268] sm:$0xff]  ;;  %v8538_v0 = vpack.c.bf16 %v1614_v44, %v1598_v57  ;;  %v1724_v57 = vld [vmem:[%s16871_s3 + $0x2560] sm:$0xff]  ;;  %v1726_v44 = vld [vmem:[%s16871_s3 + $0x2570] sm:$0xff] }
 0x43c   :  { %8255 = vmatpush1.bf16.msra.mxu0 %v8254_v7  ;;  %v1549_v7 = vld [vmem:[%s16871_s3 + $0x1fe8] sm:$0xff] }
 0x43d   :  { %8511 = vmatpush1.bf16.msra.mxu1 %v8510_v60  ;;  %8257 = vmatprep.subr.bf16.mxu0 %v8256_v6  ;;  %v1535_v60 = vld [vmem:[%s16871_s3 + $0x1f78] sm:$0xff]  ;;  %v8272_v11 = vpack.c.bf16 %v1549_v7, %v1533_v4  ;;  %v1645_v15 = vld [vmem:[%s16871_s3 + $0x22e8] sm:$0xff]  ;;  %v1630_v4 = vld [vmem:[%s16871_s3 + $0x2270] sm:$0xff] }
 0x43e   :  { %8513 = vmatprep.subr.bf16.mxu1 %v8512_v12  ;;  %v1551_v6 = vld [vmem:[%s16871_s3 + $0x1ff8] sm:$0xff]  ;;  %v1532_v12 = vld [vmem:[%s16871_s3 + $0x1f60] sm:$0xff]  ;;  %v8284_v2 = vpack.c.bf16 %v1645_v15, %v1629_v59  ;;  %v1646_v7 = vld [vmem:[%s16871_s3 + $0x22f0] sm:$0xff] }
 0x43f   :  { %v8528_v20 = vpack.c.bf16 %v1551_v6, %v1535_v60  ;;  %v8274_v27 = vpack.c.bf16 %v1548_v18, %v1532_v12  ;;  %v1661_v60 = vld [vmem:[%s16871_s3 + $0x2368] sm:$0xff]  ;;  %v1660_v18 = vld [vmem:[%s16871_s3 + $0x2360] sm:$0xff]  ;;  %v1742_v15 = vld [vmem:[%s16871_s3 + $0x25f0] sm:$0xff] }
 0x440   :  { %8259 = vmatpush1.bf16.msra.mxu0 %v8258_v1  ;;  %v1581_v1 = vld [vmem:[%s16871_s3 + $0x20e8] sm:$0xff] }
 0x441   :  { %8515 = vmatpush1.bf16.msra.mxu1 %v8514_v24  ;;  %8261 = vmatprep.subr.bf16.mxu0 %v8260_v25  ;;  %v1567_v24 = vld [vmem:[%s16871_s3 + $0x2078] sm:$0xff]  ;;  %v8276_v29 = vpack.c.bf16 %v1581_v1, %v1565_v23  ;;  %v1677_v6 = vld [vmem:[%s16871_s3 + $0x23e8] sm:$0xff]  ;;  %v1678_v23 = vld [vmem:[%s16871_s3 + $0x23f0] sm:$0xff] }
 0x442   :  { %8517 = vmatprep.subr.bf16.mxu1 %v8516_v38  ;;  %v1583_v25 = vld [vmem:[%s16871_s3 + $0x20f8] sm:$0xff]  ;;  %v1564_v38 = vld [vmem:[%s16871_s3 + $0x2060] sm:$0xff]  ;;  %v8288_v12 = vpack.c.bf16 %v1677_v6, %v1661_v60  ;;  %v1693_v1 = vld [vmem:[%s16871_s3 + $0x2468] sm:$0xff] }
 0x443   :  { %v8532_v40 = vpack.c.bf16 %v1583_v25, %v1567_v24  ;;  %v1709_v24 = vld [vmem:[%s16871_s3 + $0x24e8] sm:$0xff]  ;;  %v1695_v25 = vld [vmem:[%s16871_s3 + $0x2478] sm:$0xff]  ;;  %v1774_v60 = vld [vmem:[%s16871_s3 + $0x26f0] sm:$0xff] }
 0x444   :  { %8263 = vmatpush1.bf16.msra.mxu0 %v8262_v50  ;;  %v1613_v50 = vld [vmem:[%s16871_s3 + $0x21e8] sm:$0xff] }
 0x445   :  { %8519 = vmatpush1.bf16.msra.mxu1 %v8518_v51  ;;  %8265 = vmatprep.subr.bf16.mxu0 %v8264_v53  ;;  %v8278_v51 = vpack.c.bf16 %v1580_v36, %v1564_v38  ;;  %v1599_v53 = vld [vmem:[%s16871_s3 + $0x2178] sm:$0xff]  ;;  %v8280_v58 = vpack.c.bf16 %v1613_v50, %v1597_v49  ;;  %v8292_v38 = vpack.c.bf16 %v1709_v24, %v1693_v1  ;;  %v1692_v36 = vld [vmem:[%s16871_s3 + $0x2460] sm:$0xff]  ;;  %v1710_v49 = vld [vmem:[%s16871_s3 + $0x24f0] sm:$0xff] }
 0x446   :  { %8521 = vmatprep.subr.bf16.mxu1 %v8520_v56  ;;  %v1612_v56 = vld [vmem:[%s16871_s3 + $0x21e0] sm:$0xff]  ;;  %v1725_v50 = vld [vmem:[%s16871_s3 + $0x2568] sm:$0xff]  ;;  %v1806_v1 = vld [vmem:[%s16871_s3 + $0x27f0] sm:$0xff] }
 0x447   :  { %v8282_v63 = vpack.c.bf16 %v1612_v56, %v1596_v55  ;;  %v8550_v55 = vpack.c.bf16 %v1710_v49, %v1694_v43  ;;  %v1789_v6 = vld [vmem:[%s16871_s3 + $0x2768] sm:$0xff]  ;;  %v1836_v43 = vld [vmem:[%s16871_s3 + $0x28e0] sm:$0xff] }
 0x448   :  { %8267 = vmatpush1.bf16.msra.mxu0 %v8266_v61  ;;  %v8536_v61 = vpack.c.bf16 %v1615_v13, %v1599_v53  ;;  %v1727_v53 = vld [vmem:[%s16871_s3 + $0x2578] sm:$0xff]  ;;  %v1821_v24 = vld [vmem:[%s16871_s3 + $0x2868] sm:$0xff] }
 0x449   :  { %8523 = vmatpush1.bf16.msra.mxu1 %v8522_v62  ;;  %8269 = vmatprep.subr.bf16.mxu0 %v8268_v21  ;;  %v1631_v62 = vld [vmem:[%s16871_s3 + $0x2278] sm:$0xff] }
 0x44a   :  { %8525 = vmatprep.subr.bf16.mxu1 %v8524_v48  ;;  %v1647_v21 = vld [vmem:[%s16871_s3 + $0x22f8] sm:$0xff]  ;;  %v1628_v48 = vld [vmem:[%s16871_s3 + $0x2260] sm:$0xff] }
 0x44b   :  { %v1743_v13 = vld [vmem:[%s16871_s3 + $0x25f8] sm:$0xff] }
 0x44c   :  { %8271 = vmatpush1.bf16.msra.mxu0 %v8270_v8  ;;  %v1663_v8 = vld [vmem:[%s16871_s3 + $0x2378] sm:$0xff]  ;;  %v8552_v59 = vpack.c.bf16 %v1743_v13, %v1727_v53  ;;  %v1869_v53 = vld [vmem:[%s16871_s3 + $0x29e8] sm:$0xff] }
 0x44d   :  { %8527 = vmatpush1.bf16.msra.mxu1 %v8526_v31  ;;  %8273 = vmatprep.subr.bf16.mxu0 %v8272_v11  ;;  %v8286_v31 = vpack.c.bf16 %v1644_v3, %v1628_v48  ;;  %v8542_v11 = vpack.c.bf16 %v1646_v7, %v1630_v4  ;;  %v1756_v3 = vld [vmem:[%s16871_s3 + $0x2660] sm:$0xff]  ;;  %v1855_v13 = vld [vmem:[%s16871_s3 + $0x2978] sm:$0xff] }
 0x44e   :  { %8529 = vmatprep.subr.bf16.mxu1 %v8528_v20  ;;  %v1662_v20 = vld [vmem:[%s16871_s3 + $0x2370] sm:$0xff]  ;;  %v1772_v4 = vld [vmem:[%s16871_s3 + $0x26e0] sm:$0xff] }
 0x450   :  { %8275 = vmatpush1.bf16.msra.mxu0 %v8274_v27  ;;  %v1711_v27 = vld [vmem:[%s16871_s3 + $0x24f8] sm:$0xff] }
 0x451   :  { %8531 = vmatpush1.bf16.msra.mxu1 %v8530_v28  ;;  %8277 = vmatprep.subr.bf16.mxu0 %v8276_v29  ;;  %v8290_v28 = vpack.c.bf16 %v1676_v19, %v1660_v18  ;;  %v8546_v29 = vpack.c.bf16 %v1678_v23, %v1662_v20  ;;  %v8548_v47 = vpack.c.bf16 %v1711_v27, %v1695_v25  ;;  %v1788_v19 = vld [vmem:[%s16871_s3 + $0x2760] sm:$0xff]  ;;  %v1837_v25 = vld [vmem:[%s16871_s3 + $0x28e8] sm:$0xff]  ;;  %v1823_v27 = vld [vmem:[%s16871_s3 + $0x2878] sm:$0xff] }
 0x452   :  { %8533 = vmatprep.subr.bf16.mxu1 %v8532_v40  ;;  %v1708_v40 = vld [vmem:[%s16871_s3 + $0x24e0] sm:$0xff] }
 0x453   :  { %4500 = vmatmul.mubr.f32.vlgmr.msra.gmra.mrb[10].mxu0 %v10494_v34  ;;  %v1804_v20 = vld [vmem:[%s16871_s3 + $0x27e0] sm:$0xff] }
 0x454   :  { %4784 = vmatmul.mubr.f32.vlgmr.msra.gmra.mrb[10].mxu1 %v10494_v34  ;;  %8279 = vmatpush1.bf16.msra.mxu0 %v8278_v51  ;;  %v8540_v34 = vpack.c.bf16 %v1647_v21, %v1631_v62  ;;  %v1741_v51 = vld [vmem:[%s16871_s3 + $0x25e8] sm:$0xff]  ;;  %v1759_v21 = vld [vmem:[%s16871_s3 + $0x2678] sm:$0xff] }
 0x455   :  { %4570 = vmatprep.mubr.f32.mxu0 %v10507_v41  ;;  %8535 = vmatpush1.bf16.msra.mxu1 %v8534_v54  ;;  %v8294_v54 = vpack.c.bf16 %v1708_v40, %v1692_v36  ;;  %v8296_v56 = vpack.c.bf16 %v1741_v51, %v1725_v50  ;;  %v1773_v62 = vld [vmem:[%s16871_s3 + $0x26e8] sm:$0xff]  ;;  %v8308_v36 = vpack.c.bf16 %v1837_v25, %v1821_v24  ;;  %v1820_v40 = vld [vmem:[%s16871_s3 + $0x2860] sm:$0xff]  ;;  %v1838_v50 = vld [vmem:[%s16871_s3 + $0x28f0] sm:$0xff] }
 0x456   :  { %4854 = vmatprep.mubr.f32.mxu1 %v10507_v41  ;;  %8281 = vmatprep.subr.bf16.mxu0 %v8280_v58  ;;  %v1679_v41 = vld [vmem:[%s16871_s3 + $0x23f8] sm:$0xff]  ;;  %v1740_v58 = vld [vmem:[%s16871_s3 + $0x25e0] sm:$0xff]  ;;  %v1853_v51 = vld [vmem:[%s16871_s3 + $0x2968] sm:$0xff] }
 0x457   :  { %8537 = vmatprep.subr.bf16.mxu1 %v8536_v61  ;;  %v8544_v22 = vpack.c.bf16 %v1679_v41, %v1663_v8  ;;  %v1757_v61 = vld [vmem:[%s16871_s3 + $0x2668] sm:$0xff]  ;;  %v1791_v41 = vld [vmem:[%s16871_s3 + $0x2778] sm:$0xff]  ;;  %v1934_v24 = vld [vmem:[%s16871_s3 + $0x2bf0] sm:$0xff] }
 0x458   :  { %8283 = vmatpush1.bf16.msra.mxu0 %v8282_v63  ;;  %v1775_v63 = vld [vmem:[%s16871_s3 + $0x26f8] sm:$0xff]  ;;  %v8300_v48 = vpack.c.bf16 %v1773_v62, %v1757_v61  ;;  %v1805_v8 = vld [vmem:[%s16871_s3 + $0x27e8] sm:$0xff]  ;;  %v1870_v61 = vld [vmem:[%s16871_s3 + $0x29f0] sm:$0xff] }
 0x459   :  { %8539 = vmatpush1.bf16.msra.mxu1 %v8538_v0  ;;  %8285 = vmatprep.subr.bf16.mxu0 %v8284_v2  ;;  %v8298_v0 = vpack.c.bf16 %v1740_v58, %v1724_v57  ;;  %v8554_v2 = vpack.c.bf16 %v1742_v15, %v1726_v44  ;;  %v8556_v7 = vpack.c.bf16 %v1775_v63, %v1759_v21  ;;  %v1852_v58 = vld [vmem:[%s16871_s3 + $0x2960] sm:$0xff]  ;;  %v1885_v62 = vld [vmem:[%s16871_s3 + $0x2a68] sm:$0xff]  ;;  %v1887_v63 = vld [vmem:[%s16871_s3 + $0x2a78] sm:$0xff] }
 0x45a   :  { %8541 = vmatprep.subr.bf16.mxu1 %v8540_v34  ;;  %v1758_v34 = vld [vmem:[%s16871_s3 + $0x2670] sm:$0xff]  ;;  %v8304_v18 = vpack.c.bf16 %v1805_v8, %v1789_v6  ;;  %v8312_v57 = vpack.c.bf16 %v1869_v53, %v1853_v51  ;;  %v1868_v44 = vld [vmem:[%s16871_s3 + $0x29e0] sm:$0xff]  ;;  %v1901_v21 = vld [vmem:[%s16871_s3 + $0x2ae8] sm:$0xff] }
 0x45b   :  { %v1902_v6 = vld [vmem:[%s16871_s3 + $0x2af0] sm:$0xff]  ;;  %v1917_v8 = vld [vmem:[%s16871_s3 + $0x2b68] sm:$0xff] }
 0x45c   :  { %8287 = vmatpush1.bf16.msra.mxu0 %v8286_v31  ;;  %v1807_v31 = vld [vmem:[%s16871_s3 + $0x27f8] sm:$0xff]  ;;  %v1949_v25 = vld [vmem:[%s16871_s3 + $0x2c68] sm:$0xff]  ;;  %v1966_v51 = vld [vmem:[%s16871_s3 + $0x2cf0] sm:$0xff] }
 0x45d   :  { %8543 = vmatpush1.bf16.msra.mxu1 %v8542_v11  ;;  %8289 = vmatprep.subr.bf16.mxu0 %v8288_v12  ;;  %v8302_v11 = vpack.c.bf16 %v1772_v4, %v1756_v3  ;;  %v8558_v12 = vpack.c.bf16 %v1774_v60, %v1758_v34  ;;  %v8560_v23 = vpack.c.bf16 %v1807_v31, %v1791_v41  ;;  %v1884_v4 = vld [vmem:[%s16871_s3 + $0x2a60] sm:$0xff]  ;;  %v1933_v41 = vld [vmem:[%s16871_s3 + $0x2be8] sm:$0xff]  ;;  %v1919_v31 = vld [vmem:[%s16871_s3 + $0x2b78] sm:$0xff] }
 0x45e   :  { %8545 = vmatprep.subr.bf16.mxu1 %v8544_v22  ;;  %v1790_v22 = vld [vmem:[%s16871_s3 + $0x2770] sm:$0xff]  ;;  %v8316_v3 = vpack.c.bf16 %v1901_v21, %v1885_v62  ;;  %v1900_v34 = vld [vmem:[%s16871_s3 + $0x2ae0] sm:$0xff]  ;;  %v1981_v53 = vld [vmem:[%s16871_s3 + $0x2d68] sm:$0xff] }
 0x45f   :  { %v1998_v62 = vld [vmem:[%s16871_s3 + $0x2df0] sm:$0xff]  ;;  %v2013_v21 = vld [vmem:[%s16871_s3 + $0x2e68] sm:$0xff] }
 0x460   :  { %8291 = vmatpush1.bf16.msra.mxu0 %v8290_v28  ;;  %v1839_v28 = vld [vmem:[%s16871_s3 + $0x28f8] sm:$0xff] }
 0x461   :  { %8547 = vmatpush1.bf16.msra.mxu1 %v8546_v29  ;;  %8293 = vmatprep.subr.bf16.mxu0 %v8292_v38  ;;  %v8306_v29 = vpack.c.bf16 %v1804_v20, %v1788_v19  ;;  %v8562_v38 = vpack.c.bf16 %v1806_v1, %v1790_v22  ;;  %v8564_v49 = vpack.c.bf16 %v1839_v28, %v1823_v27  ;;  %v1916_v20 = vld [vmem:[%s16871_s3 + $0x2b60] sm:$0xff]  ;;  %v1965_v27 = vld [vmem:[%s16871_s3 + $0x2ce8] sm:$0xff]  ;;  %v1951_v28 = vld [vmem:[%s16871_s3 + $0x2c78] sm:$0xff] }
 0x462   :  { %8549 = vmatprep.subr.bf16.mxu1 %v8548_v47  ;;  %v1822_v47 = vld [vmem:[%s16871_s3 + $0x2870] sm:$0xff]  ;;  %v8320_v19 = vpack.c.bf16 %v1933_v41, %v1917_v8  ;;  %v1932_v22 = vld [vmem:[%s16871_s3 + $0x2be0] sm:$0xff]  ;;  %v2045_v41 = vld [vmem:[%s16871_s3 + $0x2f68] sm:$0xff] }
 0x463   :  { %v2030_v8 = vld [vmem:[%s16871_s3 + $0x2ef0] sm:$0xff] }
 0x464   :  { %8295 = vmatpush1.bf16.msra.mxu0 %v8294_v54  ;;  %v1871_v54 = vld [vmem:[%s16871_s3 + $0x29f8] sm:$0xff] }
 0x465   :  { %8551 = vmatpush1.bf16.msra.mxu1 %v8550_v55  ;;  %8297 = vmatprep.subr.bf16.mxu0 %v8296_v56  ;;  %v8310_v55 = vpack.c.bf16 %v1836_v43, %v1820_v40  ;;  %v8566_v56 = vpack.c.bf16 %v1838_v50, %v1822_v47  ;;  %v8568_v15 = vpack.c.bf16 %v1871_v54, %v1855_v13  ;;  %v1948_v43 = vld [vmem:[%s16871_s3 + $0x2c60] sm:$0xff]  ;;  %v1997_v13 = vld [vmem:[%s16871_s3 + $0x2de8] sm:$0xff]  ;;  %v1983_v54 = vld [vmem:[%s16871_s3 + $0x2d78] sm:$0xff] }
 0x466   :  { %8553 = vmatprep.subr.bf16.mxu1 %v8552_v59  ;;  %v1854_v59 = vld [vmem:[%s16871_s3 + $0x2970] sm:$0xff]  ;;  %v8324_v40 = vpack.c.bf16 %v1965_v27, %v1949_v25  ;;  %v1964_v47 = vld [vmem:[%s16871_s3 + $0x2ce0] sm:$0xff]  ;;  %v2077_v27 = vld [vmem:[%s16871_s3 + $0x3068] sm:$0xff] }
 0x467   :  { %v2062_v25 = vld [vmem:[%s16871_s3 + $0x2ff0] sm:$0xff] }
 0x468   :  { %8299 = vmatpush1.bf16.msra.mxu0 %v8298_v0  ;;  %v1903_v0 = vld [vmem:[%s16871_s3 + $0x2af8] sm:$0xff] }
 0x469   :  { %8555 = vmatpush1.bf16.msra.mxu1 %v8554_v2  ;;  %8301 = vmatprep.subr.bf16.mxu0 %v8300_v48  ;;  %v8314_v2 = vpack.c.bf16 %v1868_v44, %v1852_v58  ;;  %v8570_v48 = vpack.c.bf16 %v1870_v61, %v1854_v59  ;;  %v8572_v60 = vpack.c.bf16 %v1903_v0, %v1887_v63  ;;  %v1980_v44 = vld [vmem:[%s16871_s3 + $0x2d60] sm:$0xff]  ;;  %v2029_v63 = vld [vmem:[%s16871_s3 + $0x2ee8] sm:$0xff]  ;;  %v2015_v0 = vld [vmem:[%s16871_s3 + $0x2e78] sm:$0xff] }
 0x46a   :  { %8557 = vmatprep.subr.bf16.mxu1 %v8556_v7  ;;  %v1886_v7 = vld [vmem:[%s16871_s3 + $0x2a70] sm:$0xff]  ;;  %v8328_v58 = vpack.c.bf16 %v1997_v13, %v1981_v53  ;;  %v1996_v59 = vld [vmem:[%s16871_s3 + $0x2de0] sm:$0xff]  ;;  %v2109_v13 = vld [vmem:[%s16871_s3 + $0x3168] sm:$0xff] }
 0x46b   :  { %v2094_v53 = vld [vmem:[%s16871_s3 + $0x30f0] sm:$0xff] }
 0x46c   :  { %8303 = vmatpush1.bf16.msra.mxu0 %v8302_v11  ;;  %v1935_v11 = vld [vmem:[%s16871_s3 + $0x2bf8] sm:$0xff] }
 0x46d   :  { %8559 = vmatpush1.bf16.msra.mxu1 %v8558_v12  ;;  %8305 = vmatprep.subr.bf16.mxu0 %v8304_v18  ;;  %v8318_v12 = vpack.c.bf16 %v1900_v34, %v1884_v4  ;;  %v8574_v18 = vpack.c.bf16 %v1902_v6, %v1886_v7  ;;  %v8576_v1 = vpack.c.bf16 %v1935_v11, %v1919_v31  ;;  %v2012_v34 = vld [vmem:[%s16871_s3 + $0x2e60] sm:$0xff]  ;;  %v2061_v31 = vld [vmem:[%s16871_s3 + $0x2fe8] sm:$0xff]  ;;  %v2047_v11 = vld [vmem:[%s16871_s3 + $0x2f78] sm:$0xff] }
 0x46e   :  { %8561 = vmatprep.subr.bf16.mxu1 %v8560_v23  ;;  %v1918_v23 = vld [vmem:[%s16871_s3 + $0x2b70] sm:$0xff]  ;;  %v8332_v4 = vpack.c.bf16 %v2029_v63, %v2013_v21  ;;  %v2028_v7 = vld [vmem:[%s16871_s3 + $0x2ee0] sm:$0xff]  ;;  %v2141_v21 = vld [vmem:[%s16871_s3 + $0x3268] sm:$0xff] }
 0x46f   :  { %v2157_v63 = vld [vmem:[%s16871_s3 + $0x32e8] sm:$0xff] }
 0x470   :  { %8307 = vmatpush1.bf16.msra.mxu0 %v8306_v29  ;;  %v1967_v29 = vld [vmem:[%s16871_s3 + $0x2cf8] sm:$0xff] }
 0x471   :  { %8563 = vmatpush1.bf16.msra.mxu1 %v8562_v38  ;;  %8309 = vmatprep.subr.bf16.mxu0 %v8308_v36  ;;  %v8322_v38 = vpack.c.bf16 %v1932_v22, %v1916_v20  ;;  %v8578_v36 = vpack.c.bf16 %v1934_v24, %v1918_v23  ;;  %v8580_v50 = vpack.c.bf16 %v1967_v29, %v1951_v28  ;;  %v2044_v22 = vld [vmem:[%s16871_s3 + $0x2f60] sm:$0xff]  ;;  %v2093_v28 = vld [vmem:[%s16871_s3 + $0x30e8] sm:$0xff]  ;;  %v2079_v29 = vld [vmem:[%s16871_s3 + $0x3078] sm:$0xff] }
 0x472   :  { %8565 = vmatprep.subr.bf16.mxu1 %v8564_v49  ;;  %v1950_v49 = vld [vmem:[%s16871_s3 + $0x2c70] sm:$0xff]  ;;  %v8336_v20 = vpack.c.bf16 %v2061_v31, %v2045_v41  ;;  %v2060_v23 = vld [vmem:[%s16871_s3 + $0x2fe0] sm:$0xff]  ;;  %v2173_v41 = vld [vmem:[%s16871_s3 + $0x3368] sm:$0xff] }
 0x473   :  { %v2189_v31 = vld [vmem:[%s16871_s3 + $0x33e8] sm:$0xff] }
 0x474   :  { %8311 = vmatpush1.bf16.msra.mxu0 %v8310_v55  ;;  %v1999_v55 = vld [vmem:[%s16871_s3 + $0x2df8] sm:$0xff] }
 0x475   :  { %8567 = vmatpush1.bf16.msra.mxu1 %v8566_v56  ;;  %8313 = vmatprep.subr.bf16.mxu0 %v8312_v57  ;;  %v8326_v56 = vpack.c.bf16 %v1964_v47, %v1948_v43  ;;  %v8582_v57 = vpack.c.bf16 %v1966_v51, %v1950_v49  ;;  %v8584_v61 = vpack.c.bf16 %v1999_v55, %v1983_v54  ;;  %v2076_v47 = vld [vmem:[%s16871_s3 + $0x3060] sm:$0xff]  ;;  %v2078_v51 = vld [vmem:[%s16871_s3 + $0x3070] sm:$0xff]  ;;  %v2125_v54 = vld [vmem:[%s16871_s3 + $0x31e8] sm:$0xff] }
 0x476   :  { %8569 = vmatprep.subr.bf16.mxu1 %v8568_v15  ;;  %v1982_v15 = vld [vmem:[%s16871_s3 + $0x2d70] sm:$0xff]  ;;  %v8340_v43 = vpack.c.bf16 %v2093_v28, %v2077_v27  ;;  %v2092_v49 = vld [vmem:[%s16871_s3 + $0x30e0] sm:$0xff]  ;;  %v2221_v27 = vld [vmem:[%s16871_s3 + $0x34e8] sm:$0xff] }
 0x477   :  { %v8342_v55 = vpack.c.bf16 %v2092_v49, %v2076_v47  ;;  %v2207_v28 = vld [vmem:[%s16871_s3 + $0x3478] sm:$0xff]  ;;  %v2220_v47 = vld [vmem:[%s16871_s3 + $0x34e0] sm:$0xff]  ;;  %v2206_v49 = vld [vmem:[%s16871_s3 + $0x3470] sm:$0xff] }
 0x478   :  { %8315 = vmatpush1.bf16.msra.mxu0 %v8314_v2  ;;  %v2031_v2 = vld [vmem:[%s16871_s3 + $0x2ef8] sm:$0xff] }
 0x479   :  { %8571 = vmatpush1.bf16.msra.mxu1 %v8570_v48  ;;  %8317 = vmatprep.subr.bf16.mxu0 %v8316_v3  ;;  %v8330_v48 = vpack.c.bf16 %v1996_v59, %v1980_v44  ;;  %v8586_v3 = vpack.c.bf16 %v1998_v62, %v1982_v15  ;;  %v8588_v6 = vpack.c.bf16 %v2031_v2, %v2015_v0  ;;  %v2108_v44 = vld [vmem:[%s16871_s3 + $0x3160] sm:$0xff]  ;;  %v2110_v15 = vld [vmem:[%s16871_s3 + $0x3170] sm:$0xff]  ;;  %v2143_v2 = vld [vmem:[%s16871_s3 + $0x3278] sm:$0xff] }
 0x47a   :  { %8573 = vmatprep.subr.bf16.mxu1 %v8572_v60  ;;  %v2014_v60 = vld [vmem:[%s16871_s3 + $0x2e70] sm:$0xff]  ;;  %v2124_v59 = vld [vmem:[%s16871_s3 + $0x31e0] sm:$0xff] }
 0x47b   :  { %v2126_v62 = vld [vmem:[%s16871_s3 + $0x31f0] sm:$0xff] }
 0x47c   :  { %8319 = vmatpush1.bf16.msra.mxu0 %v8318_v12  ;;  %v2063_v12 = vld [vmem:[%s16871_s3 + $0x2ff8] sm:$0xff] }
 0x47d   :  { %8575 = vmatpush1.bf16.msra.mxu1 %v8574_v18  ;;  %8321 = vmatprep.subr.bf16.mxu0 %v8320_v19  ;;  %v8334_v18 = vpack.c.bf16 %v2028_v7, %v2012_v34  ;;  %v8590_v19 = vpack.c.bf16 %v2030_v8, %v2014_v60  ;;  %v8592_v24 = vpack.c.bf16 %v2063_v12, %v2047_v11  ;;  %v2140_v7 = vld [vmem:[%s16871_s3 + $0x3260] sm:$0xff]  ;;  %v2158_v8 = vld [vmem:[%s16871_s3 + $0x32f0] sm:$0xff]  ;;  %v2175_v11 = vld [vmem:[%s16871_s3 + $0x3378] sm:$0xff] }
 0x47e   :  { %8577 = vmatprep.subr.bf16.mxu1 %v8576_v1  ;;  %v2046_v1 = vld [vmem:[%s16871_s3 + $0x2f70] sm:$0xff]  ;;  %v8348_v34 = vpack.c.bf16 %v2157_v63, %v2141_v21  ;;  %v2156_v60 = vld [vmem:[%s16871_s3 + $0x32e0] sm:$0xff]  ;;  %v2269_v63 = vld [vmem:[%s16871_s3 + $0x3668] sm:$0xff] }
 0x47f   :  { %v8350_v12 = vpack.c.bf16 %v2156_v60, %v2140_v7  ;;  %v2254_v21 = vld [vmem:[%s16871_s3 + $0x35f0] sm:$0xff] }
 0x480   :  { %8323 = vmatpush1.bf16.msra.mxu0 %v8322_v38  ;;  %v2095_v38 = vld [vmem:[%s16871_s3 + $0x30f8] sm:$0xff] }
 0x481   :  { %8579 = vmatpush1.bf16.msra.mxu1 %v8578_v36  ;;  %8325 = vmatprep.subr.bf16.mxu0 %v8324_v40  ;;  %v8338_v36 = vpack.c.bf16 %v2060_v23, %v2044_v22  ;;  %v8594_v40 = vpack.c.bf16 %v2062_v25, %v2046_v1  ;;  %v2188_v22 = vld [vmem:[%s16871_s3 + $0x33e0] sm:$0xff]  ;;  %v2174_v23 = vld [vmem:[%s16871_s3 + $0x3370] sm:$0xff]  ;;  %v2205_v25 = vld [vmem:[%s16871_s3 + $0x3468] sm:$0xff] }
 0x482   :  { %8581 = vmatprep.subr.bf16.mxu1 %v8580_v50  ;;  %v8596_v50 = vpack.c.bf16 %v2095_v38, %v2079_v29  ;;  %v2223_v29 = vld [vmem:[%s16871_s3 + $0x34f8] sm:$0xff] }
 0x484   :  { %8327 = vmatpush1.bf16.msra.mxu0 %v8326_v56  ;;  %v2111_v56 = vld [vmem:[%s16871_s3 + $0x3178] sm:$0xff] }
 0x485   :  { %8583 = vmatpush1.bf16.msra.mxu1 %v8582_v57  ;;  %8329 = vmatprep.subr.bf16.mxu0 %v8328_v58  ;;  %v2127_v57 = vld [vmem:[%s16871_s3 + $0x31f8] sm:$0xff]  ;;  %v8598_v58 = vpack.c.bf16 %v2094_v53, %v2078_v51  ;;  %v2222_v51 = vld [vmem:[%s16871_s3 + $0x34f0] sm:$0xff]  ;;  %v2237_v53 = vld [vmem:[%s16871_s3 + $0x3568] sm:$0xff] }
 0x486   :  { %8585 = vmatprep.subr.bf16.mxu1 %v8584_v61  ;;  %v8344_v61 = vpack.c.bf16 %v2125_v54, %v2109_v13  ;;  %v8600_v0 = vpack.c.bf16 %v2127_v57, %v2111_v56  ;;  %v2253_v13 = vld [vmem:[%s16871_s3 + $0x35e8] sm:$0xff]  ;;  %v2239_v54 = vld [vmem:[%s16871_s3 + $0x3578] sm:$0xff] }
 0x487   :  { %v15695_v57 = vld [vmem:[#allocation3 + $0x8] sm:$0xff] }
 0x488   :  { %8331 = vmatpush1.bf16.msra.mxu0 %v8330_v48  ;;  %v2159_v48 = vld [vmem:[%s16871_s3 + $0x32f8] sm:$0xff]  ;;  %v2627_v7 = vrot.slane %v15695_v57, %v10062_v37 }
 0x489   :  { %8587 = vmatpush1.bf16.msra.mxu1 %v8586_v3  ;;  %8333 = vmatprep.subr.bf16.mxu0 %v8332_v4  ;;  %v8346_v3 = vpack.c.bf16 %v2124_v59, %v2108_v44  ;;  %v8602_v4 = vpack.c.bf16 %v2126_v62, %v2110_v15  ;;  %v8360_v44 = vpack.c.bf16 %v2253_v13, %v2237_v53  ;;  %v2236_v59 = vld [vmem:[%s16871_s3 + $0x3560] sm:$0xff]  ;;  %v2335_v53 = vld [vmem:[%s16871_s3 + $0x3878] sm:$0xff] }
 0x48a   :  { %8589 = vmatprep.subr.bf16.mxu1 %v8588_v6  ;;  %v2142_v6 = vld [vmem:[%s16871_s3 + $0x3270] sm:$0xff]  ;;  %v2252_v15 = vld [vmem:[%s16871_s3 + $0x35e0] sm:$0xff]  ;;  %v2351_v13 = vld [vmem:[%s16871_s3 + $0x38f8] sm:$0xff] }
 0x48c   :  { %8335 = vmatpush1.bf16.msra.mxu0 %v8334_v18  ;;  %v8606_v18 = vpack.c.bf16 %v2158_v8, %v2142_v6  ;;  %v2284_v8 = vld [vmem:[%s16871_s3 + $0x36e0] sm:$0xff] }
 0x48d   :  { %8591 = vmatpush1.bf16.msra.mxu1 %v8590_v19  ;;  %8337 = vmatprep.subr.bf16.mxu0 %v8336_v20  ;;  %v8352_v19 = vpack.c.bf16 %v2189_v31, %v2173_v41  ;;  %v2172_v20 = vld [vmem:[%s16871_s3 + $0x3360] sm:$0xff]  ;;  %v2286_v31 = vld [vmem:[%s16871_s3 + $0x36f0] sm:$0xff] }
 0x48e   :  { %8593 = vmatprep.subr.bf16.mxu1 %v8592_v24  ;;  %v2190_v24 = vld [vmem:[%s16871_s3 + $0x33f0] sm:$0xff]  ;;  %v8354_v38 = vpack.c.bf16 %v2188_v22, %v2172_v20 }
 0x490   :  { %8339 = vmatpush1.bf16.msra.mxu0 %v8338_v36  ;;  %v8610_v36 = vpack.c.bf16 %v2190_v24, %v2174_v23 }
 0x491   :  { %8595 = vmatpush1.bf16.msra.mxu1 %v8594_v40  ;;  %8341 = vmatprep.subr.bf16.mxu0 %v8340_v43  ;;  %v8356_v40 = vpack.c.bf16 %v2221_v27, %v2205_v25  ;;  %v2204_v43 = vld [vmem:[%s16871_s3 + $0x3460] sm:$0xff] }
 0x492   :  { %8597 = vmatprep.subr.bf16.mxu1 %v8596_v50  ;;  %v8612_v50 = vpack.c.bf16 %v2223_v29, %v2207_v28  ;;  %v8358_v56 = vpack.c.bf16 %v2220_v47, %v2204_v43  ;;  %v2300_v28 = vld [vmem:[%s16871_s3 + $0x3760] sm:$0xff]  ;;  %v2318_v47 = vld [vmem:[%s16871_s3 + $0x37f0] sm:$0xff] }
 0x493   :  { %4571 = vmatmul.mubr.f32.vlgmr.msra.gmra.mrb[10].mxu0 %v10904_v39  ;;  %v2316_v29 = vld [vmem:[%s16871_s3 + $0x37e0] sm:$0xff] }
 0x494   :  { %4855 = vmatmul.mubr.f32.vlgmr.msra.gmra.mrb[10].mxu1 %v10904_v39  ;;  %8343 = vmatpush1.bf16.msra.mxu0 %v8342_v55  ;;  %v8604_v39 = vpack.c.bf16 %v2159_v48, %v2143_v2  ;;  %v2255_v55 = vld [vmem:[%s16871_s3 + $0x35f8] sm:$0xff] }
 0x495   :  { %4641 = vmatprep.mubr.f32.mxu0 %v10917_v45  ;;  %8599 = vmatpush1.bf16.msra.mxu1 %v8598_v58  ;;  %v8614_v58 = vpack.c.bf16 %v2222_v51, %v2206_v49  ;;  %v8616_v62 = vpack.c.bf16 %v2255_v55, %v2239_v54  ;;  %v2271_v2 = vld [vmem:[%s16871_s3 + $0x3678] sm:$0xff]  ;;  %v2333_v49 = vld [vmem:[%s16871_s3 + $0x3868] sm:$0xff] }
 0x496   :  { %4925 = vmatprep.mubr.f32.mxu1 %v10917_v45  ;;  %8345 = vmatprep.subr.bf16.mxu0 %v8344_v61  ;;  %v2191_v45 = vld [vmem:[%s16871_s3 + $0x33f8] sm:$0xff]  ;;  %v2238_v61 = vld [vmem:[%s16871_s3 + $0x3570] sm:$0xff] }
 0x497   :  { %8601 = vmatprep.subr.bf16.mxu1 %v8600_v0  ;;  %v8608_v1 = vpack.c.bf16 %v2191_v45, %v2175_v11  ;;  %v2285_v0 = vld [vmem:[%s16871_s3 + $0x36e8] sm:$0xff]  ;;  %v2287_v48 = vld [vmem:[%s16871_s3 + $0x36f8] sm:$0xff]  ;;  %v8618_v60 = vpack.c.bf16 %v2254_v21, %v2238_v61  ;;  %v2348_v61 = vld [vmem:[%s16871_s3 + $0x38e0] sm:$0xff] }
 0x498   :  { %8347 = vmatpush1.bf16.msra.mxu0 %v8346_v3  ;;  %v2623_v3 = vrot.slane %v15695_v57, %v10386_v30  ;;  %v8364_v6 = vpack.c.bf16 %v2285_v0, %v2269_v63  ;;  %v2615_v30 = vrot.slane %v15695_v57, %v10017_v14  ;;  %v8620_v37 = vpack.c.bf16 %v2287_v48, %v2271_v2  ;;  %v2301_v11 = vld [vmem:[%s16871_s3 + $0x3768] sm:$0xff]  ;;  %v2303_v14 = vld [vmem:[%s16871_s3 + $0x3778] sm:$0xff]  ;;  %v2350_v0 = vld [vmem:[%s16871_s3 + $0x38f0] sm:$0xff] }
 0x499   :  { %8603 = vmatpush1.bf16.msra.mxu1 %v8602_v4  ;;  %8349 = vmatprep.subr.bf16.mxu0 %v8348_v34  ;;  %v2619_v4 = vrot.slane %v15695_v57, %v10025_v16  ;;  %v8362_v34 = vpack.c.bf16 %v2252_v15, %v2236_v59  ;;  %v2270_v16 = vld [vmem:[%s16871_s3 + $0x3670] sm:$0xff]  ;;  %v2317_v45 = vld [vmem:[%s16871_s3 + $0x37e8] sm:$0xff]  ;;  %v2332_v15 = vld [vmem:[%s16871_s3 + $0x3860] sm:$0xff]  ;;  %v8628_v63 = vpack.c.bf16 %v2351_v13, %v2335_v53 }
 0x49a   :  { %8605 = vmatprep.subr.bf16.mxu1 %v8604_v39  ;;  %v2268_v39 = vld [vmem:[%s16871_s3 + $0x3660] sm:$0xff]  ;;  %v8622_v25 = vpack.c.bf16 %v2286_v31, %v2270_v16  ;;  %v8368_v27 = vpack.c.bf16 %v2317_v45, %v2301_v11  ;;  %v2365_v2 = vld [vmem:[%s16871_s3 + $0x3968] sm:$0xff]  ;;  %v2399_v31 = vld [vmem:[%s16871_s3 + $0x3a78] sm:$0xff] }
 0x49b   :  { %v2381_v48 = vld [vmem:[%s16871_s3 + $0x39e8] sm:$0xff]  ;;  %v2415_v11 = vld [vmem:[%s16871_s3 + $0x3af8] sm:$0xff] }
 0x49c   :  { %8351 = vmatpush1.bf16.msra.mxu0 %v8350_v12  ;;  %v2463_v53 = vld [vmem:[%s16871_s3 + $0x3c78] sm:$0xff] }
 0x49d   :  { %8607 = vmatpush1.bf16.msra.mxu1 %v8606_v18  ;;  %8353 = vmatprep.subr.bf16.mxu0 %v8352_v19  ;;  %v2319_v19 = vld [vmem:[%s16871_s3 + $0x37f8] sm:$0xff] }
 0x49e   :  { %8609 = vmatprep.subr.bf16.mxu1 %v8608_v1  ;;  %v8366_v1 = vpack.c.bf16 %v2284_v8, %v2268_v39  ;;  %v8624_v43 = vpack.c.bf16 %v2319_v19, %v2303_v14  ;;  %v2380_v39 = vld [vmem:[%s16871_s3 + $0x39e0] sm:$0xff]  ;;  %v2366_v8 = vld [vmem:[%s16871_s3 + $0x3970] sm:$0xff]  ;;  %v2479_v13 = vld [vmem:[%s16871_s3 + $0x3cf8] sm:$0xff] }
 0x49f   :  { %v2396_v14 = vld [vmem:[%s16871_s3 + $0x3a60] sm:$0xff] }
 0x4a0   :  { %8355 = vmatpush1.bf16.msra.mxu0 %v8354_v38  ;;  %v2302_v38 = vld [vmem:[%s16871_s3 + $0x3770] sm:$0xff]  ;;  %v2412_v19 = vld [vmem:[%s16871_s3 + $0x3ae0] sm:$0xff] }
 0x4a1   :  { %8611 = vmatpush1.bf16.msra.mxu1 %v8610_v36  ;;  %8357 = vmatprep.subr.bf16.mxu0 %v8356_v40 }
 0x4a2   :  { %8613 = vmatprep.subr.bf16.mxu1 %v8612_v50  ;;  %v2349_v50 = vld [vmem:[%s16871_s3 + $0x38e8] sm:$0xff] }
 0x4a3   :  { %v8372_v59 = vpack.c.bf16 %v2349_v50, %v2333_v49  ;;  %v2446_v49 = vld [vmem:[%s16871_s3 + $0x3bf0] sm:$0xff]  ;;  %v2461_v50 = vld [vmem:[%s16871_s3 + $0x3c68] sm:$0xff] }
 0x4a4   :  { %8359 = vmatpush1.bf16.msra.mxu0 %v8358_v56  ;;  %v8370_v56 = vpack.c.bf16 %v2316_v29, %v2300_v28  ;;  %v8382_v28 = vpack.c.bf16 %v2412_v19, %v2396_v14 }
 0x4a5   :  { %8615 = vmatpush1.bf16.msra.mxu1 %v8614_v58  ;;  %8361 = vmatprep.subr.bf16.mxu0 %v8360_v44  ;;  %v8626_v44 = vpack.c.bf16 %v2318_v47, %v2302_v38 }
 0x4a6   :  { %v4075_v41 = vpop.f32.mrb[8].mxu0  ;;  %8617 = vmatprep.subr.bf16.mxu1 %v8616_v62  ;;  %v2334_v62 = vld [vmem:[%s16871_s3 + $0x3870] sm:$0xff] }
 0x4a7   :  { %v4359_v12 = vpop.f32.mrb[8].mxu1  ;;  %v4077_v18 = vpop.f32.mrb[9].mxu0  ;;  %v8908_v36 = vadd.f32 %v4075_v41, %v2615_v30  ;;  %v2382_v30 = vld [vmem:[%s16871_s3 + $0x39f0] sm:$0xff]  ;;  %v2397_v41 = vld [vmem:[%s16871_s3 + $0x3a68] sm:$0xff] }
 0x4a8   :  { %v8910_v20 = vadd.f32 %v4359_v12, %v2623_v3  ;;  %v8909_v22 = vadd.f32 %v4077_v18, %v2619_v4  ;;  %v4361_v23 = vpop.f32.mrb[9].mxu1  ;;  %8363 = vmatpush1.bf16.msra.mxu0 %v8362_v34  ;;  %v2367_v3 = vld [vmem:[%s16871_s3 + $0x3978] sm:$0xff]  ;;  %v8374_v34 = vpack.c.bf16 %v2348_v61, %v2332_v15  ;;  %v8634_v12 = vpack.c.bf16 %v2382_v30, %v2366_v8  ;;  %v2478_v61 = vld [vmem:[%s16871_s3 + $0x3cf0] sm:$0xff]  ;;  %v2541_v8 = vld [vmem:[%s16871_s3 + $0x3ee8] sm:$0xff] }
 0x4a9   :  { %v8911_v24 = vadd.f32 %v4361_v23, %v2627_v7  ;;  %8619 = vmatpush1.bf16.msra.mxu1 %v8618_v60  ;;  %8365 = vmatprep.subr.bf16.mxu0 %v8364_v6  ;;  %v2383_v4 = vld [vmem:[%s16871_s3 + $0x39f8] sm:$0xff]  ;;  %v8630_v7 = vpack.c.bf16 %v2350_v0, %v2334_v62  ;;  %v8376_v60 = vpack.c.bf16 %v2381_v48, %v2365_v2  ;;  %v2364_v6 = vld [vmem:[%s16871_s3 + $0x3960] sm:$0xff]  ;;  %v2414_v23 = vld [vmem:[%s16871_s3 + $0x3af0] sm:$0xff] }
 0x4aa   :  { %v4951_v40 = vrot.slane %v8909_v22, 6  ;;  %8621 = vmatprep.subr.bf16.mxu1 %v8620_v37  ;;  %v4954_v51 = vrot.slane %v8910_v20, 4  ;;  %v8632_v16 = vpack.c.bf16 %v2383_v4, %v2367_v3  ;;  %v2413_v37 = vld [vmem:[%s16871_s3 + $0x3ae8] sm:$0xff]  ;;  %v8378_v45 = vpack.c.bf16 %v2380_v39, %v2364_v6  ;;  %v2398_v20 = vld [vmem:[%s16871_s3 + $0x3a70] sm:$0xff]  ;;  %v2511_v0 = vld [vmem:[%s16871_s3 + $0x3df8] sm:$0xff] }
 0x4ab   :  { %v4957_v54 = vrot.slane %v8911_v24, 2  ;;  %v8380_v18 = vpack.c.bf16 %v2413_v37, %v2397_v41  ;;  %v8636_v22 = vpack.c.bf16 %v2415_v11, %v2399_v31  ;;  %v2445_v24 = vld [vmem:[%s16871_s3 + $0x3be8] sm:$0xff]  ;;  %v8638_v29 = vpack.c.bf16 %v2414_v23, %v2398_v20  ;;  %v2492_v4 = vld [vmem:[%s16871_s3 + $0x3d60] sm:$0xff]  ;;  %v2510_v6 = vld [vmem:[%s16871_s3 + $0x3df0] sm:$0xff] }
 0x4ac   :  { %8367 = vmatpush1.bf16.msra.mxu0 %v8366_v1  ;;  %v4977_v55 = vsel %vm4968_vm8, %v8908_v36, %v4951_v40  ;;  %v2429_v1 = vld [vmem:[%s16871_s3 + $0x3b68] sm:$0xff]  ;;  %v2428_v36 = vld [vmem:[%s16871_s3 + $0x3b60] sm:$0xff]  ;;  %v8644_v15 = vpack.c.bf16 %v2479_v13, %v2463_v53  ;;  %v2527_v30 = vld [vmem:[%s16871_s3 + $0x3e78] sm:$0xff] }
 0x4ad   :  { %8623 = vmatpush1.bf16.msra.mxu1 %v8622_v25  ;;  %8369 = vmatprep.subr.bf16.mxu0 %v8368_v27  ;;  %v4978_v58 = vsel %vm4970_vm9, %v4977_v55, %v4954_v51  ;;  %v2431_v25 = vld [vmem:[%s16871_s3 + $0x3b78] sm:$0xff]  ;;  %v8384_v38 = vpack.c.bf16 %v2445_v24, %v2429_v1  ;;  %v2444_v40 = vld [vmem:[%s16871_s3 + $0x3be0] sm:$0xff]  ;;  %v2477_v51 = vld [vmem:[%s16871_s3 + $0x3ce8] sm:$0xff] }
 0x4ae   :  { %8625 = vmatprep.subr.bf16.mxu1 %v8624_v43  ;;  %v4979_v21 = vsel %vm4972_vm10, %v4978_v58, %v4957_v54  ;;  %v2447_v27 = vld [vmem:[%s16871_s3 + $0x3bf8] sm:$0xff]  ;;  %v2430_v43 = vld [vmem:[%s16871_s3 + $0x3b70] sm:$0xff]  ;;  %v8386_v54 = vpack.c.bf16 %v2444_v40, %v2428_v36  ;;  %v2460_v58 = vld [vmem:[%s16871_s3 + $0x3c60] sm:$0xff] }
 0x4af   :  { %4991 = vrot.lane.b32.xlu1 %v4979_v21, %s9146_s16  ;;  %v8640_v47 = vpack.c.bf16 %v2447_v27, %v2431_v25  ;;  %v8642_v55 = vpack.c.bf16 %v2446_v49, %v2430_v43  ;;  %v2493_v62 = vld [vmem:[%s16871_s3 + $0x3d68] sm:$0xff]  ;;  %v2543_v41 = vld [vmem:[%s16871_s3 + $0x3ef8] sm:$0xff]  ;;  %v2542_v20 = vld [vmem:[%s16871_s3 + $0x3ef0] sm:$0xff] }
 0x4b0   :  { %8371 = vmatpush1.bf16.msra.mxu0 %v8370_v56  ;;  %v8388_v56 = vpack.c.bf16 %v2477_v51, %v2461_v50  ;;  %v2509_v21 = vld [vmem:[%s16871_s3 + $0x3de8] sm:$0xff]  ;;  %v8652_v19 = vpack.c.bf16 %v2543_v41, %v2527_v30  ;;  %v2559_v1 = vld [vmem:[%s16871_s3 + $0x3f78] sm:$0xff]  ;;  %v2572_v36 = vld [vmem:[%s16871_s3 + $0x3fe0] sm:$0xff] }
 0x4b1   :  { %8627 = vmatpush1.bf16.msra.mxu1 %v8626_v44  ;;  %8373 = vmatprep.subr.bf16.mxu0 %v8372_v59  ;;  %v2476_v44 = vld [vmem:[%s16871_s3 + $0x3ce0] sm:$0xff]  ;;  %v2462_v59 = vld [vmem:[%s16871_s3 + $0x3c70] sm:$0xff]  ;;  %v8392_v3 = vpack.c.bf16 %v2509_v21, %v2493_v62  ;;  %v2525_v39 = vld [vmem:[%s16871_s3 + $0x3e68] sm:$0xff] }
 0x4b2   :  { %8629 = vmatprep.subr.bf16.mxu1 %v8628_v63  ;;  %v2495_v63 = vld [vmem:[%s16871_s3 + $0x3d78] sm:$0xff]  ;;  %v8390_v2 = vpack.c.bf16 %v2476_v44, %v2460_v58  ;;  %v8646_v48 = vpack.c.bf16 %v2478_v61, %v2462_v59  ;;  %v8396_v11 = vpack.c.bf16 %v2541_v8, %v2525_v39  ;;  %v2573_v23 = vld [vmem:[%s16871_s3 + $0x3fe8] sm:$0xff]  ;;  %v2558_v40 = vld [vmem:[%s16871_s3 + $0x3f70] sm:$0xff] }
 0x4b3   :  { %v2575_v24 = vld [vmem:[%s16871_s3 + $0x3ff8] sm:$0xff]  ;;  %v5251_v49 = vld [vmem:[%s16873_s5 + $0x80] sm:$0xff]  ;;  %v5252_v50 = vld [vmem:[%s16873_s5 + $0x88] sm:$0xff] }
 0x4b4   :  { %8375 = vmatpush1.bf16.msra.mxu0 %v8374_v34  ;;  %v2508_v34 = vld [vmem:[%s16871_s3 + $0x3de0] sm:$0xff]  ;;  %v8656_v43 = vpack.c.bf16 %v2575_v24, %v2559_v1  ;;  %v5236_v58 = vld [vmem:[%s16873_s5 + $0x8] sm:$0xff]  ;;  %v5253_v44 = vld [vmem:[%s16873_s5 + $0x90] sm:$0xff] }
 0x4b5   :  { %8631 = vmatpush1.bf16.msra.mxu1 %v8630_v7  ;;  %8377 = vmatprep.subr.bf16.mxu0 %v8376_v60  ;;  %v2494_v7 = vld [vmem:[%s16871_s3 + $0x3d70] sm:$0xff]  ;;  %v8648_v60 = vpack.c.bf16 %v2511_v0, %v2495_v63  ;;  %v8394_v37 = vpack.c.bf16 %v2508_v34, %v2492_v4  ;;  %v5254_v59 = vld [vmem:[%s16873_s5 + $0x98] sm:$0xff]  ;;  %v5256_v4 = vld [vmem:[%s16873_s5 + $0xa8] sm:$0xff] }
 0x4b6   :  { %8633 = vmatprep.subr.bf16.mxu1 %v8632_v16  ;;  %v15919_v16 = vpop.permute.xlu0 %4989  ;;  %v8650_v31 = vpack.c.bf16 %v2510_v6, %v2494_v7  ;;  %v5237_v63 = vld [vmem:[%s16873_s5 + $0x10] sm:$0xff]  ;;  %v5238_v0 = vld [vmem:[%s16873_s5 + $0x18] sm:$0xff]  ;;  %v5239_v39 = vld [vmem:[%s16873_s5 + $0x20] sm:$0xff] }
 0x4b7   :  { %v15938_v14 = vsel %vm4999_vm11, 0.0, %v15919_v16  ;;  %v5257_v8 = vld [vmem:[%s16873_s5 + $0xb0] sm:$0xff]  ;;  %v5258_v30 = vld [vmem:[%s16873_s5 + $0xb8] sm:$0xff] }
 0x4b8   :  { %8379 = vmatpush1.bf16.msra.mxu0 %v8378_v45  ;;  %v2524_v45 = vld [vmem:[%s16871_s3 + $0x3e60] sm:$0xff]  ;;  %v5018_v27 = vrot.slane %v15938_v14, 6  ;;  %v5262_v1 = vld [vmem:[%s16873_s5 + $0xd8] sm:$0xff] }
 0x4b9   :  { %8635 = vmatpush1.bf16.msra.mxu1 %v8634_v12  ;;  %8381 = vmatprep.subr.bf16.mxu0 %v8380_v18  ;;  %v2540_v12 = vld [vmem:[%s16871_s3 + $0x3ee0] sm:$0xff]  ;;  %v2526_v18 = vld [vmem:[%s16871_s3 + $0x3e70] sm:$0xff] }
 0x4ba   :  { %8637 = vmatprep.subr.bf16.mxu1 %v8636_v22  ;;  %v2557_v22 = vld [vmem:[%s16871_s3 + $0x3f68] sm:$0xff]  ;;  %v8398_v25 = vpack.c.bf16 %v2540_v12, %v2524_v45  ;;  %v15978_v53 = vsel %vm4968_vm8, %v13359_v9, %v5018_v27  ;;  %v8973_v13 = vpop.permute.xlu0 %8972  ;;  %v5259_v45 = vld [vmem:[%s16873_s5 + $0xc0] sm:$0xff] }
 0x4bb   :  { %v8974_v61 = vunpack.i.l.bf16 %v8973_v13  ;;  %v5095_v21 = vrot.slane %v15978_v53, 2  ;;  %v5260_v12 = vld [vmem:[%s16873_s5 + $0xc8] sm:$0xff]  ;;  %v5283_v14 = vld [vmem:[%s16873_s5 + $0x180] sm:$0xff] }
 0x4bc   :  { %8383 = vmatpush1.bf16.msra.mxu0 %v8382_v28  ;;  %v8654_v28 = vpack.c.bf16 %v2542_v20, %v2526_v18  ;;  %v5243_v20 = vld [vmem:[%s16873_s5 + $0x40] sm:$0xff] }
 0x4bd   :  { %8639 = vmatpush1.bf16.msra.mxu1 %v8638_v29  ;;  %8385 = vmatprep.subr.bf16.mxu0 %v8384_v38  ;;  %v8400_v29 = vpack.c.bf16 %v2573_v23, %v2557_v22  ;;  %v2556_v38 = vld [vmem:[%s16871_s3 + $0x3f60] sm:$0xff]  ;;  %v5244_v22 = vld [vmem:[%s16873_s5 + $0x48] sm:$0xff]  ;;  %v5261_v23 = vld [vmem:[%s16873_s5 + $0xd0] sm:$0xff] }
 0x4be   :  { %8641 = vmatprep.subr.bf16.mxu1 %v8640_v47  ;;  %v2574_v47 = vld [vmem:[%s16871_s3 + $0x3ff0] sm:$0xff]  ;;  %v8402_v51 = vpack.c.bf16 %v2572_v36, %v2556_v38  ;;  %v8678_v24 = vpack.c.bf16 %v5244_v22, %v5243_v20  ;;  %v5263_v38 = vld [vmem:[%s16873_s5 + $0xe0] sm:$0xff]  ;;  %v5264_v36 = vld [vmem:[%s16873_s5 + $0xe8] sm:$0xff] }
 0x4bf   :  { %v5273_v22 = vld [vmem:[%s16873_s5 + $0x130] sm:$0xff] }
 0x4c0   :  { %8387 = vmatpush1.bf16.msra.mxu0 %v8386_v54  ;;  %v8658_v54 = vpack.c.bf16 %v2574_v47, %v2558_v40  ;;  %v5247_v47 = vld [vmem:[%s16873_s5 + $0x60] sm:$0xff] }
 0x4c1   :  { %8643 = vmatpush1.bf16.msra.mxu1 %v8642_v55  ;;  %8389 = vmatprep.subr.bf16.mxu0 %v8388_v56  ;;  %v8660_v55 = vpack.c.bf16 %v5252_v50, %v5251_v49  ;;  %v5235_v56 = vld [vmem:[%s16873_s5] sm:$0xff]  ;;  %v5248_v49 = vld [vmem:[%s16873_s5 + $0x68] sm:$0xff]  ;;  %v5265_v50 = vld [vmem:[%s16873_s5 + $0xf0] sm:$0xff] }
 0x4c2   :  { %8645 = vmatprep.subr.bf16.mxu1 %v8644_v15  ;;  %v8975_v15 = vunpack.i.h.bf16 %v8973_v13  ;;  %v8662_v62 = vpack.c.bf16 %v5236_v58, %v5235_v56  ;;  %v8686_v13 = vpack.c.bf16 %v5248_v49, %v5247_v47  ;;  %v5250_v56 = vld [vmem:[%s16873_s5 + $0x78] sm:$0xff]  ;;  %v5277_v49 = vld [vmem:[%s16873_s5 + $0x150] sm:$0xff] }
 0x4c4   :  { %8391 = vmatpush1.bf16.msra.mxu0 %v8390_v2  ;;  %v5094_v2 = vrot.slane %v13370_v17, 2  ;;  %v5060_v34 = vsel %vm5059_vm12, %v8974_v61, %v8975_v15 }
 0x4c5   :  { %8647 = vmatpush1.bf16.msra.mxu1 %v8646_v48  ;;  %8393 = vmatprep.subr.bf16.mxu0 %v8392_v3  ;;  %v8664_v48 = vpack.c.bf16 %v5254_v59, %v5253_v44  ;;  %v5255_v3 = vld [vmem:[%s16873_s5 + $0xa0] sm:$0xff]  ;;  %v16085_v44 = vsel %vm4999_vm11, %v15919_v16, 0.0 }
 0x4c6   :  { %8649 = vmatprep.subr.bf16.mxu1 %v8648_v60  ;;  %v16012_v7 = vsel %vm4972_vm10, %v5094_v2, %v5095_v21  ;;  %v8666_v60 = vpack.c.bf16 %v5238_v0, %v5237_v63  ;;  %v8668_v6 = vpack.c.bf16 %v5256_v4, %v5255_v3  ;;  %v5268_v4 = vld [vmem:[%s16873_s5 + $0x108] sm:$0xff] }
 0x4c8   :  { %8395 = vmatpush1.bf16.msra.mxu0 %v8394_v37  ;;  %v8672_v37 = vpack.c.bf16 %v5258_v30, %v5257_v8  ;;  %v5270_v8 = vld [vmem:[%s16873_s5 + $0x118] sm:$0xff]  ;;  %v5287_v30 = vld [vmem:[%s16873_s5 + $0x1a0] sm:$0xff] }
 0x4c9   :  { %8651 = vmatpush1.bf16.msra.mxu1 %v8650_v31  ;;  %8397 = vmatprep.subr.bf16.mxu0 %v8396_v11  ;;  %v5241_v31 = vld [vmem:[%s16873_s5 + $0x30] sm:$0xff]  ;;  %v5242_v11 = vld [vmem:[%s16873_s5 + $0x38] sm:$0xff] }
 0x4ca   :  { %8653 = vmatprep.subr.bf16.mxu1 %v8652_v19  ;;  %v8674_v18 = vpack.c.bf16 %v5242_v11, %v5241_v31  ;;  %v8676_v19 = vpack.c.bf16 %v5260_v12, %v5259_v45  ;;  %v5271_v11 = vld [vmem:[%s16873_s5 + $0x120] sm:$0xff]  ;;  %v5272_v45 = vld [vmem:[%s16873_s5 + $0x128] sm:$0xff]  ;;  %v5289_v12 = vld [vmem:[%s16873_s5 + $0x1b0] sm:$0xff] }
 0x4cc   :  { %8399 = vmatpush1.bf16.msra.mxu0 %v8398_v25  ;;  %v8680_v25 = vpack.c.bf16 %v5262_v1, %v5261_v23  ;;  %v5274_v23 = vld [vmem:[%s16873_s5 + $0x138] sm:$0xff]  ;;  %v5291_v1 = vld [vmem:[%s16873_s5 + $0x1c0] sm:$0xff] }
 0x4cd   :  { %8655 = vmatpush1.bf16.msra.mxu1 %v8654_v28  ;;  %8401 = vmatprep.subr.bf16.mxu0 %v8400_v29  ;;  %v5245_v28 = vld [vmem:[%s16873_s5 + $0x50] sm:$0xff]  ;;  %v5246_v29 = vld [vmem:[%s16873_s5 + $0x58] sm:$0xff] }
 0x4ce   :  { %8657 = vmatprep.subr.bf16.mxu1 %v8656_v43  ;;  %v8682_v40 = vpack.c.bf16 %v5246_v29, %v5245_v28  ;;  %v8684_v43 = vpack.c.bf16 %v5264_v36, %v5263_v38  ;;  %v5275_v29 = vld [vmem:[%s16873_s5 + $0x140] sm:$0xff]  ;;  %v5276_v38 = vld [vmem:[%s16873_s5 + $0x148] sm:$0xff]  ;;  %v5293_v36 = vld [vmem:[%s16873_s5 + $0x1d0] sm:$0xff] }
 0x4d0   :  { %8403 = vmatpush1.bf16.msra.mxu0 %v8402_v51  ;;  %v5266_v51 = vld [vmem:[%s16873_s5 + $0xf8] sm:$0xff] }
 0x4d1   :  { %8659 = vmatpush1.bf16.msra.mxu1 %v8658_v54  ;;  %8661 = vmatprep.subr.bf16.mxu0 %v8660_v55  ;;  %v8688_v54 = vpack.c.bf16 %v5266_v51, %v5265_v50  ;;  %v5249_v55 = vld [vmem:[%s16873_s5 + $0x70] sm:$0xff]  ;;  %v5278_v50 = vld [vmem:[%s16873_s5 + $0x158] sm:$0xff]  ;;  %v2639_v51 = vrot.slane %v15695_v57, %v11201_v46  ;;  %v5296_v46 = vld [vmem:[%s16873_s5 + $0x1e8] sm:$0xff] }
 0x4d2   :  { %v8690_v58 = vpack.c.bf16 %v5250_v56, %v5249_v55  ;;  %v2643_v55 = vrot.slane %v15695_v57, %v10803_v32  ;;  %v2631_v56 = vrot.slane %v15695_v57, %v10791_v26  ;;  %v5279_v32 = vld [vmem:[%s16873_s5 + $0x160] sm:$0xff]  ;;  %v5280_v26 = vld [vmem:[%s16873_s5 + $0x168] sm:$0xff] }
 0x4d3   :  { %4642 = vmatmul.mubr.f32.vlgmr.msra.gmra.mrb[10].mxu0 %v11296_v42 }
 0x4d4   :  { %4926 = vmatmul.mubr.f32.vlgmr.msra.gmra.mrb[10].mxu1 %v11296_v42  ;;  %8663 = vmatpush3.bf16.msra.mxu0 %v8662_v62  ;;  %v5240_v42 = vld [vmem:[%s16873_s5 + $0x28] sm:$0xff]  ;;  %v5020_v62 = vrot.slane %v16085_v44, 6 }
 0x4d5   :  { %5450 = vmatprep.mubr.f32.mxu0 %v5060_v34  ;;  %5535 = vmatprep.mubr.f32.mxu1 %v16012_v7  ;;  %v8670_v41 = vpack.c.bf16 %v5240_v42, %v5239_v39  ;;  %v5285_v34 = vld [vmem:[%s16873_s5 + $0x190] sm:$0xff] }
 0x4d6   :  { %8665 = vmatprep.subr.bf16.mxu0 %v8664_v48  ;;  %v5267_v48 = vld [vmem:[%s16873_s5 + $0x100] sm:$0xff]  ;;  %v5269_v42 = vld [vmem:[%s16873_s5 + $0x110] sm:$0xff] }
 0x4d8   :  { %8667 = vmatpush3.bf16.msra.mxu0 %v8666_v60  ;;  %v5286_v60 = vld [vmem:[%s16873_s5 + $0x198] sm:$0xff] }
 0x4d9   :  { %8669 = vmatprep.subr.bf16.mxu0 %v8668_v6  ;;  %v8694_v6 = vpack.c.bf16 %v5268_v4, %v5267_v48  ;;  %v8696_v39 = vpack.c.bf16 %v5286_v60, %v5285_v34  ;;  %v8718_v4 = vpack.c.bf16 %v5280_v26, %v5279_v32  ;;  %v5297_v60 = vld [vmem:[%s16873_s5 + $0x1f0] sm:$0xff]  ;;  %v5303_v32 = vld [vmem:[%s16873_s5 + $0x220] sm:$0xff]  ;;  %v5304_v26 = vld [vmem:[%s16873_s5 + $0x228] sm:$0xff] }
 0x4dc   :  { %8671 = vmatpush3.bf16.msra.mxu0 %v8670_v41  ;;  %v5288_v41 = vld [vmem:[%s16873_s5 + $0x1a8] sm:$0xff] }
 0x4dd   :  { %8673 = vmatprep.subr.bf16.mxu0 %v8672_v37  ;;  %v8698_v37 = vpack.c.bf16 %v5270_v8, %v5269_v42  ;;  %v8700_v31 = vpack.c.bf16 %v5288_v41, %v5287_v30  ;;  %v5281_v41 = vld [vmem:[%s16873_s5 + $0x170] sm:$0xff] }
 0x4e0   :  { %8675 = vmatpush3.bf16.msra.mxu0 %v8674_v18  ;;  %v5290_v18 = vld [vmem:[%s16873_s5 + $0x1b8] sm:$0xff] }
 0x4e1   :  { %8677 = vmatprep.subr.bf16.mxu0 %v8676_v19  ;;  %v8702_v19 = vpack.c.bf16 %v5272_v45, %v5271_v11  ;;  %v8704_v20 = vpack.c.bf16 %v5290_v18, %v5289_v12  ;;  %v16227_v18 = vsel %vm4968_vm8, %v5017_v10, %v5020_v62 }
 0x4e4   :  { %8679 = vmatpush3.bf16.msra.mxu0 %v8678_v24  ;;  %v5292_v24 = vld [vmem:[%s16873_s5 + $0x1c8] sm:$0xff] }
 0x4e5   :  { %8681 = vmatprep.subr.bf16.mxu0 %v8680_v25  ;;  %v8706_v25 = vpack.c.bf16 %v5274_v23, %v5273_v22  ;;  %v8708_v28 = vpack.c.bf16 %v5292_v24, %v5291_v1  ;;  %v5109_v22 = vrot.slane %v16227_v18, 2  ;;  %v5108_v23 = vrot.slane %v13375_v52, 2 }
 0x4e6   :  { %v5166_v24 = vrot.slane %v15978_v53, 4 }
 0x4e7   :  { %v5110_v44 = vsel %vm4972_vm10, %v5108_v23, %v5109_v22  ;;  %v5310_v23 = vld [vmem:[%s16873_s5 + $0x258] sm:$0xff] }
 0x4e8   :  { %8683 = vmatpush3.bf16.msra.mxu0 %v8682_v40  ;;  %v5294_v40 = vld [vmem:[%s16873_s5 + $0x1d8] sm:$0xff]  ;;  %v16240_v5 = vpack.i.bf16 %v5110_v44, %v16012_v7 }
 0x4e9   :  { %8685 = vmatprep.subr.bf16.mxu0 %v8684_v43  ;;  %v8710_v43 = vpack.c.bf16 %v5276_v38, %v5275_v29  ;;  %v8712_v47 = vpack.c.bf16 %v5294_v40, %v5293_v36  ;;  %v5178_v29 = vrot.slane %v13375_v52, 4  ;;  %v5316_v52 = vld [vmem:[%s16873_s5 + $0x288] sm:$0xff] }
 0x4ec   :  { %8687 = vmatpush3.bf16.msra.mxu0 %v8686_v13  ;;  %v2635_v13 = vrot.slane %v15695_v57, %v10398_v35 }
 0x4ed   :  { %8689 = vmatprep.subr.bf16.mxu0 %v8688_v54  ;;  %v8714_v54 = vpack.c.bf16 %v5278_v50, %v5277_v49  ;;  %v5299_v49 = vld [vmem:[%s16873_s5 + $0x200] sm:$0xff] }
 0x4f0   :  { %8691 = vmatpush3.bf16.msra.mxu0 %v8690_v58 }
 0x4f3   :  { %6128 = vmatmul.mubr.msk.f32.vlgmr.msra.gmra.mrb[12].mxu0 %vm6127_vm13, %v13359_v9 }
 0x521   :  { %v4992_v59 = vpop.permute.xlu1 %4991 }
 0x522   :  { %v16088_v15 = vsel %vm4999_vm11, 0.0, %v4992_v59  ;;  %v16091_v61 = vsel %vm4999_vm11, %v4992_v59, 0.0  ;;  %v5295_v59 = vld [vmem:[%s16873_s5 + $0x1e0] sm:$0xff] }
 0x523   :  { %v5022_v63 = vrot.slane %v16088_v15, 6  ;;  %v5024_v0 = vrot.slane %v16091_v61, 6  ;;  %v8716_v35 = vpack.c.bf16 %v5296_v46, %v5295_v59  ;;  %v5302_v59 = vld [vmem:[%s16873_s5 + $0x218] sm:$0xff]  ;;  %v5319_v46 = vld [vmem:[%s16873_s5 + $0x2a0] sm:$0xff] }
 0x525   :  { %v16101_v9 = vsel %vm4968_vm8, %v5018_v27, %v5022_v63  ;;  %v16108_v16 = vsel %vm4968_vm8, %v5020_v62, %v5024_v0  ;;  %v5284_v27 = vld [vmem:[%s16873_s5 + $0x188] sm:$0xff] }
 0x526   :  { %v16112_v2 = vpack.i.bf16 %v16108_v16, %v16101_v9  ;;  %v8692_v3 = vpack.c.bf16 %v5284_v27, %v5283_v14  ;;  %v5097_v10 = vrot.slane %v16101_v9, 2  ;;  %v5111_v62 = vrot.slane %v16108_v16, 2 }
 0x528   :  { %8982 = vrot.lane.b32.xlu0 %v16112_v2, %s9147_s9  ;;  %8693 = vmatprep.subr.bf16.mxu1 %v8692_v3  ;;  %v16251_v1 = vsel %vm4972_vm10, %v5095_v21, %v5097_v10 }
 0x529   :  { %8695 = vmatpush3.bf16.msra.mxu1 %v8694_v6  ;;  %v5298_v6 = vld [vmem:[%s16873_s5 + $0x1f8] sm:$0xff] }
 0x52a   :  { %8697 = vmatprep.subr.bf16.mxu1 %v8696_v39  ;;  %v8720_v8 = vpack.c.bf16 %v5298_v6, %v5297_v60  ;;  %v8734_v60 = vpack.c.bf16 %v5304_v26, %v5303_v32 }
 0x52d   :  { %8699 = vmatpush3.bf16.msra.mxu1 %v8698_v37  ;;  %v5282_v37 = vld [vmem:[%s16873_s5 + $0x178] sm:$0xff] }
 0x52e   :  { %8701 = vmatprep.subr.bf16.mxu1 %v8700_v31  ;;  %v8722_v45 = vpack.c.bf16 %v5282_v37, %v5281_v41 }
 0x531   :  { %8703 = vmatpush3.bf16.msra.mxu1 %v8702_v19 }
 0x532   :  { %8705 = vmatprep.subr.bf16.mxu1 %v8704_v20  ;;  %v8976_v20 = vpack.i.bf16 %v16227_v18, %v15978_v53 }
 0x535   :  { %8707 = vmatpush3.bf16.msra.mxu1 %v8706_v25  ;;  %v5179_v25 = vrot.slane %v16227_v18, 4 }
 0x536   :  { %8709 = vmatprep.subr.bf16.mxu1 %v8708_v28  ;;  %v5165_v28 = vrot.slane %v13370_v17, 4  ;;  %v5315_v17 = vld [vmem:[%s16873_s5 + $0x280] sm:$0xff] }
 0x537   :  { %v5180_v36 = vsel %vm4970_vm9, %v5178_v29, %v5179_v25  ;;  %v8724_v50 = vpack.c.bf16 %v5316_v52, %v5315_v17  ;;  %v5330_v52 = vld [vmem:[%s16873_s5 + $0x2f8] sm:$0xff] }
 0x538   :  { %v16266_v38 = vsel %vm4970_vm9, %v5165_v28, %v5166_v24  ;;  %v5311_v28 = vld [vmem:[%s16873_s5 + $0x260] sm:$0xff] }
 0x539   :  { %8711 = vmatpush3.bf16.msra.mxu1 %v8710_v43  ;;  %8725 = vmatprep.subr.bf16.mxu0 %v8724_v50  ;;  %v5314_v50 = vld [vmem:[%s16873_s5 + $0x278] sm:$0xff] }
 0x53a   :  { %8713 = vmatprep.subr.bf16.mxu1 %v8712_v47  ;;  %v16275_v47 = vpack.i.bf16 %v5180_v36, %v16266_v38 }
 0x53d   :  { %8715 = vmatpush3.bf16.msra.mxu1 %v8714_v54  ;;  %v5318_v54 = vld [vmem:[%s16873_s5 + $0x298] sm:$0xff] }
 0x53e   :  { %8717 = vmatprep.subr.bf16.mxu1 %v8716_v35 }
 0x541   :  { %8719 = vmatpush3.bf16.msra.mxu1 %v8718_v4  ;;  %v5348_v4 = vld [vmem:[%s16873_s5 + $0x388] sm:$0xff] }
 0x542   :  { %8721 = vmatprep.subr.bf16.mxu1 %v8720_v8  ;;  %v5323_v8 = vld [vmem:[%s16873_s5 + $0x2c0] sm:$0xff] }
 0x545   :  { %8723 = vmatpush3.bf16.msra.mxu1 %v8722_v45  ;;  %v5325_v45 = vld [vmem:[%s16873_s5 + $0x2d0] sm:$0xff] }
 0x5a6   :  { %v4643_v58 = vpop.f32.mrb[10].mxu0 }
 0x5a7   :  { %v4927_v14 = vpop.f32.mrb[10].mxu1  ;;  %v4645_v27 = vpop.f32.mrb[11].mxu0  ;;  %v8912_v39 = vadd.f32 %v4643_v58, %v2631_v56  ;;  %v5301_v58 = vld [vmem:[%s16873_s5 + $0x210] sm:$0xff] }
 0x5a8   :  { %v8914_v57 = vadd.f32 %v4927_v14, %v2639_v51  ;;  %v8913_v48 = vadd.f32 %v4645_v27, %v2635_v13  ;;  %v4929_v3 = vpop.f32.mrb[11].mxu1  ;;  %v5300_v51 = vld [vmem:[%s16873_s5 + $0x208] sm:$0xff]  ;;  %v5317_v13 = vld [vmem:[%s16873_s5 + $0x290] sm:$0xff]  ;;  %v8730_v27 = vpack.c.bf16 %v5302_v59, %v5301_v58 }
 0x5a9   :  { %v8915_v34 = vadd.f32 %v4929_v3, %v2643_v55  ;;  %v8726_v55 = vpack.c.bf16 %v5300_v51, %v5299_v49  ;;  %v8728_v56 = vpack.c.bf16 %v5318_v54, %v5317_v13  ;;  %v5320_v14 = vld [vmem:[%s16873_s5 + $0x2a8] sm:$0xff]  ;;  %v5347_v3 = vld [vmem:[%s16873_s5 + $0x380] sm:$0xff]  ;;  %v5313_v49 = vld [vmem:[%s16873_s5 + $0x270] sm:$0xff] }
 0x5aa   :  { %v4960_v42 = vrot.slane %v8913_v48, 6  ;;  %v4963_v30 = vrot.slane %v8914_v57, 4  ;;  %v8732_v35 = vpack.c.bf16 %v5320_v14, %v5319_v46  ;;  %v5321_v57 = vld [vmem:[%s16873_s5 + $0x2b0] sm:$0xff]  ;;  %v5322_v48 = vld [vmem:[%s16873_s5 + $0x2b8] sm:$0xff] }
 0x5ab   :  { %v4966_v11 = vrot.slane %v8915_v34, 2  ;;  %8727 = vmatpush3.bf16.msra.mxu0 %v8726_v55  ;;  %v8756_v34 = vpack.c.bf16 %v5348_v4, %v5347_v3  ;;  %v8736_v6 = vpack.c.bf16 %v5322_v48, %v5321_v57  ;;  %v8754_v55 = vpack.c.bf16 %v5314_v50, %v5313_v49  ;;  %v5336_v49 = vld [vmem:[%s16873_s5 + $0x328] sm:$0xff] }
 0x5ac   :  { %v4980_v31 = vsel %vm4968_vm8, %v8912_v39, %v4960_v42  ;;  %8729 = vmatprep.subr.bf16.mxu0 %v8728_v56  ;;  %v5305_v39 = vld [vmem:[%s16873_s5 + $0x230] sm:$0xff]  ;;  %v5306_v42 = vld [vmem:[%s16873_s5 + $0x238] sm:$0xff]  ;;  %v8983_v56 = vpop.permute.xlu0 %8982 }
 0x5ad   :  { %v4981_v12 = vsel %vm4970_vm9, %v4980_v31, %v4963_v30  ;;  %8757 = vmatprep.subr.bf16.mxu1 %v8756_v34  ;;  %v5324_v30 = vld [vmem:[%s16873_s5 + $0x2c8] sm:$0xff]  ;;  %v8738_v41 = vpack.c.bf16 %v5306_v42, %v5305_v39  ;;  %v5307_v31 = vld [vmem:[%s16873_s5 + $0x240] sm:$0xff]  ;;  %v8985_v26 = vunpack.i.h.bf16 %v8983_v56  ;;  %v8984_v57 = vunpack.i.l.bf16 %v8983_v56  ;;  %v5353_v56 = vld [vmem:[%s16873_s5 + $0x3b0] sm:$0xff] }
 0x5ae   :  { %v4982_v19 = vsel %vm4972_vm10, %v4981_v12, %v4966_v11  ;;  %v8740_v37 = vpack.c.bf16 %v5324_v30, %v5323_v8  ;;  %v5308_v11 = vld [vmem:[%s16873_s5 + $0x248] sm:$0xff]  ;;  %v5326_v12 = vld [vmem:[%s16873_s5 + $0x2d8] sm:$0xff]  ;;  %v5331_v39 = vld [vmem:[%s16873_s5 + $0x300] sm:$0xff] }
 0x5af   :  { %4993 = vrot.lane.b32.xlu1 %v4982_v19, %s9146_s16  ;;  %8731 = vmatpush3.bf16.msra.mxu0 %v8730_v27  ;;  %v8742_v19 = vpack.c.bf16 %v5308_v11, %v5307_v31  ;;  %v5332_v42 = vld [vmem:[%s16873_s5 + $0x308] sm:$0xff]  ;;  %v5062_v31 = vsel %vm5059_vm12, %v8984_v57, %v8985_v26  ;;  %v5168_v11 = vrot.slane %v16101_v9, 4  ;;  %v5337_v26 = vld [vmem:[%s16873_s5 + $0x330] sm:$0xff] }
 0x5b0   :  { %8733 = vmatprep.subr.bf16.mxu0 %v8732_v35 }
 0x5b3   :  { %8977 = vrot.lane.b32.xlu1 %v8976_v20, %s9147_s9  ;;  %8735 = vmatpush3.bf16.msra.mxu0 %v8734_v60 }
 0x5b4   :  { %8737 = vmatprep.subr.bf16.mxu0 %v8736_v6 }
 0x5b7   :  { %8987 = vrot.lane.b32.xlu1 %v13403_v33, %s9148_s20  ;;  %v5112_v33 = vsel %vm4972_vm10, %v5109_v22, %v5111_v62  ;;  %8739 = vmatpush3.bf16.msra.mxu0 %v8738_v41  ;;  %v5309_v22 = vld [vmem:[%s16873_s5 + $0x250] sm:$0xff] }
 0x5b8   :  { %v9016_v7 = vpack.i.bf16 %v5112_v33, %v16251_v1  ;;  %8741 = vmatprep.subr.bf16.mxu0 %v8740_v37  ;;  %v8746_v44 = vpack.c.bf16 %v5310_v23, %v5309_v22  ;;  %v5327_v33 = vld [vmem:[%s16873_s5 + $0x2e0] sm:$0xff]  ;;  %v8758_v22 = vpack.c.bf16 %v5332_v42, %v5331_v39 }
 0x5b9   :  { %v5363_v23 = vld [vmem:[%s16873_s5 + $0x400] sm:$0xff] }
 0x5bb   :  { %8997 = vrot.lane.b32.xlu1 %v16240_v5, %s9148_s20  ;;  %8743 = vmatpush3.bf16.msra.mxu0 %v8742_v19 }
 0x5bf   :  { %9007 = vrot.lane.b32.xlu1 %v8976_v20, %s9148_s20  ;;  %v8744_v20 = vpack.c.bf16 %v5326_v12, %v5325_v45  ;;  %v5349_v45 = vld [vmem:[%s16873_s5 + $0x390] sm:$0xff]  ;;  %v5350_v12 = vld [vmem:[%s16873_s5 + $0x398] sm:$0xff] }
 0x5c1   :  { %8745 = vmatprep.subr.bf16.mxu0 %v8744_v20  ;;  %v5181_v20 = vrot.slane %v16108_v16, 4  ;;  %v5357_v16 = vld [vmem:[%s16873_s5 + $0x3d0] sm:$0xff] }
 0x5c2   :  { %8747 = vmatpush3.bf16.msra.mxu0 %v8746_v44  ;;  %v5364_v44 = vld [vmem:[%s16873_s5 + $0x408] sm:$0xff] }
 0x5c3   :  { %9017 = vrot.lane.b32.xlu1 %v9016_v7, %s9148_s20 }
 0x5c6   :  { %v6166_v21 = vpop.f32.mrb[12].mxu0 }
 0x5c7   :  { %9022 = vrot.lane.b32.xlu1 %v9016_v7, %s9147_s9  ;;  %v6167_v40 = vpop.f32.mrb[13].mxu0  ;;  %v5328_v7 = vld [vmem:[%s16873_s5 + $0x2e8] sm:$0xff] }
 0x5c8   :  { %v16272_v43 = vadd.f32 %v6167_v40, %v6166_v21  ;;  %v8748_v29 = vpack.c.bf16 %v5328_v7, %v5327_v33  ;;  %v5312_v21 = vld [vmem:[%s16873_s5 + $0x268] sm:$0xff]  ;;  %v5329_v40 = vld [vmem:[%s16873_s5 + $0x2f0] sm:$0xff] }
 0x5c9   :  { %v8750_v36 = vpack.c.bf16 %v5312_v21, %v5311_v28  ;;  %v8752_v54 = vpack.c.bf16 %v5330_v52, %v5329_v40  ;;  %v5333_v7 = vld [vmem:[%s16873_s5 + $0x310] sm:$0xff]  ;;  %v5334_v28 = vld [vmem:[%s16873_s5 + $0x318] sm:$0xff]  ;;  %v5351_v21 = vld [vmem:[%s16873_s5 + $0x3a0] sm:$0xff]  ;;  %v16466_v40 = vpack.c.bf16 %v5364_v44, %v5363_v23 }
 0x5ca   :  { %8749 = vmatprep.subr.bf16.mxu0 %v8748_v29  ;;  %v8760_v29 = vpack.c.bf16 %v5350_v12, %v5349_v45  ;;  %v5335_v52 = vld [vmem:[%s16873_s5 + $0x320] sm:$0xff]  ;;  %v5344_v12 = vld [vmem:[%s16873_s5 + $0x368] sm:$0xff]  ;;  %v5345_v44 = vld [vmem:[%s16873_s5 + $0x370] sm:$0xff] }
 0x5cb   :  { %9027 = vrot.lane.b32.xlu1 %v16275_v47, %s9147_s9  ;;  %8751 = vmatpush3.bf16.msra.mxu0 %v8750_v36  ;;  %v5352_v36 = vld [vmem:[%s16873_s5 + $0x3a8] sm:$0xff]  ;;  %v5343_v45 = vld [vmem:[%s16873_s5 + $0x360] sm:$0xff] }
 0x5cc   :  { %8753 = vmatprep.subr.bf16.mxu0 %v8752_v54 }
 0x5cf   :  { %8755 = vmatpush3.bf16.msra.mxu0 %v8754_v55  ;;  %v8766_v55 = vpack.c.bf16 %v5336_v49, %v5335_v52 }
 0x5d0   :  { %8789 = vmatprep.subr.bf16.mxu0 %v16466_v40 }
 0x621   :  { %v4994_v17 = vpop.permute.xlu1 %4993 }
 0x622   :  { %v5003_v51 = vsel %vm4999_vm11, 0.0, %v4994_v17  ;;  %v5007_v13 = vsel %vm4999_vm11, %v4994_v17, 0.0  ;;  %v5182_v17 = vsel %vm4970_vm9, %v5179_v25, %v5181_v20  ;;  %vm6114_vm11 = vcmask 224256  }
 0x623   :  { %v5026_v58 = vrot.slane %v5003_v51, 6  ;;  %v5028_v59 = vrot.slane %v5007_v13, 6  ;;  %v8764_v51 = vpack.c.bf16 %v5352_v36, %v5351_v21 }
 0x625   :  { %v16386_v46 = vsel %vm4968_vm8, %v5022_v63, %v5026_v58  ;;  %v16391_v14 = vsel %vm4968_vm8, %v5024_v0, %v5028_v59  ;;  %v16394_v27 = vsel %vm4968_vm8, %v5026_v58, 0.0  ;;  %v16397_v35 = vsel %vm4968_vm8, %v5028_v59, 0.0  ;;  %v8978_v32 = vpop.permute.xlu1 %8977 }
 0x626   :  { %v5101_v15 = vrot.slane %v16394_v27, 2  ;;  %v5115_v63 = vrot.slane %v16397_v35, 2  ;;  %v8980_v48 = vunpack.i.h.bf16 %v8978_v32  ;;  %v8979_v3 = vunpack.i.l.bf16 %v8978_v32 }
 0x627   :  { %v16403_v61 = vpack.i.bf16 %v16391_v14, %v16386_v46  ;;  %v5099_v0 = vrot.slane %v16386_v46, 2  ;;  %v5113_v4 = vrot.slane %v16391_v14, 2  ;;  %v5172_v13 = vrot.slane %v16394_v27, 4 }
 0x628   :  { %v5061_v60 = vsel %vm5059_vm12, %v8979_v3, %v8980_v48  ;;  %v5185_v58 = vrot.slane %v16397_v35, 4  ;;  %v5338_v35 = vld [vmem:[%s16873_s5 + $0x338] sm:$0xff]  ;;  %v5356_v48 = vld [vmem:[%s16873_s5 + $0x3c8] sm:$0xff] }
 0x629   :  { %8992 = vrot.lane.b32.xlu0 %v16403_v61, %s9147_s9  ;;  %v8988_v34 = vpop.permute.xlu1 %8987  ;;  %v16413_v6 = vsel %vm4972_vm10, %v5099_v0, %v5101_v15  ;;  %5455 = vmatprep.mubr.f32.mxu0 %v5061_v60  ;;  %v5116_v41 = vsel %vm4972_vm10, %v5113_v4, %v5115_v63  ;;  %v5100_v57 = vsel %vm4972_vm10, %v5097_v10, %v5099_v0  ;;  %v5355_v63 = vld [vmem:[%s16873_s5 + $0x3c0] sm:$0xff]  ;;  %v5340_v60 = vld [vmem:[%s16873_s5 + $0x348] sm:$0xff] }
 0x62a   :  { %v8990_v8 = vunpack.i.h.bf16 %v8988_v34  ;;  %v8989_v30 = vunpack.i.l.bf16 %v8988_v34  ;;  %5456 = vmatmul.mubr.f32.gmra.mrb[14].mxu0 %v15978_v53  ;;  %v9051_v37 = vpack.i.bf16 %v5116_v41, %v16413_v6  ;;  %v5183_v53 = vrot.slane %v16391_v14, 4  ;;  %v5339_v34 = vld [vmem:[%s16873_s5 + $0x340] sm:$0xff] }
 0x62b   :  { %5460 = vmatprep.mubr.f32.mxu0 %v5062_v31  ;;  %v5114_v10 = vsel %vm4972_vm10, %v5111_v62, %v5113_v4  ;;  %v8770_v0 = vpack.c.bf16 %v5338_v35, %v5337_v26  ;;  %v8772_v14 = vpack.c.bf16 %v5356_v48, %v5355_v63  ;;  %v5358_v62 = vld [vmem:[%s16873_s5 + $0x3d8] sm:$0xff]  ;;  %v8774_v39 = vpack.c.bf16 %v5340_v60, %v5339_v34  ;;  %v5359_v41 = vld [vmem:[%s16873_s5 + $0x3e0] sm:$0xff]  ;;  %v5369_v34 = vld [vmem:[%s16873_s5 + $0x430] sm:$0xff] }
 0x62c   :  { %v5085_v19 = vsel %vm5084_vm14, %v8989_v30, %v8990_v8  ;;  %9052 = vrot.lane.b32.xlu1 %v9051_v37, %s9148_s20  ;;  %v5184_v27 = vsel %vm4970_vm9, %v5181_v20, %v5183_v53  ;;  %v9041_v4 = vpack.i.bf16 %v5114_v10, %v5100_v57  ;;  %v8776_v42 = vpack.c.bf16 %v5358_v62, %v5357_v16  ;;  %v5341_v8 = vld [vmem:[%s16873_s5 + $0x350] sm:$0xff]  ;;  %v5342_v30 = vld [vmem:[%s16873_s5 + $0x358] sm:$0xff] }
 0x62d   :  { %9002 = vrot.lane.b32.xlu0 %v16240_v5, %s9147_s9  ;;  %v16445_v33 = vpop.permute.xlu1 %8997  ;;  %5536 = vmatmul.mubr.f32.vlgmr.msra.gmra.mrb[12].mxu1 %v5085_v19  ;;  %v16458_v5 = vsel %vm4970_vm9, %v5166_v24, %v5168_v11  ;;  %v8762_v24 = vpack.c.bf16 %v5334_v28, %v5333_v7  ;;  %v8778_v31 = vpack.c.bf16 %v5342_v30, %v5341_v8  ;;  %v5361_v19 = vld [vmem:[%s16873_s5 + $0x3f0] sm:$0xff]  ;;  %v5362_v20 = vld [vmem:[%s16873_s5 + $0x3f8] sm:$0xff] }
 0x62e   :  { %5461 = vmatmul.mubr.f32.gmra.mrb[16].mxu0 %v16101_v9  ;;  %5540 = vmatprep.mubr.f32.mxu1 %v16251_v1  ;;  %v5170_v1 = vrot.slane %v16386_v46, 4  ;;  %v16485_v54 = vpack.i.bf16 %v5182_v17, %v16458_v5  ;;  %v5186_v9 = vsel %vm4970_vm9, %v5183_v53, %v5185_v58  ;;  %v8784_v23 = vpack.c.bf16 %v5362_v20, %v5361_v19  ;;  %v5346_v7 = vld [vmem:[%s16873_s5 + $0x378] sm:$0xff] }
 0x62f   :  { %8759 = vmatpush3.bf16.msra.mxu1 %v8758_v22  ;;  %v8782_v22 = vpack.c.bf16 %v5344_v12, %v5343_v45  ;;  %v8786_v28 = vpack.c.bf16 %v5346_v7, %v5345_v44  ;;  %v9000_v36 = vunpack.i.h.bf16 %v16445_v33  ;;  %v8999_v17 = vunpack.i.l.bf16 %v16445_v33  ;;  %v5366_v33 = vld [vmem:[%s16873_s5 + $0x418] sm:$0xff]  ;;  %v5373_v12 = vld [vmem:[%s16873_s5 + $0x450] sm:$0xff] }
 0x630   :  { %9057 = vrot.lane.b32.xlu1 %v9051_v37, %s9147_s9  ;;  %8761 = vmatprep.subr.bf16.mxu1 %v8760_v29  ;;  %v16496_v32 = vsel %vm4970_vm9, %v5168_v11, %v5170_v1  ;;  %v16522_v3 = vsel %vm4970_vm9, %v5170_v1, %v5172_v13  ;;  %v5360_v37 = vld [vmem:[%s16873_s5 + $0x3e8] sm:$0xff]  ;;  %v5370_v60 = vld [vmem:[%s16873_s5 + $0x438] sm:$0xff] }
 0x631   :  { %9012 = vrot.lane.b32.xlu0 %v16112_v2, %s9148_s20  ;;  %v9008_v18 = vpop.permute.xlu1 %9007  ;;  %v5354_v2 = vld [vmem:[%s16873_s5 + $0x3b8] sm:$0xff]  ;;  %v9076_v15 = vpack.i.bf16 %v5184_v27, %v16496_v32  ;;  %v8780_v11 = vpack.c.bf16 %v5360_v37, %v5359_v41 }
 0x632   :  { %v9010_v25 = vunpack.i.h.bf16 %v9008_v18  ;;  %v9009_v50 = vunpack.i.l.bf16 %v9008_v18  ;;  %v5374_v19 = vld [vmem:[%s16873_s5 + $0x458] sm:$0xff] }
 0x633   :  { %8763 = vmatpush3.bf16.msra.mxu1 %v8762_v24  ;;  %v8808_v44 = vpack.c.bf16 %v5374_v19, %v5373_v12  ;;  %v5853_v12 = vld [vmem:[%s16875_s7 + $0x10] sm:$0xff] }
 0x634   :  { %v5086_v59 = vsel %vm5084_vm14, %v9009_v50, %v9010_v25  ;;  %9062 = vrot.lane.b32.xlu1 %v16275_v47, %s9148_s20  ;;  %8765 = vmatprep.subr.bf16.mxu1 %v8764_v51  ;;  %v8768_v47 = vpack.c.bf16 %v5354_v2, %v5353_v56  ;;  %v5157_v50 = vsel %vm5084_vm14, %v8999_v17, %v9000_v36  ;;  %v5365_v51 = vld [vmem:[%s16873_s5 + $0x410] sm:$0xff]  ;;  %v5375_v36 = vld [vmem:[%s16873_s5 + $0x460] sm:$0xff]  ;;  %v5376_v17 = vld [vmem:[%s16873_s5 + $0x468] sm:$0xff] }
 0x635   :  { %9032 = vrot.lane.b32.xlu0 %v16485_v54, %s9147_s9  ;;  %5541 = vmatmul.mubr.f32.gmra.mrb[14].mxu1 %v5086_v59  ;;  %v9018_v29 = vpop.permute.xlu1 %9017  ;;  %v8792_v58 = vpack.c.bf16 %v5366_v33, %v5365_v51 }
 0x636   :  { %5545 = vmatprep.mubr.f32.mxu1 %v5100_v57  ;;  %v9020_v13 = vunpack.i.h.bf16 %v9018_v29  ;;  %v5367_v57 = vld [vmem:[%s16873_s5 + $0x420] sm:$0xff] }
 0x637   :  { %8767 = vmatpush3.bf16.msra.mxu1 %v8766_v55 }
 0x638   :  { %9077 = vrot.lane.b32.xlu1 %v9076_v15, %s9148_s20  ;;  %8769 = vmatprep.subr.bf16.mxu1 %v8768_v47  ;;  %v5368_v47 = vld [vmem:[%s16873_s5 + $0x428] sm:$0xff] }
 0x639   :  { %9037 = vrot.lane.b32.xlu0 %v16403_v61, %s9148_s20  ;;  %v9086_v61 = vpack.i.bf16 %v5186_v9, %v16522_v3  ;;  %v9023_v21 = vpop.permute.xlu1 %9022  ;;  %v8796_v9 = vpack.c.bf16 %v5368_v47, %v5367_v57 }
 0x63a   :  { %v9025_v59 = vunpack.i.h.bf16 %v9023_v21  ;;  %v9024_v27 = vunpack.i.l.bf16 %v9023_v21 }
 0x63b   :  { %8771 = vmatpush3.bf16.msra.mxu1 %v8770_v0 }
 0x63c   :  { %9087 = vrot.lane.b32.xlu1 %v9086_v61, %s9147_s9  ;;  %8773 = vmatprep.subr.bf16.mxu1 %v8772_v14  ;;  %v5134_v0 = vsel %vm5059_vm12, %v9024_v27, %v9025_v59  ;;  %v8800_v14 = vpack.c.bf16 %v5370_v60, %v5369_v34 }
 0x63d   :  { %9042 = vrot.lane.b32.xlu0 %v9041_v4, %s9148_s20  ;;  %v16585_v1 = vpop.permute.xlu1 %9027 }
 0x63e   :  { %v9030_v16 = vunpack.i.h.bf16 %v16585_v1  ;;  %v9029_v62 = vunpack.i.l.bf16 %v16585_v1 }
 0x63f   :  { %8775 = vmatpush3.bf16.msra.mxu1 %v8774_v39  ;;  %v5372_v39 = vld [vmem:[%s16873_s5 + $0x448] sm:$0xff] }
 0x640   :  { %8777 = vmatprep.subr.bf16.mxu1 %v8776_v42  ;;  %v5203_v45 = vsel %vm5059_vm12, %v9029_v62, %v9030_v16 }
 0x641   :  { %9047 = vrot.lane.b32.xlu0 %v9041_v4, %s9147_s9  ;;  %v5371_v4 = vld [vmem:[%s16873_s5 + $0x440] sm:$0xff] }
 0x642   :  { %v8804_v30 = vpack.c.bf16 %v5372_v39, %v5371_v4 }
 0x643   :  { %8779 = vmatpush3.bf16.msra.mxu1 %v8778_v31 }
 0x644   :  { %8781 = vmatprep.subr.bf16.mxu1 %v8780_v11 }
 0x645   :  { %9067 = vrot.lane.b32.xlu0 %v9076_v15, %s9147_s9 }
 0x647   :  { %8783 = vmatpush3.bf16.msra.mxu1 %v8782_v22 }
 0x648   :  { %8785 = vmatprep.subr.bf16.mxu1 %v8784_v23 }
 0x649   :  { %9072 = vrot.lane.b32.xlu0 %v16485_v54, %s9148_s20  ;;  %v9019_v54 = vunpack.i.l.bf16 %v9018_v29 }
 0x64b   :  { %8787 = vmatpush3.bf16.msra.mxu1 %v8786_v28 }
 0x64d   :  { %9082 = vrot.lane.b32.xlu0 %v9086_v61, %s9148_s20 }
 0x69b   :  { %v8993_v53 = vpop.permute.xlu0 %8992 }
 0x69c   :  { %v8995_v24 = vunpack.i.h.bf16 %v8993_v53  ;;  %v8994_v52 = vunpack.i.l.bf16 %v8993_v53 }
 0x69e   :  { %v5063_v49 = vsel %vm5059_vm12, %v8994_v52, %v8995_v24  ;;  %v16588_v18 = vpop.permute.xlu1 %9052 }
 0x69f   :  { %v9003_v25 = vpop.permute.xlu0 %9002  ;;  %5465 = vmatprep.mubr.f32.mxu0 %v5063_v49  ;;  %v9055_v7 = vunpack.i.h.bf16 %v16588_v18  ;;  %v9054_v28 = vunpack.i.l.bf16 %v16588_v18  ;;  %v8812_v18 = vpack.c.bf16 %v5376_v17, %v5375_v36  ;;  %v5981_v36 = vld [vmem:[%s16876_s8 + $0x18] sm:$0xff] }
 0x6a0   :  { %v9005_v55 = vunpack.i.h.bf16 %v9003_v25  ;;  %v9004_v56 = vunpack.i.l.bf16 %v9003_v25  ;;  %5466 = vmatmul.mubr.f32.gmra.mrb[18].mxu0 %v16386_v46  ;;  %v5158_v46 = vsel %vm5084_vm14, %v9019_v54, %v9020_v13  ;;  %v5377_v13 = vld [vmem:[%s16873_s5 + $0x470] sm:$0xff]  ;;  %v5378_v54 = vld [vmem:[%s16873_s5 + $0x478] sm:$0xff] }
 0x6a1   :  { %5620 = vmatprep.mubr.f32.mxu0 %v5157_v50  ;;  %v5160_v33 = vsel %vm5084_vm14, %v9054_v28, %v9055_v7  ;;  %v8816_v27 = vpack.c.bf16 %v5378_v54, %v5377_v13  ;;  %v5855_v28 = vld [vmem:[%s16875_s7 + $0x20] sm:$0xff] }
 0x6a2   :  { %v5133_v2 = vsel %vm5059_vm12, %v9004_v56, %v9005_v55  ;;  %v16599_v26 = vpop.permute.xlu1 %9057  ;;  %v5986_v54 = vld [vmem:[%s16876_s8 + $0x40] sm:$0xff] }
 0x6a3   :  { %v9013_v35 = vpop.permute.xlu0 %9012  ;;  %v9060_v52 = vunpack.i.h.bf16 %v16599_v26  ;;  %v9059_v49 = vunpack.i.l.bf16 %v16599_v26 }
 0x6a4   :  { %v9015_v15 = vunpack.i.h.bf16 %v9013_v35  ;;  %v9014_v63 = vunpack.i.l.bf16 %v9013_v35  ;;  %5621 = vmatmul.mubr.f32.vlgmr.msra.gmra.mrb[20].mxu0 %v5133_v2 }
 0x6a5   :  { %8791 = vmatpush3.bf16.msra.mxu0 %v16466_v40  ;;  %5625 = vmatprep.mubr.f32.mxu0 %v5158_v46  ;;  %v5136_v59 = vsel %vm5059_vm12, %v9059_v49, %v9060_v52  ;;  %v5857_v52 = vld [vmem:[%s16875_s7 + $0x30] sm:$0xff]  ;;  %v5858_v49 = vld [vmem:[%s16875_s7 + $0x38] sm:$0xff] }
 0x6a6   :  { %v5087_v48 = vsel %vm5084_vm14, %v9014_v63, %v9015_v15  ;;  %8793 = vmatprep.subr.bf16.mxu0 %v8792_v58  ;;  %v16618_v40 = vpop.permute.xlu1 %9062 }
 0x6a7   :  { %v9033_v10 = vpop.permute.xlu0 %9032  ;;  %5546 = vmatmul.mubr.f32.gmra.mrb[16].mxu1 %v5087_v48  ;;  %v9065_v25 = vunpack.i.h.bf16 %v16618_v40  ;;  %v9064_v50 = vunpack.i.l.bf16 %v16618_v40 }
 0x6a8   :  { %5550 = vmatprep.mubr.f32.mxu1 %v16413_v6  ;;  %5626 = vmatmul.mubr.f32.gmra.mrb[22].mxu0 %v5134_v0  ;;  %v9035_v41 = vunpack.i.h.bf16 %v9033_v10  ;;  %v9034_v37 = vunpack.i.l.bf16 %v9033_v10 }
 0x6a9   :  { %8795 = vmatpush3.bf16.msra.mxu0 %v8792_v58  ;;  %v5227_v35 = vsel %vm5084_vm14, %v9064_v50, %v9065_v25  ;;  %v5985_v25 = vld [vmem:[%s16876_s8 + $0x38] sm:$0xff]  ;;  %v8832_v50 = vpack.c.bf16 %v5858_v49, %v5857_v52 }
 0x6aa   :  { %8797 = vmatprep.subr.bf16.mxu0 %v8796_v9  ;;  %v16629_v31 = vpop.permute.xlu1 %9077  ;;  %v5204_v21 = vsel %vm5059_vm12, %v9034_v37, %v9035_v41 }
 0x6ab   :  { %v9038_v61 = vpop.permute.xlu0 %9037  ;;  %v9080_v63 = vunpack.i.h.bf16 %v16629_v31  ;;  %v9079_v46 = vunpack.i.l.bf16 %v16629_v31 }
 0x6ac   :  { %v9040_v6 = vunpack.i.h.bf16 %v9038_v61  ;;  %v9039_v42 = vunpack.i.l.bf16 %v9038_v61 }
 0x6ad   :  { %8799 = vmatpush3.bf16.msra.mxu0 %v8796_v9  ;;  %v5229_v0 = vsel %vm5084_vm14, %v9079_v46, %v9080_v63  ;;  %v5991_v63 = vld [vmem:[%s16876_s8 + $0x68] sm:$0xff] }
 0x6ae   :  { %v5088_v8 = vsel %vm5084_vm14, %v9039_v42, %v9040_v6  ;;  %8801 = vmatprep.subr.bf16.mxu0 %v8800_v14  ;;  %v9088_v24 = vpop.permute.xlu1 %9087 }
 0x6af   :  { %v9043_v11 = vpop.permute.xlu0 %9042  ;;  %5551 = vmatmul.mubr.f32.gmra.mrb[18].mxu1 %v5088_v8  ;;  %v9090_v55 = vunpack.i.h.bf16 %v9088_v24  ;;  %v9089_v56 = vunpack.i.l.bf16 %v9088_v24 }
 0x6b0   :  { %v9045_v20 = vunpack.i.h.bf16 %v9043_v11  ;;  %v9044_v22 = vunpack.i.l.bf16 %v9043_v11  ;;  %5705 = vmatprep.mubr.f32.mxu1 %v5203_v45  ;;  %v5851_v45 = vld [vmem:[%s16875_s7] sm:$0xff] }
 0x6b1   :  { %8803 = vmatpush3.bf16.msra.mxu0 %v8800_v14  ;;  %v5206_v57 = vsel %vm5059_vm12, %v9089_v56, %v9090_v55  ;;  %v16676_v14 = vld [vmem:[%s16874_s6] ss:$0 sm:$0xff]  ;;  %v5987_v55 = vld [vmem:[%s16876_s8 + $0x48] sm:$0xff] }
 0x6b2   :  { %v5159_v23 = vsel %vm5084_vm14, %v9044_v22, %v9045_v20  ;;  %8805 = vmatprep.subr.bf16.mxu0 %v8804_v30  ;;  %v5453_v4 = vadd.f32 %v16272_v43, %v16676_v14  ;;  %v5852_v43 = vld [vmem:[%s16875_s7 + $0x8] sm:$0xff]  ;;  %v5854_v20 = vld [vmem:[%s16875_s7 + $0x18] sm:$0xff]  ;;  %v5978_v22 = vld [vmem:[%s16876_s8] sm:$0xff] }
 0x6b3   :  { %v9048_v29 = vpop.permute.xlu0 %9047  ;;  %5630 = vmatprep.mubr.f32.mxu0 %v5159_v23  ;;  %5706 = vmatmul.mubr.f32.vlgmr.msra.gmra.mrb[20].mxu1 %v16266_v38  ;;  %v8820_v19 = vpack.c.bf16 %v5852_v43, %v5851_v45  ;;  %v5979_v23 = vld [vmem:[%s16876_s8 + $0x8] sm:$0xff] }
 0x6b4   :  { %v9050_v1 = vunpack.i.h.bf16 %v9048_v29  ;;  %v9049_v53 = vunpack.i.l.bf16 %v9048_v29  ;;  %5710 = vmatprep.mubr.f32.mxu1 %v5204_v21  ;;  %v16705_v7 = vpack.c.bf16 %v5979_v23, %v5978_v22  ;;  %v5856_v29 = vld [vmem:[%s16875_s7 + $0x28] sm:$0xff]  ;;  %v5980_v21 = vld [vmem:[%s16876_s8 + $0x10] sm:$0xff] }
 0x6b5   :  { %8807 = vmatpush3.bf16.msra.mxu0 %v8804_v30  ;;  %8821 = vmatprep.subr.bf16.mxu1 %v8820_v19  ;;  %v16720_v17 = vpack.c.bf16 %v5981_v36, %v5980_v21  ;;  %v8828_v24 = vpack.c.bf16 %v5856_v29, %v5855_v28 }
 0x6b6   :  { %v5135_v38 = vsel %vm5059_vm12, %v9049_v53, %v9050_v1  ;;  %8809 = vmatprep.subr.bf16.mxu0 %v8808_v44  ;;  %8823 = vmatpush3.bf16.msra.mxu1 %v8820_v19  ;;  %v5982_v1 = vld [vmem:[%s16876_s8 + $0x20] sm:$0xff]  ;;  %v5983_v53 = vld [vmem:[%s16876_s8 + $0x28] sm:$0xff] }
 0x6b7   :  { %v9068_v51 = vpop.permute.xlu0 %9067  ;;  %5631 = vmatmul.mubr.f32.gmra.mrb[24].mxu0 %v5135_v38  ;;  %5711 = vmatmul.mubr.f32.gmra.mrb[22].mxu1 %v16458_v5  ;;  %v16736_v38 = vpack.c.bf16 %v5983_v53, %v5982_v1 }
 0x6b8   :  { %v9070_v2 = vunpack.i.h.bf16 %v9068_v51  ;;  %v9069_v58 = vunpack.i.l.bf16 %v9068_v51  ;;  %5635 = vmatprep.mubr.f32.mxu0 %v5160_v33  ;;  %v5859_v51 = vld [vmem:[%s16875_s7 + $0x40] sm:$0xff]  ;;  %v5860_v33 = vld [vmem:[%s16875_s7 + $0x48] sm:$0xff] }
 0x6b9   :  { %8811 = vmatpush3.bf16.msra.mxu0 %v8808_v44  ;;  %v8824_v44 = vpack.c.bf16 %v5854_v20, %v5853_v12  ;;  %v8836_v56 = vpack.c.bf16 %v5860_v33, %v5859_v51 }
 0x6ba   :  { %v5205_v5 = vsel %vm5059_vm12, %v9069_v58, %v9070_v2  ;;  %8813 = vmatprep.subr.bf16.mxu0 %v8812_v18  ;;  %v5861_v2 = vld [vmem:[%s16875_s7 + $0x50] sm:$0xff]  ;;  %v5862_v58 = vld [vmem:[%s16875_s7 + $0x58] sm:$0xff] }
 0x6bb   :  { %v9073_v26 = vpop.permute.xlu0 %9072  ;;  %5636 = vmatmul.mubr.f32.gmra.mrb[26].mxu0 %v5136_v59  ;;  %5715 = vmatprep.mubr.f32.mxu1 %v5205_v5  ;;  %v16768_v59 = vpack.c.bf16 %v5987_v55, %v5986_v54  ;;  %v5988_v5 = vld [vmem:[%s16876_s8 + $0x50] sm:$0xff] }
 0x6bc   :  { %5716 = vmatmul.mubr.f32.gmra.mrb[24].mxu1 %v16496_v32  ;;  %6402 = vmatprep.mubr.f32.mxu0 %v5227_v35  ;;  %v9075_v47 = vunpack.i.h.bf16 %v9073_v26  ;;  %v9074_v15 = vunpack.i.l.bf16 %v9073_v26  ;;  %v8840_v26 = vpack.c.bf16 %v5862_v58, %v5861_v2  ;;  %v5863_v35 = vld [vmem:[%s16875_s7 + $0x60] sm:$0xff] }
 0x6bd   :  { %8815 = vmatpush3.bf16.msra.mxu0 %v8812_v18  ;;  %5720 = vmatprep.mubr.f32.mxu1 %v5206_v57  ;;  %v5984_v18 = vld [vmem:[%s16876_s8 + $0x30] sm:$0xff]  ;;  %v5864_v57 = vld [vmem:[%s16875_s7 + $0x68] sm:$0xff] }
 0x6be   :  { %8817 = vmatprep.subr.bf16.mxu0 %v8816_v27  ;;  %v5228_v32 = vsel %vm5084_vm14, %v9074_v15, %v9075_v47  ;;  %8825 = vmatprep.subr.bf16.mxu1 %v8824_v44  ;;  %v16752_v13 = vpack.c.bf16 %v5985_v25, %v5984_v18  ;;  %v5990_v15 = vld [vmem:[%s16876_s8 + $0x60] sm:$0xff]  ;;  %v8844_v46 = vpack.c.bf16 %v5864_v57, %v5863_v35 }
 0x6bf   :  { %v9083_v48 = vpop.permute.xlu0 %9082  ;;  %8827 = vmatpush3.bf16.msra.mxu1 %v8824_v44 }
 0x6c0   :  { %5721 = vmatmul.mubr.f32.gmra.mrb[26].mxu1 %v16522_v3  ;;  %v9085_v9 = vunpack.i.h.bf16 %v9083_v48  ;;  %v9084_v10 = vunpack.i.l.bf16 %v9083_v48  ;;  %8829 = vmatprep.subr.bf16.mxu1 %v8828_v24  ;;  %v5865_v48 = vld [vmem:[%s16875_s7 + $0x70] sm:$0xff] }
 0x6c1   :  { %8819 = vmatpush3.bf16.msra.mxu0 %v8816_v27  ;;  %v5989_v27 = vld [vmem:[%s16876_s8 + $0x58] sm:$0xff] }
 0x6c2   :  { %v5230_v34 = vsel %vm5084_vm14, %v9084_v10, %v9085_v9  ;;  %8853 = vmatprep.subr.bf16.mxu0 %v16705_v7  ;;  %v16784_v47 = vpack.c.bf16 %v5989_v27, %v5988_v5  ;;  %v5866_v9 = vld [vmem:[%s16875_s7 + $0x78] sm:$0xff]  ;;  %v16800_v10 = vpack.c.bf16 %v5991_v63, %v5990_v15 }
 0x6c3   :  { %8831 = vmatpush3.bf16.msra.mxu1 %v8828_v24 }
 0x6c4   :  { %6403 = vmatmul.mubr.f32.vlgmr.msra.gmra.mrb[28].mxu0 %v5228_v32  ;;  %8833 = vmatprep.subr.bf16.mxu1 %v8832_v50  ;;  %v8848_v32 = vpack.c.bf16 %v5866_v9, %v5865_v48 }
 0x6c5   :  { %6405 = vmatprep.mubr.f32.mxu0 %v5229_v0  ;;  %8855 = vmatpush3.bf16.msra.mxu0 %v16705_v7 }
 0x6c6   :  { %8857 = vmatprep.subr.bf16.mxu0 %v16720_v17 }
 0x6c7   :  { %8835 = vmatpush3.bf16.msra.mxu1 %v8832_v50 }
 0x6c8   :  { %6406 = vmatmul.mubr.f32.gmra.mrb[30].mxu0 %v5230_v34  ;;  %8837 = vmatprep.subr.bf16.mxu1 %v8836_v56 }
 0x6c9   :  { %8859 = vmatpush3.bf16.msra.mxu0 %v16720_v17 }
 0x6ca   :  { %8861 = vmatprep.subr.bf16.mxu0 %v16736_v38 }
 0x6cb   :  { %8839 = vmatpush3.bf16.msra.mxu1 %v8836_v56 }
 0x6cc   :  { %8841 = vmatprep.subr.bf16.mxu1 %v8840_v26 }
 0x6cd   :  { %8863 = vmatpush3.bf16.msra.mxu0 %v16736_v38 }
 0x6ce   :  { %8865 = vmatprep.subr.bf16.mxu0 %v16752_v13 }
 0x6cf   :  { %8843 = vmatpush3.bf16.msra.mxu1 %v8840_v26 }
 0x6d0   :  { %8845 = vmatprep.subr.bf16.mxu1 %v8844_v46 }
 0x6d1   :  { %8867 = vmatpush3.bf16.msra.mxu0 %v16752_v13 }
 0x6d2   :  { %8869 = vmatprep.subr.bf16.mxu0 %v16768_v59 }
 0x6d3   :  { %8847 = vmatpush3.bf16.msra.mxu1 %v8844_v46 }
 0x6d4   :  { %8849 = vmatprep.subr.bf16.mxu1 %v8848_v32 }
 0x6d5   :  { %8871 = vmatpush3.bf16.msra.mxu0 %v16768_v59 }
 0x6d6   :  { %8873 = vmatprep.subr.bf16.mxu0 %v16784_v47 }
 0x6d7   :  { %8851 = vmatpush3.bf16.msra.mxu1 %v8848_v32 }
 0x6d8   :  { %8884 = vmatprep.subr.bf16.mxu1 %v16705_v7 }
 0x6d9   :  { %8875 = vmatpush3.bf16.msra.mxu0 %v16784_v47 }
 0x6da   :  { %8877 = vmatprep.subr.bf16.mxu0 %v16800_v10 }
 0x6dd   :  { %8879 = vmatpush3.bf16.msra.mxu0 %v16800_v10 }
 0x6fd   :  { %v6169_v60 = vpop.f32.mrb[14].mxu0 }
 0x6fe   :  { %v6170_v40 = vpop.f32.mrb[15].mxu0 }
 0x6ff   :  { %v6171_v3 = vadd.f32 %v6170_v40, %v6169_v60 }
 0x700   :  { %v6210_v16 = vpop.f32.mrb[12].mxu1 }
 0x701   :  { %v6172_v62 = vpop.f32.mrb[16].mxu0  ;;  %v6211_v61 = vpop.f32.mrb[13].mxu1  ;;  %v5458_v37 = vadd.f32 %v6171_v3, %v16676_v14 }
 0x702   :  { %v6212_v39 = vadd.f32 %v6211_v61, %v6210_v16  ;;  %v6173_v6 = vpop.f32.mrb[17].mxu0 }
 0x703   :  { %v16680_v42 = vadd.f32 %v6173_v6, %v6172_v62 }
 0x704   :  { %v16682_v8 = vadd.f32 %v6212_v39, %v5453_v4 }
 0x705   :  { %v5463_v6 = vadd.f32 %v16680_v42, %v16676_v14 }
 0x708   :  { %v6213_v30 = vpop.f32.mrb[14].mxu1 }
 0x709   :  { %v6214_v41 = vpop.f32.mrb[15].mxu1 }
 0x70a   :  { %v6215_v31 = vadd.f32 %v6214_v41, %v6213_v30 }
 0x70c   :  { %v16685_v11 = vadd.f32 %v6215_v31, %v5458_v37 }
 0x773   :  { %v6175_v0 = vpop.f32.mrb[18].mxu0 }
 0x774   :  { %v6176_v34 = vpop.f32.mrb[19].mxu0 }
 0x775   :  { %v6177_v60 = vadd.f32 %v6176_v34, %v6175_v0  ;;  %v5992_v0 = vld [vmem:[%s16876_s8 + $0x70] sm:$0xff]  ;;  %v5993_v34 = vld [vmem:[%s16876_s8 + $0x78] sm:$0xff]  ;;  %s9149_s8 = smov 64  }
 0x777   :  { %v6254_v40 = vpop.f32.mrb[20].mxu0  ;;  %v5468_v19 = vadd.f32 %v6177_v60, %v16676_v14 }
 0x778   :  { %v6255_v3 = vpop.f32.mrb[21].mxu0 }
 0x779   :  { %v6256_v16 = vadd.f32 %v6255_v3, %v6254_v40  ;;  %v8880_v40 = vpack.c.bf16 %v5993_v34, %v5992_v0 }
 0x77a   :  { %v6216_v62 = vpop.f32.mrb[16].mxu1 }
 0x77b   :  { %v5623_v61 = vadd.f32 %v6256_v16, %v16682_v8  ;;  %v6217_v4 = vpop.f32.mrb[17].mxu1  ;;  %v6257_v39 = vpop.f32.mrb[22].mxu0  ;;  %8881 = vmatprep.subr.bf16.mxu0 %v8880_v40 }
 0x77c   :  { %v6218_v30 = vadd.f32 %v6217_v4, %v6216_v62  ;;  %v6258_v41 = vpop.f32.mrb[23].mxu0  ;;  %8883 = vmatpush3.bf16.msra.mxu0 %v8880_v40 }
 0x77d   :  { %v6259_v37 = vadd.f32 %v6258_v41, %v6257_v39 }
 0x77e   :  { %v5548_v31 = vadd.f32 %v6218_v30, %v5463_v6 }
 0x77f   :  { %v5628_v45 = vadd.f32 %v6259_v37, %v16685_v11 }
 0x782   :  { %v6219_v43 = vpop.f32.mrb[18].mxu1 }
 0x783   :  { %v6220_v12 = vpop.f32.mrb[19].mxu1 }
 0x784   :  { %v6221_v20 = vadd.f32 %v6220_v12, %v6219_v43  ;;  %v6129_v43 = vld [vmem:[#allocation2] ss:$0 sm:$0xff]  ;;  %v9150_v12 = vmov 0  }
 0x785   :  { %9101 = vset.pattern.permute.xlu0 %v9150_v12 }
 0x786   :  { %v5553_v22 = vadd.f32 %v6221_v20, %v5468_v19  ;;  %v6298_v23 = vpop.f32.mrb[20].mxu1 }
 0x787   :  { %v6299_v44 = vpop.f32.mrb[21].mxu1 }
 0x788   :  { %v6300_v8 = vadd.f32 %v6299_v44, %v6298_v23 }
 0x78a   :  { %v6260_v28 = vpop.f32.mrb[24].mxu0  ;;  %v6301_v29 = vpop.f32.mrb[22].mxu1  ;;  %v5708_v21 = vadd.f32 %v6300_v8, %v5623_v61 }
 0x78b   :  { %v6261_v36 = vpop.f32.mrb[25].mxu0  ;;  %v6302_v42 = vpop.f32.mrb[23].mxu1 }
 0x78c   :  { %v6262_v1 = vadd.f32 %v6261_v36, %v6260_v28  ;;  %v6303_v53 = vadd.f32 %v6302_v42, %v6301_v29 }
 0x78e   :  { %v5633_v24 = vadd.f32 %v6262_v1, %v5548_v31  ;;  %v6263_v52 = vpop.f32.mrb[26].mxu0  ;;  %v5713_v49 = vadd.f32 %v6303_v53, %v5628_v45 }
 0x78f   :  { %v6264_v11 = vpop.f32.mrb[27].mxu0  ;;  %v6304_v18 = vpop.f32.mrb[24].mxu1 }
 0x790   :  { %v6265_v25 = vadd.f32 %v6264_v11, %v6263_v52  ;;  %v6305_v50 = vpop.f32.mrb[25].mxu1 }
 0x791   :  { %v6306_v14 = vadd.f32 %v6305_v50, %v6304_v18 }
 0x792   :  { %v5638_v51 = vadd.f32 %v6265_v25, %v5553_v22 }
 0x793   :  { %v6307_v33 = vpop.f32.mrb[26].mxu1  ;;  %v5718_v54 = vadd.f32 %v6306_v14, %v5633_v24 }
 0x794   :  { %v6308_v55 = vpop.f32.mrb[27].mxu1 }
 0x795   :  { %v6309_v56 = vadd.f32 %v6308_v55, %v6307_v33 }
 0x797   :  { %v6404_v2 = vpop.f32.mrb[28].mxu0  ;;  %v5723_v58 = vadd.f32 %v6309_v56, %v5638_v51 }
 0x798   :  { %v5798_v5 = vadd.f32 %v6404_v2, %v5713_v49  ;;  %v5792_v27 = vpop.f32.mrb[29].mxu0 }
 0x799   :  { %v5793_v26 = vadd.f32 %v5792_v27, %v5708_v21 }
 0x79a   :  { %vm5812_vm15 = vcmp.gt.f32.partialorder %v5798_v5, 0.0  ;;  %v5816_v35 = vmul.f32 0.2, %v5798_v5 }
 0x79b   :  { %vm5811_vm0 = vcmp.gt.f32.partialorder %v5793_v26, 0.0  ;;  %v5815_v57 = vmul.f32 0.2, %v5793_v26  ;;  %v6407_v15 = vpop.f32.mrb[30].mxu0 }
 0x79c   :  { %v5808_v63 = vadd.f32 %v6407_v15, %v5723_v58  ;;  %v5802_v46 = vpop.f32.mrb[31].mxu0  ;;  %v5820_v48 = vsel %vm5812_vm15, %v5798_v5, %v5816_v35 }
 0x79d   :  { %v5819_v9 = vsel %vm5811_vm0, %v5793_v26, %v5815_v57  ;;  %v5803_v32 = vadd.f32 %v5802_v46, %v5718_v54  ;;  %v5828_v16 = vrot.slane %v5820_v48, 2 }
 0x79e   :  { %vm5814_vm1 = vcmp.gt.f32.partialorder %v5808_v63, 0.0  ;;  %v5818_v60 = vmul.f32 0.2, %v5808_v63  ;;  %v5827_v62 = vrot.slane %v5819_v9, 2 }
 0x79f   :  { %vm5813_vm2 = vcmp.gt.f32.partialorder %v5803_v32, 0.0  ;;  %v5817_v3 = vmul.f32 0.2, %v5803_v32 }
 0x7a0   :  { %v5822_v61 = vsel %vm5814_vm1, %v5808_v63, %v5818_v60  ;;  %v5829_v41 = vsel %vm4972_vm10, %v5827_v62, %v5828_v16 }
 0x7a1   :  { %v5821_v4 = vsel %vm5813_vm2, %v5803_v32, %v5817_v3  ;;  %v5832_v39 = vrot.slane %v5822_v61, 2 }
 0x7a2   :  { %v5830_v6 = vrot.slane %v5821_v4, 2 }
 0x7a4   :  { %v5833_v30 = vsel %vm4972_vm10, %v5830_v6, %v5832_v39  ;;  %v5831_v37 = vsel %vm4972_vm10, %v5828_v16, %v5830_v6 }
 0x7a5   :  { %v9096_v31 = vpack.i.bf16 %v5832_v39, %v5833_v30  ;;  %v9091_v45 = vpack.i.bf16 %v5831_v37, %v5829_v41 }
 0x7a7   :  { %9097 = vrot.lane.b32.xlu1 %v9096_v31, %s9149_s8  ;;  %9092 = vrot.lane.b32.xlu0 %v9091_v45, %s9149_s8 }
 0x7ab   :  { %5874 = vperm.xlu0 %9101, %v6129_v43  }
 0x819   :  { %v9098_v19 = vpop.permute.xlu1 %9097  ;;  %v9093_v20 = vpop.permute.xlu0 %9092 }
 0x81a   :  { %v9100_v22 = vunpack.i.h.bf16 %v9098_v19  ;;  %v9099_v23 = vunpack.i.l.bf16 %v9098_v19  ;;  %v9095_v44 = vunpack.i.h.bf16 %v9093_v20  ;;  %v9094_v8 = vunpack.i.l.bf16 %v9093_v20 }
 0x81c   :  { %v5847_v28 = vsel %vm5846_vm3, %v5819_v9, %v9094_v8  ;;  %v5848_v29 = vsel %vm5846_vm3, %v5820_v48, %v9095_v44  ;;  %v5849_v21 = vsel %vm5846_vm3, %v5821_v4, %v9099_v23  ;;  %v5850_v36 = vsel %vm5846_vm3, %v5822_v61, %v9100_v22 }
 0x81d   :  { %6440 = vmatprep.mubr.f32.mxu1 %v5847_v28  ;;  %v5998_v42 = vrot.slane %v5847_v28, 2  ;;  %v6001_v1 = vrot.slane %v5849_v21, 2  ;;  %v5999_v53 = vrot.slane %v5848_v29, 2  ;;  %v6003_v24 = vrot.slane %v5850_v36, 2 }
 0x81e   :  { %6441 = vmatmul.mubr.f32.vlgmr.msra.gmra.mrb[28].mxu1 %v5848_v29 }
 0x81f   :  { %8892 = vmatpush3.bf16.msra.mxu1 %v16705_v7  ;;  %6443 = vmatprep.mubr.f32.mxu1 %v5849_v21  ;;  %v6000_v52 = vsel %vm4972_vm10, %v5998_v42, %v5999_v53  ;;  %v6002_v49 = vsel %vm4972_vm10, %v5999_v53, %v6001_v1  ;;  %v6004_v11 = vsel %vm4972_vm10, %v6001_v1, %v6003_v24  ;;  %vm6110_vm10 = vcmask 228352  }
 0x820   :  { %6478 = vmatprep.mubr.f32.mxu0 %v6000_v52  ;;  %8885 = vmatprep.subr.bf16.mxu1 %v16720_v17 }
 0x821   :  { %6479 = vmatmul.mubr.f32.vlgmr.msra.gmra.mrb[32].mxu0 %v6002_v49 }
 0x822   :  { %6444 = vmatmul.mubr.f32.gmra.mrb[30].mxu1 %v5850_v36 }
 0x823   :  { %8893 = vmatpush3.bf16.msra.mxu1 %v16720_v17  ;;  %6481 = vmatprep.mubr.f32.mxu1 %v6004_v11 }
 0x824   :  { %8886 = vmatprep.subr.bf16.mxu1 %v16736_v38 }
 0x827   :  { %8894 = vmatpush3.bf16.msra.mxu1 %v16736_v38 }
 0x828   :  { %8887 = vmatprep.subr.bf16.mxu1 %v16752_v13 }
 0x82a   :  { %v5875_v7 = vpop.permute.xlu0 %5874 }
 0x82b   :  { %8895 = vmatpush3.bf16.msra.mxu1 %v16752_v13 }
 0x82c   :  { %8888 = vmatprep.subr.bf16.mxu1 %v16768_v59 }
 0x82f   :  { %8896 = vmatpush3.bf16.msra.mxu1 %v16768_v59 }
 0x830   :  { %8889 = vmatprep.subr.bf16.mxu1 %v16784_v47 }
 0x833   :  { %8897 = vmatpush3.bf16.msra.mxu1 %v16784_v47 }
 0x834   :  { %8890 = vmatprep.subr.bf16.mxu1 %v16800_v10 }
 0x837   :  { %8898 = vmatpush3.bf16.msra.mxu1 %v16800_v10 }
 0x838   :  { %8891 = vmatprep.subr.bf16.mxu1 %v8880_v40 }
 0x83b   :  { %8899 = vmatpush3.bf16.msra.mxu1 %v8880_v40 }
 0x83e   :  { %6482 = vmatmul.mubr.f32.vlgmr.msra.gmra.mrb[32].mxu1 %v6003_v24 }
 0x8f1   :  { %v6442_v17 = vpop.f32.mrb[28].mxu1 }
 0x8f2   :  { %v5949_v38 = vadd.f32 %v6442_v17, %v5875_v7  ;;  %v5943_v18 = vpop.f32.mrb[29].mxu1 }
 0x8f3   :  { %v5944_v13 = vadd.f32 %v5943_v18, %v5875_v7 }
 0x8f4   :  { %vm5963_vm4 = vcmp.gt.f32.partialorder %v5949_v38, 0.0  ;;  %v5967_v25 = vmul.f32 0.2, %v5949_v38  ;;  %v6480_v50 = vpop.f32.mrb[32].mxu0 }
 0x8f5   :  { %vm5962_vm5 = vcmp.gt.f32.partialorder %v5944_v13, 0.0  ;;  %v5966_v59 = vmul.f32 0.2, %v5944_v13  ;;  %v6081_v14 = vadd.f32 %v6480_v50, %v5875_v7  ;;  %v6445_v51 = vpop.f32.mrb[30].mxu1  ;;  %v6075_v47 = vpop.f32.mrb[33].mxu0 }
 0x8f6   :  { %v5971_v33 = vsel %vm5963_vm4, %v5949_v38, %v5967_v25  ;;  %v5959_v54 = vadd.f32 %v6445_v51, %v5875_v7  ;;  %v6076_v55 = vadd.f32 %v6075_v47, %v5875_v7  ;;  %v5953_v10 = vpop.f32.mrb[31].mxu1 }
 0x8f7   :  { %9102 = vtanh.f32 %v5971_v33  ;;  %v5970_v56 = vsel %vm5962_vm5, %v5944_v13, %v5966_v59  ;;  %vm6095_vm6 = vcmp.gt.f32.partialorder %v6081_v14, 0.0  ;;  %v6099_v2 = vmul.f32 0.2, %v6081_v14 }
 0x8f8   :  { %9104 = vtanh.f32 %v5970_v56  ;;  %vm5965_vm7 = vcmp.gt.f32.partialorder %v5959_v54, 0.0  ;;  %v5969_v58 = vmul.f32 0.2, %v5959_v54  ;;  %vm6094_vm8 = vcmp.gt.f32.partialorder %v6076_v55, 0.0 }
 0x8f9   :  { %v6103_v5 = vsel %vm6095_vm6, %v6081_v14, %v6099_v2  ;;  %v6098_v27 = vmul.f32 0.2, %v6076_v55  ;;  %v5954_v26 = vadd.f32 %v5953_v10, %v5875_v7 }
 0x8fa   :  { %9106 = vtanh.f32 %v6103_v5  ;;  %v5973_v35 = vsel %vm5965_vm7, %v5959_v54, %v5969_v58 }
 0x8fb   :  { %9108 = vtanh.f32 %v5973_v35  ;;  %v6102_v57 = vsel %vm6094_vm8, %v6076_v55, %v6098_v27  ;;  %vm5964_vm9 = vcmp.gt.f32.partialorder %v5954_v26, 0.0  ;;  %v5968_v15 = vmul.f32 0.2, %v5954_v26 }
 0x8fc   :  { %9110 = vtanh.f32 %v6102_v57 }
 0x8fd   :  { %v5972_v63 = vsel %vm5964_vm9, %v5954_v26, %v5968_v15 }
 0x8fe   :  { %9112 = vtanh.f32 %v5972_v63 }
 0x901   :  { %v9103_v46 = vpop.eup %9102 }
 0x902   :  { %v9105_v48 = vpop.eup %9104  ;;  %6112 = vst.msk [vmem:[%s16878_s10 + $0x8] sm:$0xff] %vm6110_vm10, %v9103_v46 }
 0x903   :  { %6111 = vst.msk [vmem:[%s16878_s10] sm:$0xff] %vm6110_vm10, %v9105_v48 }
 0x904   :  { %v9107_v9 = vpop.eup %9106 }
 0x905   :  { %v9109_v32 = vpop.eup %9108  ;;  %6131 = vst.msk [vmem:[%s16878_s10 + $0x28] sm:$0xff] %vm6110_vm10, %v9107_v9 }
 0x906   :  { %v9111_v0 = vpop.eup %9110  ;;  %6115 = vst.msk [vmem:[%s16878_s10 + $0x18] sm:$0xf] %vm6114_vm11, %v9109_v32 }
 0x907   :  { %6130 = vst.msk [vmem:[%s16878_s10 + $0x20] sm:$0xff] %vm6110_vm10, %v9111_v0 }
 0x908   :  { %v9113_v34 = vpop.eup %9112 }
 0x909   :  { %6113 = vst.msk [vmem:[%s16878_s10 + $0x10] sm:$0xff] %vm6110_vm10, %v9113_v34 }
 0x911   :  { %v6483_v60 = vpop.f32.mrb[32].mxu1 }
 0x912   :  { %v6091_v40 = vadd.f32 %v6483_v60, %v5875_v7  ;;  %v6085_v3 = vpop.f32.mrb[33].mxu1 }
 0x913   :  { %v6086_v16 = vadd.f32 %v6085_v3, %v5875_v7 }
 0x914   :  { %vm6097_vm12 = vcmp.gt.f32.partialorder %v6091_v40, 0.0  ;;  %v6101_v62 = vmul.f32 0.2, %v6091_v40 }
 0x915   :  { %vm6096_vm13 = vcmp.gt.f32.partialorder %v6086_v16, 0.0  ;;  %v6100_v61 = vmul.f32 0.2, %v6086_v16 }
 0x916   :  { %v6105_v4 = vsel %vm6097_vm12, %v6091_v40, %v6101_v62 }
 0x917   :  { %9114 = vtanh.f32 %v6105_v4  ;;  %v6104_v39 = vsel %vm6096_vm13, %v6086_v16, %v6100_v61 }
 0x918   :  { %9116 = vtanh.f32 %v6104_v39 }
 0x921   :  { %v9115_v6 = vpop.eup %9114 }
 0x922   :  { %v9117_v30 = vpop.eup %9116  ;;  %6133 = vst.msk [vmem:[%s16878_s10 + $0x38] sm:$0xf] %vm6114_vm11, %v9115_v6 }
 0x923   :  { %6132 = vst.msk [vmem:[%s16878_s10 + $0x30] sm:$0xff] %vm6110_vm10, %v9117_v30 }
 0x924   :  { %6125 = vsyncpa [#allocation4], 1 }

</bundles_post_ra>
